<compile_context>
chip_gen: v6e
topology: v6e:2x2x1
jax: 0.10.0
libtpu: 0.0.40
codegen_flags: <defaults>
</compile_context>

<pallas_src>
import functools

import jax
import jax.numpy as jnp
from jax.experimental import pallas as pl
from jax.experimental.pallas import tpu as pltpu


# ----------------------------------------------------------------------------
# Fused core kernel: stem conv -> basic block (residual) -> avgpool -> FC
# One grid step == one image.
# ----------------------------------------------------------------------------
def _fused_core_kernel(x_ref, ws_ref, bs_ref, w1_ref, b1_ref, w2_ref, b2_ref,
                       wf_ref, bf_ref, o_ref, pbuf0, pbuf1, *, H, W, Cp, Fp):
    HW = H * W

    def conv3x3(src_ref, w_ref):
        # 'same' 3x3 conv as 9 tap matmuls on the MXU, f32 accumulation.
        # src_ref: (H+2, W+2, Cp) zero-halo activation; w_ref: (9, Cp, Cp) bf16.
        acc = None
        for di in range(3):
            for dj in range(3):
                xt = src_ref[di:di + H, dj:dj + W, :]            # (H, W, Cp) f32
                xt = xt.reshape(HW, Cp).astype(jnp.bfloat16)
                t = di * 3 + dj
                d = jnp.dot(xt, w_ref[t], preferred_element_type=jnp.float32)
                acc = d if acc is None else acc + d
        return acc                                               # (HW, Cp) f32

    def store_padded(dst_ref, act):
        # Write activation into the center of a zeroed halo buffer.
        dst_ref[...] = jnp.zeros((H + 2, W + 2, Cp), jnp.float32)
        dst_ref[1:1 + H, 1:1 + W, :] = act.reshape(H, W, Cp)

    # --- stem: conv3x3 + folded-BN bias + ReLU --------------------------------
    h0 = jnp.maximum(conv3x3(x_ref, ws_ref) + bs_ref[...], 0.0)
    store_padded(pbuf0, h0)

    # --- basic block, conv 1 --------------------------------------------------
    h1 = jnp.maximum(conv3x3(pbuf0, w1_ref) + b1_ref[...], 0.0)
    store_padded(pbuf1, h1)

    # --- basic block, conv 2 + residual (identity = stem output) + ReLU ------
    ident = pbuf0[1:1 + H, 1:1 + W, :].reshape(HW, Cp)
    h2 = jnp.maximum(conv3x3(pbuf1, w2_ref) + b2_ref[...] + ident, 0.0)

    # --- global average pool + FC head (num_classes = feature_cnt) -----------
    pooled = jnp.mean(h2, axis=0, keepdims=True)                 # (1, Cp) f32
    pooled8 = jnp.broadcast_to(pooled, (8, Cp)).astype(jnp.bfloat16)
    logits = jnp.dot(pooled8, wf_ref[...],
                     preferred_element_type=jnp.float32) + bf_ref[...]
    o_ref[...] = logits                                          # (8, Fp), rows identical


# ----------------------------------------------------------------------------
# Wrapper: layout plumbing + single pallas_call
# ----------------------------------------------------------------------------
@functools.partial(jax.jit, static_argnames=("feature_cnt",))
def interprinter_forward(x_nchw, params, *, feature_cnt):
    """neko_visual_only_interprinter.forward: returns core(x) of shape (N, feature_cnt)."""
    N, Cin, H, W = x_nchw.shape
    Cp = params["w_stem"].shape[-1]
    Fp = params["w_fc"].shape[-1]

    # NCHW -> NHWC (lane = channels), zero-pad channels to Cp lanes, add the
    # 1-pixel 'same'-conv halo.  Pure layout plumbing, done once.
    x = jnp.transpose(x_nchw, (0, 2, 3, 1)).astype(jnp.float32)
    x = jnp.pad(x, ((0, 0), (1, 1), (1, 1), (0, Cp - Cin)))

    kernel = functools.partial(_fused_core_kernel, H=H, W=W, Cp=Cp, Fp=Fp)
    out = pl.pallas_call(
        kernel,
        out_shape=jax.ShapeDtypeStruct((N, 8, Fp), jnp.float32),
        grid_spec=pltpu.PrefetchScalarGridSpec(
            num_scalar_prefetch=0,
            grid=(N,),
            in_specs=[
                pl.BlockSpec((None, H + 2, W + 2, Cp), lambda n: (n, 0, 0, 0)),
                pl.BlockSpec((9, Cp, Cp), lambda n: (0, 0, 0)),   # stem weight
                pl.BlockSpec((1, Cp), lambda n: (0, 0)),          # stem bias
                pl.BlockSpec((9, Cp, Cp), lambda n: (0, 0, 0)),   # block conv1 w
                pl.BlockSpec((1, Cp), lambda n: (0, 0)),          # block conv1 b
                pl.BlockSpec((9, Cp, Cp), lambda n: (0, 0, 0)),   # block conv2 w
                pl.BlockSpec((1, Cp), lambda n: (0, 0)),          # block conv2 b
                pl.BlockSpec((Cp, Fp), lambda n: (0, 0)),         # fc weight
                pl.BlockSpec((1, Fp), lambda n: (0, 0)),          # fc bias
            ],
            out_specs=pl.BlockSpec((None, 8, Fp), lambda n: (n, 0, 0)),
            scratch_shapes=[
                pltpu.VMEM((H + 2, W + 2, Cp), jnp.float32),      # h0 (halo'd)
                pltpu.VMEM((H + 2, W + 2, Cp), jnp.float32),      # h1 (halo'd)
            ],
        ),
        compiler_params=pltpu.CompilerParams(
            dimension_semantics=("parallel",)),
    )(x, params["w_stem"], params["b_stem"], params["w_b1"], params["b_b1"],
      params["w_b2"], params["b_b2"], params["w_fc"], params["b_fc"])

    # all 8 sublane rows are identical; logical classes are the first feature_cnt lanes
    return out[:, 0, :feature_cnt]


# ----------------------------------------------------------------------------
# Deterministic parameters: BN folded into weights, zero-padded to 128 lanes.
# Also returns unpadded f32 copies for a pure-JAX reference check.
# ----------------------------------------------------------------------------
def make_core_params(cin, cmid, feature_cnt, *, cpad=128, fpad=128, seed=42):
    assert cin <= cpad and cmid <= cpad and feature_cnt <= fpad
    keys = jax.random.split(jax.random.PRNGKey(seed), 4)
    eps = 1e-5

    def conv_bn_folded(key, ci, co):
        kw, kg, kb = jax.random.split(key, 3)
        fan_in = 9 * ci
        w = jax.random.normal(kw, (9, ci, co), jnp.float32) / jnp.sqrt(jnp.float32(fan_in))
        gamma = 1.0 + 0.1 * jax.random.normal(kg, (co,), jnp.float32)
        beta = 0.05 * jax.random.normal(kb, (co,), jnp.float32)
        # fresh BN (mean=0, var=1): scale = gamma/sqrt(1+eps); fold into weight cols
        w = w * (gamma / jnp.sqrt(1.0 + eps))
        w_pad = jnp.zeros((9, cpad, cpad), jnp.float32).at[:, :ci, :co].set(w)
        w_pad = w_pad.astype(jnp.bfloat16)
        b_pad = jnp.zeros((1, cpad), jnp.float32).at[:, :co].set(beta)
        w_ref = w_pad[:, :ci, :co].astype(jnp.float32)   # bf16-rounded, unpadded
        return w_pad, b_pad, w_ref, beta

    def fc_layer(key, ci, co):
        kw, kb = jax.random.split(key, 2)
        w = jax.random.normal(kw, (ci, co), jnp.float32) / jnp.sqrt(jnp.float32(ci))
        b = 0.02 * jax.random.normal(kb, (co,), jnp.float32)
        w_pad = jnp.zeros((cpad, fpad), jnp.float32).at[:ci, :co].set(w)
        w_pad = w_pad.astype(jnp.bfloat16)
        b_pad = jnp.zeros((1, fpad), jnp.float32).at[:, :co].set(b)
        w_ref = w_pad[:ci, :co].astype(jnp.float32)
        return w_pad, b_pad, w_ref, b

    ws, bs, ws_r, bs_r = conv_bn_folded(keys[0], cin, cmid)
    w1, b1, w1_r, b1_r = conv_bn_folded(keys[1], cmid, cmid)
    w2, b2, w2_r, b2_r = conv_bn_folded(keys[2], cmid, cmid)
    wf, bf, wf_r, bf_r = fc_layer(keys[3], cmid, feature_cnt)

    params = dict(w_stem=ws, b_stem=bs, w_b1=w1, b_b1=b1,
                  w_b2=w2, b_b2=b2, w_fc=wf, b_fc=bf)
    ref_params = dict(w_stem=ws_r, b_stem=bs_r, w_b1=w1_r, b_b1=b1_r,
                      w_b2=w2_r, b_b2=b2_r, w_fc=wf_r, b_fc=bf_r)
    return params, ref_params


# ----------------------------------------------------------------------------
# Pure-JAX reference of the same stand-in core (for a tolerance check)
# ----------------------------------------------------------------------------
def reference_forward(x_nchw, rp):
    x = jnp.transpose(x_nchw, (0, 2, 3, 1)).astype(jnp.float32)

    def conv(h, w, b):
        k = w.reshape(3, 3, w.shape[1], w.shape[2])   # (kh, kw, ci, co)
        y = jax.lax.conv_general_dilated(
            h, k, window_strides=(1, 1), padding="SAME",
            dimension_numbers=("NHWC", "HWIO", "NHWC"))
        return y + b

    h0 = jax.nn.relu(conv(x, rp["w_stem"], rp["b_stem"]))
    h1 = jax.nn.relu(conv(h0, rp["w_b1"], rp["b_b1"]))
    h2 = jax.nn.relu(conv(h1, rp["w_b2"], rp["b_b2"]) + h0)
    pooled = jnp.mean(h2, axis=(1, 2))
    return pooled @ rp["w_fc"] + rp["b_fc"]


if __name__ == "__main__":
    batch, cin, spatial = 2, 4, 16
    cmid, feature_cnt = 8, 32

    x = jax.random.normal(jax.random.PRNGKey(0),
                          (batch, cin, spatial, spatial), jnp.float32)
    params, ref_params = make_core_params(cin, cmid, feature_cnt)

    out = interprinter_forward(x, params, feature_cnt=feature_cnt)
    jax.block_until_ready(out)

    assert out.shape == (batch, feature_cnt), out.shape
    assert bool(jnp.all(jnp.isfinite(out)))

    ref = reference_forward(x, ref_params)
    assert bool(jnp.allclose(out, ref, rtol=5e-2, atol=5e-2)), (
        "max abs err:", float(jnp.max(jnp.abs(out - ref))))

    print("KERNEL_OK")
</pallas_src>

<mosaic_0001>
module attributes {stable_mosaic.version = 11 : i64} {
  func.func @_fused_core_kernel(%arg0: i32, %arg1: memref<1x18x18x128xf32, #tpu.memory_space<vmem>>, %arg2: memref<9x128x128xbf16, #tpu.memory_space<vmem>>, %arg3: memref<1x128xf32, #tpu.memory_space<vmem>>, %arg4: memref<9x128x128xbf16, #tpu.memory_space<vmem>>, %arg5: memref<1x128xf32, #tpu.memory_space<vmem>>, %arg6: memref<9x128x128xbf16, #tpu.memory_space<vmem>>, %arg7: memref<1x128xf32, #tpu.memory_space<vmem>>, %arg8: memref<128x128xbf16, #tpu.memory_space<vmem>>, %arg9: memref<1x128xf32, #tpu.memory_space<vmem>>, %arg10: memref<1x8x128xf32, #tpu.memory_space<vmem>>, %arg11: memref<18x18x128xf32, #tpu.memory_space<vmem>>, %arg12: memref<18x18x128xf32, #tpu.memory_space<vmem>>) attributes {dimension_semantics = [#tpu.dimension_semantics<parallel>], iteration_bounds = array<i64: 2>, scalar_prefetch = 0 : i64, scratch_operands = 2 : i64, tpu.core_type = #tpu.core_type<tc>, window_params = [{transform_indices = @transform_0, window_bounds = array<i64: 1, 18, 18, 128>}, {pipeline_mode = #tpu.pipeline_mode<synchronous>, transform_indices = @transform_1, window_bounds = array<i64: 9, 128, 128>}, {pipeline_mode = #tpu.pipeline_mode<synchronous>, transform_indices = @transform_2, window_bounds = array<i64: 1, 128>}, {pipeline_mode = #tpu.pipeline_mode<synchronous>, transform_indices = @transform_3, window_bounds = array<i64: 9, 128, 128>}, {pipeline_mode = #tpu.pipeline_mode<synchronous>, transform_indices = @transform_4, window_bounds = array<i64: 1, 128>}, {pipeline_mode = #tpu.pipeline_mode<synchronous>, transform_indices = @transform_5, window_bounds = array<i64: 9, 128, 128>}, {pipeline_mode = #tpu.pipeline_mode<synchronous>, transform_indices = @transform_6, window_bounds = array<i64: 1, 128>}, {pipeline_mode = #tpu.pipeline_mode<synchronous>, transform_indices = @transform_7, window_bounds = array<i64: 128, 128>}, {pipeline_mode = #tpu.pipeline_mode<synchronous>, transform_indices = @transform_8, window_bounds = array<i64: 1, 128>}, {transform_indices = @transform_9, window_bounds = array<i64: 1, 8, 128>}]} {
    %c0 = arith.constant 0 : index
    %c0_0 = arith.constant 0 : index
    %c0_1 = arith.constant 0 : index
    %c0_2 = arith.constant 0 : index
    %0 = vector.load %arg1[%c0, %c0_0, %c0_1, %c0_2] : memref<1x18x18x128xf32, #tpu.memory_space<vmem>>, vector<1x16x16x128xf32>
    %1 = vector.shape_cast %0 : vector<1x16x16x128xf32> to vector<16x16x128xf32>
    %2 = vector.shape_cast %1 : vector<16x16x128xf32> to vector<256x128xf32>
    %3 = arith.truncf %2 : vector<256x128xf32> to vector<256x128xbf16>
    %c0_3 = arith.constant 0 : index
    %c0_4 = arith.constant 0 : index
    %c0_5 = arith.constant 0 : index
    %4 = vector.load %arg2[%c0_3, %c0_4, %c0_5] : memref<9x128x128xbf16, #tpu.memory_space<vmem>>, vector<1x128x128xbf16>
    %5 = vector.shape_cast %4 : vector<1x128x128xbf16> to vector<128x128xbf16>
    %cst = arith.constant dense<0.000000e+00> : vector<256x128xf32>
    %6 = tpu.matmul %3, %5, %cst {dimension_numbers = #tpu.dot_dimension_numbers<[1], [0], [0], [1], [0, 0, 1, 1], [], []>} : vector<256x128xbf16>, vector<128x128xbf16>, vector<256x128xf32> -> vector<256x128xf32>
    %c0_6 = arith.constant 0 : index
    %c0_7 = arith.constant 0 : index
    %c1 = arith.constant 1 : index
    %c0_8 = arith.constant 0 : index
    %7 = vector.load %arg1[%c0_6, %c0_7, %c1, %c0_8] : memref<1x18x18x128xf32, #tpu.memory_space<vmem>>, vector<1x16x16x128xf32>
    %8 = vector.shape_cast %7 : vector<1x16x16x128xf32> to vector<16x16x128xf32>
    %9 = vector.shape_cast %8 : vector<16x16x128xf32> to vector<256x128xf32>
    %10 = arith.truncf %9 : vector<256x128xf32> to vector<256x128xbf16>
    %c1_9 = arith.constant 1 : index
    %c0_10 = arith.constant 0 : index
    %c0_11 = arith.constant 0 : index
    %11 = vector.load %arg2[%c1_9, %c0_10, %c0_11] : memref<9x128x128xbf16, #tpu.memory_space<vmem>>, vector<1x128x128xbf16>
    %12 = vector.shape_cast %11 : vector<1x128x128xbf16> to vector<128x128xbf16>
    %cst_12 = arith.constant dense<0.000000e+00> : vector<256x128xf32>
    %13 = tpu.matmul %10, %12, %cst_12 {dimension_numbers = #tpu.dot_dimension_numbers<[1], [0], [0], [1], [0, 0, 1, 1], [], []>} : vector<256x128xbf16>, vector<128x128xbf16>, vector<256x128xf32> -> vector<256x128xf32>
    %14 = arith.addf %6, %13 : vector<256x128xf32>
    %c0_13 = arith.constant 0 : index
    %c0_14 = arith.constant 0 : index
    %c2 = arith.constant 2 : index
    %c0_15 = arith.constant 0 : index
    %15 = vector.load %arg1[%c0_13, %c0_14, %c2, %c0_15] : memref<1x18x18x128xf32, #tpu.memory_space<vmem>>, vector<1x16x16x128xf32>
    %16 = vector.shape_cast %15 : vector<1x16x16x128xf32> to vector<16x16x128xf32>
    %17 = vector.shape_cast %16 : vector<16x16x128xf32> to vector<256x128xf32>
    %18 = arith.truncf %17 : vector<256x128xf32> to vector<256x128xbf16>
    %c2_16 = arith.constant 2 : index
    %c0_17 = arith.constant 0 : index
    %c0_18 = arith.constant 0 : index
    %19 = vector.load %arg2[%c2_16, %c0_17, %c0_18] : memref<9x128x128xbf16, #tpu.memory_space<vmem>>, vector<1x128x128xbf16>
    %20 = vector.shape_cast %19 : vector<1x128x128xbf16> to vector<128x128xbf16>
    %cst_19 = arith.constant dense<0.000000e+00> : vector<256x128xf32>
    %21 = tpu.matmul %18, %20, %cst_19 {dimension_numbers = #tpu.dot_dimension_numbers<[1], [0], [0], [1], [0, 0, 1, 1], [], []>} : vector<256x128xbf16>, vector<128x128xbf16>, vector<256x128xf32> -> vector<256x128xf32>
    %22 = arith.addf %14, %21 : vector<256x128xf32>
    %c0_20 = arith.constant 0 : index
    %c1_21 = arith.constant 1 : index
    %c0_22 = arith.constant 0 : index
    %c0_23 = arith.constant 0 : index
    %23 = vector.load %arg1[%c0_20, %c1_21, %c0_22, %c0_23] : memref<1x18x18x128xf32, #tpu.memory_space<vmem>>, vector<1x16x16x128xf32>
    %24 = vector.shape_cast %23 : vector<1x16x16x128xf32> to vector<16x16x128xf32>
    %25 = vector.shape_cast %24 : vector<16x16x128xf32> to vector<256x128xf32>
    %26 = arith.truncf %25 : vector<256x128xf32> to vector<256x128xbf16>
    %c3 = arith.constant 3 : index
    %c0_24 = arith.constant 0 : index
    %c0_25 = arith.constant 0 : index
    %27 = vector.load %arg2[%c3, %c0_24, %c0_25] : memref<9x128x128xbf16, #tpu.memory_space<vmem>>, vector<1x128x128xbf16>
    %28 = vector.shape_cast %27 : vector<1x128x128xbf16> to vector<128x128xbf16>
    %cst_26 = arith.constant dense<0.000000e+00> : vector<256x128xf32>
    %29 = tpu.matmul %26, %28, %cst_26 {dimension_numbers = #tpu.dot_dimension_numbers<[1], [0], [0], [1], [0, 0, 1, 1], [], []>} : vector<256x128xbf16>, vector<128x128xbf16>, vector<256x128xf32> -> vector<256x128xf32>
    %30 = arith.addf %22, %29 : vector<256x128xf32>
    %c0_27 = arith.constant 0 : index
    %c1_28 = arith.constant 1 : index
    %c1_29 = arith.constant 1 : index
    %c0_30 = arith.constant 0 : index
    %31 = vector.load %arg1[%c0_27, %c1_28, %c1_29, %c0_30] : memref<1x18x18x128xf32, #tpu.memory_space<vmem>>, vector<1x16x16x128xf32>
    %32 = vector.shape_cast %31 : vector<1x16x16x128xf32> to vector<16x16x128xf32>
    %33 = vector.shape_cast %32 : vector<16x16x128xf32> to vector<256x128xf32>
    %34 = arith.truncf %33 : vector<256x128xf32> to vector<256x128xbf16>
    %c4 = arith.constant 4 : index
    %c0_31 = arith.constant 0 : index
    %c0_32 = arith.constant 0 : index
    %35 = vector.load %arg2[%c4, %c0_31, %c0_32] : memref<9x128x128xbf16, #tpu.memory_space<vmem>>, vector<1x128x128xbf16>
    %36 = vector.shape_cast %35 : vector<1x128x128xbf16> to vector<128x128xbf16>
    %cst_33 = arith.constant dense<0.000000e+00> : vector<256x128xf32>
    %37 = tpu.matmul %34, %36, %cst_33 {dimension_numbers = #tpu.dot_dimension_numbers<[1], [0], [0], [1], [0, 0, 1, 1], [], []>} : vector<256x128xbf16>, vector<128x128xbf16>, vector<256x128xf32> -> vector<256x128xf32>
    %38 = arith.addf %30, %37 : vector<256x128xf32>
    %c0_34 = arith.constant 0 : index
    %c1_35 = arith.constant 1 : index
    %c2_36 = arith.constant 2 : index
    %c0_37 = arith.constant 0 : index
    %39 = vector.load %arg1[%c0_34, %c1_35, %c2_36, %c0_37] : memref<1x18x18x128xf32, #tpu.memory_space<vmem>>, vector<1x16x16x128xf32>
    %40 = vector.shape_cast %39 : vector<1x16x16x128xf32> to vector<16x16x128xf32>
    %41 = vector.shape_cast %40 : vector<16x16x128xf32> to vector<256x128xf32>
    %42 = arith.truncf %41 : vector<256x128xf32> to vector<256x128xbf16>
    %c5 = arith.constant 5 : index
    %c0_38 = arith.constant 0 : index
    %c0_39 = arith.constant 0 : index
    %43 = vector.load %arg2[%c5, %c0_38, %c0_39] : memref<9x128x128xbf16, #tpu.memory_space<vmem>>, vector<1x128x128xbf16>
    %44 = vector.shape_cast %43 : vector<1x128x128xbf16> to vector<128x128xbf16>
    %cst_40 = arith.constant dense<0.000000e+00> : vector<256x128xf32>
    %45 = tpu.matmul %42, %44, %cst_40 {dimension_numbers = #tpu.dot_dimension_numbers<[1], [0], [0], [1], [0, 0, 1, 1], [], []>} : vector<256x128xbf16>, vector<128x128xbf16>, vector<256x128xf32> -> vector<256x128xf32>
    %46 = arith.addf %38, %45 : vector<256x128xf32>
    %c0_41 = arith.constant 0 : index
    %c2_42 = arith.constant 2 : index
    %c0_43 = arith.constant 0 : index
    %c0_44 = arith.constant 0 : index
    %47 = vector.load %arg1[%c0_41, %c2_42, %c0_43, %c0_44] : memref<1x18x18x128xf32, #tpu.memory_space<vmem>>, vector<1x16x16x128xf32>
    %48 = vector.shape_cast %47 : vector<1x16x16x128xf32> to vector<16x16x128xf32>
    %49 = vector.shape_cast %48 : vector<16x16x128xf32> to vector<256x128xf32>
    %50 = arith.truncf %49 : vector<256x128xf32> to vector<256x128xbf16>
    %c6 = arith.constant 6 : index
    %c0_45 = arith.constant 0 : index
    %c0_46 = arith.constant 0 : index
    %51 = vector.load %arg2[%c6, %c0_45, %c0_46] : memref<9x128x128xbf16, #tpu.memory_space<vmem>>, vector<1x128x128xbf16>
    %52 = vector.shape_cast %51 : vector<1x128x128xbf16> to vector<128x128xbf16>
    %cst_47 = arith.constant dense<0.000000e+00> : vector<256x128xf32>
    %53 = tpu.matmul %50, %52, %cst_47 {dimension_numbers = #tpu.dot_dimension_numbers<[1], [0], [0], [1], [0, 0, 1, 1], [], []>} : vector<256x128xbf16>, vector<128x128xbf16>, vector<256x128xf32> -> vector<256x128xf32>
    %54 = arith.addf %46, %53 : vector<256x128xf32>
    %c0_48 = arith.constant 0 : index
    %c2_49 = arith.constant 2 : index
    %c1_50 = arith.constant 1 : index
    %c0_51 = arith.constant 0 : index
    %55 = vector.load %arg1[%c0_48, %c2_49, %c1_50, %c0_51] : memref<1x18x18x128xf32, #tpu.memory_space<vmem>>, vector<1x16x16x128xf32>
    %56 = vector.shape_cast %55 : vector<1x16x16x128xf32> to vector<16x16x128xf32>
    %57 = vector.shape_cast %56 : vector<16x16x128xf32> to vector<256x128xf32>
    %58 = arith.truncf %57 : vector<256x128xf32> to vector<256x128xbf16>
    %c7 = arith.constant 7 : index
    %c0_52 = arith.constant 0 : index
    %c0_53 = arith.constant 0 : index
    %59 = vector.load %arg2[%c7, %c0_52, %c0_53] : memref<9x128x128xbf16, #tpu.memory_space<vmem>>, vector<1x128x128xbf16>
    %60 = vector.shape_cast %59 : vector<1x128x128xbf16> to vector<128x128xbf16>
    %cst_54 = arith.constant dense<0.000000e+00> : vector<256x128xf32>
    %61 = tpu.matmul %58, %60, %cst_54 {dimension_numbers = #tpu.dot_dimension_numbers<[1], [0], [0], [1], [0, 0, 1, 1], [], []>} : vector<256x128xbf16>, vector<128x128xbf16>, vector<256x128xf32> -> vector<256x128xf32>
    %62 = arith.addf %54, %61 : vector<256x128xf32>
    %c0_55 = arith.constant 0 : index
    %c2_56 = arith.constant 2 : index
    %c2_57 = arith.constant 2 : index
    %c0_58 = arith.constant 0 : index
    %63 = vector.load %arg1[%c0_55, %c2_56, %c2_57, %c0_58] : memref<1x18x18x128xf32, #tpu.memory_space<vmem>>, vector<1x16x16x128xf32>
    %64 = vector.shape_cast %63 : vector<1x16x16x128xf32> to vector<16x16x128xf32>
    %65 = vector.shape_cast %64 : vector<16x16x128xf32> to vector<256x128xf32>
    %66 = arith.truncf %65 : vector<256x128xf32> to vector<256x128xbf16>
    %c8 = arith.constant 8 : index
    %c0_59 = arith.constant 0 : index
    %c0_60 = arith.constant 0 : index
    %67 = vector.load %arg2[%c8, %c0_59, %c0_60] : memref<9x128x128xbf16, #tpu.memory_space<vmem>>, vector<1x128x128xbf16>
    %68 = vector.shape_cast %67 : vector<1x128x128xbf16> to vector<128x128xbf16>
    %cst_61 = arith.constant dense<0.000000e+00> : vector<256x128xf32>
    %69 = tpu.matmul %66, %68, %cst_61 {dimension_numbers = #tpu.dot_dimension_numbers<[1], [0], [0], [1], [0, 0, 1, 1], [], []>} : vector<256x128xbf16>, vector<128x128xbf16>, vector<256x128xf32> -> vector<256x128xf32>
    %70 = arith.addf %62, %69 : vector<256x128xf32>
    %c0_62 = arith.constant 0 : index
    %c0_63 = arith.constant 0 : index
    %71 = vector.load %arg3[%c0_62, %c0_63] : memref<1x128xf32, #tpu.memory_space<vmem>>, vector<1x128xf32>
    %72 = vector.broadcast %71 : vector<1x128xf32> to vector<256x128xf32>
    %73 = arith.addf %70, %72 : vector<256x128xf32>
    %cst_64 = arith.constant 0.000000e+00 : f32
    %74 = vector.broadcast %cst_64 : f32 to vector<256x128xf32>
    %75 = arith.maximumf %73, %74 : vector<256x128xf32>
    %cst_65 = arith.constant 0.000000e+00 : f32
    %76 = vector.broadcast %cst_65 : f32 to vector<18x18x128xf32>
    %c0_66 = arith.constant 0 : index
    %c0_67 = arith.constant 0 : index
    %c0_68 = arith.constant 0 : index
    %77 = vector.load %arg11[%c0_66, %c0_67, %c0_68] : memref<18x18x128xf32, #tpu.memory_space<vmem>>, vector<18x18x128xf32>
    tpu.vector_store %arg11[%c0_66, %c0_67, %c0_68], %76 {strides = array<i32>} : memref<18x18x128xf32, #tpu.memory_space<vmem>>, vector<18x18x128xf32>,
    %78 = vector.shape_cast %75 : vector<256x128xf32> to vector<16x16x128xf32>
    %c1_69 = arith.constant 1 : index
    %c1_70 = arith.constant 1 : index
    %c0_71 = arith.constant 0 : index
    %79 = vector.load %arg11[%c1_69, %c1_70, %c0_71] : memref<18x18x128xf32, #tpu.memory_space<vmem>>, vector<16x16x128xf32>
    tpu.vector_store %arg11[%c1_69, %c1_70, %c0_71], %78 {strides = array<i32>} : memref<18x18x128xf32, #tpu.memory_space<vmem>>, vector<16x16x128xf32>,
    %c0_72 = arith.constant 0 : index
    %c0_73 = arith.constant 0 : index
    %c0_74 = arith.constant 0 : index
    %80 = vector.load %arg11[%c0_72, %c0_73, %c0_74] : memref<18x18x128xf32, #tpu.memory_space<vmem>>, vector<16x16x128xf32>
    %81 = vector.shape_cast %80 : vector<16x16x128xf32> to vector<256x128xf32>
    %82 = arith.truncf %81 : vector<256x128xf32> to vector<256x128xbf16>
    %c0_75 = arith.constant 0 : index
    %c0_76 = arith.constant 0 : index
    %c0_77 = arith.constant 0 : index
    %83 = vector.load %arg4[%c0_75, %c0_76, %c0_77] : memref<9x128x128xbf16, #tpu.memory_space<vmem>>, vector<1x128x128xbf16>
    %84 = vector.shape_cast %83 : vector<1x128x128xbf16> to vector<128x128xbf16>
    %cst_78 = arith.constant dense<0.000000e+00> : vector<256x128xf32>
    %85 = tpu.matmul %82, %84, %cst_78 {dimension_numbers = #tpu.dot_dimension_numbers<[1], [0], [0], [1], [0, 0, 1, 1], [], []>} : vector<256x128xbf16>, vector<128x128xbf16>, vector<256x128xf32> -> vector<256x128xf32>
    %c0_79 = arith.constant 0 : index
    %c1_80 = arith.constant 1 : index
    %c0_81 = arith.constant 0 : index
    %86 = vector.load %arg11[%c0_79, %c1_80, %c0_81] : memref<18x18x128xf32, #tpu.memory_space<vmem>>, vector<16x16x128xf32>
    %87 = vector.shape_cast %86 : vector<16x16x128xf32> to vector<256x128xf32>
    %88 = arith.truncf %87 : vector<256x128xf32> to vector<256x128xbf16>
    %c1_82 = arith.constant 1 : index
    %c0_83 = arith.constant 0 : index
    %c0_84 = arith.constant 0 : index
    %89 = vector.load %arg4[%c1_82, %c0_83, %c0_84] : memref<9x128x128xbf16, #tpu.memory_space<vmem>>, vector<1x128x128xbf16>
    %90 = vector.shape_cast %89 : vector<1x128x128xbf16> to vector<128x128xbf16>
    %cst_85 = arith.constant dense<0.000000e+00> : vector<256x128xf32>
    %91 = tpu.matmul %88, %90, %cst_85 {dimension_numbers = #tpu.dot_dimension_numbers<[1], [0], [0], [1], [0, 0, 1, 1], [], []>} : vector<256x128xbf16>, vector<128x128xbf16>, vector<256x128xf32> -> vector<256x128xf32>
    %92 = arith.addf %85, %91 : vector<256x128xf32>
    %c0_86 = arith.constant 0 : index
    %c2_87 = arith.constant 2 : index
    %c0_88 = arith.constant 0 : index
    %93 = vector.load %arg11[%c0_86, %c2_87, %c0_88] : memref<18x18x128xf32, #tpu.memory_space<vmem>>, vector<16x16x128xf32>
    %94 = vector.shape_cast %93 : vector<16x16x128xf32> to vector<256x128xf32>
    %95 = arith.truncf %94 : vector<256x128xf32> to vector<256x128xbf16>
    %c2_89 = arith.constant 2 : index
    %c0_90 = arith.constant 0 : index
    %c0_91 = arith.constant 0 : index
    %96 = vector.load %arg4[%c2_89, %c0_90, %c0_91] : memref<9x128x128xbf16, #tpu.memory_space<vmem>>, vector<1x128x128xbf16>
    %97 = vector.shape_cast %96 : vector<1x128x128xbf16> to vector<128x128xbf16>
    %cst_92 = arith.constant dense<0.000000e+00> : vector<256x128xf32>
    %98 = tpu.matmul %95, %97, %cst_92 {dimension_numbers = #tpu.dot_dimension_numbers<[1], [0], [0], [1], [0, 0, 1, 1], [], []>} : vector<256x128xbf16>, vector<128x128xbf16>, vector<256x128xf32> -> vector<256x128xf32>
    %99 = arith.addf %92, %98 : vector<256x128xf32>
    %c1_93 = arith.constant 1 : index
    %c0_94 = arith.constant 0 : index
    %c0_95 = arith.constant 0 : index
    %100 = vector.load %arg11[%c1_93, %c0_94, %c0_95] : memref<18x18x128xf32, #tpu.memory_space<vmem>>, vector<16x16x128xf32>
    %101 = vector.shape_cast %100 : vector<16x16x128xf32> to vector<256x128xf32>
    %102 = arith.truncf %101 : vector<256x128xf32> to vector<256x128xbf16>
    %c3_96 = arith.constant 3 : index
    %c0_97 = arith.constant 0 : index
    %c0_98 = arith.constant 0 : index
    %103 = vector.load %arg4[%c3_96, %c0_97, %c0_98] : memref<9x128x128xbf16, #tpu.memory_space<vmem>>, vector<1x128x128xbf16>
    %104 = vector.shape_cast %103 : vector<1x128x128xbf16> to vector<128x128xbf16>
    %cst_99 = arith.constant dense<0.000000e+00> : vector<256x128xf32>
    %105 = tpu.matmul %102, %104, %cst_99 {dimension_numbers = #tpu.dot_dimension_numbers<[1], [0], [0], [1], [0, 0, 1, 1], [], []>} : vector<256x128xbf16>, vector<128x128xbf16>, vector<256x128xf32> -> vector<256x128xf32>
    %106 = arith.addf %99, %105 : vector<256x128xf32>
    %c1_100 = arith.constant 1 : index
    %c1_101 = arith.constant 1 : index
    %c0_102 = arith.constant 0 : index
    %107 = vector.load %arg11[%c1_100, %c1_101, %c0_102] : memref<18x18x128xf32, #tpu.memory_space<vmem>>, vector<16x16x128xf32>
    %108 = vector.shape_cast %107 : vector<16x16x128xf32> to vector<256x128xf32>
    %109 = arith.truncf %108 : vector<256x128xf32> to vector<256x128xbf16>
    %c4_103 = arith.constant 4 : index
    %c0_104 = arith.constant 0 : index
    %c0_105 = arith.constant 0 : index
    %110 = vector.load %arg4[%c4_103, %c0_104, %c0_105] : memref<9x128x128xbf16, #tpu.memory_space<vmem>>, vector<1x128x128xbf16>
    %111 = vector.shape_cast %110 : vector<1x128x128xbf16> to vector<128x128xbf16>
    %cst_106 = arith.constant dense<0.000000e+00> : vector<256x128xf32>
    %112 = tpu.matmul %109, %111, %cst_106 {dimension_numbers = #tpu.dot_dimension_numbers<[1], [0], [0], [1], [0, 0, 1, 1], [], []>} : vector<256x128xbf16>, vector<128x128xbf16>, vector<256x128xf32> -> vector<256x128xf32>
    %113 = arith.addf %106, %112 : vector<256x128xf32>
    %c1_107 = arith.constant 1 : index
    %c2_108 = arith.constant 2 : index
    %c0_109 = arith.constant 0 : index
    %114 = vector.load %arg11[%c1_107, %c2_108, %c0_109] : memref<18x18x128xf32, #tpu.memory_space<vmem>>, vector<16x16x128xf32>
    %115 = vector.shape_cast %114 : vector<16x16x128xf32> to vector<256x128xf32>
    %116 = arith.truncf %115 : vector<256x128xf32> to vector<256x128xbf16>
    %c5_110 = arith.constant 5 : index
    %c0_111 = arith.constant 0 : index
    %c0_112 = arith.constant 0 : index
    %117 = vector.load %arg4[%c5_110, %c0_111, %c0_112] : memref<9x128x128xbf16, #tpu.memory_space<vmem>>, vector<1x128x128xbf16>
    %118 = vector.shape_cast %117 : vector<1x128x128xbf16> to vector<128x128xbf16>
    %cst_113 = arith.constant dense<0.000000e+00> : vector<256x128xf32>
    %119 = tpu.matmul %116, %118, %cst_113 {dimension_numbers = #tpu.dot_dimension_numbers<[1], [0], [0], [1], [0, 0, 1, 1], [], []>} : vector<256x128xbf16>, vector<128x128xbf16>, vector<256x128xf32> -> vector<256x128xf32>
    %120 = arith.addf %113, %119 : vector<256x128xf32>
    %c2_114 = arith.constant 2 : index
    %c0_115 = arith.constant 0 : index
    %c0_116 = arith.constant 0 : index
    %121 = vector.load %arg11[%c2_114, %c0_115, %c0_116] : memref<18x18x128xf32, #tpu.memory_space<vmem>>, vector<16x16x128xf32>
    %122 = vector.shape_cast %121 : vector<16x16x128xf32> to vector<256x128xf32>
    %123 = arith.truncf %122 : vector<256x128xf32> to vector<256x128xbf16>
    %c6_117 = arith.constant 6 : index
    %c0_118 = arith.constant 0 : index
    %c0_119 = arith.constant 0 : index
    %124 = vector.load %arg4[%c6_117, %c0_118, %c0_119] : memref<9x128x128xbf16, #tpu.memory_space<vmem>>, vector<1x128x128xbf16>
    %125 = vector.shape_cast %124 : vector<1x128x128xbf16> to vector<128x128xbf16>
    %cst_120 = arith.constant dense<0.000000e+00> : vector<256x128xf32>
    %126 = tpu.matmul %123, %125, %cst_120 {dimension_numbers = #tpu.dot_dimension_numbers<[1], [0], [0], [1], [0, 0, 1, 1], [], []>} : vector<256x128xbf16>, vector<128x128xbf16>, vector<256x128xf32> -> vector<256x128xf32>
    %127 = arith.addf %120, %126 : vector<256x128xf32>
    %c2_121 = arith.constant 2 : index
    %c1_122 = arith.constant 1 : index
    %c0_123 = arith.constant 0 : index
    %128 = vector.load %arg11[%c2_121, %c1_122, %c0_123] : memref<18x18x128xf32, #tpu.memory_space<vmem>>, vector<16x16x128xf32>
    %129 = vector.shape_cast %128 : vector<16x16x128xf32> to vector<256x128xf32>
    %130 = arith.truncf %129 : vector<256x128xf32> to vector<256x128xbf16>
    %c7_124 = arith.constant 7 : index
    %c0_125 = arith.constant 0 : index
    %c0_126 = arith.constant 0 : index
    %131 = vector.load %arg4[%c7_124, %c0_125, %c0_126] : memref<9x128x128xbf16, #tpu.memory_space<vmem>>, vector<1x128x128xbf16>
    %132 = vector.shape_cast %131 : vector<1x128x128xbf16> to vector<128x128xbf16>
    %cst_127 = arith.constant dense<0.000000e+00> : vector<256x128xf32>
    %133 = tpu.matmul %130, %132, %cst_127 {dimension_numbers = #tpu.dot_dimension_numbers<[1], [0], [0], [1], [0, 0, 1, 1], [], []>} : vector<256x128xbf16>, vector<128x128xbf16>, vector<256x128xf32> -> vector<256x128xf32>
    %134 = arith.addf %127, %133 : vector<256x128xf32>
    %c2_128 = arith.constant 2 : index
    %c2_129 = arith.constant 2 : index
    %c0_130 = arith.constant 0 : index
    %135 = vector.load %arg11[%c2_128, %c2_129, %c0_130] : memref<18x18x128xf32, #tpu.memory_space<vmem>>, vector<16x16x128xf32>
    %136 = vector.shape_cast %135 : vector<16x16x128xf32> to vector<256x128xf32>
    %137 = arith.truncf %136 : vector<256x128xf32> to vector<256x128xbf16>
    %c8_131 = arith.constant 8 : index
    %c0_132 = arith.constant 0 : index
    %c0_133 = arith.constant 0 : index
    %138 = vector.load %arg4[%c8_131, %c0_132, %c0_133] : memref<9x128x128xbf16, #tpu.memory_space<vmem>>, vector<1x128x128xbf16>
    %139 = vector.shape_cast %138 : vector<1x128x128xbf16> to vector<128x128xbf16>
    %cst_134 = arith.constant dense<0.000000e+00> : vector<256x128xf32>
    %140 = tpu.matmul %137, %139, %cst_134 {dimension_numbers = #tpu.dot_dimension_numbers<[1], [0], [0], [1], [0, 0, 1, 1], [], []>} : vector<256x128xbf16>, vector<128x128xbf16>, vector<256x128xf32> -> vector<256x128xf32>
    %141 = arith.addf %134, %140 : vector<256x128xf32>
    %c0_135 = arith.constant 0 : index
    %c0_136 = arith.constant 0 : index
    %142 = vector.load %arg5[%c0_135, %c0_136] : memref<1x128xf32, #tpu.memory_space<vmem>>, vector<1x128xf32>
    %143 = vector.broadcast %142 : vector<1x128xf32> to vector<256x128xf32>
    %144 = arith.addf %141, %143 : vector<256x128xf32>
    %cst_137 = arith.constant 0.000000e+00 : f32
    %145 = vector.broadcast %cst_137 : f32 to vector<256x128xf32>
    %146 = arith.maximumf %144, %145 : vector<256x128xf32>
    %cst_138 = arith.constant 0.000000e+00 : f32
    %147 = vector.broadcast %cst_138 : f32 to vector<18x18x128xf32>
    %c0_139 = arith.constant 0 : index
    %c0_140 = arith.constant 0 : index
    %c0_141 = arith.constant 0 : index
    %148 = vector.load %arg12[%c0_139, %c0_140, %c0_141] : memref<18x18x128xf32, #tpu.memory_space<vmem>>, vector<18x18x128xf32>
    tpu.vector_store %arg12[%c0_139, %c0_140, %c0_141], %147 {strides = array<i32>} : memref<18x18x128xf32, #tpu.memory_space<vmem>>, vector<18x18x128xf32>,
    %149 = vector.shape_cast %146 : vector<256x128xf32> to vector<16x16x128xf32>
    %c1_142 = arith.constant 1 : index
    %c1_143 = arith.constant 1 : index
    %c0_144 = arith.constant 0 : index
    %150 = vector.load %arg12[%c1_142, %c1_143, %c0_144] : memref<18x18x128xf32, #tpu.memory_space<vmem>>, vector<16x16x128xf32>
    tpu.vector_store %arg12[%c1_142, %c1_143, %c0_144], %149 {strides = array<i32>} : memref<18x18x128xf32, #tpu.memory_space<vmem>>, vector<16x16x128xf32>,
    %c1_145 = arith.constant 1 : index
    %c1_146 = arith.constant 1 : index
    %c0_147 = arith.constant 0 : index
    %151 = vector.load %arg11[%c1_145, %c1_146, %c0_147] : memref<18x18x128xf32, #tpu.memory_space<vmem>>, vector<16x16x128xf32>
    %152 = vector.shape_cast %151 : vector<16x16x128xf32> to vector<256x128xf32>
    %c0_148 = arith.constant 0 : index
    %c0_149 = arith.constant 0 : index
    %c0_150 = arith.constant 0 : index
    %153 = vector.load %arg12[%c0_148, %c0_149, %c0_150] : memref<18x18x128xf32, #tpu.memory_space<vmem>>, vector<16x16x128xf32>
    %154 = vector.shape_cast %153 : vector<16x16x128xf32> to vector<256x128xf32>
    %155 = arith.truncf %154 : vector<256x128xf32> to vector<256x128xbf16>
    %c0_151 = arith.constant 0 : index
    %c0_152 = arith.constant 0 : index
    %c0_153 = arith.constant 0 : index
    %156 = vector.load %arg6[%c0_151, %c0_152, %c0_153] : memref<9x128x128xbf16, #tpu.memory_space<vmem>>, vector<1x128x128xbf16>
    %157 = vector.shape_cast %156 : vector<1x128x128xbf16> to vector<128x128xbf16>
    %cst_154 = arith.constant dense<0.000000e+00> : vector<256x128xf32>
    %158 = tpu.matmul %155, %157, %cst_154 {dimension_numbers = #tpu.dot_dimension_numbers<[1], [0], [0], [1], [0, 0, 1, 1], [], []>} : vector<256x128xbf16>, vector<128x128xbf16>, vector<256x128xf32> -> vector<256x128xf32>
    %c0_155 = arith.constant 0 : index
    %c1_156 = arith.constant 1 : index
    %c0_157 = arith.constant 0 : index
    %159 = vector.load %arg12[%c0_155, %c1_156, %c0_157] : memref<18x18x128xf32, #tpu.memory_space<vmem>>, vector<16x16x128xf32>
    %160 = vector.shape_cast %159 : vector<16x16x128xf32> to vector<256x128xf32>
    %161 = arith.truncf %160 : vector<256x128xf32> to vector<256x128xbf16>
    %c1_158 = arith.constant 1 : index
    %c0_159 = arith.constant 0 : index
    %c0_160 = arith.constant 0 : index
    %162 = vector.load %arg6[%c1_158, %c0_159, %c0_160] : memref<9x128x128xbf16, #tpu.memory_space<vmem>>, vector<1x128x128xbf16>
    %163 = vector.shape_cast %162 : vector<1x128x128xbf16> to vector<128x128xbf16>
    %cst_161 = arith.constant dense<0.000000e+00> : vector<256x128xf32>
    %164 = tpu.matmul %161, %163, %cst_161 {dimension_numbers = #tpu.dot_dimension_numbers<[1], [0], [0], [1], [0, 0, 1, 1], [], []>} : vector<256x128xbf16>, vector<128x128xbf16>, vector<256x128xf32> -> vector<256x128xf32>
    %165 = arith.addf %158, %164 : vector<256x128xf32>
    %c0_162 = arith.constant 0 : index
    %c2_163 = arith.constant 2 : index
    %c0_164 = arith.constant 0 : index
    %166 = vector.load %arg12[%c0_162, %c2_163, %c0_164] : memref<18x18x128xf32, #tpu.memory_space<vmem>>, vector<16x16x128xf32>
    %167 = vector.shape_cast %166 : vector<16x16x128xf32> to vector<256x128xf32>
    %168 = arith.truncf %167 : vector<256x128xf32> to vector<256x128xbf16>
    %c2_165 = arith.constant 2 : index
    %c0_166 = arith.constant 0 : index
    %c0_167 = arith.constant 0 : index
    %169 = vector.load %arg6[%c2_165, %c0_166, %c0_167] : memref<9x128x128xbf16, #tpu.memory_space<vmem>>, vector<1x128x128xbf16>
    %170 = vector.shape_cast %169 : vector<1x128x128xbf16> to vector<128x128xbf16>
    %cst_168 = arith.constant dense<0.000000e+00> : vector<256x128xf32>
    %171 = tpu.matmul %168, %170, %cst_168 {dimension_numbers = #tpu.dot_dimension_numbers<[1], [0], [0], [1], [0, 0, 1, 1], [], []>} : vector<256x128xbf16>, vector<128x128xbf16>, vector<256x128xf32> -> vector<256x128xf32>
    %172 = arith.addf %165, %171 : vector<256x128xf32>
    %c1_169 = arith.constant 1 : index
    %c0_170 = arith.constant 0 : index
    %c0_171 = arith.constant 0 : index
    %173 = vector.load %arg12[%c1_169, %c0_170, %c0_171] : memref<18x18x128xf32, #tpu.memory_space<vmem>>, vector<16x16x128xf32>
    %174 = vector.shape_cast %173 : vector<16x16x128xf32> to vector<256x128xf32>
    %175 = arith.truncf %174 : vector<256x128xf32> to vector<256x128xbf16>
    %c3_172 = arith.constant 3 : index
    %c0_173 = arith.constant 0 : index
    %c0_174 = arith.constant 0 : index
    %176 = vector.load %arg6[%c3_172, %c0_173, %c0_174] : memref<9x128x128xbf16, #tpu.memory_space<vmem>>, vector<1x128x128xbf16>
    %177 = vector.shape_cast %176 : vector<1x128x128xbf16> to vector<128x128xbf16>
    %cst_175 = arith.constant dense<0.000000e+00> : vector<256x128xf32>
    %178 = tpu.matmul %175, %177, %cst_175 {dimension_numbers = #tpu.dot_dimension_numbers<[1], [0], [0], [1], [0, 0, 1, 1], [], []>} : vector<256x128xbf16>, vector<128x128xbf16>, vector<256x128xf32> -> vector<256x128xf32>
    %179 = arith.addf %172, %178 : vector<256x128xf32>
    %c1_176 = arith.constant 1 : index
    %c1_177 = arith.constant 1 : index
    %c0_178 = arith.constant 0 : index
    %180 = vector.load %arg12[%c1_176, %c1_177, %c0_178] : memref<18x18x128xf32, #tpu.memory_space<vmem>>, vector<16x16x128xf32>
    %181 = vector.shape_cast %180 : vector<16x16x128xf32> to vector<256x128xf32>
    %182 = arith.truncf %181 : vector<256x128xf32> to vector<256x128xbf16>
    %c4_179 = arith.constant 4 : index
    %c0_180 = arith.constant 0 : index
    %c0_181 = arith.constant 0 : index
    %183 = vector.load %arg6[%c4_179, %c0_180, %c0_181] : memref<9x128x128xbf16, #tpu.memory_space<vmem>>, vector<1x128x128xbf16>
    %184 = vector.shape_cast %183 : vector<1x128x128xbf16> to vector<128x128xbf16>
    %cst_182 = arith.constant dense<0.000000e+00> : vector<256x128xf32>
    %185 = tpu.matmul %182, %184, %cst_182 {dimension_numbers = #tpu.dot_dimension_numbers<[1], [0], [0], [1], [0, 0, 1, 1], [], []>} : vector<256x128xbf16>, vector<128x128xbf16>, vector<256x128xf32> -> vector<256x128xf32>
    %186 = arith.addf %179, %185 : vector<256x128xf32>
    %c1_183 = arith.constant 1 : index
    %c2_184 = arith.constant 2 : index
    %c0_185 = arith.constant 0 : index
    %187 = vector.load %arg12[%c1_183, %c2_184, %c0_185] : memref<18x18x128xf32, #tpu.memory_space<vmem>>, vector<16x16x128xf32>
    %188 = vector.shape_cast %187 : vector<16x16x128xf32> to vector<256x128xf32>
    %189 = arith.truncf %188 : vector<256x128xf32> to vector<256x128xbf16>
    %c5_186 = arith.constant 5 : index
    %c0_187 = arith.constant 0 : index
    %c0_188 = arith.constant 0 : index
    %190 = vector.load %arg6[%c5_186, %c0_187, %c0_188] : memref<9x128x128xbf16, #tpu.memory_space<vmem>>, vector<1x128x128xbf16>
    %191 = vector.shape_cast %190 : vector<1x128x128xbf16> to vector<128x128xbf16>
    %cst_189 = arith.constant dense<0.000000e+00> : vector<256x128xf32>
    %192 = tpu.matmul %189, %191, %cst_189 {dimension_numbers = #tpu.dot_dimension_numbers<[1], [0], [0], [1], [0, 0, 1, 1], [], []>} : vector<256x128xbf16>, vector<128x128xbf16>, vector<256x128xf32> -> vector<256x128xf32>
    %193 = arith.addf %186, %192 : vector<256x128xf32>
    %c2_190 = arith.constant 2 : index
    %c0_191 = arith.constant 0 : index
    %c0_192 = arith.constant 0 : index
    %194 = vector.load %arg12[%c2_190, %c0_191, %c0_192] : memref<18x18x128xf32, #tpu.memory_space<vmem>>, vector<16x16x128xf32>
    %195 = vector.shape_cast %194 : vector<16x16x128xf32> to vector<256x128xf32>
    %196 = arith.truncf %195 : vector<256x128xf32> to vector<256x128xbf16>
    %c6_193 = arith.constant 6 : index
    %c0_194 = arith.constant 0 : index
    %c0_195 = arith.constant 0 : index
    %197 = vector.load %arg6[%c6_193, %c0_194, %c0_195] : memref<9x128x128xbf16, #tpu.memory_space<vmem>>, vector<1x128x128xbf16>
    %198 = vector.shape_cast %197 : vector<1x128x128xbf16> to vector<128x128xbf16>
    %cst_196 = arith.constant dense<0.000000e+00> : vector<256x128xf32>
    %199 = tpu.matmul %196, %198, %cst_196 {dimension_numbers = #tpu.dot_dimension_numbers<[1], [0], [0], [1], [0, 0, 1, 1], [], []>} : vector<256x128xbf16>, vector<128x128xbf16>, vector<256x128xf32> -> vector<256x128xf32>
    %200 = arith.addf %193, %199 : vector<256x128xf32>
    %c2_197 = arith.constant 2 : index
    %c1_198 = arith.constant 1 : index
    %c0_199 = arith.constant 0 : index
    %201 = vector.load %arg12[%c2_197, %c1_198, %c0_199] : memref<18x18x128xf32, #tpu.memory_space<vmem>>, vector<16x16x128xf32>
    %202 = vector.shape_cast %201 : vector<16x16x128xf32> to vector<256x128xf32>
    %203 = arith.truncf %202 : vector<256x128xf32> to vector<256x128xbf16>
    %c7_200 = arith.constant 7 : index
    %c0_201 = arith.constant 0 : index
    %c0_202 = arith.constant 0 : index
    %204 = vector.load %arg6[%c7_200, %c0_201, %c0_202] : memref<9x128x128xbf16, #tpu.memory_space<vmem>>, vector<1x128x128xbf16>
    %205 = vector.shape_cast %204 : vector<1x128x128xbf16> to vector<128x128xbf16>
    %cst_203 = arith.constant dense<0.000000e+00> : vector<256x128xf32>
    %206 = tpu.matmul %203, %205, %cst_203 {dimension_numbers = #tpu.dot_dimension_numbers<[1], [0], [0], [1], [0, 0, 1, 1], [], []>} : vector<256x128xbf16>, vector<128x128xbf16>, vector<256x128xf32> -> vector<256x128xf32>
    %207 = arith.addf %200, %206 : vector<256x128xf32>
    %c2_204 = arith.constant 2 : index
    %c2_205 = arith.constant 2 : index
    %c0_206 = arith.constant 0 : index
    %208 = vector.load %arg12[%c2_204, %c2_205, %c0_206] : memref<18x18x128xf32, #tpu.memory_space<vmem>>, vector<16x16x128xf32>
    %209 = vector.shape_cast %208 : vector<16x16x128xf32> to vector<256x128xf32>
    %210 = arith.truncf %209 : vector<256x128xf32> to vector<256x128xbf16>
    %c8_207 = arith.constant 8 : index
    %c0_208 = arith.constant 0 : index
    %c0_209 = arith.constant 0 : index
    %211 = vector.load %arg6[%c8_207, %c0_208, %c0_209] : memref<9x128x128xbf16, #tpu.memory_space<vmem>>, vector<1x128x128xbf16>
    %212 = vector.shape_cast %211 : vector<1x128x128xbf16> to vector<128x128xbf16>
    %cst_210 = arith.constant dense<0.000000e+00> : vector<256x128xf32>
    %213 = tpu.matmul %210, %212, %cst_210 {dimension_numbers = #tpu.dot_dimension_numbers<[1], [0], [0], [1], [0, 0, 1, 1], [], []>} : vector<256x128xbf16>, vector<128x128xbf16>, vector<256x128xf32> -> vector<256x128xf32>
    %214 = arith.addf %207, %213 : vector<256x128xf32>
    %c0_211 = arith.constant 0 : index
    %c0_212 = arith.constant 0 : index
    %215 = vector.load %arg7[%c0_211, %c0_212] : memref<1x128xf32, #tpu.memory_space<vmem>>, vector<1x128xf32>
    %216 = vector.broadcast %215 : vector<1x128xf32> to vector<256x128xf32>
    %217 = arith.addf %214, %216 : vector<256x128xf32>
    %218 = arith.addf %217, %152 : vector<256x128xf32>
    %cst_213 = arith.constant 0.000000e+00 : f32
    %219 = vector.broadcast %cst_213 : f32 to vector<256x128xf32>
    %220 = arith.maximumf %218, %219 : vector<256x128xf32>
    %cst_214 = arith.constant dense<0.000000e+00> : vector<128xf32>
    %221 = vector.multi_reduction <add>, %220, %cst_214 [0] : vector<256x128xf32> to vector<128xf32>
    %222 = vector.shape_cast %221 : vector<128xf32> to vector<1x128xf32>
    %cst_215 = arith.constant 2.560000e+02 : f32
    %223 = vector.broadcast %cst_215 : f32 to vector<1x128xf32>
    %224 = arith.divf %222, %223 : vector<1x128xf32>
    %225 = vector.shape_cast %224 : vector<1x128xf32> to vector<1x128xf32>
    %226 = vector.broadcast %225 : vector<1x128xf32> to vector<8x128xf32>
    %227 = arith.truncf %226 : vector<8x128xf32> to vector<8x128xbf16>
    %c0_216 = arith.constant 0 : index
    %c0_217 = arith.constant 0 : index
    %228 = vector.load %arg8[%c0_216, %c0_217] : memref<128x128xbf16, #tpu.memory_space<vmem>>, vector<128x128xbf16>
    %cst_218 = arith.constant dense<0.000000e+00> : vector<8x128xf32>
    %229 = tpu.matmul %227, %228, %cst_218 {dimension_numbers = #tpu.dot_dimension_numbers<[1], [0], [0], [1], [0, 0, 1, 1], [], []>} : vector<8x128xbf16>, vector<128x128xbf16>, vector<8x128xf32> -> vector<8x128xf32>
    %c0_219 = arith.constant 0 : index
    %c0_220 = arith.constant 0 : index
    %230 = vector.load %arg9[%c0_219, %c0_220] : memref<1x128xf32, #tpu.memory_space<vmem>>, vector<1x128xf32>
    %231 = vector.broadcast %230 : vector<1x128xf32> to vector<8x128xf32>
    %232 = arith.addf %229, %231 : vector<8x128xf32>
    %c0_221 = arith.constant 0 : index
    %c0_222 = arith.constant 0 : index
    %c0_223 = arith.constant 0 : index
    %233 = vector.load %arg10[%c0_221, %c0_222, %c0_223] : memref<1x8x128xf32, #tpu.memory_space<vmem>>, vector<1x8x128xf32>
    %234 = vector.shape_cast %233 : vector<1x8x128xf32> to vector<8x128xf32>
    %235 = vector.shape_cast %232 : vector<8x128xf32> to vector<1x8x128xf32>
    tpu.vector_store %arg10[%c0_221, %c0_222, %c0_223], %235 {strides = array<i32>} : memref<1x8x128xf32, #tpu.memory_space<vmem>>, vector<1x8x128xf32>,
    return
  }
  func.func @transform_0(%arg0: i32) -> (i32, i32, i32, i32) {
    %c0_i32 = arith.constant 0 : i32
    %c0_i32_0 = arith.constant 0 : i32
    %c0_i32_1 = arith.constant 0 : i32
    %c0_i32_2 = arith.constant 0 : i32
    return %arg0, %c0_i32, %c0_i32_0, %c0_i32_1 : i32, i32, i32, i32
  }
  func.func @transform_1(%arg0: i32) -> (i32, i32, i32) {
    %c0_i32 = arith.constant 0 : i32
    %c0_i32_0 = arith.constant 0 : i32
    %c0_i32_1 = arith.constant 0 : i32
    %c0_i32_2 = arith.constant 0 : i32
    return %c0_i32, %c0_i32_0, %c0_i32_1 : i32, i32, i32
  }
  func.func @transform_2(%arg0: i32) -> (i32, i32) {
    %c0_i32 = arith.constant 0 : i32
    %c0_i32_0 = arith.constant 0 : i32
    %c0_i32_1 = arith.constant 0 : i32
    return %c0_i32, %c0_i32_0 : i32, i32
  }
  func.func @transform_3(%arg0: i32) -> (i32, i32, i32) {
    %c0_i32 = arith.constant 0 : i32
    %c0_i32_0 = arith.constant 0 : i32
    %c0_i32_1 = arith.constant 0 : i32
    %c0_i32_2 = arith.constant 0 : i32
    return %c0_i32, %c0_i32_0, %c0_i32_1 : i32, i32, i32
  }
  func.func @transform_4(%arg0: i32) -> (i32, i32) {
    %c0_i32 = arith.constant 0 : i32
    %c0_i32_0 = arith.constant 0 : i32
    %c0_i32_1 = arith.constant 0 : i32
    return %c0_i32, %c0_i32_0 : i32, i32
  }
  func.func @transform_5(%arg0: i32) -> (i32, i32, i32) {
    %c0_i32 = arith.constant 0 : i32
    %c0_i32_0 = arith.constant 0 : i32
    %c0_i32_1 = arith.constant 0 : i32
    %c0_i32_2 = arith.constant 0 : i32
    return %c0_i32, %c0_i32_0, %c0_i32_1 : i32, i32, i32
  }
  func.func @transform_6(%arg0: i32) -> (i32, i32) {
    %c0_i32 = arith.constant 0 : i32
    %c0_i32_0 = arith.constant 0 : i32
    %c0_i32_1 = arith.constant 0 : i32
    return %c0_i32, %c0_i32_0 : i32, i32
  }
  func.func @transform_7(%arg0: i32) -> (i32, i32) {
    %c0_i32 = arith.constant 0 : i32
    %c0_i32_0 = arith.constant 0 : i32
    %c0_i32_1 = arith.constant 0 : i32
    return %c0_i32, %c0_i32_0 : i32, i32
  }
  func.func @transform_8(%arg0: i32) -> (i32, i32) {
    %c0_i32 = arith.constant 0 : i32
    %c0_i32_0 = arith.constant 0 : i32
    %c0_i32_1 = arith.constant 0 : i32
    return %c0_i32, %c0_i32_0 : i32, i32
  }
  func.func @transform_9(%arg0: i32) -> (i32, i32, i32) {
    %c0_i32 = arith.constant 0 : i32
    %c0_i32_0 = arith.constant 0 : i32
    %c0_i32_1 = arith.constant 0 : i32
    return %arg0, %c0_i32, %c0_i32_0 : i32, i32, i32
  }
}

</mosaic_0001>

<bundles_post_ra>
// kernel: interprinter_forward.1
= control target key start
LH: loop header
LB: loop body
LE: loop exit
PB: predicated region body
PF: predicated region fallthrough
CT: control target
= control target key end

     0   :  { %s12160_s30 = smov 0   ;;  %s15609_s0 = inlined_call_operand.vmem [shape: f32[2,18,18,128], index: 0, kind: input, shape index: {}]   ;;  %s15610_s1 = inlined_call_operand.vmem [shape: bf16[9,128,128], index: 1, kind: input, shape index: {}]   ;;  %s15611_s2 = inlined_call_operand.vmem [shape: f32[1,128], index: 2, kind: input, shape index: {}]   ;;  %s15612_s3 = inlined_call_operand.vmem [shape: bf16[9,128,128], index: 3, kind: input, shape index: {}]   ;;  %s15613_s4 = inlined_call_operand.vmem [shape: f32[1,128], index: 4, kind: input, shape index: {}]   ;;  %s15614_s5 = inlined_call_operand.vmem [shape: bf16[9,128,128], index: 5, kind: input, shape index: {}]   ;;  %s15615_s6 = inlined_call_operand.vmem [shape: f32[1,128], index: 6, kind: input, shape index: {}]   ;;  %s15616_s7 = inlined_call_operand.vmem [shape: bf16[128,128], index: 7, kind: input, shape index: {}]   ;;  %s15617_s8 = inlined_call_operand.vmem [shape: f32[1,128], index: 8, kind: input, shape index: {}]   ;;  %s15618_s9 = inlined_call_operand.vmem [shape: f32[2,8,128], index: 9, kind: output, shape index: {}]  }
   0x1 LB: > { %s9059_s10 = sadd.s32 4294967295, %s12105_s30   ;;  %p9063_p0 = scmp.ge.s32.totalorder %s12105_s30, 1  ;;  %s12105_s30 = sphi %s12160_s30, %s19_s30  }
   0x2   : > { %p287_p1 = scmp.lt.s32.totalorder %s12105_s30, 3 }
   0x4   : > { %p288_p2 = pnand %p9063_p0, %p287_p1 }
   0x6   : > { %291 = sbr.rel (%p288_p2) target bundleno = 1716 (0x6b4), region = 56 }
   0xb   : > { %v11872_v0 = vld [vmem:[%s15610_s1 + $0x78] sm:$0xff]   ;;  %p322_p3 = scmp.lt.s32.totalorder %s9059_s10, 1  ;;  %v11873_v1 = vld [vmem:[%s15610_s1 + $0x70] sm:$0xff]   ;;  %v11874_v2 = vld [vmem:[%s15610_s1 + $0x68] sm:$0xff]   ;;  %vm12109_vm0 = vmmov 0  }
   0xc   : > { %10529 = vmatprep.subr.bf16.mxu0 %v11872_v0  ;;  %11845 = vmatprep.subr.bf16.mxu1 %v11872_v0  ;;  %v11875_v3 = vld [vmem:[%s15610_s1 + $0x60] sm:$0xff]   ;;  %v11876_v10 = vld [vmem:[%s15610_s1 + $0x58] sm:$0xff]   ;;  %v11877_v11 = vld [vmem:[%s15610_s1 + $0x50] sm:$0xff]  }
   0xd   : > { %s15972_s10 = smov (!%p322_p3, %s9059_s10), 1  ;;  %10530 = vmatpush3.bf16.msra.mxu0 %v11872_v0  ;;  %11853 = vmatpush3.bf16.msra.mxu1 %v11872_v0  ;;  %v11878_v12 = vld [vmem:[%s15610_s1 + $0x48] sm:$0xff]   ;;  %v11879_v13 = vld [vmem:[%s15610_s1 + $0x40] sm:$0xff]   ;;  %v11880_v18 = vld [vmem:[%s15610_s1 + $0x38] sm:$0xff]  }
   0xe   : > { %10531 = vmatprep.subr.bf16.mxu0 %v11873_v1  ;;  %11846 = vmatprep.subr.bf16.mxu1 %v11873_v1  ;;  %s11861_s17 = smul.u32 432, %s15972_s10  ;;  %v11881_v19 = vld [vmem:[%s15610_s1 + $0xb8] sm:$0xff]   ;;  %v11882_v26 = vld [vmem:[%s15610_s1 + $0x30] sm:$0xff]   ;;  %v11884_v34 = vld [vmem:[%s15610_s1 + $0x28] sm:$0xff]   ;;  %s9065_s21 = sshll.u32 %s15972_s10, 3 }
   0xf   : > { %v11883_v27 = vld [vmem:[%s15610_s1 + $0xb0] sm:$0xff]   ;;  %v11885_v35 = vld [vmem:[%s15610_s1 + $0xa8] sm:$0xff]   ;;  %v11886_v42 = vld [vmem:[%s15610_s1 + $0x20] sm:$0xff]   ;;  %s330_s25 = scalar_lea.vmem %s15618_s9, %s9065_s21 }
  0x10   : > { %s12183_s20 = scalar_lea.vmem %s15609_s0, %s11861_s17  ;;  %v11887_v43 = vld [vmem:[%s15610_s1 + $0xa0] sm:$0xff]   ;;  %v11888_v50 = vld [vmem:[%s15610_s1 + $0x18] sm:$0xff]   ;;  %v11890_v58 = vld [vmem:[%s15610_s1 + $0x10] sm:$0xff]  }
  0x11   : > { %10532 = vmatpush3.bf16.msra.mxu0 %v11873_v1  ;;  %11854 = vmatpush3.bf16.msra.mxu1 %v11873_v1  ;;  %v396_v4 = vld [vmem:[%s12183_s20 + $0x1] sm:$0xff]  ;;  %v397_v5 = vld [vmem:[%s12183_s20 + $0x9] sm:$0xff]  ;;  %v398_v14 = vld [vmem:[%s12183_s20 + $0x19] sm:$0xff] }
  0x12   : > { %10533 = vmatprep.subr.bf16.mxu0 %v11874_v2  ;;  %11847 = vmatprep.subr.bf16.mxu1 %v11874_v2  ;;  %v412_v6 = vld [vmem:[%s12183_s20 + $0xc1] sm:$0xff]  ;;  %v428_v7 = vpack.c.bf16 %v397_v5, %v396_v4  ;;  %v413_v8 = vld [vmem:[%s12183_s20 + $0xc9] sm:$0xff]  ;;  %v414_v16 = vld [vmem:[%s12183_s20 + $0xd9] sm:$0xff] }
  0x13   : > { %v12192_v9 = vpack.c.bf16 %v413_v8, %v412_v6  ;;  %v399_v15 = vld [vmem:[%s12183_s20 + $0x21] sm:$0xff]  ;;  %v400_v20 = vld [vmem:[%s12183_s20 + $0x31] sm:$0xff]  ;;  %v401_v21 = vld [vmem:[%s12183_s20 + $0x39] sm:$0xff] }
  0x14   : > { %10545 = vmatprep.mubr.bf16.mxu0 %v428_v7  ;;  %v415_v17 = vld [vmem:[%s12183_s20 + $0xe1] sm:$0xff]  ;;  %v12219_v22 = vpack.c.bf16 %v399_v15, %v398_v14  ;;  %v416_v24 = vld [vmem:[%s12183_s20 + $0xf1] sm:$0xff]  ;;  %v417_v25 = vld [vmem:[%s12183_s20 + $0xf9] sm:$0xff]  ;;  %v12231_v28 = vpack.c.bf16 %v401_v21, %v400_v20 }
  0x15   : > { %10534 = vmatpush3.bf16.msra.mxu0 %v11874_v2  ;;  %11855 = vmatpush3.bf16.msra.mxu1 %v11874_v2  ;;  %v12221_v23 = vpack.c.bf16 %v415_v17, %v414_v16  ;;  %v12233_v29 = vpack.c.bf16 %v417_v25, %v416_v24  ;;  %v402_v30 = vld [vmem:[%s12183_s20 + $0x49] sm:$0xff]  ;;  %v403_v31 = vld [vmem:[%s12183_s20 + $0x51] sm:$0xff]  ;;  %v404_v36 = vld [vmem:[%s12183_s20 + $0x61] sm:$0xff] }
  0x16   : > { %10535 = vmatprep.subr.bf16.mxu0 %v11875_v3  ;;  %11848 = vmatprep.subr.bf16.mxu1 %v11875_v3  ;;  %v418_v32 = vld [vmem:[%s12183_s20 + $0x109] sm:$0xff]  ;;  %v419_v33 = vld [vmem:[%s12183_s20 + $0x111] sm:$0xff]  ;;  %v420_v38 = vld [vmem:[%s12183_s20 + $0x121] sm:$0xff]  ;;  %v12252_v39 = vpack.c.bf16 %v403_v31, %v402_v30 }
  0x17   : > { %10561 = vmatprep.mubr.bf16.mxu1 %v12192_v9  ;;  %v405_v37 = vld [vmem:[%s12183_s20 + $0x69] sm:$0xff]  ;;  %v12254_v40 = vpack.c.bf16 %v419_v33, %v418_v32  ;;  %v406_v46 = vld [vmem:[%s12183_s20 + $0x79] sm:$0xff]  ;;  %v407_v47 = vld [vmem:[%s12183_s20 + $0x81] sm:$0xff] }
  0x18   : > { %v421_v41 = vld [vmem:[%s12183_s20 + $0x129] sm:$0xff]  ;;  %v12263_v44 = vpack.c.bf16 %v405_v37, %v404_v36  ;;  %v422_v48 = vld [vmem:[%s12183_s20 + $0x139] sm:$0xff]  ;;  %v423_v49 = vld [vmem:[%s12183_s20 + $0x141] sm:$0xff]  ;;  %v12283_v54 = vpack.c.bf16 %v407_v47, %v406_v46 }
  0x19   : > { %10536 = vmatpush3.bf16.msra.mxu0 %v11875_v3  ;;  %11856 = vmatpush3.bf16.msra.mxu1 %v11875_v3  ;;  %v12265_v45 = vpack.c.bf16 %v421_v41, %v420_v38  ;;  %v11889_v51 = vld [vmem:[%s15610_s1 + $0x98] sm:$0xff]   ;;  %v12285_v55 = vpack.c.bf16 %v423_v49, %v422_v48  ;;  %v11891_v59 = vld [vmem:[%s15610_s1 + $0x90] sm:$0xff]   ;;  %v11892_v2 = vld [vmem:[%s15610_s1 + $0x8] sm:$0xff]  }
  0x1a   : > { %10537 = vmatprep.subr.bf16.mxu0 %v11876_v10  ;;  %11849 = vmatprep.subr.bf16.mxu1 %v11876_v10  ;;  %v408_v52 = vld [vmem:[%s12183_s20 + $0x91] sm:$0xff]  ;;  %v409_v53 = vld [vmem:[%s12183_s20 + $0x99] sm:$0xff]  ;;  %v410_v62 = vld [vmem:[%s12183_s20 + $0xa9] sm:$0xff] }
  0x1b   : > { %v424_v56 = vld [vmem:[%s12183_s20 + $0x151] sm:$0xff]  ;;  %v425_v57 = vld [vmem:[%s12183_s20 + $0x159] sm:$0xff]  ;;  %v12295_v60 = vpack.c.bf16 %v409_v53, %v408_v52  ;;  %v426_v0 = vld [vmem:[%s12183_s20 + $0x169] sm:$0xff] }
  0x1c   : > { %v12297_v61 = vpack.c.bf16 %v425_v57, %v424_v56  ;;  %v411_v63 = vld [vmem:[%s12183_s20 + $0xb1] sm:$0xff]  ;;  %v11893_v3 = vld [vmem:[%s15610_s1 + $0x88] sm:$0xff]   ;;  %v332_v4 = vld [vmem:[%s12183_s20] sm:$0xff] }
  0x1d   : > { %10538 = vmatpush3.bf16.msra.mxu0 %v11876_v10  ;;  %11857 = vmatpush3.bf16.msra.mxu1 %v11876_v10  ;;  %v427_v1 = vld [vmem:[%s12183_s20 + $0x171] sm:$0xff]  ;;  %v12314_v5 = vpack.c.bf16 %v411_v63, %v410_v62  ;;  %v333_v7 = vld [vmem:[%s12183_s20 + $0x8] sm:$0xff]  ;;  %v335_v16 = vld [vmem:[%s12183_s20 + $0x20] sm:$0xff] }
  0x1e   : > { %10539 = vmatprep.subr.bf16.mxu0 %v11877_v11  ;;  %11850 = vmatprep.subr.bf16.mxu1 %v11877_v11  ;;  %v12316_v6 = vpack.c.bf16 %v427_v1, %v426_v0  ;;  %v879_v8 = vld [vmem:[%s12183_s20 + $0x2] sm:$0xff]  ;;  %v880_v10 = vld [vmem:[%s12183_s20 + $0xa] sm:$0xff]  ;;  %v334_v15 = vld [vmem:[%s12183_s20 + $0x18] sm:$0xff] }
  0x1f   : > { %v911_v14 = vpack.c.bf16 %v880_v10, %v879_v8  ;;  %v881_v17 = vld [vmem:[%s12183_s20 + $0x1a] sm:$0xff]  ;;  %v336_v21 = vld [vmem:[%s12183_s20 + $0x30] sm:$0xff]  ;;  %v11900_v47 = vld [vmem:[%s15610_s1 + $0xe8] sm:$0xff]  }
  0x20   : > { %v11897_v20 = vld [vmem:[%s15610_s1 + $0x138] sm:$0xff]   ;;  %v11898_v33 = vld [vmem:[%s15610_s1 + $0xf0] sm:$0xff]   ;;  %v340_v41 = vld [vmem:[%s12183_s20 + $0x60] sm:$0xff] }
  0x21   : > { %10540 = vmatpush3.bf16.msra.mxu0 %v11877_v11  ;;  %11858 = vmatpush3.bf16.msra.mxu1 %v11877_v11  ;;  %v11894_v11 = vld [vmem:[%s15610_s1] sm:$0xff]   ;;  %v337_v24 = vld [vmem:[%s12183_s20 + $0x38] sm:$0xff]  ;;  %v885_v36 = vld [vmem:[%s12183_s20 + $0x4a] sm:$0xff] }
  0x22   : > { %10541 = vmatprep.subr.bf16.mxu0 %v11878_v12  ;;  %11851 = vmatprep.subr.bf16.mxu1 %v11878_v12  ;;  %v883_v25 = vld [vmem:[%s12183_s20 + $0x32] sm:$0xff]  ;;  %v12347_v31 = vpack.c.bf16 %v337_v24, %v336_v21  ;;  %v888_v46 = vld [vmem:[%s12183_s20 + $0x6a] sm:$0xff]  ;;  %v11902_v53 = vld [vmem:[%s15610_s1 + $0xe0] sm:$0xff]  }
  0x23   : > { %v11899_v37 = vld [vmem:[%s15610_s1 + $0x130] sm:$0xff]   ;;  %v11901_v48 = vld [vmem:[%s15610_s1 + $0x128] sm:$0xff]   ;;  %v342_v56 = vld [vmem:[%s12183_s20 + $0x78] sm:$0xff] }
  0x24   : > { %v886_v38 = vld [vmem:[%s12183_s20 + $0x52] sm:$0xff]  ;;  %v343_v57 = vld [vmem:[%s12183_s20 + $0x80] sm:$0xff]  ;;  %v896_v21 = vld [vmem:[%s12183_s20 + $0xca] sm:$0xff] }
  0x25   : > { %10542 = vmatpush3.bf16.msra.mxu0 %v11878_v12  ;;  %11859 = vmatpush3.bf16.msra.mxu1 %v11878_v12  ;;  %v11895_v12 = vld [vmem:[%s15610_s1 + $0x80] sm:$0xff]   ;;  %v344_v63 = vld [vmem:[%s12183_s20 + $0x90] sm:$0xff]  ;;  %v345_v0 = vld [vmem:[%s12183_s20 + $0x98] sm:$0xff] }
  0x26   : > { %10543 = vmatprep.subr.bf16.mxu0 %v11879_v13  ;;  %11852 = vmatprep.subr.bf16.mxu1 %v11879_v13  ;;  %v11903_v62 = vld [vmem:[%s15610_s1 + $0x120] sm:$0xff]   ;;  %v891_v1 = vld [vmem:[%s12183_s20 + $0x92] sm:$0xff]  ;;  %v12411_v10 = vpack.c.bf16 %v345_v0, %v344_v63  ;;  %v11908_v24 = vld [vmem:[%s15610_s1 + $0xc8] sm:$0xff]  }
  0x27   : > { %v354_v0 = vld [vmem:[%s12183_s20 + $0x108] sm:$0xff] }
  0x29   : > { %10544 = vmatpush3.bf16.msra.mxu0 %v11879_v13  ;;  %11860 = vmatpush3.bf16.msra.mxu1 %v11879_v13  ;;  %v364_v13 = vpack.c.bf16 %v333_v7, %v332_v4  ;;  %v11905_v4 = vld [vmem:[%s15610_s1 + $0x118] sm:$0xff]   ;;  %v12407_v7 = vpack.c.bf16 %v343_v57, %v342_v56 }
  0x2a   : > { %10577 = vmatprep.subr.bf16.mxu1 %v11880_v18  ;;  %10625 = vmatprep.subr.bf16.mxu0 %v11881_v19  ;;  %v12468_v56 = vld [vmem:[%s15610_s1 + $0x178] sm:$0xff]  }
  0x2b   : > { %v11913_v57 = vld [vmem:[%s15610_s1 + $0x1b8] sm:$0xff]  }
  0x2c   : > { %10546 = vmatmul.mubr.bf16.vlgmr.msra.gmra.mxu0 %v12219_v22  ;;  %10562 = vmatmul.mubr.bf16.vlgmr.msra.gmra.mxu1 %v12221_v23 }
  0x2d   : > { %10578 = vmatpush3.bf16.msra.mxu1 %v11880_v18  ;;  %10626 = vmatpush3.bf16.msra.mxu0 %v11881_v19  ;;  %v882_v18 = vld [vmem:[%s12183_s20 + $0x22] sm:$0xff]  ;;  %v11896_v19 = vld [vmem:[%s15610_s1 + $0xf8] sm:$0xff]  }
  0x2e   : > { %10579 = vmatprep.subr.bf16.mxu1 %v11882_v26  ;;  %10627 = vmatprep.subr.bf16.mxu0 %v11883_v27  ;;  %v12345_v30 = vpack.c.bf16 %v882_v18, %v881_v17  ;;  %v11907_v17 = vld [vmem:[%s15610_s1 + $0x110] sm:$0xff]   ;;  %v348_v18 = vld [vmem:[%s12183_s20 + $0xc0] sm:$0xff] }
  0x2f   : > { %10549 = vmatprep.mubr.bf16.mxu0 %v12231_v28  ;;  %10565 = vmatprep.mubr.bf16.mxu1 %v12233_v29 }
  0x31   : > { %10580 = vmatpush3.bf16.msra.mxu1 %v11882_v26  ;;  %10628 = vmatpush3.bf16.msra.mxu0 %v11883_v27  ;;  %v884_v26 = vld [vmem:[%s12183_s20 + $0x3a] sm:$0xff]  ;;  %v12343_v27 = vpack.c.bf16 %v335_v16, %v334_v15  ;;  %v893_v15 = vld [vmem:[%s12183_s20 + $0xaa] sm:$0xff]  ;;  %v894_v16 = vld [vmem:[%s12183_s20 + $0xb2] sm:$0xff] }
  0x32   : > { %10581 = vmatprep.subr.bf16.mxu1 %v11884_v34  ;;  %10629 = vmatprep.subr.bf16.mxu0 %v11885_v35  ;;  %v12349_v32 = vpack.c.bf16 %v884_v26, %v883_v25  ;;  %v11909_v25 = vld [vmem:[%s15610_s1 + $0x108] sm:$0xff]  }
  0x34   : > { %10550 = vmatmul.mubr.bf16.gmra.mxu0 %v12252_v39  ;;  %10566 = vmatmul.mubr.bf16.gmra.mxu1 %v12254_v40 }
  0x35   : > { %10582 = vmatpush3.bf16.msra.mxu1 %v11884_v34  ;;  %10630 = vmatpush3.bf16.msra.mxu0 %v11885_v35  ;;  %v338_v34 = vld [vmem:[%s12183_s20 + $0x48] sm:$0xff]  ;;  %v339_v35 = vld [vmem:[%s12183_s20 + $0x50] sm:$0xff] }
  0x36   : > { %10583 = vmatprep.subr.bf16.mxu1 %v11886_v42  ;;  %10631 = vmatprep.subr.bf16.mxu0 %v11887_v43  ;;  %v12375_v49 = vpack.c.bf16 %v339_v35, %v338_v34 }
  0x37   : > { %10553 = vmatprep.mubr.bf16.mxu0 %v12263_v44  ;;  %10569 = vmatprep.mubr.bf16.mxu1 %v12265_v45 }
  0x39   : > { %10584 = vmatpush3.bf16.msra.mxu1 %v11886_v42  ;;  %10632 = vmatpush3.bf16.msra.mxu0 %v11887_v43  ;;  %v341_v42 = vld [vmem:[%s12183_s20 + $0x68] sm:$0xff] }
  0x3a   : > { %10585 = vmatprep.subr.bf16.mxu1 %v11888_v50  ;;  %10633 = vmatprep.subr.bf16.mxu0 %v11889_v51  ;;  %v887_v43 = vld [vmem:[%s12183_s20 + $0x62] sm:$0xff] }
  0x3b   : > { %v12381_v52 = vpack.c.bf16 %v888_v46, %v887_v43  ;;  %v11911_v43 = vld [vmem:[%s15610_s1 + $0x100] sm:$0xff]   ;;  %v352_v46 = vld [vmem:[%s12183_s20 + $0xf0] sm:$0xff] }
  0x3c   : > { %10554 = vmatmul.mubr.bf16.gmra.mxu0 %v12283_v54  ;;  %10570 = vmatmul.mubr.bf16.gmra.mxu1 %v12285_v55 }
  0x3d   : > { %10586 = vmatpush3.bf16.msra.mxu1 %v11888_v50  ;;  %10634 = vmatpush3.bf16.msra.mxu0 %v11889_v51  ;;  %v12377_v50 = vpack.c.bf16 %v886_v38, %v885_v36  ;;  %v12379_v51 = vpack.c.bf16 %v341_v42, %v340_v41  ;;  %v11910_v36 = vld [vmem:[%s15610_s1 + $0xc0] sm:$0xff]  }
  0x3e   : > { %10587 = vmatprep.subr.bf16.mxu1 %v11890_v58  ;;  %10635 = vmatprep.subr.bf16.mxu0 %v11891_v59  ;;  %v351_v38 = vld [vmem:[%s12183_s20 + $0xe0] sm:$0xff] }
  0x3f   : > { %10557 = vmatprep.mubr.bf16.mxu0 %v12295_v60  ;;  %10573 = vmatprep.mubr.bf16.mxu1 %v12297_v61  ;;  %v897_v41 = vld [vmem:[%s12183_s20 + $0xda] sm:$0xff]  ;;  %v898_v42 = vld [vmem:[%s12183_s20 + $0xe2] sm:$0xff] }
  0x41   : > { %10588 = vmatpush3.bf16.msra.mxu1 %v11890_v58  ;;  %10636 = vmatpush3.bf16.msra.mxu0 %v11891_v59  ;;  %v889_v58 = vld [vmem:[%s12183_s20 + $0x7a] sm:$0xff]  ;;  %v890_v59 = vld [vmem:[%s12183_s20 + $0x82] sm:$0xff] }
  0x42   : > { %10589 = vmatprep.subr.bf16.mxu1 %v11892_v2  ;;  %10637 = vmatprep.subr.bf16.mxu0 %v11893_v3  ;;  %v12409_v8 = vpack.c.bf16 %v890_v59, %v889_v58  ;;  %v12475_v59 = vpack.c.bf16 %v898_v42, %v897_v41 }
  0x44   : > { %10558 = vmatmul.mubr.bf16.gmra.mxu0 %v12314_v5  ;;  %10574 = vmatmul.mubr.bf16.gmra.mxu1 %v12316_v6 }
  0x45   : > { %10590 = vmatpush3.bf16.msra.mxu1 %v11892_v2  ;;  %10638 = vmatpush3.bf16.msra.mxu0 %v11893_v3  ;;  %v892_v2 = vld [vmem:[%s12183_s20 + $0x9a] sm:$0xff] }
  0x46   : > { %10591 = vmatprep.subr.bf16.mxu1 %v11894_v11  ;;  %10639 = vmatprep.subr.bf16.mxu0 %v11895_v12  ;;  %v11904_v3 = vld [vmem:[%s15610_s1 + $0xd8] sm:$0xff]  }
  0x47   : > { %10593 = vmatprep.mubr.bf16.mxu1 %v364_v13  ;;  %10641 = vmatprep.mubr.bf16.mxu0 %v911_v14  ;;  %v346_v13 = vld [vmem:[%s12183_s20 + $0xa8] sm:$0xff]  ;;  %v347_v14 = vld [vmem:[%s12183_s20 + $0xb0] sm:$0xff] }
  0x48   : > { %v12439_v26 = vpack.c.bf16 %v347_v14, %v346_v13  ;;  %v903_v13 = vld [vmem:[%s12183_s20 + $0x122] sm:$0xff]  ;;  %v904_v14 = vld [vmem:[%s12183_s20 + $0x12a] sm:$0xff] }
  0x49   : > { %10592 = vmatpush3.bf16.msra.mxu1 %v11894_v11  ;;  %10640 = vmatpush3.bf16.msra.mxu0 %v11895_v12  ;;  %v12413_v11 = vpack.c.bf16 %v892_v2, %v891_v1  ;;  %v11906_v12 = vld [vmem:[%s15610_s1 + $0xd0] sm:$0xff]  }
  0x4a   : > { %10673 = vmatprep.subr.bf16.mxu1 %v11896_v19  ;;  %10721 = vmatprep.subr.bf16.mxu0 %v11897_v20  ;;  %v355_v1 = vld [vmem:[%s12183_s20 + $0x110] sm:$0xff] }
  0x4b   : > { %v901_v2 = vld [vmem:[%s12183_s20 + $0x10a] sm:$0xff] }
  0x4c   : > { %10594 = vmatmul.mubr.bf16.vlgmr.msra.gmra.mxu1 %v12343_v27  ;;  %10642 = vmatmul.mubr.bf16.vlgmr.msra.gmra.mxu0 %v12345_v30 }
  0x4d   : > { %10674 = vmatpush3.bf16.msra.mxu1 %v11896_v19  ;;  %10722 = vmatpush3.bf16.msra.mxu0 %v11897_v20  ;;  %v349_v19 = vld [vmem:[%s12183_s20 + $0xc8] sm:$0xff] }
  0x4e   : > { %10597 = vmatprep.mubr.bf16.mxu1 %v12347_v31  ;;  %10645 = vmatprep.mubr.bf16.mxu0 %v12349_v32  ;;  %v895_v20 = vld [vmem:[%s12183_s20 + $0xc2] sm:$0xff]  ;;  %v12443_v34 = vpack.c.bf16 %v349_v19, %v348_v18  ;;  %v12500_v18 = vpack.c.bf16 %v904_v14, %v903_v13  ;;  %v358_v19 = vld [vmem:[%s12183_s20 + $0x138] sm:$0xff] }
  0x4f   : > { %10675 = vmatprep.subr.bf16.mxu1 %v11898_v33  ;;  %10723 = vmatprep.subr.bf16.mxu0 %v11899_v37  ;;  %v12445_v35 = vpack.c.bf16 %v896_v21, %v895_v20  ;;  %v359_v20 = vld [vmem:[%s12183_s20 + $0x140] sm:$0xff]  ;;  %v11925_v13 = vld [vmem:[%s15610_s1 + $0x188] sm:$0xff]   ;;  %v11928_v14 = vld [vmem:[%s15610_s1 + $0x1f8] sm:$0xff]  }
  0x50   : > { %v905_v21 = vld [vmem:[%s12183_s20 + $0x13a] sm:$0xff]  ;;  %v12514_v41 = vpack.c.bf16 %v359_v20, %v358_v19 }
  0x51   : > { %10676 = vmatpush3.bf16.msra.mxu1 %v11898_v33  ;;  %10724 = vmatpush3.bf16.msra.mxu0 %v11899_v37  ;;  %v12441_v33 = vpack.c.bf16 %v894_v16, %v893_v15  ;;  %v350_v37 = vld [vmem:[%s12183_s20 + $0xd8] sm:$0xff]  ;;  %v12494_v15 = vpack.c.bf16 %v355_v1, %v354_v0  ;;  %v9208_v20 = vld [vmem:[%s12183_s20 + $0x181] sm:$0xff] }
  0x52   : > { %10677 = vmatprep.subr.bf16.mxu1 %v11900_v47  ;;  %10725 = vmatprep.subr.bf16.mxu0 %v11901_v48  ;;  %v12473_v58 = vpack.c.bf16 %v351_v38, %v350_v37  ;;  %v907_v37 = vld [vmem:[%s12183_s20 + $0x152] sm:$0xff]  ;;  %v908_v38 = vld [vmem:[%s12183_s20 + $0x15a] sm:$0xff] }
  0x53   : > { %v910_v0 = vld [vmem:[%s12183_s20 + $0x172] sm:$0xff] }
  0x54   : > { %10598 = vmatmul.mubr.bf16.gmra.mxu1 %v12375_v49  ;;  %10646 = vmatmul.mubr.bf16.gmra.mxu0 %v12377_v50  ;;  %v11929_v19 = vld [vmem:[%s15610_s1 + $0x238] sm:$0xff]  }
  0x55   : > { %10601 = vmatprep.mubr.bf16.mxu1 %v12379_v51  ;;  %10649 = vmatprep.mubr.bf16.mxu0 %v12381_v52 }
  0x56   : > { %10678 = vmatpush3.bf16.msra.mxu1 %v11900_v47  ;;  %10726 = vmatpush3.bf16.msra.mxu0 %v11901_v48  ;;  %v353_v47 = vld [vmem:[%s12183_s20 + $0xf8] sm:$0xff] }
  0x57   : > { %10679 = vmatprep.subr.bf16.mxu1 %v11902_v53  ;;  %10727 = vmatprep.subr.bf16.mxu0 %v11903_v62  ;;  %v899_v48 = vld [vmem:[%s12183_s20 + $0xf2] sm:$0xff] }
  0x5a   : > { %10680 = vmatpush3.bf16.msra.mxu1 %v11902_v53  ;;  %10728 = vmatpush3.bf16.msra.mxu0 %v11903_v62  ;;  %v900_v53 = vld [vmem:[%s12183_s20 + $0xfa] sm:$0xff]  ;;  %v12477_v62 = vpack.c.bf16 %v353_v47, %v352_v46  ;;  %v12520_v46 = vpack.c.bf16 %v908_v38, %v907_v37  ;;  %v362_v47 = vld [vmem:[%s12183_s20 + $0x168] sm:$0xff] }
  0x5b   : > { %10681 = vmatprep.subr.bf16.mxu1 %v11904_v3  ;;  %10729 = vmatprep.subr.bf16.mxu0 %v11905_v4  ;;  %v12479_v63 = vpack.c.bf16 %v900_v53, %v899_v48  ;;  %v363_v48 = vld [vmem:[%s12183_s20 + $0x170] sm:$0xff] }
  0x5c   : > { %10602 = vmatmul.mubr.bf16.gmra.mxu1 %v12407_v7  ;;  %10650 = vmatmul.mubr.bf16.gmra.mxu0 %v12409_v8  ;;  %v909_v53 = vld [vmem:[%s12183_s20 + $0x16a] sm:$0xff]  ;;  %v12530_v1 = vpack.c.bf16 %v363_v48, %v362_v47  ;;  %v9321_v47 = vld [vmem:[%s12183_s20 + $0x1a0] sm:$0xff] }
  0x5d   : > { %10605 = vmatprep.mubr.bf16.mxu1 %v12411_v10  ;;  %10653 = vmatprep.mubr.bf16.mxu0 %v12413_v11  ;;  %v9346_v48 = vld [vmem:[%s12183_s20 + $0x31] sm:$0xff] }
  0x5e   : > { %10682 = vmatpush3.bf16.msra.mxu1 %v11904_v3  ;;  %10730 = vmatpush3.bf16.msra.mxu0 %v11905_v4  ;;  %v902_v3 = vld [vmem:[%s12183_s20 + $0x112] sm:$0xff]  ;;  %v356_v4 = vld [vmem:[%s12183_s20 + $0x120] sm:$0xff] }
  0x5f   : > { %10683 = vmatprep.subr.bf16.mxu1 %v11906_v12  ;;  %10731 = vmatprep.subr.bf16.mxu0 %v11907_v17  ;;  %v12496_v16 = vpack.c.bf16 %v902_v3, %v901_v2  ;;  %v12532_v2 = vpack.c.bf16 %v910_v0, %v909_v53  ;;  %v11914_v3 = vld [vmem:[%s15610_s1 + $0x170] sm:$0xff]  }
  0x62   : > { %10684 = vmatpush3.bf16.msra.mxu1 %v11906_v12  ;;  %10732 = vmatpush3.bf16.msra.mxu0 %v11907_v17  ;;  %v357_v12 = vld [vmem:[%s12183_s20 + $0x128] sm:$0xff] }
  0x63   : > { %10685 = vmatprep.subr.bf16.mxu1 %v11908_v24  ;;  %10733 = vmatprep.subr.bf16.mxu0 %v11909_v25  ;;  %v12498_v17 = vpack.c.bf16 %v357_v12, %v356_v4  ;;  %v11915_v4 = vld [vmem:[%s15610_s1 + $0x1b0] sm:$0xff]   ;;  %v11916_v12 = vld [vmem:[%s15610_s1 + $0x168] sm:$0xff]  }
  0x64   : > { %10606 = vmatmul.mubr.bf16.gmra.mxu1 %v12439_v26  ;;  %10654 = vmatmul.mubr.bf16.gmra.mxu0 %v12441_v33 }
  0x65   : > { %10609 = vmatprep.mubr.bf16.mxu1 %v12443_v34  ;;  %10657 = vmatprep.mubr.bf16.mxu0 %v12445_v35 }
  0x66   : > { %10686 = vmatpush3.bf16.msra.mxu1 %v11908_v24  ;;  %10734 = vmatpush3.bf16.msra.mxu0 %v11909_v25  ;;  %v906_v24 = vld [vmem:[%s12183_s20 + $0x142] sm:$0xff]  ;;  %v360_v25 = vld [vmem:[%s12183_s20 + $0x150] sm:$0xff] }
  0x67   : > { %10687 = vmatprep.subr.bf16.mxu1 %v11910_v36  ;;  %10735 = vmatprep.subr.bf16.mxu0 %v11911_v43  ;;  %v12516_v42 = vpack.c.bf16 %v906_v24, %v905_v21  ;;  %v9209_v21 = vld [vmem:[%s12183_s20 + $0x189] sm:$0xff] }
  0x6a   : > { %10688 = vmatpush3.bf16.msra.mxu1 %v11910_v36  ;;  %10736 = vmatpush3.bf16.msra.mxu0 %v11911_v43  ;;  %v361_v36 = vld [vmem:[%s12183_s20 + $0x158] sm:$0xff] }
  0x6b   : > { %10769 = vmatprep.subr.bf16.mxu1 %v12468_v56  ;;  %10817 = vmatprep.subr.bf16.mxu0 %v11913_v57  ;;  %v12518_v43 = vpack.c.bf16 %v361_v36, %v360_v25 }
  0x6c   : > { %10610 = vmatmul.mubr.bf16.gmra.mxu1 %v12473_v58  ;;  %10658 = vmatmul.mubr.bf16.gmra.mxu0 %v12475_v59 }
  0x6d   : > { %10613 = vmatprep.mubr.bf16.mxu1 %v12477_v62  ;;  %10661 = vmatprep.mubr.bf16.mxu0 %v12479_v63 }
  0x74   : > { %10614 = vmatmul.mubr.bf16.gmra.mxu1 %v12494_v15  ;;  %10662 = vmatmul.mubr.bf16.gmra.mxu0 %v12496_v16 }
  0x75   : > { %10617 = vmatprep.mubr.bf16.mxu1 %v12498_v17  ;;  %10665 = vmatprep.mubr.bf16.mxu0 %v12500_v18 }
  0x7c   : > { %10618 = vmatmul.mubr.bf16.gmra.mxu1 %v12514_v41  ;;  %10666 = vmatmul.mubr.bf16.gmra.mxu0 %v12516_v42 }
  0x7d   : > { %10621 = vmatprep.mubr.bf16.mxu1 %v12518_v43  ;;  %10669 = vmatprep.mubr.bf16.mxu0 %v12520_v46 }
  0x84   : > { %10622 = vmatmul.mubr.bf16.gmra.mxu1 %v12530_v1  ;;  %10670 = vmatmul.mubr.bf16.gmra.mxu0 %v12532_v2 }
  0x85   : > { %10689 = vmatprep.mubr.bf16.mxu1 %v12343_v27  ;;  %10737 = vmatprep.mubr.bf16.mxu0 %v12219_v22  ;;  %v11917_v22 = vld [vmem:[%s15610_s1 + $0x1a8] sm:$0xff]   ;;  %v11919_v27 = vld [vmem:[%s15610_s1 + $0x1a0] sm:$0xff]  }
  0x8c   : > { %10690 = vmatmul.mubr.bf16.vlgmr.msra.gmra.mxu1 %v12347_v31  ;;  %10738 = vmatmul.mubr.bf16.vlgmr.msra.gmra.mxu0 %v12231_v28  ;;  %v11918_v28 = vld [vmem:[%s15610_s1 + $0x160] sm:$0xff]  }
  0x8d   : > { %10770 = vmatpush3.bf16.msra.mxu1 %v12468_v56  ;;  %10818 = vmatpush3.bf16.msra.mxu0 %v11913_v57  ;;  %v11921_v56 = vld [vmem:[%s15610_s1 + $0x198] sm:$0xff]   ;;  %v11924_v57 = vld [vmem:[%s15610_s1 + $0x148] sm:$0xff]  }
  0x8e   : > { %10693 = vmatprep.mubr.bf16.mxu1 %v12375_v49  ;;  %10741 = vmatprep.mubr.bf16.mxu0 %v12252_v39  ;;  %v11920_v39 = vld [vmem:[%s15610_s1 + $0x158] sm:$0xff]  }
  0x8f   : > { %10771 = vmatprep.subr.bf16.mxu1 %v11914_v3  ;;  %10819 = vmatprep.subr.bf16.mxu0 %v11915_v4 }
  0x91   : > { %10772 = vmatpush3.bf16.msra.mxu1 %v11914_v3  ;;  %10820 = vmatpush3.bf16.msra.mxu0 %v11915_v4  ;;  %v9347_v3 = vld [vmem:[%s12183_s20 + $0x39] sm:$0xff] }
  0x92   : > { %10773 = vmatprep.subr.bf16.mxu1 %v11916_v12  ;;  %10821 = vmatprep.subr.bf16.mxu0 %v11917_v22  ;;  %v9402_v4 = vld [vmem:[%s12183_s20 + $0x32] sm:$0xff] }
  0x94   : > { %10694 = vmatmul.mubr.bf16.gmra.mxu1 %v12379_v51  ;;  %10742 = vmatmul.mubr.bf16.gmra.mxu0 %v12263_v44  ;;  %v11922_v44 = vld [vmem:[%s15610_s1 + $0x150] sm:$0xff]  }
  0x95   : > { %10697 = vmatprep.mubr.bf16.mxu1 %v12407_v7  ;;  %10745 = vmatprep.mubr.bf16.mxu0 %v12283_v54  ;;  %v11923_v54 = vld [vmem:[%s15610_s1 + $0x190] sm:$0xff]  }
  0x96   : > { %10774 = vmatpush3.bf16.msra.mxu1 %v11916_v12  ;;  %10822 = vmatpush3.bf16.msra.mxu0 %v11917_v22 }
  0x97   : > { %10775 = vmatprep.subr.bf16.mxu1 %v11918_v28  ;;  %10823 = vmatprep.subr.bf16.mxu0 %v11919_v27 }
  0x9a   : > { %10776 = vmatpush3.bf16.msra.mxu1 %v11918_v28  ;;  %10824 = vmatpush3.bf16.msra.mxu0 %v11919_v27  ;;  %v2443_v28 = vpack.c.bf16 %v9347_v3, %v9346_v48  ;;  %v9410_v48 = vld [vmem:[%s12183_s20 + $0x92] sm:$0xff]  ;;  %v9411_v3 = vld [vmem:[%s12183_s20 + $0x9a] sm:$0xff] }
  0x9b   : > { %10777 = vmatprep.subr.bf16.mxu1 %v11920_v39  ;;  %10825 = vmatprep.subr.bf16.mxu0 %v11921_v56 }
  0x9c   : > { %10698 = vmatmul.mubr.bf16.gmra.mxu1 %v12411_v10  ;;  %10746 = vmatmul.mubr.bf16.gmra.mxu0 %v12295_v60  ;;  %v11926_v60 = vld [vmem:[%s15610_s1 + $0x140] sm:$0xff]  }
  0x9d   : > { %10701 = vmatprep.mubr.bf16.mxu1 %v12439_v26  ;;  %10749 = vmatprep.mubr.bf16.mxu0 %v12314_v5  ;;  %v11927_v5 = vld [vmem:[%s15610_s1 + $0x180] sm:$0xff]  }
  0x9e   : > { %10778 = vmatpush3.bf16.msra.mxu1 %v11920_v39  ;;  %10826 = vmatpush3.bf16.msra.mxu0 %v11921_v56 }
  0x9f   : > { %10779 = vmatprep.subr.bf16.mxu1 %v11922_v44  ;;  %10827 = vmatprep.subr.bf16.mxu0 %v11923_v54 }
  0xa2   : > { %10780 = vmatpush3.bf16.msra.mxu1 %v11922_v44  ;;  %10828 = vmatpush3.bf16.msra.mxu0 %v11923_v54 }
  0xa3   : > { %10781 = vmatprep.subr.bf16.mxu1 %v11924_v57  ;;  %10829 = vmatprep.subr.bf16.mxu0 %v11925_v13 }
  0xa4   : > { %10702 = vmatmul.mubr.bf16.gmra.mxu1 %v12443_v34  ;;  %10750 = vmatmul.mubr.bf16.gmra.mxu0 %v12192_v9  ;;  %v9152_v9 = vld [vmem:[%s12183_s20 + $0x180] sm:$0xff] }
  0xa5   : > { %10705 = vmatprep.mubr.bf16.mxu1 %v12473_v58  ;;  %10753 = vmatprep.mubr.bf16.mxu0 %v12221_v23  ;;  %v9153_v23 = vld [vmem:[%s12183_s20 + $0x188] sm:$0xff] }
  0xa6   : > { %10782 = vmatpush3.bf16.msra.mxu1 %v11924_v57  ;;  %10830 = vmatpush3.bf16.msra.mxu0 %v11925_v13  ;;  %v9348_v57 = vld [vmem:[%s12183_s20 + $0x49] sm:$0xff]  ;;  %v9349_v13 = vld [vmem:[%s12183_s20 + $0x51] sm:$0xff] }
  0xa7   : > { %10783 = vmatprep.subr.bf16.mxu1 %v11926_v60  ;;  %10831 = vmatprep.subr.bf16.mxu0 %v11927_v5 }
  0xaa   : > { %10784 = vmatpush3.bf16.msra.mxu1 %v11926_v60  ;;  %10832 = vmatpush3.bf16.msra.mxu0 %v11927_v5  ;;  %v9404_v60 = vld [vmem:[%s12183_s20 + $0x4a] sm:$0xff]  ;;  %v9405_v5 = vld [vmem:[%s12183_s20 + $0x52] sm:$0xff] }
  0xab   : > { %10865 = vmatprep.subr.bf16.mxu1 %v11928_v14  ;;  %10913 = vmatprep.subr.bf16.mxu0 %v11929_v19 }
  0xac   : > { %10706 = vmatmul.mubr.bf16.gmra.mxu1 %v12477_v62  ;;  %10754 = vmatmul.mubr.bf16.gmra.mxu0 %v12233_v29  ;;  %v12619_v29 = vpack.c.bf16 %v9153_v23, %v9152_v9  ;;  %v9351_v23 = vld [vmem:[%s12183_s20 + $0x69] sm:$0xff] }
  0xad   : > { %10709 = vmatprep.mubr.bf16.mxu1 %v12494_v15  ;;  %10757 = vmatprep.mubr.bf16.mxu0 %v12254_v40  ;;  %v12621_v40 = vpack.c.bf16 %v9209_v21, %v9208_v20  ;;  %v9406_v20 = vld [vmem:[%s12183_s20 + $0x62] sm:$0xff]  ;;  %v9407_v21 = vld [vmem:[%s12183_s20 + $0x6a] sm:$0xff] }
  0xb4   : > { %10710 = vmatmul.mubr.bf16.gmra.mxu1 %v12498_v17  ;;  %10758 = vmatmul.mubr.bf16.gmra.mxu0 %v12265_v45  ;;  %v11930_v45 = vld [vmem:[%s15610_s1 + $0x1f0] sm:$0xff]  }
  0xb5   : > { %10713 = vmatprep.mubr.bf16.mxu1 %v12514_v41  ;;  %10761 = vmatprep.mubr.bf16.mxu0 %v12285_v55  ;;  %v11931_v55 = vld [vmem:[%s15610_s1 + $0x230] sm:$0xff]  }
  0xbc   : > { %10714 = vmatmul.mubr.bf16.gmra.mxu1 %v12518_v43  ;;  %10762 = vmatmul.mubr.bf16.gmra.mxu0 %v12297_v61  ;;  %v11932_v61 = vld [vmem:[%s15610_s1 + $0x1e8] sm:$0xff]  }
  0xbd   : > { %10717 = vmatprep.mubr.bf16.mxu1 %v12530_v1  ;;  %10765 = vmatprep.mubr.bf16.mxu0 %v12316_v6  ;;  %v11933_v6 = vld [vmem:[%s15610_s1 + $0x228] sm:$0xff]  }
  0xc4   : > { %10718 = vmatmul.mubr.bf16.gmra.mxu1 %v12619_v29  ;;  %10766 = vmatmul.mubr.bf16.gmra.mxu0 %v12621_v40 }
  0xc5   : > { %10785 = vmatprep.mubr.bf16.mxu1 %v12345_v30  ;;  %10833 = vmatprep.mubr.bf16.mxu0 %v12347_v31  ;;  %v11934_v30 = vld [vmem:[%s15610_s1 + $0x1e0] sm:$0xff]  }
  0xc6   : > { %v11935_v31 = vld [vmem:[%s15610_s1 + $0x220] sm:$0xff]  }
  0xcc   : > { %10786 = vmatmul.mubr.bf16.vlgmr.msra.gmra.mxu1 %v12349_v32  ;;  %10834 = vmatmul.mubr.bf16.vlgmr.msra.gmra.mxu0 %v12375_v49  ;;  %v11936_v32 = vld [vmem:[%s15610_s1 + $0x1d8] sm:$0xff]  }
  0xcd   : > { %10866 = vmatpush3.bf16.msra.mxu1 %v11928_v14  ;;  %10914 = vmatpush3.bf16.msra.mxu0 %v11929_v19  ;;  %v11937_v49 = vld [vmem:[%s15610_s1 + $0x218] sm:$0xff]   ;;  %v9350_v14 = vld [vmem:[%s12183_s20 + $0x61] sm:$0xff] }
  0xce   : > { %10789 = vmatprep.mubr.bf16.mxu1 %v12377_v50  ;;  %10837 = vmatprep.mubr.bf16.mxu0 %v12379_v51  ;;  %v11938_v50 = vld [vmem:[%s15610_s1 + $0x1d0] sm:$0xff]  }
  0xcf   : > { %10867 = vmatprep.subr.bf16.mxu1 %v11930_v45  ;;  %10915 = vmatprep.subr.bf16.mxu0 %v11931_v55  ;;  %v11939_v51 = vld [vmem:[%s15610_s1 + $0x210] sm:$0xff]  }
  0xd1   : > { %10868 = vmatpush3.bf16.msra.mxu1 %v11930_v45  ;;  %10916 = vmatpush3.bf16.msra.mxu0 %v11931_v55  ;;  %v2444_v55 = vpack.c.bf16 %v9349_v13, %v9348_v57 }
  0xd2   : > { %10869 = vmatprep.subr.bf16.mxu1 %v11932_v61  ;;  %10917 = vmatprep.subr.bf16.mxu0 %v11933_v6 }
  0xd4   : > { %10790 = vmatmul.mubr.bf16.gmra.mxu1 %v12381_v52  ;;  %10838 = vmatmul.mubr.bf16.gmra.mxu0 %v12407_v7  ;;  %v11940_v52 = vld [vmem:[%s15610_s1 + $0x1c8] sm:$0xff]  }
  0xd5   : > { %10793 = vmatprep.mubr.bf16.mxu1 %v12409_v8  ;;  %10841 = vmatprep.mubr.bf16.mxu0 %v12411_v10  ;;  %v11941_v7 = vld [vmem:[%s15610_s1 + $0x208] sm:$0xff]   ;;  %v11942_v8 = vld [vmem:[%s15610_s1 + $0x1c0] sm:$0xff]  }
  0xd6   : > { %10870 = vmatpush3.bf16.msra.mxu1 %v11932_v61  ;;  %10918 = vmatpush3.bf16.msra.mxu0 %v11933_v6  ;;  %v11943_v10 = vld [vmem:[%s15610_s1 + $0x200] sm:$0xff]   ;;  %v2750_v61 = vpack.c.bf16 %v9405_v5, %v9404_v60  ;;  %v2445_v6 = vpack.c.bf16 %v9351_v23, %v9350_v14  ;;  %v2753_v5 = vpack.c.bf16 %v9411_v3, %v9410_v48 }
  0xd7   : > { %10871 = vmatprep.subr.bf16.mxu1 %v11934_v30  ;;  %10919 = vmatprep.subr.bf16.mxu0 %v11935_v31 }
  0xda   : > { %10872 = vmatpush3.bf16.msra.mxu1 %v11934_v30  ;;  %10920 = vmatpush3.bf16.msra.mxu0 %v11935_v31  ;;  %v2751_v30 = vpack.c.bf16 %v9407_v21, %v9406_v20 }
  0xdb   : > { %10873 = vmatprep.subr.bf16.mxu1 %v11936_v32  ;;  %10921 = vmatprep.subr.bf16.mxu0 %v11937_v49 }
  0xdc   : > { %10794 = vmatmul.mubr.bf16.gmra.mxu1 %v12413_v11  ;;  %10842 = vmatmul.mubr.bf16.gmra.mxu0 %v12439_v26 }
  0xdd   : > { %10797 = vmatprep.mubr.bf16.mxu1 %v12441_v33  ;;  %10845 = vmatprep.mubr.bf16.mxu0 %v12443_v34 }
  0xde   : > { %10874 = vmatpush3.bf16.msra.mxu1 %v11936_v32  ;;  %10922 = vmatpush3.bf16.msra.mxu0 %v11937_v49 }
  0xdf   : > { %10875 = vmatprep.subr.bf16.mxu1 %v11938_v50  ;;  %10923 = vmatprep.subr.bf16.mxu0 %v11939_v51 }
  0xe2   : > { %10876 = vmatpush3.bf16.msra.mxu1 %v11938_v50  ;;  %10924 = vmatpush3.bf16.msra.mxu0 %v11939_v51  ;;  %v9352_v51 = vld [vmem:[%s12183_s20 + $0x79] sm:$0xff] }
  0xe3   : > { %10877 = vmatprep.subr.bf16.mxu1 %v11940_v52  ;;  %10925 = vmatprep.subr.bf16.mxu0 %v11941_v7 }
  0xe4   : > { %10798 = vmatmul.mubr.bf16.gmra.mxu1 %v12445_v35  ;;  %10846 = vmatmul.mubr.bf16.gmra.mxu0 %v12473_v58 }
  0xe5   : > { %10801 = vmatprep.mubr.bf16.mxu1 %v12475_v59  ;;  %10849 = vmatprep.mubr.bf16.mxu0 %v12477_v62 }
  0xe6   : > { %10878 = vmatpush3.bf16.msra.mxu1 %v11940_v52  ;;  %10926 = vmatpush3.bf16.msra.mxu0 %v11941_v7  ;;  %v9353_v52 = vld [vmem:[%s12183_s20 + $0x81] sm:$0xff] }
  0xe7   : > { %10879 = vmatprep.subr.bf16.mxu1 %v11942_v8  ;;  %10927 = vmatprep.subr.bf16.mxu0 %v11943_v10 }
  0xea   : > { %10880 = vmatpush3.bf16.msra.mxu1 %v11942_v8  ;;  %10928 = vmatpush3.bf16.msra.mxu0 %v11943_v10  ;;  %v9408_v8 = vld [vmem:[%s12183_s20 + $0x7a] sm:$0xff]  ;;  %v9409_v10 = vld [vmem:[%s12183_s20 + $0x82] sm:$0xff] }
  0xec   : > { %v12685_v11 = vpop.f32.mrf.mxu0  ;;  %v12687_v26 = vpop.f32.mrf.mxu1  ;;  %10802 = vmatmul.mubr.bf16.gmra.mxu1 %v12479_v63  ;;  %10850 = vmatmul.mubr.bf16.gmra.mxu0 %v12494_v15 }
  0xed   : > { %10805 = vmatprep.mubr.bf16.mxu1 %v12496_v16  ;;  %10853 = vmatprep.mubr.bf16.mxu0 %v12498_v17 }
  0xee   : > { %v12693_v33 = vpop.f32.mrf.mxu0  ;;  %v12695_v34 = vpop.f32.mrf.mxu1 }
  0xf0   : > { %v12697_v35 = vpop.f32.mrf.mxu0  ;;  %v12699_v58 = vpop.f32.mrf.mxu1 }
  0xf2   : > { %v12701_v59 = vpop.f32.mrf.mxu0  ;;  %v12703_v62 = vpop.f32.mrf.mxu1 }
  0xf4   : > { %v12705_v24 = vpop.f32.mrf.mxu0  ;;  %v12707_v63 = vpop.f32.mrf.mxu1  ;;  %10806 = vmatmul.mubr.bf16.gmra.mxu1 %v12500_v18  ;;  %10854 = vmatmul.mubr.bf16.gmra.mxu0 %v12514_v41  ;;  %v9264_v41 = vld [vmem:[%s12183_s20 + $0x182] sm:$0xff] }
  0xf5   : > { %10809 = vmatprep.mubr.bf16.mxu1 %v12516_v42  ;;  %10857 = vmatprep.mubr.bf16.mxu0 %v12518_v43  ;;  %v9265_v42 = vld [vmem:[%s12183_s20 + $0x18a] sm:$0xff]  ;;  %v9320_v43 = vld [vmem:[%s12183_s20 + $0x198] sm:$0xff] }
  0xf6   : > { %v12713_v15 = vpop.f32.mrf.mxu0  ;;  %v12715_v16 = vpop.f32.mrf.mxu1  ;;  %v2152_v22 = vpack.c.bf16 %v9321_v47, %v9320_v43  ;;  %v9355_v47 = vld [vmem:[%s12183_s20 + $0x99] sm:$0xff] }
  0xf8   : > { %v12717_v17 = vpop.f32.mrf.mxu0  ;;  %v12719_v25 = vpop.f32.mrf.mxu1 }
  0xfa   : > { %v12721_v36 = vpop.f32.mrf.mxu0  ;;  %v12723_v18 = vpop.f32.mrf.mxu1 }
  0xfc   : > { %v12725_v37 = vpop.f32.mrf.mxu0  ;;  %v12727_v38 = vpop.f32.mrf.mxu1  ;;  %10810 = vmatmul.mubr.bf16.gmra.mxu1 %v12520_v46  ;;  %10858 = vmatmul.mubr.bf16.gmra.mxu0 %v12530_v1  ;;  %v9403_v46 = vld [vmem:[%s12183_s20 + $0x3a] sm:$0xff] }
  0xfd   : > { %10813 = vmatprep.mubr.bf16.mxu1 %v12532_v2  ;;  %10861 = vmatprep.mubr.bf16.mxu0 %v12619_v29  ;;  %v12749_v2 = vpack.c.bf16 %v9265_v42, %v9264_v41  ;;  %v2749_v27 = vpack.c.bf16 %v9403_v46, %v9402_v4  ;;  %v9354_v41 = vld [vmem:[%s12183_s20 + $0x91] sm:$0xff] }
  0xfe   : > { %v12738_v53 = vpop.f32.mrf.mxu0  ;;  %v12740_v0 = vpop.f32.mrf.mxu1  ;;  %v2447_v60 = vpack.c.bf16 %v9355_v47, %v9354_v41 }
 0x100   : > { %v12745_v12 = vpop.f32.mrf.mxu0  ;;  %v12747_v1 = vpop.f32.mrf.mxu1 }
 0x102   : > { %v12751_v39 = vpop.f32.mrf.mxu0  ;;  %v12753_v56 = vpop.f32.mrf.mxu1 }
 0x104   : > { %v12755_v44 = vpop.f32.mrf.mxu0  ;;  %v12757_v54 = vpop.f32.mrf.mxu1  ;;  %10814 = vmatmul.mubr.bf16.gmra.mxu1 %v12749_v2  ;;  %10862 = vmatmul.mubr.bf16.gmra.mxu0 %v2152_v22 }
 0x105   : > { %10881 = vmatprep.mubr.bf16.mxu1 %v2443_v28  ;;  %10929 = vmatprep.mubr.bf16.mxu0 %v2749_v27  ;;  %v2446_v27 = vpack.c.bf16 %v9353_v52, %v9352_v51  ;;  %v9358_v51 = vld [vmem:[%s12183_s20 + $0xc1] sm:$0xff] }
 0x106   : > { %v12765_v19 = vpop.f32.mrf.mxu0  ;;  %v12767_v9 = vpop.f32.mrf.mxu1 }
 0x108   : > { %v12772_v29 = vpop.f32.mrf.mxu0  ;;  %v12774_v45 = vpop.f32.mrf.mxu1 }
 0x10a   : > { %v12776_v31 = vpop.f32.mrf.mxu0  ;;  %v12778_v32 = vpop.f32.mrf.mxu1 }
 0x10c   : > { %v10595_v49 = vpop.f32.mrf.mxu1  ;;  %v10643_v50 = vpop.f32.mrf.mxu0  ;;  %10882 = vmatmul.mubr.bf16.vlgmr.msra.gmra.mxu1 %v2444_v55  ;;  %10930 = vmatmul.mubr.bf16.vlgmr.msra.gmra.mxu0 %v2750_v61  ;;  %v9356_v61 = vld [vmem:[%s12183_s20 + $0xa9] sm:$0xff] }
 0x10d   : > { %v761_v7 = vadd.f32 %v10595_v49, %v12685_v11  ;;  %10885 = vmatprep.mubr.bf16.mxu1 %v2445_v6  ;;  %10933 = vmatprep.mubr.bf16.mxu0 %v2751_v30  ;;  %v2752_v11 = vpack.c.bf16 %v9409_v10, %v9408_v8  ;;  %v9412_v49 = vld [vmem:[%s12183_s20 + $0xaa] sm:$0xff]  ;;  %v9414_v8 = vld [vmem:[%s12183_s20 + $0xc2] sm:$0xff] }
 0x10e   : > { %v752_v42 = vpop.f32.mrf.mxu1  ;;  %v1026_v43 = vpop.f32.mrf.mxu0  ;;  %v9415_v10 = vld [vmem:[%s12183_s20 + $0xca] sm:$0xff] }
 0x10f   : > { %v12789_v4 = vadd.f32 %v10643_v50, %v761_v7  ;;  %v753_v46 = vadd.f32 %v752_v42, %v12693_v33  ;;  %v9413_v50 = vld [vmem:[%s12183_s20 + $0xb2] sm:$0xff]  ;;  %v9359_v7 = vld [vmem:[%s12183_s20 + $0xc9] sm:$0xff] }
 0x110   : > { %v10596_v22 = vpop.f32.mrf.mxu1  ;;  %v10644_v28 = vpop.f32.mrf.mxu0 }
 0x111   : > { %v12792_v57 = vadd.f32 %v1026_v43, %v753_v46  ;;  %v764_v13 = vadd.f32 %v10596_v22, %v12697_v35  ;;  %v9357_v35 = vld [vmem:[%s12183_s20 + $0xb1] sm:$0xff]  ;;  %v2449_v22 = vpack.c.bf16 %v9359_v7, %v9358_v51 }
 0x112   : > { %v755_v14 = vpop.f32.mrf.mxu1  ;;  %v1029_v23 = vpop.f32.mrf.mxu0  ;;  %v2448_v48 = vpack.c.bf16 %v9357_v35, %v9356_v61  ;;  %v9362_v61 = vld [vmem:[%s12183_s20 + $0xf1] sm:$0xff] }
 0x113   : > { %v12795_v20 = vadd.f32 %v10644_v28, %v764_v13  ;;  %v756_v33 = vadd.f32 %v755_v14, %v12701_v59  ;;  %v2755_v28 = vpack.c.bf16 %v9415_v10, %v9414_v8  ;;  %v9360_v14 = vld [vmem:[%s12183_s20 + $0xd9] sm:$0xff] }
 0x114   : > { %v10599_v21 = vpop.f32.mrf.mxu1  ;;  %v10647_v55 = vpop.f32.mrf.mxu0  ;;  %10886 = vmatmul.mubr.bf16.gmra.mxu1 %v2446_v27  ;;  %10934 = vmatmul.mubr.bf16.gmra.mxu0 %v2752_v11 }
 0x115   : > { %v12800_v6 = vadd.f32 %v1029_v23, %v756_v33  ;;  %v777_v30 = vadd.f32 %v10599_v21, %v12705_v24  ;;  %10889 = vmatprep.mubr.bf16.mxu1 %v2447_v60  ;;  %10937 = vmatprep.mubr.bf16.mxu0 %v2753_v5  ;;  %v2754_v24 = vpack.c.bf16 %v9413_v50, %v9412_v49  ;;  %v9416_v21 = vld [vmem:[%s12183_s20 + $0xda] sm:$0xff]  ;;  %v9418_v49 = vld [vmem:[%s12183_s20 + $0xf2] sm:$0xff] }
 0x116   : > { %v768_v52 = vpop.f32.mrf.mxu1  ;;  %v1042_v59 = vpop.f32.mrf.mxu0  ;;  %v9419_v50 = vld [vmem:[%s12183_s20 + $0xfa] sm:$0xff] }
 0x117   : > { %v12809_v41 = vadd.f32 %v10647_v55, %v777_v30  ;;  %v769_v42 = vadd.f32 %v768_v52, %v12713_v15  ;;  %v9417_v55 = vld [vmem:[%s12183_s20 + $0xe2] sm:$0xff]  ;;  %v9363_v30 = vld [vmem:[%s12183_s20 + $0xf9] sm:$0xff] }
 0x118   : > { %v10600_v43 = vpop.f32.mrf.mxu1  ;;  %v10648_v47 = vpop.f32.mrf.mxu0 }
 0x119   : > { %v12812_v3 = vadd.f32 %v1042_v59, %v769_v42  ;;  %v780_v46 = vadd.f32 %v10600_v43, %v12717_v17  ;;  %v9361_v17 = vld [vmem:[%s12183_s20 + $0xe1] sm:$0xff]  ;;  %v2451_v43 = vpack.c.bf16 %v9363_v30, %v9362_v61 }
 0x11a   : > { %v771_v27 = vpop.f32.mrf.mxu1  ;;  %v1045_v11 = vpop.f32.mrf.mxu0  ;;  %v2450_v8 = vpack.c.bf16 %v9361_v17, %v9360_v14  ;;  %v9366_v14 = vld [vmem:[%s12183_s20 + $0x121] sm:$0xff] }
 0x11b   : > { %v12815_v13 = vadd.f32 %v10648_v47, %v780_v46  ;;  %v772_v15 = vadd.f32 %v771_v27, %v12721_v36  ;;  %v2757_v47 = vpack.c.bf16 %v9419_v50, %v9418_v49  ;;  %v9364_v27 = vld [vmem:[%s12183_s20 + $0x109] sm:$0xff] }
 0x11c   : > { %v10603_v60 = vpop.f32.mrf.mxu1  ;;  %v10651_v5 = vpop.f32.mrf.mxu0  ;;  %10890 = vmatmul.mubr.bf16.gmra.mxu1 %v2448_v48  ;;  %10938 = vmatmul.mubr.bf16.gmra.mxu0 %v2754_v24 }
 0x11d   : > { %v12820_v23 = vadd.f32 %v1045_v11, %v772_v15  ;;  %v793_v33 = vadd.f32 %v10603_v60, %v12725_v37  ;;  %10893 = vmatprep.mubr.bf16.mxu1 %v2449_v22  ;;  %10941 = vmatprep.mubr.bf16.mxu0 %v2755_v28  ;;  %v2756_v37 = vpack.c.bf16 %v9417_v55, %v9416_v21  ;;  %v9420_v60 = vld [vmem:[%s12183_s20 + $0x10a] sm:$0xff]  ;;  %v9422_v21 = vld [vmem:[%s12183_s20 + $0x122] sm:$0xff] }
 0x11e   : > { %v784_v35 = vpop.f32.mrf.mxu1  ;;  %v1058_v36 = vpop.f32.mrf.mxu0  ;;  %v9423_v55 = vld [vmem:[%s12183_s20 + $0x12a] sm:$0xff] }
 0x11f   : > { %v12829_v51 = vadd.f32 %v10651_v5, %v793_v33  ;;  %v785_v52 = vadd.f32 %v784_v35, %v12738_v53  ;;  %v9421_v5 = vld [vmem:[%s12183_s20 + $0x112] sm:$0xff]  ;;  %v9367_v33 = vld [vmem:[%s12183_s20 + $0x129] sm:$0xff] }
 0x120   : > { %v10604_v59 = vpop.f32.mrf.mxu1  ;;  %v10652_v7 = vpop.f32.mrf.mxu0  ;;  %v2758_v50 = vpack.c.bf16 %v9421_v5, %v9420_v60  ;;  %v9371_v60 = vld [vmem:[%s12183_s20 + $0x159] sm:$0xff] }
 0x121   : > { %v12832_v10 = vadd.f32 %v1058_v36, %v785_v52  ;;  %v796_v42 = vadd.f32 %v10604_v59, %v12745_v12  ;;  %v9365_v12 = vld [vmem:[%s12183_s20 + $0x111] sm:$0xff] }
 0x122   : > { %v787_v48 = vpop.f32.mrf.mxu1  ;;  %v1061_v24 = vpop.f32.mrf.mxu0  ;;  %v11944_v36 = vld [vmem:[%s15612_s3 + $0x78] sm:$0xff]   ;;  %v2452_v49 = vpack.c.bf16 %v9365_v12, %v9364_v27  ;;  %v9425_v27 = vld [vmem:[%s12183_s20 + $0x142] sm:$0xff] }
 0x123   : > { %v12835_v46 = vadd.f32 %v10652_v7, %v796_v42  ;;  %v788_v53 = vadd.f32 %v787_v48, %v12751_v39  ;;  %v2453_v7 = vpack.c.bf16 %v9367_v33, %v9366_v14  ;;  %10961 = vmatprep.subr.bf16.mxu1 %v11944_v36  ;;  %v9370_v12 = vld [vmem:[%s12183_s20 + $0x151] sm:$0xff]  ;;  %v9427_v14 = vld [vmem:[%s12183_s20 + $0x15a] sm:$0xff] }
 0x124   : > { %v10607_v22 = vpop.f32.mrf.mxu1  ;;  %v10655_v28 = vpop.f32.mrf.mxu0  ;;  %10894 = vmatmul.mubr.bf16.gmra.mxu1 %v2450_v8  ;;  %10942 = vmatmul.mubr.bf16.gmra.mxu0 %v2756_v37  ;;  %v2759_v8 = vpack.c.bf16 %v9423_v55, %v9422_v21  ;;  %v9426_v5 = vld [vmem:[%s12183_s20 + $0x152] sm:$0xff] }
 0x125   : > { %v12840_v11 = vadd.f32 %v1061_v24, %v788_v53  ;;  %v809_v15 = vadd.f32 %v10607_v22, %v12755_v44  ;;  %10897 = vmatprep.mubr.bf16.mxu1 %v2451_v43  ;;  %10945 = vmatprep.mubr.bf16.mxu0 %v2757_v47  ;;  %v9369_v24 = vld [vmem:[%s12183_s20 + $0x141] sm:$0xff]  ;;  %v11945_v33 = vld [vmem:[%s15612_s3 + $0x70] sm:$0xff]  }
 0x126   : > { %v800_v17 = vpop.f32.mrf.mxu1  ;;  %v1074_v39 = vpop.f32.mrf.mxu0  ;;  %10962 = vmatpush3.bf16.msra.mxu1 %v11944_v36 }
 0x127   : > { %v12849_v61 = vadd.f32 %v10655_v28, %v809_v15  ;;  %v801_v35 = vadd.f32 %v800_v17, %v12765_v19  ;;  %v9424_v28 = vld [vmem:[%s12183_s20 + $0x13a] sm:$0xff]  ;;  %10963 = vmatprep.subr.bf16.mxu1 %v11945_v33 }
 0x128   : > { %v10608_v30 = vpop.f32.mrf.mxu1  ;;  %v10656_v44 = vpop.f32.mrf.mxu0 }
 0x129   : > { %v12855_v52 = vadd.f32 %v1074_v39, %v801_v35  ;;  %v812_v59 = vadd.f32 %v10608_v30, %v12772_v29  ;;  %v9368_v29 = vld [vmem:[%s12183_s20 + $0x139] sm:$0xff]  ;;  %v2760_v35 = vpack.c.bf16 %v9425_v27, %v9424_v28  ;;  %v11946_v28 = vld [vmem:[%s15612_s3 + $0x68] sm:$0xff]  }
 0x12a   : > { %v803_v37 = vpop.f32.mrf.mxu1  ;;  %v1077_v19 = vpop.f32.mrf.mxu0  ;;  %v2454_v55 = vpack.c.bf16 %v9369_v24, %v9368_v29  ;;  %10964 = vmatpush3.bf16.msra.mxu1 %v11945_v33 }
 0x12b   : > { %v12858_v42 = vadd.f32 %v10656_v44, %v812_v59  ;;  %v804_v43 = vadd.f32 %v803_v37, %v12776_v31  ;;  %v2455_v44 = vpack.c.bf16 %v9371_v60, %v9370_v12  ;;  %v9372_v37 = vld [vmem:[%s12183_s20 + $0x169] sm:$0xff]  ;;  %10965 = vmatprep.subr.bf16.mxu1 %v11946_v28 }
 0x12c   : > { %v10611_v47 = vpop.f32.mrf.mxu1  ;;  %v10659_v48 = vpop.f32.mrf.mxu0  ;;  %10898 = vmatmul.mubr.bf16.gmra.mxu1 %v2452_v49  ;;  %10946 = vmatmul.mubr.bf16.gmra.mxu0 %v2758_v50  ;;  %v2761_v49 = vpack.c.bf16 %v9427_v14, %v9426_v5 }
 0x12d   : > { %v12863_v53 = vadd.f32 %v1077_v19, %v804_v43  ;;  %v825_v22 = vadd.f32 %v10611_v47, %v12687_v26  ;;  %10901 = vmatprep.mubr.bf16.mxu1 %v2453_v7  ;;  %10949 = vmatprep.mubr.bf16.mxu0 %v2759_v8  ;;  %v9373_v19 = vld [vmem:[%s12183_s20 + $0x171] sm:$0xff] }
 0x12e   : > { %v816_v15 = vpop.f32.mrf.mxu1  ;;  %v1090_v31 = vpop.f32.mrf.mxu0  ;;  %v9428_v43 = vld [vmem:[%s12183_s20 + $0x16a] sm:$0xff]  ;;  %v9429_v47 = vld [vmem:[%s12183_s20 + $0x172] sm:$0xff]  ;;  %10966 = vmatpush3.bf16.msra.mxu1 %v11946_v28 }
 0x12f   : > { %v12872_v17 = vadd.f32 %v10659_v48, %v825_v22  ;;  %v817_v39 = vadd.f32 %v816_v15, %v12695_v34  ;;  %v2456_v15 = vpack.c.bf16 %v9373_v19, %v9372_v37 }
 0x130   : > { %v10612_v21 = vpop.f32.mrf.mxu1  ;;  %v10660_v26 = vpop.f32.mrf.mxu0 }
 0x131   : > { %v12878_v36 = vadd.f32 %v1090_v31, %v817_v39  ;;  %v828_v30 = vadd.f32 %v10612_v21, %v12699_v58  ;;  %v9376_v21 = vld [vmem:[%s12183_s20 + $0x199] sm:$0xff] }
 0x132   : > { %v12881_v34 = vpop.f32.mrf.mxu1  ;;  %v12883_v50 = vpop.f32.mrf.mxu0 }
 0x133   : > { %v12885_v59 = vadd.f32 %v10660_v26, %v828_v30 }
 0x134   : > { %v10615_v7 = vpop.f32.mrf.mxu1  ;;  %v10663_v8 = vpop.f32.mrf.mxu0  ;;  %10902 = vmatmul.mubr.bf16.gmra.mxu1 %v2454_v55  ;;  %10950 = vmatmul.mubr.bf16.gmra.mxu0 %v2760_v35  ;;  %v9432_v55 = vld [vmem:[%s12183_s20 + $0x19a] sm:$0xff]  ;;  %v9433_v35 = vld [vmem:[%s12183_s20 + $0x1a2] sm:$0xff] }
 0x135   : > { %v841_v58 = vadd.f32 %v10615_v7, %v12707_v63  ;;  %10905 = vmatprep.mubr.bf16.mxu1 %v2455_v44  ;;  %10953 = vmatprep.mubr.bf16.mxu0 %v2761_v49  ;;  %v2762_v63 = vpack.c.bf16 %v9429_v47, %v9428_v43  ;;  %v2764_v19 = vpack.c.bf16 %v9433_v35, %v9432_v55  ;;  %v11952_v55 = vld [vmem:[%s15612_s3 + $0x28] sm:$0xff]  }
 0x136   : > { %v832_v48 = vpop.f32.mrf.mxu1  ;;  %v1106_v29 = vpop.f32.mrf.mxu0 }
 0x137   : > { %v12892_v24 = vadd.f32 %v10663_v8, %v841_v58  ;;  %v833_v22 = vadd.f32 %v832_v48, %v12715_v16  ;;  %v11947_v8 = vld [vmem:[%s15612_s3 + $0x60] sm:$0xff]  }
 0x138   : > { %v10616_v27 = vpop.f32.mrf.mxu1  ;;  %v10664_v12 = vpop.f32.mrf.mxu0  ;;  %10967 = vmatprep.subr.bf16.mxu1 %v11947_v8 }
 0x139   : > { %v12898_v31 = vadd.f32 %v1106_v29, %v833_v22  ;;  %v844_v60 = vadd.f32 %v10616_v27, %v12719_v25  ;;  %v9377_v25 = vld [vmem:[%s12183_s20 + $0x1a1] sm:$0xff]  ;;  %10968 = vmatpush3.bf16.msra.mxu1 %v11947_v8 }
 0x13a   : > { %v12901_v5 = vpop.f32.mrf.mxu1  ;;  %v12903_v16 = vpop.f32.mrf.mxu0 }
 0x13b   : > { %v12905_v14 = vadd.f32 %v10664_v12, %v844_v60  ;;  %v11950_v60 = vld [vmem:[%s15612_s3 + $0x30] sm:$0xff]  }
 0x13c   : > { %v10619_v39 = vpop.f32.mrf.mxu1  ;;  %v10667_v33 = vpop.f32.mrf.mxu0  ;;  %10906 = vmatmul.mubr.bf16.gmra.mxu1 %v2456_v15  ;;  %10954 = vmatmul.mubr.bf16.gmra.mxu0 %v2762_v63  ;;  %v11948_v63 = vld [vmem:[%s15612_s3 + $0x58] sm:$0xff]  }
 0x13d   : > { %v857_v26 = vadd.f32 %v10619_v39, %v12727_v38  ;;  %10909 = vmatprep.mubr.bf16.mxu1 %v12621_v40  ;;  %10957 = vmatprep.mubr.bf16.mxu0 %v12749_v2  ;;  %v2458_v38 = vpack.c.bf16 %v9377_v25, %v9376_v21 }
 0x13e   : > { %v848_v30 = vpop.f32.mrf.mxu1  ;;  %v1122_v44 = vpop.f32.mrf.mxu0  ;;  %10969 = vmatprep.subr.bf16.mxu1 %v11948_v63 }
 0x13f   : > { %v12914_v49 = vadd.f32 %v10667_v33, %v857_v26  ;;  %v849_v7 = vadd.f32 %v848_v30, %v12740_v0  ;;  %v11949_v0 = vld [vmem:[%s15612_s3 + $0x38] sm:$0xff]   ;;  %10970 = vmatpush3.bf16.msra.mxu1 %v11948_v63 }
 0x140   : > { %v10620_v37 = vpop.f32.mrf.mxu1  ;;  %v10668_v58 = vpop.f32.mrf.mxu0  ;;  %11009 = vmatprep.subr.bf16.mxu0 %v11949_v0 }
 0x141   : > { %v12920_v40 = vadd.f32 %v1122_v44, %v849_v7  ;;  %v860_v2 = vadd.f32 %v10620_v37, %v12747_v1  ;;  %11010 = vmatpush3.bf16.msra.mxu0 %v11949_v0 }
 0x142   : > { %v12923_v43 = vpop.f32.mrf.mxu1  ;;  %v12925_v47 = vpop.f32.mrf.mxu0  ;;  %11011 = vmatprep.subr.bf16.mxu0 %v11950_v60 }
 0x143   : > { %15623 = vst [vmem:[#allocation4_spill] sm:$0xff] %v12925_v47  ;;  %v12927_v48 = vadd.f32 %v10668_v58, %v860_v2  ;;  %v12961_v58 = vld [vmem:[%s15612_s3 + $0x50] sm:$0xff]  }
 0x144   : > { %v10623_v29 = vpop.f32.mrf.mxu1  ;;  %v10671_v22 = vpop.f32.mrf.mxu0  ;;  %10910 = vmatmul.mubr.bf16.gmra.mxu1 %v2458_v38  ;;  %10958 = vmatmul.mubr.bf16.gmra.mxu0 %v2764_v19  ;;  %v12966_v38 = vld [vmem:[%s15612_s3 + $0x20] sm:$0xff]  }
 0x145   : > { %v873_v28 = vadd.f32 %v10623_v29, %v12757_v54  ;;  %11012 = vmatpush3.bf16.msra.mxu0 %v11950_v60  ;;  %10971 = vmatprep.subr.bf16.mxu1 %v12961_v58 }
 0x146   : > { %v864_v1 = vpop.f32.mrf.mxu1  ;;  %v1138_v27 = vpop.f32.mrf.mxu0  ;;  %11013 = vmatprep.subr.bf16.mxu0 %v11952_v55  ;;  %10972 = vmatpush3.bf16.msra.mxu1 %v12961_v58 }
 0x147   : > { %v12933_v12 = vadd.f32 %v10671_v22, %v873_v28  ;;  %v865_v15 = vadd.f32 %v864_v1, %v12767_v9  ;;  %v12107_v22 = vmov 0.0   ;;  %v11954_v28 = vld [vmem:[%s15612_s3 + $0x48] sm:$0xff]   ;;  %v11955_v1 = vld [vmem:[%s15612_s3 + $0x18] sm:$0xff]  }
 0x148   : > { %v10624_v39 = vpop.f32.mrf.mxu1  ;;  %v10672_v33 = vpop.f32.mrf.mxu0  ;;  %3100 = vst [vmem:[#allocation2 + $0x30] sm:$0xff] %v12107_v22  ;;  %3101 = vst [vmem:[#allocation2 + $0x38] sm:$0xff] %v12107_v22  ;;  %10973 = vmatprep.subr.bf16.mxu1 %v11954_v28 }
 0x149   : > { %v12942_v21 = vadd.f32 %v1138_v27, %v865_v15  ;;  %v876_v54 = vadd.f32 %v10624_v39, %v12774_v45  ;;  %11014 = vmatpush3.bf16.msra.mxu0 %v11952_v55  ;;  %3094 = vst [vmem:[#allocation2] sm:$0xff] %v12107_v22  ;;  %3095 = vst [vmem:[#allocation2 + $0x8] sm:$0xff] %v12107_v22  ;;  %v11956_v55 = vld [vmem:[%s15612_s3 + $0x10] sm:$0xff]  }
 0x14a   : > { %v12945_v26 = vpop.f32.mrf.mxu1  ;;  %v12947_v25 = vpop.f32.mrf.mxu0  ;;  %11015 = vmatprep.subr.bf16.mxu0 %v12966_v38  ;;  %3096 = vst [vmem:[#allocation2 + $0x10] sm:$0x3] %v12107_v22  ;;  %3097 = vst [vmem:[#allocation2 + $0x18] sm:$0xff] %v12107_v22  ;;  %10974 = vmatpush3.bf16.msra.mxu1 %v11954_v28 }
 0x14b   : > { %15624 = vst [vmem:[#allocation5_spill] sm:$0xff] %v12947_v25  ;;  %v12949_v9 = vadd.f32 %v10672_v33, %v876_v54  ;;  %3098 = vst [vmem:[#allocation2 + $0x20] sm:$0xff] %v12107_v22 }
 0x14c   : > { %v10691_v35 = vpop.f32.mrf.mxu1  ;;  %v10739_v30 = vpop.f32.mrf.mxu0  ;;  %3099 = vst [vmem:[#allocation2 + $0x28] sm:$0x3] %v12107_v22  ;;  %3102 = vst [vmem:[#allocation2 + $0x40] sm:$0x3] %v12107_v22 }
 0x14d   : > { %v1462_v44 = vadd.f32 %v10691_v35, %v12789_v4  ;;  %3103 = vst [vmem:[#allocation2 + $0x48] sm:$0xff] %v12107_v22  ;;  %3104 = vst [vmem:[#allocation2 + $0x50] sm:$0xff] %v12107_v22  ;;  %11016 = vmatpush3.bf16.msra.mxu0 %v12966_v38  ;;  %v11957_v35 = vld [vmem:[%s15612_s3 + $0x40] sm:$0xff]  }
 0x14e   : > { %v1333_v45 = vpop.f32.mrf.mxu1  ;;  %v1639_v7 = vpop.f32.mrf.mxu0  ;;  %3105 = vst [vmem:[#allocation2 + $0x58] sm:$0x3] %v12107_v22  ;;  %3106 = vst [vmem:[#allocation2 + $0x60] sm:$0xff] %v12107_v22  ;;  %11017 = vmatprep.subr.bf16.mxu0 %v11955_v1  ;;  %10975 = vmatprep.subr.bf16.mxu1 %v11957_v35 }
 0x14f   : > { %v12955_v8 = vadd.f32 %v10739_v30, %v1462_v44  ;;  %v1460_v37 = vadd.f32 %v1333_v45, %v12792_v57  ;;  %3107 = vst [vmem:[#allocation2 + $0x68] sm:$0xff] %v12107_v22  ;;  %3108 = vst [vmem:[#allocation2 + $0x70] sm:$0x3] %v12107_v22  ;;  %10976 = vmatpush3.bf16.msra.mxu1 %v11957_v35 }
 0x150   : > { %v10692_v19 = vpop.f32.mrf.mxu1  ;;  %v12968_v4 = vpop.f32.mrf.mxu0  ;;  %3109 = vst [vmem:[#allocation2 + $0x78] sm:$0xff] %v12107_v22  ;;  %3110 = vst [vmem:[#allocation2 + $0x80] sm:$0xff] %v12107_v22 }
 0x151   : > { %v12970_v2 = vadd.f32 %v1639_v7, %v1460_v37  ;;  %v12973_v0 = vadd.f32 %v10692_v19, %v12795_v20  ;;  %3111 = vst [vmem:[#allocation2 + $0x88] sm:$0x3] %v12107_v22  ;;  %3112 = vst [vmem:[#allocation2 + $0x90] sm:$0xff] %v12107_v22  ;;  %11018 = vmatpush3.bf16.msra.mxu0 %v11955_v1  ;;  %v3245_v7 = vld [vmem:[#allocation2 + $0x1] sm:$0xff]  ;;  %v3246_v37 = vld [vmem:[#allocation2 + $0x9] sm:$0xff] }
 0x152   : > { %v12977_v57 = vpop.f32.mrf.mxu1  ;;  %v12979_v29 = vpop.f32.mrf.mxu0  ;;  %3113 = vst [vmem:[#allocation2 + $0x98] sm:$0xff] %v12107_v22  ;;  %3114 = vst [vmem:[#allocation2 + $0xa0] sm:$0x3] %v12107_v22  ;;  %11019 = vmatprep.subr.bf16.mxu0 %v11956_v55  ;;  %v3277_v38 = vpack.c.bf16 %v3246_v37, %v3245_v7 }
 0x153   : > { %3115 = vst [vmem:[#allocation2 + $0xa8] sm:$0xff] %v12107_v22  ;;  %3116 = vst [vmem:[#allocation2 + $0xb0] sm:$0xff] %v12107_v22  ;;  %v13093_v20 = vadd.f32 %v12968_v4, %v12973_v0  ;;  %v11958_v4 = vld [vmem:[%s15612_s3 + $0x8] sm:$0xff]  }
 0x154   : > { %3117 = vst [vmem:[#allocation2 + $0xb8] sm:$0x3] %v12107_v22  ;;  %3118 = vst [vmem:[#allocation2 + $0xc0] sm:$0xff] %v12107_v22  ;;  %v10695_v27 = vpop.f32.mrf.mxu1  ;;  %v10743_v15 = vpop.f32.mrf.mxu0  ;;  %10977 = vmatprep.mubr.bf16.mxu1 %v3277_v38 }
 0x155   : > { %3119 = vst [vmem:[#allocation2 + $0xc8] sm:$0xff] %v12107_v22  ;;  %3120 = vst [vmem:[#allocation2 + $0xd0] sm:$0x3] %v12107_v22  ;;  %v1466_v63 = vadd.f32 %v10695_v27, %v12809_v41  ;;  %11020 = vmatpush3.bf16.msra.mxu0 %v11956_v55 }
 0x156   : > { %3121 = vst [vmem:[#allocation2 + $0xd8] sm:$0xff] %v12107_v22  ;;  %3122 = vst [vmem:[#allocation2 + $0xe0] sm:$0xff] %v12107_v22  ;;  %v1349_v60 = vpop.f32.mrf.mxu1  ;;  %v1655_v39 = vpop.f32.mrf.mxu0  ;;  %11021 = vmatprep.subr.bf16.mxu0 %v11958_v4 }
 0x157   : > { %3123 = vst [vmem:[#allocation2 + $0xe8] sm:$0x3] %v12107_v22  ;;  %3124 = vst [vmem:[#allocation2 + $0xf0] sm:$0xff] %v12107_v22  ;;  %v13102_v33 = vadd.f32 %v10743_v15, %v1466_v63  ;;  %v1464_v54 = vadd.f32 %v1349_v60, %v12812_v3  ;;  %v11959_v63 = vld [vmem:[%s15612_s3] sm:$0xff]  }
 0x158   : > { %3125 = vst [vmem:[#allocation2 + $0xf8] sm:$0xff] %v12107_v22  ;;  %3126 = vst [vmem:[#allocation2 + $0x100] sm:$0x3] %v12107_v22  ;;  %v10696_v30 = vpop.f32.mrf.mxu1  ;;  %v10744_v41 = vpop.f32.mrf.mxu0 }
 0x159   : > { %3127 = vst [vmem:[#allocation2 + $0x108] sm:$0xff] %v12107_v22  ;;  %3128 = vst [vmem:[#allocation2 + $0x110] sm:$0xff] %v12107_v22  ;;  %v13111_v44 = vadd.f32 %v1655_v39, %v1464_v54  ;;  %v1467_v45 = vadd.f32 %v10696_v30, %v12815_v13  ;;  %11022 = vmatpush3.bf16.msra.mxu0 %v11958_v4 }
 0x15a   : > { %3129 = vst [vmem:[#allocation2 + $0x118] sm:$0x3] %v12107_v22  ;;  %3130 = vst [vmem:[#allocation2 + $0x120] sm:$0xff] %v12107_v22  ;;  %v13114_v58 = vpop.f32.mrf.mxu1  ;;  %v13116_v3 = vpop.f32.mrf.mxu0  ;;  %11023 = vmatprep.subr.bf16.mxu0 %v11959_v63 }
 0x15b   : > { %3131 = vst [vmem:[#allocation2 + $0x128] sm:$0xff] %v12107_v22  ;;  %3132 = vst [vmem:[#allocation2 + $0x130] sm:$0x3] %v12107_v22  ;;  %v13118_v19 = vadd.f32 %v10744_v41, %v1467_v45  ;;  %v12108_v45 = vmov 0.0|0.0  }
 0x15c   : > { %3133 = vst [vmem:[#allocation2 + $0x138] sm:$0xff] %v12107_v22  ;;  %3134 = vst [vmem:[#allocation2 + $0x140] sm:$0xff] %v12107_v22  ;;  %v10699_v0 = vpop.f32.mrf.mxu1  ;;  %11025 = vmatprep.mubr.bf16.mxu0 %v12108_v45 }
 0x15d   : > { %3135 = vst [vmem:[#allocation2 + $0x148] sm:$0x3] %v12107_v22  ;;  %3136 = vst [vmem:[#allocation2 + $0x150] sm:$0xff] %v12107_v22  ;;  %v1470_v13 = vadd.f32 %v10699_v0, %v12829_v51  ;;  %11024 = vmatpush3.bf16.msra.mxu0 %v11959_v63 }
 0x15e   : > { %3137 = vst [vmem:[#allocation2 + $0x158] sm:$0xff] %v12107_v22  ;;  %3138 = vst [vmem:[#allocation2 + $0x160] sm:$0x3] %v12107_v22  ;;  %v1365_v28 = vpop.f32.mrf.mxu1 }
 0x15f   : > { %3139 = vst [vmem:[#allocation2 + $0x168] sm:$0xff] %v12107_v22  ;;  %3140 = vst [vmem:[#allocation2 + $0x170] sm:$0xff] %v12107_v22  ;;  %v1468_v15 = vadd.f32 %v1365_v28, %v12832_v10 }
 0x160   : > { %3141 = vst [vmem:[#allocation2 + $0x178] sm:$0x3] %v12107_v22  ;;  %3142 = vst [vmem:[#allocation2 + $0x180] sm:$0xff] %v12107_v22  ;;  %v10700_v60 = vpop.f32.mrf.mxu1 }
 0x161   : > { %3143 = vst [vmem:[#allocation2 + $0x188] sm:$0xff] %v12107_v22  ;;  %3144 = vst [vmem:[#allocation2 + $0x190] sm:$0x3] %v12107_v22  ;;  %v1471_v55 = vadd.f32 %v10700_v60, %v12835_v46 }
 0x162   : > { %3145 = vst [vmem:[#allocation2 + $0x198] sm:$0xff] %v12107_v22  ;;  %3146 = vst [vmem:[#allocation2 + $0x1a0] sm:$0xff] %v12107_v22  ;;  %v13133_v51 = vpop.f32.mrf.mxu1 }
 0x163   : > { %3147 = vst [vmem:[#allocation2 + $0x1a8] sm:$0x3] %v12107_v22  ;;  %5942 = vst [vmem:[#allocation3] sm:$0xff] %v12107_v22 }
 0x164   : > { %5943 = vst [vmem:[#allocation3 + $0x8] sm:$0xff] %v12107_v22  ;;  %5944 = vst [vmem:[#allocation3 + $0x10] sm:$0x3] %v12107_v22  ;;  %v10703_v41 = vpop.f32.mrf.mxu1 }
 0x165   : > { %5945 = vst [vmem:[#allocation3 + $0x18] sm:$0xff] %v12107_v22  ;;  %5946 = vst [vmem:[#allocation3 + $0x20] sm:$0xff] %v12107_v22  ;;  %v1474_v7 = vadd.f32 %v10703_v41, %v12849_v61 }
 0x166   : > { %5947 = vst [vmem:[#allocation3 + $0x28] sm:$0x3] %v12107_v22  ;;  %5948 = vst [vmem:[#allocation3 + $0x30] sm:$0xff] %v12107_v22  ;;  %v1381_v37 = vpop.f32.mrf.mxu1 }
 0x167   : > { %5949 = vst [vmem:[#allocation3 + $0x38] sm:$0xff] %v12107_v22  ;;  %5950 = vst [vmem:[#allocation3 + $0x40] sm:$0x3] %v12107_v22  ;;  %v1472_v46 = vadd.f32 %v1381_v37, %v12855_v52  ;;  %v13156_v52 = vld [vmem:[%s15612_s3 + $0xb8] sm:$0xff]  }
 0x168   : > { %5951 = vst [vmem:[#allocation3 + $0x48] sm:$0xff] %v12107_v22  ;;  %5952 = vst [vmem:[#allocation3 + $0x50] sm:$0xff] %v12107_v22  ;;  %v10704_v0 = vpop.f32.mrf.mxu1  ;;  %11057 = vmatprep.subr.bf16.mxu1 %v13156_v52 }
 0x169   : > { %5953 = vst [vmem:[#allocation3 + $0x58] sm:$0x3] %v12107_v22  ;;  %5954 = vst [vmem:[#allocation3 + $0x60] sm:$0xff] %v12107_v22  ;;  %v1475_v28 = vadd.f32 %v10704_v0, %v12858_v42 }
 0x16a   : > { %5955 = vst [vmem:[#allocation3 + $0x68] sm:$0xff] %v12107_v22  ;;  %5956 = vst [vmem:[#allocation3 + $0x70] sm:$0x3] %v12107_v22 }
 0x16b   : > { %5957 = vst [vmem:[#allocation3 + $0x78] sm:$0xff] %v12107_v22  ;;  %5958 = vst [vmem:[#allocation3 + $0x80] sm:$0xff] %v12107_v22 }
 0x16c   : > { %5959 = vst [vmem:[#allocation3 + $0x88] sm:$0x3] %v12107_v22  ;;  %5960 = vst [vmem:[#allocation3 + $0x90] sm:$0xff] %v12107_v22 }
 0x16d   : > { %5961 = vst [vmem:[#allocation3 + $0x98] sm:$0xff] %v12107_v22  ;;  %5962 = vst [vmem:[#allocation3 + $0xa0] sm:$0x3] %v12107_v22 }
 0x16e   : > { %5963 = vst [vmem:[#allocation3 + $0xa8] sm:$0xff] %v12107_v22  ;;  %5964 = vst [vmem:[#allocation3 + $0xb0] sm:$0xff] %v12107_v22 }
 0x16f   : > { %5965 = vst [vmem:[#allocation3 + $0xb8] sm:$0x3] %v12107_v22  ;;  %5966 = vst [vmem:[#allocation3 + $0xc0] sm:$0xff] %v12107_v22 }
 0x170   : > { %5967 = vst [vmem:[#allocation3 + $0xc8] sm:$0xff] %v12107_v22  ;;  %5968 = vst [vmem:[#allocation3 + $0xd0] sm:$0x3] %v12107_v22 }
 0x171   : > { %5969 = vst [vmem:[#allocation3 + $0xd8] sm:$0xff] %v12107_v22  ;;  %5970 = vst [vmem:[#allocation3 + $0xe0] sm:$0xff] %v12107_v22 }
 0x172   : > { %5971 = vst [vmem:[#allocation3 + $0xe8] sm:$0x3] %v12107_v22  ;;  %5972 = vst [vmem:[#allocation3 + $0xf0] sm:$0xff] %v12107_v22 }
 0x173   : > { %5973 = vst [vmem:[#allocation3 + $0xf8] sm:$0xff] %v12107_v22  ;;  %5974 = vst [vmem:[#allocation3 + $0x100] sm:$0x3] %v12107_v22 }
 0x174   : > { %5975 = vst [vmem:[#allocation3 + $0x108] sm:$0xff] %v12107_v22  ;;  %5976 = vst [vmem:[#allocation3 + $0x110] sm:$0xff] %v12107_v22 }
 0x175   : > { %5977 = vst [vmem:[#allocation3 + $0x118] sm:$0x3] %v12107_v22  ;;  %5978 = vst [vmem:[#allocation3 + $0x120] sm:$0xff] %v12107_v22 }
 0x176   : > { %5979 = vst [vmem:[#allocation3 + $0x128] sm:$0xff] %v12107_v22  ;;  %5980 = vst [vmem:[#allocation3 + $0x130] sm:$0x3] %v12107_v22 }
 0x177   : > { %5981 = vst [vmem:[#allocation3 + $0x138] sm:$0xff] %v12107_v22  ;;  %5982 = vst [vmem:[#allocation3 + $0x140] sm:$0xff] %v12107_v22 }
 0x178   : > { %5983 = vst [vmem:[#allocation3 + $0x148] sm:$0x3] %v12107_v22  ;;  %5984 = vst [vmem:[#allocation3 + $0x150] sm:$0xff] %v12107_v22 }
 0x179   : > { %5985 = vst [vmem:[#allocation3 + $0x158] sm:$0xff] %v12107_v22  ;;  %5986 = vst [vmem:[#allocation3 + $0x160] sm:$0x3] %v12107_v22 }
 0x17a   : > { %5987 = vst [vmem:[#allocation3 + $0x168] sm:$0xff] %v12107_v22  ;;  %5988 = vst [vmem:[#allocation3 + $0x170] sm:$0xff] %v12107_v22 }
 0x17b   : > { %5989 = vst [vmem:[#allocation3 + $0x178] sm:$0x3] %v12107_v22  ;;  %5990 = vst [vmem:[#allocation3 + $0x180] sm:$0xff] %v12107_v22 }
 0x17c   : > { %5991 = vst [vmem:[#allocation3 + $0x188] sm:$0xff] %v12107_v22  ;;  %5992 = vst [vmem:[#allocation3 + $0x190] sm:$0x3] %v12107_v22 }
 0x17d   : > { %5993 = vst [vmem:[#allocation3 + $0x198] sm:$0xff] %v12107_v22  ;;  %5994 = vst [vmem:[#allocation3 + $0x1a0] sm:$0xff] %v12107_v22 }
 0x17e   : > { %5995 = vst [vmem:[#allocation3 + $0x1a8] sm:$0x3] %v12107_v22  ;;  %v10747_v22 = vpop.f32.mrf.mxu0  ;;  %15629 = vst [vmem:[#allocation10_spill] sm:$0xff] %v13156_v52 }
 0x17f   : > { %v13124_v27 = vadd.f32 %v10747_v22, %v1470_v13 }
 0x180   : > { %v1671_v1 = vpop.f32.mrf.mxu0 }
 0x181   : > { %v13130_v54 = vadd.f32 %v1671_v1, %v1468_v15  ;;  %v13146_v1 = vpop.f32.mrf.mxu1 }
 0x182   : > { %v10748_v39 = vpop.f32.mrf.mxu0 }
 0x183   : > { %v13137_v30 = vadd.f32 %v10748_v39, %v1471_v55  ;;  %v10707_v60 = vpop.f32.mrf.mxu1 }
 0x184   : > { %v13135_v35 = vpop.f32.mrf.mxu0  ;;  %v1478_v39 = vadd.f32 %v10707_v60, %v12872_v17 }
 0x185   : > { %v1397_v55 = vpop.f32.mrf.mxu1 }
 0x186   : > { %v10751_v10 = vpop.f32.mrf.mxu0  ;;  %v1476_v42 = vadd.f32 %v1397_v55, %v12878_v36 }
 0x187   : > { %v13140_v4 = vadd.f32 %v10751_v10, %v1474_v7  ;;  %v10708_v45 = vpop.f32.mrf.mxu1 }
 0x188   : > { %v1687_v38 = vpop.f32.mrf.mxu0 }
 0x189   : > { %15625 = vst [vmem:[#allocation6_spill] sm:$0xff] %v13140_v4  ;;  %v13143_v13 = vadd.f32 %v1687_v38, %v1472_v46  ;;  %v1479_v38 = vadd.f32 %v10708_v45, %v12885_v59  ;;  %v13165_v17 = vpop.f32.mrf.mxu1 }
 0x18a   : > { %v10752_v22 = vpop.f32.mrf.mxu0 }
 0x18b   : > { %15626 = vst [vmem:[#allocation7_spill] sm:$0xff] %v13143_v13  ;;  %v13150_v63 = vadd.f32 %v10752_v22, %v1475_v28  ;;  %v10711_v22 = vpop.f32.mrf.mxu1 }
 0x18c   : > { %v13148_v15 = vpop.f32.mrf.mxu0  ;;  %v1482_v60 = vadd.f32 %v10711_v22, %v12892_v24 }
 0x18d   : > { %15627 = vst [vmem:[#allocation8_spill] sm:$0xff] %v13148_v15  ;;  %15628 = vst [vmem:[#allocation9_spill] sm:$0xff] %v13150_v63 }
 0x18e   : > { %v10755_v61 = vpop.f32.mrf.mxu0 }
 0x18f   : > { %v13158_v10 = vadd.f32 %v10755_v61, %v1478_v39  ;;  %v1413_v61 = vpop.f32.mrf.mxu1 }
 0x190   : > { %v1703_v41 = vpop.f32.mrf.mxu0  ;;  %v1480_v55 = vadd.f32 %v1413_v61, %v12898_v31 }
 0x191   : > { %15630 = vst [vmem:[#allocation11_spill] sm:$0xff] %v13158_v10  ;;  %v13162_v37 = vadd.f32 %v1703_v41, %v1476_v42  ;;  %v10712_v41 = vpop.f32.mrf.mxu1 }
 0x192   : > { %v10756_v7 = vpop.f32.mrf.mxu0  ;;  %v1483_v59 = vadd.f32 %v10712_v41, %v12905_v14 }
 0x193   : > { %15631 = vst [vmem:[#allocation12_spill] sm:$0xff] %v13162_v37  ;;  %v13169_v0 = vadd.f32 %v10756_v7, %v1479_v38  ;;  %v13178_v45 = vpop.f32.mrf.mxu1 }
 0x194   : > { %v13167_v46 = vpop.f32.mrf.mxu0  ;;  %15636 = vst [vmem:[#allocation17_spill] sm:$0xff] %v13178_v45 }
 0x195   : > { %15632 = vst [vmem:[#allocation13_spill] sm:$0xff] %v13167_v46  ;;  %15633 = vst [vmem:[#allocation14_spill] sm:$0xff] %v13169_v0  ;;  %v10715_v0 = vpop.f32.mrf.mxu1 }
 0x196   : > { %v10759_v28 = vpop.f32.mrf.mxu0  ;;  %v1486_v22 = vadd.f32 %v10715_v0, %v12914_v49  ;;  %v13200_v0 = vld [vmem:[%s15612_s3 + $0xf8] sm:$0xff]  }
 0x197   : > { %v13172_v39 = vadd.f32 %v10759_v28, %v1482_v60  ;;  %v1429_v28 = vpop.f32.mrf.mxu1  ;;  %15644 = vst [vmem:[#allocation25_spill] sm:$0xff] %v13200_v0  ;;  %11105 = vmatprep.subr.bf16.mxu0 %v13200_v0 }
 0x198   : > { %v1719_v36 = vpop.f32.mrf.mxu0  ;;  %v1484_v31 = vadd.f32 %v1429_v28, %v12920_v40 }
 0x199   : > { %15634 = vst [vmem:[#allocation15_spill] sm:$0xff] %v13172_v39  ;;  %v13175_v37 = vadd.f32 %v1719_v36, %v1480_v55  ;;  %v10716_v61 = vpop.f32.mrf.mxu1 }
 0x19a   : > { %v10760_v42 = vpop.f32.mrf.mxu0  ;;  %v1487_v14 = vadd.f32 %v10716_v61, %v12927_v48 }
 0x19b   : > { %15635 = vst [vmem:[#allocation16_spill] sm:$0xff] %v13175_v37  ;;  %v13182_v38 = vadd.f32 %v10760_v42, %v1483_v59  ;;  %v13191_v41 = vpop.f32.mrf.mxu1 }
 0x19c   : > { %v13180_v7 = vpop.f32.mrf.mxu0  ;;  %15641 = vst [vmem:[#allocation22_spill] sm:$0xff] %v13191_v41 }
 0x19d   : > { %15637 = vst [vmem:[#allocation18_spill] sm:$0xff] %v13180_v7  ;;  %15638 = vst [vmem:[#allocation19_spill] sm:$0xff] %v13182_v38  ;;  %v10719_v38 = vpop.f32.mrf.mxu1 }
 0x19e   : > { %v10763_v24 = vpop.f32.mrf.mxu0  ;;  %v1490_v40 = vadd.f32 %v10719_v38, %v12933_v12 }
 0x19f   : > { %v13185_v39 = vadd.f32 %v10763_v24, %v1486_v22  ;;  %v1445_v24 = vpop.f32.mrf.mxu1 }
 0x1a0   : > { %v1735_v60 = vpop.f32.mrf.mxu0  ;;  %v1488_v28 = vadd.f32 %v1445_v24, %v12942_v21 }
 0x1a1   : > { %15639 = vst [vmem:[#allocation20_spill] sm:$0xff] %v13185_v39  ;;  %v13188_v55 = vadd.f32 %v1735_v60, %v1484_v31  ;;  %v10720_v60 = vpop.f32.mrf.mxu1 }
 0x1a2   : > { %v10764_v36 = vpop.f32.mrf.mxu0 }
 0x1a3   : > { %15640 = vst [vmem:[#allocation21_spill] sm:$0xff] %v13188_v55  ;;  %v13195_v59 = vadd.f32 %v10764_v36, %v1487_v14  ;;  %v1491_v36 = vadd.f32 %v10720_v60, %v12949_v9  ;;  %v13210_v14 = vpop.f32.mrf.mxu1 }
 0x1a4   : > { %v13193_v42 = vpop.f32.mrf.mxu0  ;;  %15647 = vst [vmem:[#allocation28_spill] sm:$0xff] %v13210_v14 }
 0x1a5   : > { %15642 = vst [vmem:[#allocation23_spill] sm:$0xff] %v13193_v42  ;;  %15643 = vst [vmem:[#allocation24_spill] sm:$0xff] %v13195_v59  ;;  %v10787_v12 = vpop.f32.mrf.mxu1 }
 0x1a6   : > { %v10767_v49 = vpop.f32.mrf.mxu0 }
 0x1a7   : > { %v13204_v48 = vadd.f32 %v10767_v49, %v1490_v40  ;;  %v1945_v42 = vpop.f32.mrf.mxu1 }
 0x1a8   : > { %v1751_v22 = vpop.f32.mrf.mxu0 }
 0x1a9   : > { %15645 = vst [vmem:[#allocation26_spill] sm:$0xff] %v13204_v48  ;;  %v13207_v61 = vadd.f32 %v1751_v22, %v1488_v28  ;;  %v13220_v40 = vpop.f32.mrf.mxu1 }
 0x1aa   : > { %v10768_v31 = vpop.f32.mrf.mxu0 }
 0x1ab   : > { %15646 = vst [vmem:[#allocation27_spill] sm:$0xff] %v13207_v61  ;;  %v13214_v55 = vadd.f32 %v10768_v31, %v1491_v36  ;;  %v13224_v24 = vpop.f32.mrf.mxu1 }
 0x1ac   : > { %v13212_v59 = vpop.f32.mrf.mxu0 }
 0x1ad   : > { %15648 = vst [vmem:[#allocation29_spill] sm:$0xff] %v13212_v59  ;;  %15649 = vst [vmem:[#allocation30_spill] sm:$0xff] %v13214_v55  ;;  %v13228_v9 = vpop.f32.mrf.mxu1 }
 0x1ae   : > { %v13216_v38 = vpop.f32.mrf.mxu0 }
 0x1af   : > { %v13232_v60 = vpop.f32.mrf.mxu1 }
 0x1b0   : > { %v13218_v49 = vpop.f32.mrf.mxu0 }
 0x1b1   : > { %v13236_v36 = vpop.f32.mrf.mxu1 }
 0x1b2   : > { %v13222_v21 = vpop.f32.mrf.mxu0 }
 0x1b3   : > { %v13240_v59 = vpop.f32.mrf.mxu1 }
 0x1b4   : > { %v13226_v22 = vpop.f32.mrf.mxu0 }
 0x1b5   : > { %v13244_v48 = vpop.f32.mrf.mxu1 }
 0x1b6   : > { %v13230_v28 = vpop.f32.mrf.mxu0 }
 0x1b7   : > { %v13248_v39 = vpop.f32.mrf.mxu1 }
 0x1b8   : > { %v13234_v31 = vpop.f32.mrf.mxu0 }
 0x1b9   : > { %v13252_v7 = vpop.f32.mrf.mxu1 }
 0x1ba   : > { %v13238_v55 = vpop.f32.mrf.mxu0 }
 0x1bb   : > { %v13256_v0 = vpop.f32.mrf.mxu1 }
 0x1bc   : > { %v13242_v61 = vpop.f32.mrf.mxu0 }
 0x1bd   : > { %v13260_v10 = vpop.f32.mrf.mxu1 }
 0x1be   : > { %v13246_v14 = vpop.f32.mrf.mxu0  ;;  %15652 = vst [vmem:[#allocation33_spill] sm:$0xff] %v13260_v10 }
 0x1bf   : > { %v13264_v46 = vpop.f32.mrf.mxu1 }
 0x1c0   : > { %v13250_v41 = vpop.f32.mrf.mxu0  ;;  %15654 = vst [vmem:[#allocation35_spill] sm:$0xff] %v13264_v46 }
 0x1c1   : > { %v13268_v15 = vpop.f32.mrf.mxu1 }
 0x1c2   : > { %v13254_v37 = vpop.f32.mrf.mxu0  ;;  %15656 = vst [vmem:[#allocation37_spill] sm:$0xff] %v13268_v15 }
 0x1c3   : > { %15650 = vst [vmem:[#allocation31_spill] sm:$0xff] %v13254_v37  ;;  %v13272_v47 = vpop.f32.mrf.mxu1 }
 0x1c4   : > { %v13258_v45 = vpop.f32.mrf.mxu0  ;;  %15658 = vst [vmem:[#allocation39_spill] sm:$0xff] %v13272_v47 }
 0x1c5   : > { %15651 = vst [vmem:[#allocation32_spill] sm:$0xff] %v13258_v45  ;;  %v13276_v37 = vpop.f32.mrf.mxu1 }
 0x1c6   : > { %v13262_v63 = vpop.f32.mrf.mxu0  ;;  %15660 = vst [vmem:[#allocation41_spill] sm:$0xff] %v13276_v37 }
 0x1c7   : > { %15653 = vst [vmem:[#allocation34_spill] sm:$0xff] %v13262_v63  ;;  %v13280_v45 = vpop.f32.mrf.mxu1 }
 0x1c8   : > { %v13266_v52 = vpop.f32.mrf.mxu0  ;;  %15662 = vst [vmem:[#allocation43_spill] sm:$0xff] %v13280_v45 }
 0x1c9   : > { %15655 = vst [vmem:[#allocation36_spill] sm:$0xff] %v13266_v52  ;;  %v13284_v63 = vpop.f32.mrf.mxu1 }
 0x1ca   : > { %v13270_v25 = vpop.f32.mrf.mxu0  ;;  %15664 = vst [vmem:[#allocation45_spill] sm:$0xff] %v13284_v63 }
 0x1cb   : > { %15657 = vst [vmem:[#allocation38_spill] sm:$0xff] %v13270_v25  ;;  %v13288_v52 = vpop.f32.mrf.mxu1 }
 0x1cc   : > { %v13274_v13 = vpop.f32.mrf.mxu0  ;;  %15666 = vst [vmem:[#allocation47_spill] sm:$0xff] %v13288_v52 }
 0x1cd   : > { %15659 = vst [vmem:[#allocation40_spill] sm:$0xff] %v13274_v13  ;;  %v13292_v25 = vpop.f32.mrf.mxu1 }
 0x1ce   : > { %v13278_v4 = vpop.f32.mrf.mxu0  ;;  %15668 = vst [vmem:[#allocation49_spill] sm:$0xff] %v13292_v25 }
 0x1cf   : > { %15661 = vst [vmem:[#allocation42_spill] sm:$0xff] %v13278_v4  ;;  %v13296_v13 = vpop.f32.mrf.mxu1 }
 0x1d0   : > { %v13282_v10 = vpop.f32.mrf.mxu0  ;;  %15670 = vst [vmem:[#allocation51_spill] sm:$0xff] %v13296_v13 }
 0x1d1   : > { %15663 = vst [vmem:[#allocation44_spill] sm:$0xff] %v13282_v10  ;;  %v13300_v4 = vpop.f32.mrf.mxu1 }
 0x1d2   : > { %v13286_v46 = vpop.f32.mrf.mxu0  ;;  %15672 = vst [vmem:[#allocation53_spill] sm:$0xff] %v13300_v4 }
 0x1d3   : > { %15665 = vst [vmem:[#allocation46_spill] sm:$0xff] %v13286_v46  ;;  %v13304_v10 = vpop.f32.mrf.mxu1 }
 0x1d4   : > { %v13290_v15 = vpop.f32.mrf.mxu0  ;;  %15674 = vst [vmem:[#allocation55_spill] sm:$0xff] %v13304_v10 }
 0x1d5   : > { %15667 = vst [vmem:[#allocation48_spill] sm:$0xff] %v13290_v15  ;;  %v13308_v46 = vpop.f32.mrf.mxu1 }
 0x1d6   : > { %v13294_v47 = vpop.f32.mrf.mxu0  ;;  %15676 = vst [vmem:[#allocation57_spill] sm:$0xff] %v13308_v46 }
 0x1d7   : > { %15669 = vst [vmem:[#allocation50_spill] sm:$0xff] %v13294_v47  ;;  %v13312_v15 = vpop.f32.mrf.mxu1 }
 0x1d8   : > { %v13298_v37 = vpop.f32.mrf.mxu0 }
 0x1d9   : > { %15671 = vst [vmem:[#allocation52_spill] sm:$0xff] %v13298_v37  ;;  %v13316_v47 = vpop.f32.mrf.mxu1 }
 0x1da   : > { %v13302_v45 = vpop.f32.mrf.mxu0  ;;  %15679 = vst [vmem:[#allocation60_spill] sm:$0xff] %v13316_v47 }
 0x1db   : > { %15673 = vst [vmem:[#allocation54_spill] sm:$0xff] %v13302_v45  ;;  %v13320_v37 = vpop.f32.mrf.mxu1 }
 0x1dc   : > { %v13306_v63 = vpop.f32.mrf.mxu0  ;;  %15681 = vst [vmem:[#allocation62_spill] sm:$0xff] %v13320_v37  ;;  %v2072_v37 = vadd.f32 %v1945_v42, %v12970_v2 }
 0x1dd   : > { %15675 = vst [vmem:[#allocation56_spill] sm:$0xff] %v13306_v63  ;;  %v13324_v45 = vpop.f32.mrf.mxu1 }
 0x1de   : > { %v13310_v52 = vpop.f32.mrf.mxu0  ;;  %15683 = vst [vmem:[#allocation64_spill] sm:$0xff] %v13324_v45 }
 0x1df   : > { %15677 = vst [vmem:[#allocation58_spill] sm:$0xff] %v13310_v52  ;;  %v13328_v63 = vpop.f32.mrf.mxu1  ;;  %v1461_v52 = vadd.f32 %v12977_v57, %v12800_v6  ;;  %v820_v6 = vadd.f32 %v12881_v34, %v12703_v62  ;;  %v13361_v62 = vld [vmem:[%s15611_s2] ss:$0 sm:$0xff] }
 0x1e0   : > { %v13314_v25 = vpop.f32.mrf.mxu0  ;;  %15685 = vst [vmem:[#allocation66_spill] sm:$0xff] %v13328_v63 }
 0x1e1   : > { %15678 = vst [vmem:[#allocation59_spill] sm:$0xff] %v13314_v25  ;;  %v2074_v25 = vadd.f32 %v10787_v12, %v12955_v8  ;;  %v13335_v47 = vpop.f32.mrf.mxu1  ;;  %v2379_v12 = vadd.f32 %v13218_v49, %v2072_v37  ;;  %v1170_v37 = vadd.f32 %v12883_v50, %v820_v6  ;;  %v2079_v50 = vadd.f32 %v13236_v36, %v13118_v19 }
 0x1e2   : > { %v13318_v13 = vpop.f32.mrf.mxu0 }
 0x1e3   : > { %15680 = vst [vmem:[#allocation61_spill] sm:$0xff] %v13318_v13  ;;  %v2381_v63 = vadd.f32 %v13216_v38, %v2074_v25  ;;  %v2078_v25 = vadd.f32 %v13228_v9, %v13102_v33 }
 0x1e4   : > { %v13322_v4 = vpop.f32.mrf.mxu0 }
 0x1e5   : > { %15682 = vst [vmem:[#allocation63_spill] sm:$0xff] %v13322_v4  ;;  %v13340_v4 = vpop.f32.mrf.mxu1 }
 0x1e6   : > { %v13326_v10 = vpop.f32.mrf.mxu0 }
 0x1e7   : > { %15684 = vst [vmem:[#allocation65_spill] sm:$0xff] %v13326_v10  ;;  %v1767_v10 = vadd.f32 %v12979_v29, %v1461_v52  ;;  %v10883_v8 = vpop.f32.mrf.mxu1  ;;  %v1465_v29 = vadd.f32 %v13114_v58, %v12820_v23 }
 0x1e8   : > { %v13330_v46 = vpop.f32.mrf.mxu0  ;;  %v2687_v42 = vadd.f32 %v10883_v8, %v2381_v63  ;;  %v852_v8 = vadd.f32 %v12923_v43, %v12753_v56  ;;  %v2386_v56 = vadd.f32 %v13238_v55, %v2079_v50  ;;  %v2080_v43 = vadd.f32 %v13248_v39, %v13130_v54  ;;  %v11961_v50 = vld [vmem:[%s15612_s3 + $0xb0] sm:$0xff]  }
 0x1e9   : > { %15686 = vst [vmem:[#allocation67_spill] sm:$0xff] %v13330_v46  ;;  %v2075_v46 = vadd.f32 %v13220_v40, %v13093_v20  ;;  %v2073_v2 = vadd.f32 %v13224_v24, %v1767_v10  ;;  %v2558_v34 = vpop.f32.mrf.mxu1 }
 0x1ea   : > { %v13337_v13 = vpop.f32.mrf.mxu0  ;;  %v2685_v63 = vadd.f32 %v2558_v34, %v2379_v12 }
 0x1eb   : > { %v2382_v52 = vadd.f32 %v13222_v21, %v2075_v46  ;;  %v10884_v23 = vpop.f32.mrf.mxu1  ;;  %v2380_v33 = vadd.f32 %v13226_v22, %v2073_v2  ;;  %v1771_v46 = vadd.f32 %v13116_v3, %v1465_v29  ;;  %v2385_v21 = vadd.f32 %v13230_v28, %v2078_v25 }
 0x1ec   : > { %v13342_v45 = vpop.f32.mrf.mxu0 }
 0x1ed   : > { %15687 = vst [vmem:[#allocation68_spill] sm:$0xff] %v13342_v45  ;;  %v836_v45 = vadd.f32 %v12901_v5, %v12723_v18  ;;  %v2076_v18 = vadd.f32 %v13232_v60, %v13111_v44  ;;  %v2688_v49 = vadd.f32 %v10884_v23, %v2382_v52  ;;  %v2561_v24 = vpop.f32.mrf.mxu1 }
 0x1ee   : > { %v10931_v57 = vpop.f32.mrf.mxu0  ;;  %v2686_v6 = vadd.f32 %v2561_v24, %v2380_v33 }
 0x1ef   : > { %v2993_v10 = vadd.f32 %v10931_v57, %v2687_v42  ;;  %v13370_v40 = vadd.f32 %v12903_v16, %v836_v45  ;;  %v1469_v16 = vadd.f32 %v13133_v51, %v12840_v11  ;;  %v2383_v3 = vadd.f32 %v13234_v31, %v2076_v18  ;;  %v10887_v28 = vpop.f32.mrf.mxu1 }
 0x1f0   : > { %v2864_v20 = vpop.f32.mrf.mxu0  ;;  %v2077_v45 = vadd.f32 %v13240_v59, %v1771_v46  ;;  %v2691_v2 = vadd.f32 %v10887_v28, %v2385_v21  ;;  %v868_v42 = vadd.f32 %v12945_v26, %v12778_v32  ;;  %v2082_v11 = vadd.f32 %v13244_v48, %v13124_v27  ;;  %v15695_v28 = vld [vmem:[#allocation31_spill] sm:$0xff] }
 0x1f1   : > { %v3032_v58 = vadd.f32 %v13361_v62, %v2993_v10  ;;  %v2991_v38 = vadd.f32 %v2864_v20, %v2685_v63  ;;  %v2574_v51 = vpop.f32.mrf.mxu1  ;;  %v1775_v20 = vadd.f32 %v13135_v35, %v1469_v16  ;;  %v1473_v32 = vadd.f32 %v13146_v1, %v12863_v53 }
 0x1f2   : > { %v10932_v5 = vpop.f32.mrf.mxu0  ;;  %v2689_v34 = vadd.f32 %v2574_v51, %v2383_v3  ;;  %v1477_v26 = vadd.f32 %v13165_v17, %v1170_v37  ;;  %v2384_v27 = vadd.f32 %v13242_v61, %v2077_v45  ;;  %v2389_v63 = vadd.f32 %v13246_v14, %v2082_v11  ;;  %v15694_v3 = vld [vmem:[#allocation8_spill] sm:$0xff] }
 0x1f3   : > { %v3064_v9 = vmax.f32 %v3032_v58, 0.0  ;;  %v3030_v60 = vadd.f32 %v13361_v62, %v2991_v38  ;;  %v2994_v22 = vadd.f32 %v10932_v5, %v2688_v49  ;;  %v10888_v55 = vpop.f32.mrf.mxu1  ;;  %v2387_v18 = vadd.f32 %v13250_v41, %v2080_v43  ;;  %v15688_v58 = vld [vmem:[#allocation6_spill] sm:$0xff]  ;;  %v15689_v38 = vld [vmem:[#allocation33_spill] sm:$0xff]  ;;  %v15690_v49 = vld [vmem:[#allocation7_spill] sm:$0xff] }
 0x1f4   : > { %v2867_v44 = vpop.f32.mrf.mxu0  ;;  %v2692_v10 = vadd.f32 %v10888_v55, %v2386_v56  ;;  %v2083_v35 = vadd.f32 %v13252_v7, %v13137_v30  ;;  %v2081_v33 = vadd.f32 %v13256_v0, %v1775_v20  ;;  %v2086_v14 = vadd.f32 %v15689_v38, %v15688_v58  ;;  %v15691_v41 = vld [vmem:[#allocation35_spill] sm:$0xff]  ;;  %v15696_v43 = vld [vmem:[#allocation10_spill] sm:$0xff] }
 0x1f5   : > { %3151 = vst [vmem:[#allocation2 + $0x31] sm:$0xff] %v3064_v9  ;;  %v3062_v19 = vmax.f32 %v3030_v60, 0.0  ;;  %v3033_v36 = vadd.f32 %v13361_v62, %v2994_v22  ;;  %v2992_v12 = vadd.f32 %v2867_v44, %v2686_v6  ;;  %v2577_v53 = vpop.f32.mrf.mxu1  ;;  %v2084_v46 = vadd.f32 %v15691_v41, %v15690_v49  ;;  %v15692_v60 = vld [vmem:[#allocation4_spill] sm:$0xff]  ;;  %v15693_v6 = vld [vmem:[#allocation5_spill] sm:$0xff] }
 0x1f6   : > { %v10935_v57 = vpop.f32.mrf.mxu0  ;;  %v2690_v5 = vadd.f32 %v2577_v53, %v2384_v27  ;;  %v13416_v22 = vadd.f32 %v15692_v60, %v852_v8  ;;  %v13419_v16 = vadd.f32 %v15693_v6, %v868_v42  ;;  %v1779_v45 = vadd.f32 %v15694_v3, %v1473_v32  ;;  %v15697_v8 = vld [vmem:[#allocation13_spill] sm:$0xff]  ;;  %v15698_v42 = vld [vmem:[#allocation32_spill] sm:$0xff]  ;;  %v15704_v53 = vld [vmem:[#allocation11_spill] sm:$0xff] }
 0x1f7   : > { %3149 = vst [vmem:[#allocation2 + $0x19] sm:$0xff] %v3062_v19  ;;  %v3065_v31 = vmax.f32 %v3033_v36, 0.0  ;;  %v3031_v29 = vadd.f32 %v13361_v62, %v2992_v12  ;;  %v2997_v25 = vadd.f32 %v10935_v57, %v2691_v2  ;;  %v10891_v21 = vpop.f32.mrf.mxu1  ;;  %v2390_v57 = vadd.f32 %v15695_v28, %v2083_v35  ;;  %v11962_v27 = vld [vmem:[%s15612_s3 + $0xa8] sm:$0xff]  }
 0x1f8   : > { %v2880_v59 = vpop.f32.mrf.mxu0  ;;  %v2695_v0 = vadd.f32 %v10891_v21, %v2389_v63  ;;  %v13426_v51 = vadd.f32 %v15697_v8, %v1477_v26  ;;  %v15706_v21 = vld [vmem:[#allocation12_spill] sm:$0xff] }
 0x1f9   : > { %3152 = vst [vmem:[#allocation2 + $0x39] sm:$0xff] %v3065_v31  ;;  %v3063_v54 = vmax.f32 %v3031_v29, 0.0  ;;  %v3036_v39 = vadd.f32 %v13361_v62, %v2997_v25  ;;  %v2995_v52 = vadd.f32 %v2880_v59, %v2689_v34  ;;  %v3279_v17 = vpack.c.bf16 %v3065_v31, %v3064_v9  ;;  %v15699_v31 = vld [vmem:[#allocation34_spill] sm:$0xff]  ;;  %v15700_v25 = vld [vmem:[#allocation36_spill] sm:$0xff] }
 0x1fa   : > { %v10936_v48 = vpop.f32.mrf.mxu0  ;;  %v2388_v59 = vadd.f32 %v15698_v42, %v2081_v33  ;;  %v2393_v29 = vadd.f32 %v15699_v31, %v2086_v14  ;;  %v2391_v34 = vadd.f32 %v15700_v25, %v2084_v46  ;;  %v15712_v25 = vld [vmem:[#allocation44_spill] sm:$0xff] }
 0x1fb   : > { %3150 = vst [vmem:[#allocation2 + $0x21] sm:$0xff] %v3063_v54  ;;  %v3068_v61 = vmax.f32 %v3036_v39, 0.0  ;;  %v13403_v37 = vadd.f32 %v13361_v62, %v2995_v52  ;;  %v2998_v23 = vadd.f32 %v10936_v48, %v2692_v10  ;;  %v3278_v7 = vpack.c.bf16 %v3063_v54, %v3062_v19  ;;  %v2590_v19 = vpop.f32.mrf.mxu1  ;;  %v15701_v52 = vld [vmem:[#allocation9_spill] sm:$0xff] }
 0x1fc   : > { %v2883_v1 = vpop.f32.mrf.mxu0  ;;  %v2693_v11 = vadd.f32 %v2590_v19, %v2387_v18  ;;  %v15702_v10 = vld [vmem:[#allocation37_spill] sm:$0xff]  ;;  %v15703_v18 = vld [vmem:[#allocation39_spill] sm:$0xff]  ;;  %v3185_v46 = vld [vmem:[#allocation2 + $0x30] sm:$0xff] }
 0x1fd   : > { %3155 = vst [vmem:[#allocation2 + $0x61] sm:$0xff] %v3068_v61  ;;  %v3066_v24 = vmax.f32 %v13403_v37, 0.0  ;;  %v3037_v44 = vadd.f32 %v13361_v62, %v2998_v23  ;;  %v2996_v9 = vadd.f32 %v2883_v1, %v2690_v5  ;;  %10978 = vmatmul.mubr.bf16.vlgmr.msra.gmra.mxu1 %v3278_v7  ;;  %v10892_v20 = vpop.f32.mrf.mxu1  ;;  %v2087_v63 = vadd.f32 %v15702_v10, %v15701_v52  ;;  %v15705_v1 = vld [vmem:[#allocation41_spill] sm:$0xff] }
 0x1fe   : > { %v10939_v30 = vpop.f32.mrf.mxu0  ;;  %10981 = vmatprep.mubr.bf16.mxu1 %v3279_v17  ;;  %11058 = vmatpush3.bf16.msra.mxu1 %v15696_v43  ;;  %v2696_v54 = vadd.f32 %v10892_v20, %v2390_v57  ;;  %v2085_v35 = vadd.f32 %v15703_v18, %v1779_v45  ;;  %v2090_v17 = vadd.f32 %v15705_v1, %v15704_v53  ;;  %v3183_v41 = vld [vmem:[#allocation2 + $0x18] sm:$0xff]  ;;  %v11966_v57 = vld [vmem:[%s15612_s3 + $0xf0] sm:$0xff]   ;;  %v15708_v19 = vld [vmem:[#allocation17_spill] sm:$0xff] }
 0x1ff   : > { %3153 = vst [vmem:[#allocation2 + $0x49] sm:$0xff] %v3066_v24  ;;  %v3069_v12 = vmax.f32 %v3037_v44, 0.0  ;;  %v3035_v2 = vadd.f32 %v13361_v62, %v2996_v9  ;;  %v3001_v56 = vadd.f32 %v10939_v30, %v2695_v0  ;;  %11059 = vmatprep.subr.bf16.mxu1 %v11961_v50  ;;  %v2593_v37 = vpop.f32.mrf.mxu1  ;;  %v15707_v30 = vld [vmem:[#allocation43_spill] sm:$0xff] }
 0x200   : > { %v2896_v36 = vpop.f32.mrf.mxu0  ;;  %v3186_v39 = vld [vmem:[#allocation2 + $0x38] sm:$0xff]  ;;  %v2694_v49 = vadd.f32 %v2593_v37, %v2388_v59  ;;  %v2088_v7 = vadd.f32 %v15707_v30, %v15706_v21  ;;  %v15718_v37 = vld [vmem:[#allocation49_spill] sm:$0xff] }
 0x201   : > { %3156 = vst [vmem:[#allocation2 + $0x69] sm:$0xff] %v3069_v12  ;;  %v3067_v55 = vmax.f32 %v3035_v2, 0.0  ;;  %v13435_v48 = vadd.f32 %v13361_v62, %v3001_v56  ;;  %v2999_v26 = vadd.f32 %v2896_v36, %v2693_v11  ;;  %v3281_v33 = vpack.c.bf16 %v3069_v12, %v3068_v61  ;;  %v10895_v44 = vpop.f32.mrf.mxu1  ;;  %v15710_v2 = vld [vmem:[#allocation40_spill] sm:$0xff]  ;;  %v15716_v53 = vld [vmem:[#allocation47_spill] sm:$0xff] }
 0x202   : > { %v10940_v32 = vpop.f32.mrf.mxu0  ;;  %v3184_v5 = vld [vmem:[#allocation2 + $0x20] sm:$0xff]  ;;  %11060 = vmatpush3.bf16.msra.mxu1 %v11961_v50  ;;  %v13450_v60 = vpack.c.bf16 %v3186_v39, %v3185_v46  ;;  %v2699_v28 = vadd.f32 %v10895_v44, %v2393_v29  ;;  %v1481_v36 = vadd.f32 %v15708_v19, %v13370_v40  ;;  %v2392_v56 = vadd.f32 %v15710_v2, %v2085_v35  ;;  %v15711_v29 = vld [vmem:[#allocation42_spill] sm:$0xff]  ;;  %v15715_v39 = vld [vmem:[#allocation25_spill] sm:$0xff] }
 0x203   : > { %3154 = vst [vmem:[#allocation2 + $0x51] sm:$0xff] %v3067_v55  ;;  %v3072_v58 = vmax.f32 %v13435_v48, 0.0  ;;  %v13444_v38 = vadd.f32 %v13361_v62, %v2999_v26  ;;  %v3002_v14 = vadd.f32 %v10940_v32, %v2696_v54  ;;  %v13448_v0 = vpack.c.bf16 %v3184_v5, %v3183_v41  ;;  %11061 = vmatprep.subr.bf16.mxu1 %v11962_v27  ;;  %v11963_v50 = vld [vmem:[%s15612_s3 + $0xa0] sm:$0xff]   ;;  %v2606_v11 = vpop.f32.mrf.mxu1  ;;  %v15713_v32 = vld [vmem:[#allocation14_spill] sm:$0xff]  ;;  %v11964_v35 = vld [vmem:[%s15612_s3 + $0x98] sm:$0xff]  }
 0x204   : > { %v2899_v23 = vpop.f32.mrf.mxu0  ;;  %v3280_v61 = vpack.c.bf16 %v3067_v55, %v3066_v24  ;;  %v15709_v24 = vld [vmem:[#allocation38_spill] sm:$0xff]  ;;  %v2697_v31 = vadd.f32 %v2606_v11, %v2391_v34  ;;  %v2397_v40 = vadd.f32 %v15711_v29, %v2090_v17  ;;  %v2395_v20 = vadd.f32 %v15712_v25, %v2088_v7  ;;  %v15714_v55 = vld [vmem:[#allocation45_spill] sm:$0xff]  ;;  %v15717_v17 = vld [vmem:[#allocation15_spill] sm:$0xff] }
 0x205   : > { %3159 = vst [vmem:[#allocation2 + $0x91] sm:$0xff] %v3072_v58  ;;  %v3070_v6 = vmax.f32 %v13444_v38, 0.0  ;;  %v3041_v3 = vadd.f32 %v13361_v62, %v3002_v14  ;;  %v3000_v45 = vadd.f32 %v2899_v23, %v2694_v49  ;;  %v2394_v12 = vadd.f32 %v15709_v24, %v2087_v63  ;;  %11026 = vmatmul.mubr.bf16.vlgmr.msra.gmra.mxu0 %v13448_v0  ;;  %v10896_v26 = vpop.f32.mrf.mxu1  ;;  %v15719_v5 = vld [vmem:[#allocation16_spill] sm:$0xff] }
 0x206   : > { %v10943_v9 = vpop.f32.mrf.mxu0  ;;  %10982 = vmatmul.mubr.bf16.gmra.mxu1 %v3280_v61  ;;  %11029 = vmatprep.mubr.bf16.mxu0 %v13450_v60  ;;  %v2091_v48 = vadd.f32 %v15714_v55, %v15713_v32  ;;  %v2089_v1 = vadd.f32 %v15716_v53, %v13426_v51  ;;  %v2094_v23 = vadd.f32 %v15718_v37, %v15717_v17  ;;  %v3189_v51 = vld [vmem:[#allocation2 + $0x60] sm:$0xff]  ;;  %v11970_v53 = vld [vmem:[%s15612_s3 + $0x88] sm:$0xff]   ;;  %v15729_v37 = vld [vmem:[#allocation55_spill] sm:$0xff] }
 0x207   : > { %3157 = vst [vmem:[#allocation2 + $0x79] sm:$0xff] %v3070_v6  ;;  %v3073_v8 = vmax.f32 %v3041_v3, 0.0  ;;  %v3039_v42 = vadd.f32 %v13361_v62, %v3000_v45  ;;  %v3005_v59 = vadd.f32 %v10943_v9, %v2699_v28  ;;  %10985 = vmatprep.mubr.bf16.mxu1 %v3281_v33  ;;  %11062 = vmatpush3.bf16.msra.mxu1 %v11962_v27  ;;  %v11968_v27 = vld [vmem:[%s15612_s3 + $0xe8] sm:$0xff]   ;;  %v15720_v33 = vld [vmem:[#allocation51_spill] sm:$0xff]  ;;  %v2609_v14 = vpop.f32.mrf.mxu1  ;;  %v11969_v11 = vld [vmem:[%s15612_s3 + $0xe0] sm:$0xff]  }
 0x208   : > { %v2912_v43 = vpop.f32.mrf.mxu0  ;;  %11106 = vmatpush3.bf16.msra.mxu0 %v15715_v39  ;;  %v2700_v63 = vadd.f32 %v10896_v26, %v2394_v12  ;;  %v3190_v18 = vld [vmem:[#allocation2 + $0x68] sm:$0xff]  ;;  %11063 = vmatprep.subr.bf16.mxu1 %v11963_v50  ;;  %v2092_v38 = vadd.f32 %v15720_v33, %v15719_v5  ;;  %v2698_v44 = vadd.f32 %v2609_v14, %v2392_v56  ;;  %v11967_v56 = vld [vmem:[%s15612_s3 + $0x90] sm:$0xff]   ;;  %v15730_v5 = vld [vmem:[#allocation20_spill] sm:$0xff] }
 0x209   : > { %3160 = vst [vmem:[#allocation2 + $0x99] sm:$0xff] %v3073_v8  ;;  %v3071_v52 = vmax.f32 %v3039_v42, 0.0  ;;  %v13473_v10 = vadd.f32 %v13361_v62, %v3005_v59  ;;  %v3003_v34 = vadd.f32 %v2912_v43, %v2697_v31  ;;  %11107 = vmatprep.subr.bf16.mxu0 %v11966_v57  ;;  %v3283_v46 = vpack.c.bf16 %v3073_v8, %v3072_v58  ;;  %v3187_v9 = vld [vmem:[#allocation2 + $0x48] sm:$0xff]  ;;  %v10899_v61 = vpop.f32.mrf.mxu1  ;;  %v15723_v8 = vld [vmem:[#allocation46_spill] sm:$0xff] }
 0x20a   : > { %v10944_v54 = vpop.f32.mrf.mxu0  ;;  %v3188_v41 = vld [vmem:[#allocation2 + $0x50] sm:$0xff]  ;;  %v13493_v28 = vpack.c.bf16 %v3190_v18, %v3189_v51  ;;  %v2703_v2 = vadd.f32 %v10899_v61, %v2397_v40  ;;  %v2398_v42 = vadd.f32 %v15723_v8, %v2091_v48  ;;  %v15731_v33 = vld [vmem:[#allocation57_spill] sm:$0xff] }
 0x20b   : > { %3158 = vst [vmem:[#allocation2 + $0x81] sm:$0xff] %v3071_v52  ;;  %v3076_v21 = vmax.f32 %v13473_v10, 0.0  ;;  %v13489_v30 = vadd.f32 %v13361_v62, %v3003_v34  ;;  %v3006_v7 = vadd.f32 %v10944_v54, %v2700_v63  ;;  %v13491_v45 = vpack.c.bf16 %v3188_v41, %v3187_v9  ;;  %11064 = vmatpush3.bf16.msra.mxu1 %v11963_v50  ;;  %v2622_v59 = vpop.f32.mrf.mxu1  ;;  %v15725_v26 = vld [vmem:[#allocation50_spill] sm:$0xff]  ;;  %v15726_v54 = vld [vmem:[#allocation52_spill] sm:$0xff] }
 0x20c   : > { %v2915_v49 = vpop.f32.mrf.mxu0  ;;  %v3282_v19 = vpack.c.bf16 %v3071_v52, %v3070_v6  ;;  %11108 = vmatpush3.bf16.msra.mxu0 %v11966_v57  ;;  %11065 = vmatprep.subr.bf16.mxu1 %v11964_v35  ;;  %v15721_v6 = vld [vmem:[#allocation18_spill] sm:$0xff]  ;;  %v2701_v32 = vadd.f32 %v2622_v59, %v2395_v20  ;;  %v2399_v48 = vadd.f32 %v15726_v54, %v2092_v38  ;;  %v15736_v54 = vld [vmem:[#allocation56_spill] sm:$0xff] }
 0x20d   : > { %3163 = vst [vmem:[#allocation2 + $0xc1] sm:$0xff] %v3076_v21  ;;  %v3074_v58 = vmax.f32 %v13489_v30, 0.0  ;;  %v3045_v24 = vadd.f32 %v13361_v62, %v3006_v7  ;;  %v3004_v12 = vadd.f32 %v2915_v49, %v2698_v44  ;;  %11109 = vmatprep.subr.bf16.mxu0 %v11968_v27  ;;  %v1787_v50 = vadd.f32 %v15721_v6, %v1481_v36  ;;  %v15722_v57 = vld [vmem:[#allocation22_spill] sm:$0xff]  ;;  %v15724_v36 = vld [vmem:[#allocation48_spill] sm:$0xff]  ;;  %v10900_v39 = vpop.f32.mrf.mxu1 }
 0x20e   : > { %v10947_v3 = vpop.f32.mrf.mxu0  ;;  %v1485_v43 = vadd.f32 %v15722_v57, %v13416_v22  ;;  %11030 = vmatmul.mubr.bf16.gmra.mxu0 %v13491_v45  ;;  %10986 = vmatmul.mubr.bf16.gmra.mxu1 %v3282_v19  ;;  %v2396_v55 = vadd.f32 %v15724_v36, %v2089_v1  ;;  %v2401_v22 = vadd.f32 %v15725_v26, %v2094_v23  ;;  %v11971_v1 = vld [vmem:[%s15612_s3 + $0xd8] sm:$0xff]   ;;  %v3193_v61 = vld [vmem:[#allocation2 + $0x90] sm:$0xff] }
 0x20f   : > { %3161 = vst [vmem:[#allocation2 + $0xa9] sm:$0xff] %v3074_v58  ;;  %v3077_v29 = vmax.f32 %v3045_v24, 0.0  ;;  %v3043_v40 = vadd.f32 %v13361_v62, %v3004_v12  ;;  %v3009_v25 = vadd.f32 %v10947_v3, %v2703_v2  ;;  %11033 = vmatprep.mubr.bf16.mxu0 %v13493_v28  ;;  %10989 = vmatprep.mubr.bf16.mxu1 %v3283_v46  ;;  %v2625_v14 = vpop.f32.mrf.mxu1  ;;  %v3191_v51 = vld [vmem:[#allocation2 + $0x78] sm:$0xff]  ;;  %v11972_v8 = vld [vmem:[%s15612_s3 + $0xd0] sm:$0xff]  }
 0x210   : > { %v2928_v31 = vpop.f32.mrf.mxu0  ;;  %11066 = vmatpush3.bf16.msra.mxu1 %v11964_v35  ;;  %11110 = vmatpush3.bf16.msra.mxu0 %v11968_v27  ;;  %v2704_v20 = vadd.f32 %v10900_v39, %v2398_v42  ;;  %v3194_v18 = vld [vmem:[#allocation2 + $0x98] sm:$0xff]  ;;  %v15728_v27 = vld [vmem:[#allocation53_spill] sm:$0xff]  ;;  %v2093_v23 = vadd.f32 %v15729_v37, %v1787_v50  ;;  %v2098_v38 = vadd.f32 %v15731_v33, %v15730_v5  ;;  %v11973_v42 = vld [vmem:[%s15612_s3 + $0x80] sm:$0xff]  }
 0x211   : > { %3164 = vst [vmem:[#allocation2 + $0xc9] sm:$0xff] %v3077_v29  ;;  %v3075_v10 = vmax.f32 %v3043_v40, 0.0  ;;  %v13514_v34 = vadd.f32 %v13361_v62, %v3009_v25  ;;  %v3007_v63 = vadd.f32 %v2928_v31, %v2701_v32  ;;  %11067 = vmatprep.subr.bf16.mxu1 %v11967_v56  ;;  %11111 = vmatprep.subr.bf16.mxu0 %v11969_v11  ;;  %v15727_v35 = vld [vmem:[#allocation19_spill] sm:$0xff]  ;;  %v10903_v3 = vpop.f32.mrf.mxu1  ;;  %v15734_v31 = vld [vmem:[#allocation21_spill] sm:$0xff]  ;;  %v15740_v37 = vld [vmem:[#allocation60_spill] sm:$0xff] }
 0x212   : > { %v10948_v52 = vpop.f32.mrf.mxu0  ;;  %v2095_v17 = vadd.f32 %v15728_v27, %v15727_v35  ;;  %v3192_v41 = vld [vmem:[#allocation2 + $0x80] sm:$0xff]  ;;  %v3285_v46 = vpack.c.bf16 %v3077_v29, %v3076_v21  ;;  %v2702_v9 = vadd.f32 %v2625_v14, %v2396_v55  ;;  %v13533_v12 = vpack.c.bf16 %v3194_v18, %v3193_v61  ;;  %v13563_v27 = vld [vmem:[%s15612_s3 + $0x138] sm:$0xff]   ;;  %v15741_v5 = vld [vmem:[#allocation62_spill] sm:$0xff] }
 0x213   : > { %3162 = vst [vmem:[#allocation2 + $0xb1] sm:$0xff] %v3075_v10  ;;  %v3080_v30 = vmax.f32 %v13514_v34, 0.0  ;;  %v13529_v7 = vadd.f32 %v13361_v62, %v3007_v63  ;;  %v3010_v44 = vadd.f32 %v10948_v52, %v2704_v20  ;;  %v13531_v24 = vpack.c.bf16 %v3192_v41, %v3191_v51  ;;  %v2638_v40 = vpop.f32.mrf.mxu1 }
 0x214   : > { %v2931_v49 = vpop.f32.mrf.mxu0  ;;  %v3284_v2 = vpack.c.bf16 %v3075_v10, %v3074_v58  ;;  %11068 = vmatpush3.bf16.msra.mxu1 %v11967_v56  ;;  %11112 = vmatpush3.bf16.msra.mxu0 %v11969_v11  ;;  %v2707_v57 = vadd.f32 %v10903_v3, %v2401_v22  ;;  %v15732_v58 = vld [vmem:[#allocation23_spill] sm:$0xff]  ;;  %v15733_v11 = vld [vmem:[#allocation54_spill] sm:$0xff]  ;;  %v2096_v29 = vadd.f32 %v13312_v15, %v15734_v31  ;;  %v3197_v61 = vld [vmem:[#allocation2 + $0xc0] sm:$0xff] }
 0x215   : > { %3167 = vst [vmem:[#allocation2 + $0xf1] sm:$0xff] %v3080_v30  ;;  %v3078_v21 = vmax.f32 %v13529_v7, 0.0  ;;  %v3049_v6 = vadd.f32 %v13361_v62, %v3010_v44  ;;  %v3008_v50 = vadd.f32 %v2931_v49, %v2702_v9  ;;  %11069 = vmatprep.subr.bf16.mxu1 %v11970_v53  ;;  %11113 = vmatprep.subr.bf16.mxu0 %v11971_v1  ;;  %v15737_v15 = vld [vmem:[#allocation58_spill] sm:$0xff]  ;;  %v10904_v10 = vpop.f32.mrf.mxu1 }
 0x216   : > { %v10951_v19 = vpop.f32.mrf.mxu0  ;;  %v1791_v56 = vadd.f32 %v15732_v58, %v1485_v43  ;;  %v2402_v59 = vadd.f32 %v15733_v11, %v2095_v17  ;;  %11034 = vmatmul.mubr.bf16.gmra.mxu0 %v13531_v24  ;;  %10990 = vmatmul.mubr.bf16.gmra.mxu1 %v3284_v2  ;;  %v2705_v26 = vadd.f32 %v2638_v40, %v2399_v48  ;;  %v15735_v43 = vld [vmem:[#allocation28_spill] sm:$0xff]  ;;  %v3195_v51 = vld [vmem:[#allocation2 + $0xa8] sm:$0xff]  ;;  %v15746_v40 = vld [vmem:[#allocation66_spill] sm:$0xff] }
 0x217   : > { %3165 = vst [vmem:[#allocation2 + $0xd9] sm:$0xff] %v3078_v21  ;;  %v3081_v32 = vmax.f32 %v3049_v6, 0.0  ;;  %v3047_v36 = vadd.f32 %v13361_v62, %v3008_v50  ;;  %v3013_v55 = vadd.f32 %v10951_v19, %v2707_v57  ;;  %11037 = vmatprep.mubr.bf16.mxu0 %v13533_v12  ;;  %10993 = vmatprep.mubr.bf16.mxu1 %v3285_v46  ;;  %v15739_v17 = vld [vmem:[#allocation24_spill] sm:$0xff] }
 0x218   : > { %v2944_v25 = vpop.f32.mrf.mxu0  ;;  %v1489_v22 = vadd.f32 %v15735_v43, %v13419_v16  ;;  %v2400_v39 = vadd.f32 %v15736_v54, %v2093_v23  ;;  %v2405_v52 = vadd.f32 %v15737_v15, %v2098_v38  ;;  %11070 = vmatpush3.bf16.msra.mxu1 %v11970_v53  ;;  %11114 = vmatpush3.bf16.msra.mxu0 %v11971_v1  ;;  %v3198_v35 = vld [vmem:[#allocation2 + $0xc8] sm:$0xff]  ;;  %v15738_v53 = vld [vmem:[#allocation59_spill] sm:$0xff]  ;;  %v2641_v38 = vpop.f32.mrf.mxu1  ;;  %v11975_v11 = vld [vmem:[%s15612_s3 + $0xc0] sm:$0xff]  }
 0x219   : > { %3168 = vst [vmem:[#allocation2 + $0xf9] sm:$0xff] %v3081_v32  ;;  %v3079_v63 = vmax.f32 %v3047_v36, 0.0  ;;  %v13555_v20 = vadd.f32 %v13361_v62, %v3013_v55  ;;  %v3011_v48 = vadd.f32 %v2944_v25, %v2705_v26  ;;  %v2708_v18 = vadd.f32 %v10904_v10, %v2402_v59  ;;  %11115 = vmatprep.subr.bf16.mxu0 %v11972_v8  ;;  %v11974_v16 = vld [vmem:[%s15612_s3 + $0xc8] sm:$0xff]  }
 0x21a   : > { %v10952_v34 = vpop.f32.mrf.mxu0  ;;  %11071 = vmatprep.subr.bf16.mxu1 %v11973_v42  ;;  %v2403_v1 = vadd.f32 %v15738_v53, %v2096_v29  ;;  %v2099_v23 = vadd.f32 %v15740_v37, %v15739_v17  ;;  %v2097_v33 = vadd.f32 %v15741_v5, %v1791_v56  ;;  %v3196_v49 = vld [vmem:[#allocation2 + $0xb0] sm:$0xff]  ;;  %v3287_v41 = vpack.c.bf16 %v3081_v32, %v3080_v30  ;;  %v10907_v3 = vpop.f32.mrf.mxu1  ;;  %v15742_v59 = vld [vmem:[#allocation61_spill] sm:$0xff]  ;;  %v15750_v37 = vld [vmem:[#allocation67_spill] sm:$0xff] }
 0x21b   : > { %3166 = vst [vmem:[#allocation2 + $0xe1] sm:$0xff] %v3079_v63  ;;  %v3084_v46 = vmax.f32 %v13555_v20, 0.0  ;;  %v13571_v7 = vadd.f32 %v13361_v62, %v3011_v48  ;;  %v3014_v44 = vadd.f32 %v10952_v34, %v2708_v18  ;;  %v2706_v9 = vadd.f32 %v2641_v38, %v2400_v39  ;;  %v15743_v29 = vld [vmem:[#allocation26_spill] sm:$0xff]  ;;  %v15747_v39 = vld [vmem:[#allocation29_spill] sm:$0xff] }
 0x21c   : > { %v2947_v14 = vpop.f32.mrf.mxu0  ;;  %v13573_v2 = vpack.c.bf16 %v3196_v49, %v3195_v51  ;;  %v13575_v6 = vpack.c.bf16 %v3198_v35, %v3197_v61  ;;  %v3286_v50 = vpack.c.bf16 %v3079_v63, %v3078_v21  ;;  %11116 = vmatpush3.bf16.msra.mxu0 %v11972_v8  ;;  %11072 = vmatpush3.bf16.msra.mxu1 %v11973_v42  ;;  %v15744_v21 = vld [vmem:[#allocation64_spill] sm:$0xff]  ;;  %v15745_v42 = vld [vmem:[#allocation27_spill] sm:$0xff]  ;;  %v2654_v32 = vpop.f32.mrf.mxu1  ;;  %v15751_v5 = vld [vmem:[#allocation30_spill] sm:$0xff] }
 0x21d   : > { %3171 = vst [vmem:[#allocation2 + $0x121] sm:$0xff] %v3084_v46  ;;  %v3082_v30 = vmax.f32 %v13571_v7, 0.0  ;;  %v3053_v57 = vadd.f32 %v13361_v62, %v3014_v44  ;;  %v3012_v58 = vadd.f32 %v2947_v14, %v2706_v9  ;;  %v2711_v56 = vadd.f32 %v10907_v3, %v2405_v52  ;;  %11117 = vmatprep.subr.bf16.mxu0 %v11974_v16  ;;  %v15748_v52 = vld [vmem:[#allocation63_spill] sm:$0xff]  ;;  %v3201_v61 = vld [vmem:[#allocation2 + $0xf0] sm:$0xff] }
 0x21e   : > { %v10955_v19 = vpop.f32.mrf.mxu0  ;;  %11153 = vmatprep.subr.bf16.mxu1 %v13563_v27  ;;  %v2406_v31 = vadd.f32 %v15742_v59, %v2099_v23  ;;  %v2102_v8 = vadd.f32 %v15744_v21, %v15743_v29  ;;  %v2100_v25 = vadd.f32 %v15746_v40, %v15745_v42  ;;  %11038 = vmatmul.mubr.bf16.gmra.mxu0 %v13573_v2  ;;  %v10908_v34 = vpop.f32.mrf.mxu1  ;;  %v3199_v51 = vld [vmem:[#allocation2 + $0xd8] sm:$0xff]  ;;  %v15752_v40 = vld [vmem:[#allocation68_spill] sm:$0xff] }
 0x21f   : > { %10994 = vmatmul.mubr.bf16.gmra.mxu1 %v3286_v50  ;;  %3169 = vst [vmem:[#allocation2 + $0x109] sm:$0xff] %v3082_v30  ;;  %v3085_v55 = vmax.f32 %v3053_v57, 0.0  ;;  %v3051_v26 = vadd.f32 %v13361_v62, %v3012_v58  ;;  %v3017_v43 = vadd.f32 %v10955_v19, %v2711_v56  ;;  %v2709_v54 = vadd.f32 %v2654_v32, %v2403_v1  ;;  %v13599_v1 = vld [vmem:[%s15612_s3 + $0x178] sm:$0xff]  }
 0x220   : > { %v2960_v36 = vpop.f32.mrf.mxu0  ;;  %11041 = vmatprep.mubr.bf16.mxu0 %v13575_v6  ;;  %10997 = vmatprep.mubr.bf16.mxu1 %v3287_v41  ;;  %v1795_v15 = vadd.f32 %v15747_v39, %v1489_v22  ;;  %v2404_v10 = vadd.f32 %v15748_v52, %v2097_v33  ;;  %v2712_v35 = vadd.f32 %v10908_v34, %v2406_v31  ;;  %v3202_v53 = vld [vmem:[#allocation2 + $0xf8] sm:$0xff]  ;;  %v15749_v22 = vld [vmem:[#allocation65_spill] sm:$0xff]  ;;  %v2657_v33 = vpop.f32.mrf.mxu1 }
 0x221   : > { %11118 = vmatpush3.bf16.msra.mxu0 %v11974_v16  ;;  %3172 = vst [vmem:[#allocation2 + $0x129] sm:$0xff] %v3085_v55  ;;  %v13593_v20 = vmax.f32 %v3051_v26, 0.0  ;;  %v3056_v48 = vadd.f32 %v13361_v62, %v3017_v43  ;;  %v3015_v18 = vadd.f32 %v2960_v36, %v2709_v54  ;;  %v2409_v17 = vadd.f32 %v15749_v22, %v2102_v8 }
 0x222   : > { %v10956_v63 = vpop.f32.mrf.mxu0  ;;  %11119 = vmatprep.subr.bf16.mxu0 %v11975_v11  ;;  %v2407_v23 = vadd.f32 %v15750_v37, %v2100_v25  ;;  %v2103_v16 = vadd.f32 %v13335_v47, %v15751_v5  ;;  %v3200_v14 = vld [vmem:[#allocation2 + $0xe0] sm:$0xff]  ;;  %v3289_v49 = vpack.c.bf16 %v3085_v55, %v3084_v46  ;;  %v2710_v9 = vadd.f32 %v2657_v33, %v2404_v10  ;;  %v10911_v19 = vpop.f32.mrf.mxu1 }
 0x223   : > { %3170 = vst [vmem:[#allocation2 + $0x111] sm:$0xff] %v13593_v20  ;;  %v3088_v41 = vmax.f32 %v3056_v48, 0.0  ;;  %v3054_v7 = vadd.f32 %v13361_v62, %v3015_v18  ;;  %v3018_v44 = vadd.f32 %v10956_v63, %v2712_v35  ;;  %v2101_v3 = vadd.f32 %v13340_v4, %v1795_v15 }
 0x224   : > { %v2963_v38 = vpop.f32.mrf.mxu0  ;;  %v13608_v57 = vpack.c.bf16 %v3200_v14, %v3199_v51  ;;  %v13610_v47 = vpack.c.bf16 %v3202_v53, %v3201_v61  ;;  %v3288_v58 = vpack.c.bf16 %v13593_v20, %v3082_v30  ;;  %v2715_v31 = vadd.f32 %v10911_v19, %v2409_v17  ;;  %v2670_v4 = vpop.f32.mrf.mxu1  ;;  %v3205_v22 = vld [vmem:[#allocation2 + $0x120] sm:$0xff] }
 0x225   : > { %11120 = vmatpush3.bf16.msra.mxu0 %v11975_v11  ;;  %3175 = vst [vmem:[#allocation2 + $0x151] sm:$0xff] %v3088_v41  ;;  %v3086_v46 = vmax.f32 %v3054_v7, 0.0  ;;  %v3057_v56 = vadd.f32 %v13361_v62, %v3018_v44  ;;  %v3016_v59 = vadd.f32 %v2963_v38, %v2710_v9  ;;  %v2410_v29 = vadd.f32 %v13337_v13, %v2103_v16  ;;  %v3728_v14 = vld [vmem:[#allocation2 + $0x2] sm:$0xff] }
 0x226   : > { %v10959_v50 = vpop.f32.mrf.mxu0  ;;  %11201 = vmatprep.subr.bf16.mxu0 %v13599_v1  ;;  %11042 = vmatmul.mubr.bf16.gmra.mxu0 %v13608_v57  ;;  %v2713_v42 = vadd.f32 %v2670_v4, %v2407_v23  ;;  %v2408_v25 = vadd.f32 %v15752_v40, %v2101_v3  ;;  %v10912_v32 = vpop.f32.mrf.mxu1  ;;  %v3203_v18 = vld [vmem:[#allocation2 + $0x108] sm:$0xff] }
 0x227   : > { %10998 = vmatmul.mubr.bf16.gmra.mxu1 %v3288_v58  ;;  %3173 = vst [vmem:[#allocation2 + $0x139] sm:$0xff] %v3086_v46  ;;  %v3089_v8 = vmax.f32 %v3057_v56, 0.0  ;;  %v3055_v30 = vadd.f32 %v13361_v62, %v3016_v59  ;;  %v3021_v11 = vadd.f32 %v10959_v50, %v2715_v31  ;;  %11045 = vmatprep.mubr.bf16.mxu0 %v13610_v47  ;;  %v3730_v50 = vld [vmem:[#allocation2 + $0x1a] sm:$0xff]  ;;  %v3731_v58 = vld [vmem:[#allocation2 + $0x22] sm:$0xff] }
 0x228   : > { %v2976_v21 = vpop.f32.mrf.mxu0  ;;  %11001 = vmatprep.mubr.bf16.mxu1 %v3289_v49  ;;  %v2716_v43 = vadd.f32 %v10912_v32, %v2410_v29  ;;  %v2673_v54 = vpop.f32.mrf.mxu1  ;;  %v3206_v15 = vld [vmem:[#allocation2 + $0x128] sm:$0xff]  ;;  %v3733_v31 = vld [vmem:[#allocation2 + $0x3a] sm:$0xff]  ;;  %v13650_v4 = vpack.c.bf16 %v3731_v58, %v3730_v50 }
 0x229   : > { %3176 = vst [vmem:[#allocation2 + $0x159] sm:$0xff] %v3089_v8  ;;  %v13620_v13 = vmax.f32 %v3055_v30, 0.0  ;;  %v3060_v55 = vadd.f32 %v13361_v62, %v3021_v11  ;;  %v3019_v26 = vadd.f32 %v2976_v21, %v2713_v42  ;;  %v3291_v52 = vpack.c.bf16 %v3089_v8, %v3088_v41  ;;  %v3729_v49 = vld [vmem:[#allocation2 + $0xa] sm:$0xff]  ;;  %v3735_v11 = vld [vmem:[#allocation2 + $0x52] sm:$0xff]  ;;  %v3736_v40 = vld [vmem:[#allocation2 + $0x62] sm:$0xff] }
 0x22a   : > { %v10960_v36 = vpop.f32.mrf.mxu0  ;;  %v3204_v39 = vld [vmem:[#allocation2 + $0x110] sm:$0xff]  ;;  %v2714_v48 = vadd.f32 %v2673_v54, %v2408_v25  ;;  %v13631_v16 = vpack.c.bf16 %v3206_v15, %v3205_v22  ;;  %v3760_v3 = vpack.c.bf16 %v3729_v49, %v3728_v14  ;;  %v11978_v42 = vld [vmem:[%s15612_s3 + $0x128] sm:$0xff]   ;;  %v3749_v49 = vld [vmem:[#allocation2 + $0xfa] sm:$0xff] }
 0x22b   : > { %3174 = vst [vmem:[#allocation2 + $0x141] sm:$0xff] %v13620_v13  ;;  %v3092_v10 = vmax.f32 %v3060_v55, 0.0  ;;  %v3058_v34 = vadd.f32 %v13361_v62, %v3019_v26  ;;  %v3022_v63 = vadd.f32 %v10960_v36, %v2716_v43  ;;  %v13625_v53 = vpack.c.bf16 %v3204_v39, %v3203_v18  ;;  %v11977_v8 = vld [vmem:[%s15612_s3 + $0x130] sm:$0xff]   ;;  %v11980_v55 = vld [vmem:[%s15612_s3 + $0x118] sm:$0xff]   ;;  %v3739_v43 = vld [vmem:[#allocation2 + $0x82] sm:$0xff] }
 0x22c   : > { %v2979_v35 = vpop.f32.mrf.mxu0  ;;  %v3290_v17 = vpack.c.bf16 %v13620_v13, %v3086_v46  ;;  %v3209_v19 = vld [vmem:[#allocation2 + $0x150] sm:$0xff]  ;;  %v3738_v26 = vld [vmem:[#allocation2 + $0x7a] sm:$0xff] }
 0x22d   : > { %3179 = vst [vmem:[#allocation2 + $0x181] sm:$0xff] %v3092_v10  ;;  %v3090_v37 = vmax.f32 %v3058_v34, 0.0  ;;  %v13629_v23 = vadd.f32 %v13361_v62, %v3022_v63  ;;  %v3020_v5 = vadd.f32 %v2979_v35, %v2714_v48  ;;  %v3732_v46 = vld [vmem:[#allocation2 + $0x32] sm:$0xff]  ;;  %v3734_v30 = vld [vmem:[#allocation2 + $0x4a] sm:$0xff]  ;;  %v3741_v39 = vld [vmem:[#allocation2 + $0x9a] sm:$0xff] }
 0x22e   : > { %11046 = vmatmul.mubr.bf16.gmra.mxu0 %v13625_v53  ;;  %v3207_v7 = vld [vmem:[#allocation2 + $0x138] sm:$0xff]  ;;  %v13652_v21 = vpack.c.bf16 %v3733_v31, %v3732_v46  ;;  %v3737_v25 = vld [vmem:[#allocation2 + $0x6a] sm:$0xff]  ;;  %v13665_v32 = vpack.c.bf16 %v3735_v11, %v3734_v30  ;;  %v3744_v48 = vld [vmem:[#allocation2 + $0xc2] sm:$0xff] }
 0x22f   : > { %11002 = vmatmul.mubr.bf16.gmra.mxu1 %v3290_v17  ;;  %3177 = vst [vmem:[#allocation2 + $0x169] sm:$0xff] %v3090_v37  ;;  %v3093_v33 = vmax.f32 %v13629_v23, 0.0  ;;  %v3059_v38 = vadd.f32 %v13361_v62, %v3020_v5  ;;  %11049 = vmatprep.mubr.bf16.mxu0 %v13631_v16  ;;  %v13667_v36 = vpack.c.bf16 %v3737_v25, %v3736_v40  ;;  %v3740_v54 = vld [vmem:[#allocation2 + $0x92] sm:$0xff]  ;;  %v11986_v10 = vld [vmem:[%s15612_s3 + $0x108] sm:$0xff]   ;;  %v11989_v17 = vld [vmem:[%s15612_s3 + $0x100] sm:$0xff]  }
 0x230   : > { %11005 = vmatprep.mubr.bf16.mxu1 %v3291_v52  ;;  %v3210_v9 = vld [vmem:[#allocation2 + $0x158] sm:$0xff]  ;;  %v13688_v15 = vpack.c.bf16 %v3741_v39, %v3740_v54  ;;  %v11985_v52 = vld [vmem:[%s15612_s3 + $0x160] sm:$0xff]   ;;  %v3742_v34 = vld [vmem:[#allocation2 + $0xaa] sm:$0xff] }
 0x231   : > { %3180 = vst [vmem:[#allocation2 + $0x189] sm:$0xff] %v3093_v33  ;;  %v3091_v41 = vmax.f32 %v3059_v38, 0.0  ;;  %v13643_v62 = vpack.c.bf16 %v3210_v9, %v3209_v19  ;;  %v3743_v63 = vld [vmem:[#allocation2 + $0xb2] sm:$0xff]  ;;  %v3745_v18 = vld [vmem:[#allocation2 + $0xca] sm:$0xff]  ;;  %v3746_v5 = vld [vmem:[#allocation2 + $0xda] sm:$0xff] }
 0x232   : > { %v3208_v44 = vld [vmem:[#allocation2 + $0x140] sm:$0xff]  ;;  %v13706_v35 = vpack.c.bf16 %v3743_v63, %v3742_v34  ;;  %v11988_v22 = vld [vmem:[%s15612_s3 + $0x150] sm:$0xff]   ;;  %v11994_v54 = vld [vmem:[%s15612_s3 + $0x1a8] sm:$0xff]  }
 0x233   : > { %3178 = vst [vmem:[#allocation2 + $0x171] sm:$0xff] %v3091_v41  ;;  %v13639_v51 = vpack.c.bf16 %v3208_v44, %v3207_v7  ;;  %v13641_v61 = vpack.c.bf16 %v3091_v41, %v3090_v37  ;;  %v11990_v37 = vld [vmem:[%s15612_s3 + $0x148] sm:$0xff]   ;;  %v3748_v14 = vld [vmem:[#allocation2 + $0xf2] sm:$0xff]  ;;  %v11991_v7 = vld [vmem:[%s15612_s3 + $0x140] sm:$0xff]  }
 0x234   : > { %v3747_v38 = vld [vmem:[#allocation2 + $0xe2] sm:$0xff]  ;;  %v3750_v44 = vld [vmem:[#allocation2 + $0x10a] sm:$0xff]  ;;  %v3751_v9 = vld [vmem:[#allocation2 + $0x112] sm:$0xff] }
 0x235   : > { %v13726_v41 = vpack.c.bf16 %v3747_v38, %v3746_v5  ;;  %v3752_v19 = vld [vmem:[#allocation2 + $0x122] sm:$0xff]  ;;  %v3753_v50 = vld [vmem:[#allocation2 + $0x12a] sm:$0xff]  ;;  %v13740_v58 = vpack.c.bf16 %v3751_v9, %v3750_v44  ;;  %v4343_v25 = vld [vmem:[#allocation2 + $0x39] sm:$0xff] }
 0x236   : > { %11050 = vmatmul.mubr.bf16.gmra.mxu0 %v13639_v51  ;;  %v3211_v56 = vld [vmem:[#allocation2 + $0x168] sm:$0xff]  ;;  %v11998_v63 = vld [vmem:[%s15612_s3 + $0x1f0] sm:$0xff]   ;;  %v12001_v38 = vld [vmem:[%s15612_s3 + $0x1e0] sm:$0xff]  }
 0x237   : > { %11006 = vmatmul.mubr.bf16.gmra.mxu1 %v13641_v61  ;;  %11053 = vmatprep.mubr.bf16.mxu0 %v13643_v62  ;;  %v3755_v46 = vld [vmem:[#allocation2 + $0x142] sm:$0xff]  ;;  %v11999_v5 = vld [vmem:[%s15612_s3 + $0x190] sm:$0xff]  }
 0x238   : > { %11073 = vmatprep.mubr.bf16.mxu1 %v3760_v3  ;;  %v11997_v3 = vld [vmem:[%s15612_s3 + $0x1f8] sm:$0xff]   ;;  %v4341_v30 = vld [vmem:[#allocation2 + $0x21] sm:$0xff]  ;;  %v12009_v23 = vld [vmem:[%s15612_s3 + $0x230] sm:$0xff]  }
 0x239   : > { %v4349_v39 = vld [vmem:[#allocation2 + $0x81] sm:$0xff] }
 0x23a   : > { %v3212_v59 = vld [vmem:[#allocation2 + $0x170] sm:$0xff] }
 0x23b   : > { %v13648_v29 = vpack.c.bf16 %v3212_v59, %v3211_v56  ;;  %v3756_v56 = vld [vmem:[#allocation2 + $0x152] sm:$0xff]  ;;  %v3757_v59 = vld [vmem:[#allocation2 + $0x15a] sm:$0xff] }
 0x23e   : > { %11054 = vmatmul.mubr.bf16.gmra.mxu0 %v13648_v29 }
 0x23f   : > { %11074 = vmatmul.mubr.bf16.vlgmr.msra.gmra.mxu1 %v13650_v4  ;;  %11121 = vmatprep.mubr.bf16.mxu0 %v13448_v0  ;;  %v11979_v0 = vld [vmem:[%s15612_s3 + $0x120] sm:$0xff]  }
 0x240   : > { %11077 = vmatprep.mubr.bf16.mxu1 %v13652_v21  ;;  %11154 = vmatpush3.bf16.msra.mxu1 %v13563_v27  ;;  %v11982_v27 = vld [vmem:[%s15612_s3 + $0x170] sm:$0xff]  }
 0x241   : > { %11155 = vmatprep.subr.bf16.mxu1 %v11977_v8 }
 0x244   : > { %11156 = vmatpush3.bf16.msra.mxu1 %v11977_v8  ;;  %v13750_v8 = vpack.c.bf16 %v3757_v59, %v3756_v56  ;;  %v4358_v56 = vld [vmem:[#allocation2 + $0xf1] sm:$0xff] }
 0x245   : > { %11157 = vmatprep.subr.bf16.mxu1 %v11978_v42 }
 0x246   : > { %11122 = vmatmul.mubr.bf16.vlgmr.msra.gmra.mxu0 %v13450_v60  ;;  %v11984_v60 = vld [vmem:[%s15612_s3 + $0x168] sm:$0xff]  }
 0x247   : > { %11078 = vmatmul.mubr.bf16.gmra.mxu1 %v13665_v32  ;;  %11125 = vmatprep.mubr.bf16.mxu0 %v13491_v45  ;;  %v13686_v45 = vpack.c.bf16 %v3739_v43, %v3738_v26  ;;  %v4344_v43 = vld [vmem:[#allocation2 + $0x49] sm:$0xff] }
 0x248   : > { %11081 = vmatprep.mubr.bf16.mxu1 %v13667_v36  ;;  %11158 = vmatpush3.bf16.msra.mxu1 %v11978_v42  ;;  %v4340_v42 = vld [vmem:[#allocation2 + $0x19] sm:$0xff] }
 0x249   : > { %11202 = vmatpush3.bf16.msra.mxu0 %v13599_v1  ;;  %11159 = vmatprep.subr.bf16.mxu1 %v11979_v0  ;;  %v11983_v1 = vld [vmem:[%s15612_s3 + $0x110] sm:$0xff]   ;;  %v4372_v40 = vpack.c.bf16 %v4341_v30, %v4340_v42  ;;  %v13849_v30 = vld [vmem:[#allocation2 + $0x139] sm:$0xff]  ;;  %v4362_v42 = vld [vmem:[#allocation2 + $0x121] sm:$0xff] }
 0x24a   : > { %11203 = vmatprep.subr.bf16.mxu0 %v11982_v27 }
 0x24c   : > { %11160 = vmatpush3.bf16.msra.mxu1 %v11979_v0  ;;  %v4345_v0 = vld [vmem:[#allocation2 + $0x51] sm:$0xff] }
 0x24d   : > { %11204 = vmatpush3.bf16.msra.mxu0 %v11982_v27  ;;  %11161 = vmatprep.subr.bf16.mxu1 %v11980_v55  ;;  %v4342_v27 = vld [vmem:[#allocation2 + $0x31] sm:$0xff] }
 0x24e   : > { %11205 = vmatprep.subr.bf16.mxu0 %v11984_v60  ;;  %11126 = vmatmul.mubr.bf16.gmra.mxu0 %v13493_v28  ;;  %v11987_v28 = vld [vmem:[%s15612_s3 + $0x158] sm:$0xff]   ;;  %v13763_v26 = vpack.c.bf16 %v4343_v25, %v4342_v27  ;;  %v4953_v25 = vld [vmem:[#allocation2 + $0x30] sm:$0xff]  ;;  %v4958_v27 = vld [vmem:[#allocation2 + $0x68] sm:$0xff] }
 0x24f   : > { %11082 = vmatmul.mubr.bf16.gmra.mxu1 %v13686_v45  ;;  %11129 = vmatprep.mubr.bf16.mxu0 %v13531_v24  ;;  %v13708_v24 = vpack.c.bf16 %v3745_v18, %v3744_v48  ;;  %v11996_v48 = vld [vmem:[%s15612_s3 + $0x198] sm:$0xff]   ;;  %v12000_v18 = vld [vmem:[%s15612_s3 + $0x1e8] sm:$0xff]  }
 0x250   : > { %11085 = vmatprep.mubr.bf16.mxu1 %v13688_v15  ;;  %11162 = vmatpush3.bf16.msra.mxu1 %v11980_v55 }
 0x251   : > { %11206 = vmatpush3.bf16.msra.mxu0 %v11984_v60  ;;  %11163 = vmatprep.subr.bf16.mxu1 %v11983_v1  ;;  %v13765_v60 = vpack.c.bf16 %v4345_v0, %v4344_v43 }
 0x252   : > { %11207 = vmatprep.subr.bf16.mxu0 %v11985_v52 }
 0x254   : > { %11164 = vmatpush3.bf16.msra.mxu1 %v11983_v1  ;;  %v4346_v1 = vld [vmem:[#allocation2 + $0x61] sm:$0xff] }
 0x255   : > { %11208 = vmatpush3.bf16.msra.mxu0 %v11985_v52  ;;  %11165 = vmatprep.subr.bf16.mxu1 %v11986_v10 }
 0x256   : > { %11209 = vmatprep.subr.bf16.mxu0 %v11987_v28  ;;  %11130 = vmatmul.mubr.bf16.gmra.mxu0 %v13533_v12  ;;  %v11992_v12 = vld [vmem:[%s15612_s3 + $0x1b8] sm:$0xff]  }
 0x257   : > { %11086 = vmatmul.mubr.bf16.gmra.mxu1 %v13706_v35  ;;  %11133 = vmatprep.mubr.bf16.mxu0 %v13573_v2  ;;  %v13728_v2 = vpack.c.bf16 %v3749_v49, %v3748_v14  ;;  %v12002_v14 = vld [vmem:[%s15612_s3 + $0x188] sm:$0xff]   ;;  %v12003_v49 = vld [vmem:[%s15612_s3 + $0x1d8] sm:$0xff]  }
 0x258   : > { %11089 = vmatprep.mubr.bf16.mxu1 %v13708_v24  ;;  %11166 = vmatpush3.bf16.msra.mxu1 %v11986_v10  ;;  %v4348_v10 = vld [vmem:[#allocation2 + $0x79] sm:$0xff] }
 0x259   : > { %11210 = vmatpush3.bf16.msra.mxu0 %v11987_v28  ;;  %11167 = vmatprep.subr.bf16.mxu1 %v11989_v17  ;;  %v13779_v34 = vpack.c.bf16 %v4349_v39, %v4348_v10  ;;  %v4351_v28 = vld [vmem:[#allocation2 + $0x99] sm:$0xff]  ;;  %v12010_v39 = vld [vmem:[%s15612_s3 + $0x228] sm:$0xff]  }
 0x25a   : > { %11211 = vmatprep.subr.bf16.mxu0 %v11988_v22  ;;  %v4962_v10 = vld [vmem:[#allocation2 + $0x98] sm:$0xff] }
 0x25c   : > { %11168 = vmatpush3.bf16.msra.mxu1 %v11989_v17 }
 0x25d   : > { %11212 = vmatpush3.bf16.msra.mxu0 %v11988_v22  ;;  %11249 = vmatprep.subr.bf16.mxu1 %v11992_v12  ;;  %v4350_v22 = vld [vmem:[#allocation2 + $0x91] sm:$0xff] }
 0x25e   : > { %11213 = vmatprep.subr.bf16.mxu0 %v11990_v37  ;;  %11134 = vmatmul.mubr.bf16.gmra.mxu0 %v13575_v6  ;;  %v13742_v6 = vpack.c.bf16 %v3753_v50, %v3752_v19  ;;  %v13797_v17 = vpack.c.bf16 %v4351_v28, %v4350_v22  ;;  %v12005_v19 = vld [vmem:[%s15612_s3 + $0x180] sm:$0xff]  }
 0x25f   : > { %11090 = vmatmul.mubr.bf16.gmra.mxu1 %v13726_v41  ;;  %11137 = vmatprep.mubr.bf16.mxu0 %v13608_v57  ;;  %v3754_v57 = vld [vmem:[#allocation2 + $0x13a] sm:$0xff] }
 0x260   : > { %11093 = vmatprep.mubr.bf16.mxu1 %v13728_v2  ;;  %v13748_v31 = vpack.c.bf16 %v3755_v46, %v3754_v57  ;;  %v4359_v50 = vld [vmem:[#allocation2 + $0xf9] sm:$0xff]  ;;  %v12006_v57 = vld [vmem:[%s15612_s3 + $0x1c8] sm:$0xff]  }
 0x261   : > { %11214 = vmatpush3.bf16.msra.mxu0 %v11990_v37  ;;  %v12008_v46 = vld [vmem:[%s15612_s3 + $0x238] sm:$0xff]   ;;  %v13839_v59 = vpack.c.bf16 %v4359_v50, %v4358_v56 }
 0x262   : > { %11215 = vmatprep.subr.bf16.mxu0 %v11991_v7 }
 0x265   : > { %11216 = vmatpush3.bf16.msra.mxu0 %v11991_v7  ;;  %v4354_v7 = vld [vmem:[#allocation2 + $0xc1] sm:$0xff] }
 0x266   : > { %11297 = vmatprep.subr.bf16.mxu0 %v11997_v3  ;;  %11138 = vmatmul.mubr.bf16.gmra.mxu0 %v13610_v47  ;;  %v3758_v47 = vld [vmem:[#allocation2 + $0x16a] sm:$0xff] }
 0x267   : > { %11094 = vmatmul.mubr.bf16.gmra.mxu1 %v13740_v58  ;;  %11141 = vmatprep.mubr.bf16.mxu0 %v13625_v53  ;;  %v3759_v53 = vld [vmem:[#allocation2 + $0x172] sm:$0xff] }
 0x268   : > { %11097 = vmatprep.mubr.bf16.mxu1 %v13742_v6  ;;  %v13756_v11 = vpack.c.bf16 %v3759_v53, %v3758_v47  ;;  %v12007_v47 = vld [vmem:[%s15612_s3 + $0x1c0] sm:$0xff]   ;;  %v4363_v53 = vld [vmem:[#allocation2 + $0x129] sm:$0xff] }
 0x26e   : > { %11142 = vmatmul.mubr.bf16.gmra.mxu0 %v13631_v16  ;;  %v4065_v16 = vld [vmem:[#allocation2 + $0x188] sm:$0xff] }
 0x26f   : > { %11098 = vmatmul.mubr.bf16.gmra.mxu1 %v13748_v31  ;;  %11145 = vmatprep.mubr.bf16.mxu0 %v13639_v51  ;;  %v4064_v51 = vld [vmem:[#allocation2 + $0x180] sm:$0xff] }
 0x270   : > { %11101 = vmatprep.mubr.bf16.mxu1 %v13750_v8  ;;  %v13761_v55 = vpack.c.bf16 %v4065_v16, %v4064_v51  ;;  %v4677_v51 = vld [vmem:[#allocation2 + $0x18a] sm:$0xff] }
 0x276   : > { %11146 = vmatmul.mubr.bf16.gmra.mxu0 %v13643_v62  ;;  %v11993_v62 = vld [vmem:[%s15612_s3 + $0x1b0] sm:$0xff]  }
 0x277   : > { %11102 = vmatmul.mubr.bf16.gmra.mxu1 %v13756_v11  ;;  %11149 = vmatprep.mubr.bf16.mxu0 %v13648_v29  ;;  %v4347_v29 = vld [vmem:[#allocation2 + $0x69] sm:$0xff] }
 0x278   : > { %11169 = vmatprep.mubr.bf16.mxu1 %v4372_v40  ;;  %v13777_v52 = vpack.c.bf16 %v4347_v29, %v4346_v1  ;;  %v4384_v40 = vpack.c.bf16 %v13620_v13, %v13849_v30  ;;  %v13864_v13 = vld [vmem:[#allocation2 + $0x181] sm:$0xff] }
 0x279   : > { %v4957_v29 = vld [vmem:[#allocation2 + $0x60] sm:$0xff] }
 0x27e   : > { %11150 = vmatmul.mubr.bf16.gmra.mxu0 %v13761_v55 }
 0x27f   : > { %11170 = vmatmul.mubr.bf16.vlgmr.msra.gmra.mxu1 %v13763_v26  ;;  %11217 = vmatprep.mubr.bf16.mxu0 %v13650_v4  ;;  %v11995_v4 = vld [vmem:[%s15612_s3 + $0x1a0] sm:$0xff]  }
 0x280   : > { %11173 = vmatprep.mubr.bf16.mxu1 %v13765_v60  ;;  %11250 = vmatpush3.bf16.msra.mxu1 %v11992_v12  ;;  %v4355_v12 = vld [vmem:[#allocation2 + $0xc9] sm:$0xff] }
 0x281   : > { %11251 = vmatprep.subr.bf16.mxu1 %v11993_v62  ;;  %v13817_v44 = vpack.c.bf16 %v4355_v12, %v4354_v7  ;;  %v4966_v7 = vld [vmem:[#allocation2 + $0xc8] sm:$0xff] }
 0x284   : > { %11252 = vmatpush3.bf16.msra.mxu1 %v11993_v62 }
 0x285   : > { %11253 = vmatprep.subr.bf16.mxu1 %v11994_v54 }
 0x286   : > { %11218 = vmatmul.mubr.bf16.vlgmr.msra.gmra.mxu0 %v13652_v21  ;;  %v4353_v21 = vld [vmem:[#allocation2 + $0xb1] sm:$0xff] }
 0x287   : > { %11174 = vmatmul.mubr.bf16.gmra.mxu1 %v13777_v52  ;;  %11221 = vmatprep.mubr.bf16.mxu0 %v13665_v32  ;;  %v4352_v32 = vld [vmem:[#allocation2 + $0xa9] sm:$0xff] }
 0x288   : > { %11177 = vmatprep.mubr.bf16.mxu1 %v13779_v34  ;;  %11254 = vmatpush3.bf16.msra.mxu1 %v11994_v54  ;;  %v13799_v37 = vpack.c.bf16 %v4353_v21, %v4352_v32  ;;  %v4987_v54 = vpack.c.bf16 %v4958_v27, %v4957_v29 }
 0x289   : > { %11298 = vmatpush3.bf16.msra.mxu0 %v11997_v3  ;;  %11255 = vmatprep.subr.bf16.mxu1 %v11995_v4  ;;  %v12004_v3 = vld [vmem:[%s15612_s3 + $0x1d0] sm:$0xff]  }
 0x28a   : > { %11299 = vmatprep.subr.bf16.mxu0 %v11998_v63 }
 0x28c   : > { %11256 = vmatpush3.bf16.msra.mxu1 %v11995_v4  ;;  %v4959_v4 = vld [vmem:[#allocation2 + $0x78] sm:$0xff] }
 0x28d   : > { %11300 = vmatpush3.bf16.msra.mxu0 %v11998_v63  ;;  %11257 = vmatprep.subr.bf16.mxu1 %v11996_v48 }
 0x28e   : > { %11301 = vmatprep.subr.bf16.mxu0 %v12000_v18  ;;  %11222 = vmatmul.mubr.bf16.gmra.mxu0 %v13667_v36  ;;  %v4357_v36 = vld [vmem:[#allocation2 + $0xe1] sm:$0xff] }
 0x28f   : > { %11178 = vmatmul.mubr.bf16.gmra.mxu1 %v13797_v17  ;;  %11225 = vmatprep.mubr.bf16.mxu0 %v13686_v45  ;;  %v4356_v45 = vld [vmem:[#allocation2 + $0xd9] sm:$0xff] }
 0x290   : > { %11181 = vmatprep.mubr.bf16.mxu1 %v13799_v37  ;;  %11258 = vmatpush3.bf16.msra.mxu1 %v11996_v48  ;;  %v13819_v9 = vpack.c.bf16 %v4357_v36, %v4356_v45  ;;  %v4961_v48 = vld [vmem:[#allocation2 + $0x90] sm:$0xff] }
 0x291   : > { %11302 = vmatpush3.bf16.msra.mxu0 %v12000_v18  ;;  %11259 = vmatprep.subr.bf16.mxu1 %v11999_v5  ;;  %v4989_v18 = vpack.c.bf16 %v4962_v10, %v4961_v48  ;;  %v4972_v10 = vld [vmem:[#allocation2 + $0x110] sm:$0xff] }
 0x292   : > { %11303 = vmatprep.subr.bf16.mxu0 %v12001_v38 }
 0x294   : > { %11260 = vmatpush3.bf16.msra.mxu1 %v11999_v5 }
 0x295   : > { %11304 = vmatpush3.bf16.msra.mxu0 %v12001_v38  ;;  %11261 = vmatprep.subr.bf16.mxu1 %v12002_v14 }
 0x296   : > { %11305 = vmatprep.subr.bf16.mxu0 %v12003_v49  ;;  %11226 = vmatmul.mubr.bf16.gmra.mxu0 %v13688_v15  ;;  %v13837_v15 = vld [vmem:[#allocation2 + $0x109] sm:$0xff] }
 0x297   : > { %11182 = vmatmul.mubr.bf16.gmra.mxu1 %v13817_v44  ;;  %11229 = vmatprep.mubr.bf16.mxu0 %v13706_v35  ;;  %v4382_v35 = vpack.c.bf16 %v13593_v20, %v13837_v15  ;;  %v13851_v20 = vpack.c.bf16 %v4363_v53, %v4362_v42 }
 0x298   : > { %11185 = vmatprep.mubr.bf16.mxu1 %v13819_v9  ;;  %11262 = vmatpush3.bf16.msra.mxu1 %v12002_v14  ;;  %v4964_v14 = vld [vmem:[#allocation2 + $0xb0] sm:$0xff] }
 0x299   : > { %11306 = vmatpush3.bf16.msra.mxu0 %v12003_v49  ;;  %11263 = vmatprep.subr.bf16.mxu1 %v12005_v19  ;;  %v12012_v49 = vld [vmem:[%s15612_s3 + $0x218] sm:$0xff]  }
 0x29a   : > { %11307 = vmatprep.subr.bf16.mxu0 %v12004_v3 }
 0x29c   : > { %11264 = vmatpush3.bf16.msra.mxu1 %v12005_v19 }
 0x29d   : > { %11308 = vmatpush3.bf16.msra.mxu0 %v12004_v3  ;;  %11345 = vmatprep.subr.bf16.mxu1 %v12008_v46  ;;  %v4963_v3 = vld [vmem:[#allocation2 + $0xa8] sm:$0xff] }
 0x29e   : > { %11309 = vmatprep.subr.bf16.mxu0 %v12006_v57  ;;  %11230 = vmatmul.mubr.bf16.gmra.mxu0 %v13708_v24  ;;  %v4367_v24 = vld [vmem:[#allocation2 + $0x159] sm:$0xff]  ;;  %v4990_v50 = vpack.c.bf16 %v4964_v14, %v4963_v3  ;;  %v5278_v3 = vld [vmem:[#allocation2 + $0x111] sm:$0xff] }
 0x29f   : > { %11186 = vmatmul.mubr.bf16.gmra.mxu1 %v13839_v59  ;;  %11233 = vmatprep.mubr.bf16.mxu0 %v13726_v41  ;;  %v4366_v41 = vld [vmem:[#allocation2 + $0x151] sm:$0xff] }
 0x2a0   : > { %11189 = vmatprep.mubr.bf16.mxu1 %v4382_v35  ;;  %v13858_v16 = vpack.c.bf16 %v4367_v24, %v4366_v41  ;;  %v12013_v35 = vld [vmem:[%s15612_s3 + $0x210] sm:$0xff]  }
 0x2a1   : > { %11310 = vmatpush3.bf16.msra.mxu0 %v12006_v57  ;;  %v4965_v57 = vld [vmem:[#allocation2 + $0xc0] sm:$0xff] }
 0x2a2   : > { %11311 = vmatprep.subr.bf16.mxu0 %v12007_v47  ;;  %v4991_v56 = vpack.c.bf16 %v4966_v7, %v4965_v57  ;;  %v4978_v57 = vld [vmem:[#allocation2 + $0x158] sm:$0xff] }
 0x2a5   : > { %11312 = vmatpush3.bf16.msra.mxu0 %v12007_v47 }
 0x2a6   : > { %11234 = vmatmul.mubr.bf16.gmra.mxu0 %v13728_v2  ;;  %v4954_v2 = vld [vmem:[#allocation2 + $0x38] sm:$0xff] }
 0x2a7   : > { %11190 = vmatmul.mubr.bf16.gmra.mxu1 %v13851_v20  ;;  %11237 = vmatprep.mubr.bf16.mxu0 %v13740_v58  ;;  %v4387_v58 = vpack.c.bf16 %v3093_v33, %v13864_v13  ;;  %v4985_v0 = vpack.c.bf16 %v4954_v2, %v4953_v25  ;;  %v4968_v2 = vld [vmem:[#allocation2 + $0xe0] sm:$0xff] }
 0x2a8   : > { %11193 = vmatprep.mubr.bf16.mxu1 %v4384_v40 }
 0x2ae   : > { %11238 = vmatmul.mubr.bf16.gmra.mxu0 %v13742_v6  ;;  %v4676_v6 = vld [vmem:[#allocation2 + $0x182] sm:$0xff] }
 0x2af   : > { %11194 = vmatmul.mubr.bf16.gmra.mxu1 %v13858_v16  ;;  %11241 = vmatprep.mubr.bf16.mxu0 %v13748_v31  ;;  %v4956_v31 = vld [vmem:[#allocation2 + $0x50] sm:$0xff]  ;;  %v13871_v43 = vpack.c.bf16 %v4677_v51, %v4676_v6  ;;  %v4967_v51 = vld [vmem:[#allocation2 + $0xd8] sm:$0xff] }
 0x2b0   : > { %11197 = vmatprep.mubr.bf16.mxu1 %v13641_v61  ;;  %v4955_v61 = vld [vmem:[#allocation2 + $0x48] sm:$0xff]  ;;  %v4992_v27 = vpack.c.bf16 %v4968_v2, %v4967_v51 }
 0x2b1   : > { %v4986_v62 = vpack.c.bf16 %v4956_v31, %v4955_v61  ;;  %v4969_v61 = vld [vmem:[#allocation2 + $0xf0] sm:$0xff] }
 0x2b6   : > { %11242 = vmatmul.mubr.bf16.gmra.mxu0 %v13750_v8 }
 0x2b7   : > { %11198 = vmatmul.mubr.bf16.gmra.mxu1 %v4387_v58  ;;  %11245 = vmatprep.mubr.bf16.mxu0 %v13756_v11  ;;  %v4960_v11 = vld [vmem:[#allocation2 + $0x80] sm:$0xff]  ;;  %v12014_v58 = vld [vmem:[%s15612_s3 + $0x208] sm:$0xff]  }
 0x2b8   : > { %11265 = vmatprep.mubr.bf16.mxu1 %v4985_v0  ;;  %v4988_v28 = vpack.c.bf16 %v4960_v11, %v4959_v4  ;;  %v4970_v0 = vld [vmem:[#allocation2 + $0xf8] sm:$0xff] }
 0x2b9   : > { %v4993_v29 = vpack.c.bf16 %v4970_v0, %v4969_v61 }
 0x2bd   : > { %v10979_v33 = vpop.f32.mrf.mxu1 }
 0x2be   : > { %11246 = vmatmul.mubr.bf16.gmra.mxu0 %v13871_v43 }
 0x2bf   : > { %11266 = vmatmul.mubr.bf16.vlgmr.msra.gmra.mxu1 %v4986_v62  ;;  %11313 = vmatprep.mubr.bf16.mxu0 %v13763_v26  ;;  %v3392_v8 = vpop.f32.mrf.mxu1  ;;  %v12011_v26 = vld [vmem:[%s15612_s3 + $0x220] sm:$0xff]  }
 0x2c0   : > { %11269 = vmatprep.mubr.bf16.mxu1 %v4987_v54  ;;  %11346 = vmatpush3.bf16.msra.mxu1 %v12008_v46  ;;  %v12015_v54 = vld [vmem:[%s15612_s3 + $0x200] sm:$0xff]  }
 0x2c1   : > { %11347 = vmatprep.subr.bf16.mxu1 %v12009_v23  ;;  %v10980_v1 = vpop.f32.mrf.mxu1 }
 0x2c3   : > { %v3395_v63 = vpop.f32.mrf.mxu1 }
 0x2c4   : > { %11348 = vmatpush3.bf16.msra.mxu1 %v12009_v23 }
 0x2c5   : > { %11349 = vmatprep.subr.bf16.mxu1 %v12010_v39  ;;  %v11027_v21 = vpop.f32.mrf.mxu0 }
 0x2c6   : > { %11314 = vmatmul.mubr.bf16.vlgmr.msra.gmra.mxu0 %v13765_v60  ;;  %v10983_v22 = vpop.f32.mrf.mxu1  ;;  %v13885_v32 = vadd.f32 %v11027_v21, %v10979_v33 }
 0x2c7   : > { %11270 = vmatmul.mubr.bf16.gmra.mxu1 %v4988_v28  ;;  %11317 = vmatprep.mubr.bf16.mxu0 %v13777_v52  ;;  %v3601_v5 = vpop.f32.mrf.mxu0  ;;  %v4974_v28 = vld [vmem:[#allocation2 + $0x128] sm:$0xff] }
 0x2c8   : > { %11273 = vmatprep.mubr.bf16.mxu1 %v4989_v18  ;;  %v3408_v38 = vpop.f32.mrf.mxu1  ;;  %11350 = vmatpush3.bf16.msra.mxu1 %v12010_v39  ;;  %v13888_v12 = vadd.f32 %v3601_v5, %v3392_v8 }
 0x2c9   : > { %11351 = vmatprep.subr.bf16.mxu1 %v12011_v26  ;;  %v11028_v36 = vpop.f32.mrf.mxu0 }
 0x2ca   : > { %v10984_v60 = vpop.f32.mrf.mxu1  ;;  %v13893_v45 = vadd.f32 %v11028_v36, %v10980_v1 }
 0x2cb   : > { %v3604_v19 = vpop.f32.mrf.mxu0 }
 0x2cc   : > { %v3411_v52 = vpop.f32.mrf.mxu1  ;;  %11352 = vmatpush3.bf16.msra.mxu1 %v12011_v26  ;;  %v13895_v46 = vadd.f32 %v3604_v19, %v3395_v63  ;;  %v4976_v19 = vld [vmem:[#allocation2 + $0x140] sm:$0xff] }
 0x2cd   : > { %11353 = vmatprep.subr.bf16.mxu1 %v12012_v49 }
 0x2ce   : > { %v11031_v47 = vpop.f32.mrf.mxu0  ;;  %11318 = vmatmul.mubr.bf16.gmra.mxu0 %v13779_v34  ;;  %v10987_v53 = vpop.f32.mrf.mxu1 }
 0x2cf   : > { %11274 = vmatmul.mubr.bf16.gmra.mxu1 %v4990_v50  ;;  %v13901_v42 = vadd.f32 %v11031_v47, %v10983_v22  ;;  %11321 = vmatprep.mubr.bf16.mxu0 %v13797_v17  ;;  %v4973_v22 = vld [vmem:[#allocation2 + $0x120] sm:$0xff]  ;;  %v5300_v47 = vpack.c.bf16 %v5278_v3, %v13837_v15 }
 0x2d0   : > { %11277 = vmatprep.mubr.bf16.mxu1 %v4991_v56  ;;  %v3617_v40 = vpop.f32.mrf.mxu0  ;;  %v3424_v24 = vpop.f32.mrf.mxu1  ;;  %11354 = vmatpush3.bf16.msra.mxu1 %v12012_v49  ;;  %v4995_v5 = vpack.c.bf16 %v4974_v28, %v4973_v22  ;;  %v5282_v15 = vld [vmem:[#allocation2 + $0x141] sm:$0xff] }
 0x2d1   : > { %v13904_v41 = vadd.f32 %v3617_v40, %v3408_v38  ;;  %11355 = vmatprep.subr.bf16.mxu1 %v12013_v35  ;;  %v12096_v22 = vld [vmem:[#allocation2] sm:$0xff] }
 0x2d2   : > { %v11032_v25 = vpop.f32.mrf.mxu0  ;;  %v10988_v34 = vpop.f32.mrf.mxu1 }
 0x2d3   : > { %v13909_v6 = vadd.f32 %v11032_v25, %v10984_v60 }
 0x2d4   : > { %v3620_v31 = vpop.f32.mrf.mxu0  ;;  %v3427_v17 = vpop.f32.mrf.mxu1  ;;  %11356 = vmatpush3.bf16.msra.mxu1 %v12013_v35  ;;  %v4975_v35 = vld [vmem:[#allocation2 + $0x138] sm:$0xff] }
 0x2d5   : > { %v13911_v62 = vadd.f32 %v3620_v31, %v3411_v52  ;;  %11357 = vmatprep.subr.bf16.mxu1 %v12014_v58  ;;  %v4996_v40 = vpack.c.bf16 %v4976_v19, %v4975_v35 }
 0x2d6   : > { %v11035_v23 = vpop.f32.mrf.mxu0  ;;  %11322 = vmatmul.mubr.bf16.gmra.mxu0 %v13799_v37  ;;  %v10991_v33 = vpop.f32.mrf.mxu1  ;;  %v4971_v37 = vld [vmem:[#allocation2 + $0x108] sm:$0xff] }
 0x2d7   : > { %11278 = vmatmul.mubr.bf16.gmra.mxu1 %v4992_v27  ;;  %v13917_v8 = vadd.f32 %v11035_v23, %v10987_v53  ;;  %11325 = vmatprep.mubr.bf16.mxu0 %v13817_v44  ;;  %v4994_v21 = vpack.c.bf16 %v4972_v10, %v4971_v37 }
 0x2d8   : > { %11281 = vmatprep.mubr.bf16.mxu1 %v4993_v29  ;;  %v3633_v11 = vpop.f32.mrf.mxu0  ;;  %v3440_v39 = vpop.f32.mrf.mxu1  ;;  %11358 = vmatpush3.bf16.msra.mxu1 %v12014_v58 }
 0x2d9   : > { %v13920_v1 = vadd.f32 %v3633_v11, %v3424_v24  ;;  %11359 = vmatprep.subr.bf16.mxu1 %v12015_v54 }
 0x2da   : > { %v11036_v4 = vpop.f32.mrf.mxu0  ;;  %v10992_v63 = vpop.f32.mrf.mxu1 }
 0x2db   : > { %v13922_v48 = vadd.f32 %v11036_v4, %v10988_v34 }
 0x2dc   : > { %v3636_v18 = vpop.f32.mrf.mxu0  ;;  %v3443_v26 = vpop.f32.mrf.mxu1  ;;  %11360 = vmatpush3.bf16.msra.mxu1 %v12015_v54  ;;  %v4979_v54 = vld [vmem:[#allocation2 + $0x168] sm:$0xff] }
 0x2dd   : > { %v13924_v44 = vadd.f32 %v3636_v18, %v3427_v17  ;;  %v4980_v17 = vld [vmem:[#allocation2 + $0x170] sm:$0xff] }
 0x2de   : > { %v11039_v38 = vpop.f32.mrf.mxu0  ;;  %11326 = vmatmul.mubr.bf16.gmra.mxu0 %v13819_v9  ;;  %v5286_v18 = vld [vmem:[#allocation2 + $0x171] sm:$0xff] }
 0x2df   : > { %v10995_v14 = vpop.f32.mrf.mxu1  ;;  %11282 = vmatmul.mubr.bf16.gmra.mxu1 %v4994_v21  ;;  %v13927_v49 = vadd.f32 %v11039_v38, %v10991_v33  ;;  %11329 = vmatprep.mubr.bf16.mxu0 %v13839_v59  ;;  %v4977_v59 = vld [vmem:[#allocation2 + $0x150] sm:$0xff]  ;;  %v5302_v33 = vpack.c.bf16 %v5282_v15, %v13849_v30  ;;  %v5569_v15 = vld [vmem:[#allocation2 + $0x62] sm:$0xff] }
 0x2e0   : > { %11285 = vmatprep.mubr.bf16.mxu1 %v4995_v5  ;;  %v3649_v36 = vpop.f32.mrf.mxu0  ;;  %v4997_v2 = vpack.c.bf16 %v4978_v57, %v4977_v59  ;;  %v5288_v30 = vld [vmem:[#allocation2 + $0x189] sm:$0xff]  ;;  %v13957_v5 = vpack.c.bf16 %v12096_v22, %v12096_v22  ;;  %v5565_v38 = vld [vmem:[#allocation2 + $0x32] sm:$0xff]  ;;  %v5571_v22 = vld [vmem:[#allocation2 + $0x7a] sm:$0xff] }
 0x2e1   : > { %v3456_v60 = vpop.f32.mrf.mxu1  ;;  %v13930_v7 = vadd.f32 %v3649_v36, %v3440_v39  ;;  %v4998_v39 = vpack.c.bf16 %v4980_v17, %v4979_v54  ;;  %v5305_v19 = vpack.c.bf16 %v5288_v30, %v13864_v13  ;;  %v5570_v17 = vld [vmem:[#allocation2 + $0x6a] sm:$0xff] }
 0x2e2   : > { %v11040_v52 = vpop.f32.mrf.mxu0 }
 0x2e3   : > { %v10996_v50 = vpop.f32.mrf.mxu1  ;;  %v13932_v56 = vadd.f32 %v11040_v52, %v10992_v63 }
 0x2e4   : > { %v3652_v9 = vpop.f32.mrf.mxu0 }
 0x2e5   : > { %v13935_v53 = vpop.f32.mrf.mxu1  ;;  %v13937_v24 = vadd.f32 %v3652_v9, %v3443_v26  ;;  %v5289_v9 = vld [vmem:[#allocation2 + $0x199] sm:$0xff] }
 0x2e6   : > { %v11043_v58 = vpop.f32.mrf.mxu0  ;;  %11330 = vmatmul.mubr.bf16.gmra.mxu0 %v5300_v47  ;;  %v5290_v47 = vld [vmem:[#allocation2 + $0x1a1] sm:$0xff] }
 0x2e7   : > { %v10999_v25 = vpop.f32.mrf.mxu1  ;;  %11286 = vmatmul.mubr.bf16.gmra.mxu1 %v4996_v40  ;;  %v13939_v34 = vadd.f32 %v11043_v58, %v10995_v14  ;;  %11333 = vmatprep.mubr.bf16.mxu0 %v13851_v20  ;;  %v5566_v14 = vld [vmem:[#allocation2 + $0x3a] sm:$0xff]  ;;  %v5567_v58 = vld [vmem:[#allocation2 + $0x4a] sm:$0xff]  ;;  %v5306_v13 = vpack.c.bf16 %v5290_v47, %v5289_v9 }
 0x2e8   : > { %11289 = vmatprep.mubr.bf16.mxu1 %v4997_v2  ;;  %v3665_v0 = vpop.f32.mrf.mxu0  ;;  %v5597_v52 = vpack.c.bf16 %v5566_v14, %v5565_v38  ;;  %v5572_v38 = vld [vmem:[#allocation2 + $0x82] sm:$0xff] }
 0x2e9   : > { %v3472_v51 = vpop.f32.mrf.mxu1  ;;  %v13942_v31 = vadd.f32 %v3665_v0, %v3456_v60  ;;  %v5285_v60 = vld [vmem:[#allocation2 + $0x169] sm:$0xff]  ;;  %v5600_v9 = vpack.c.bf16 %v5572_v38, %v5571_v22 }
 0x2ea   : > { %v11044_v27 = vpop.f32.mrf.mxu0 }
 0x2eb   : > { %v11000_v61 = vpop.f32.mrf.mxu1  ;;  %v13944_v29 = vadd.f32 %v11044_v27, %v10996_v50 }
 0x2ec   : > { %v13946_v23 = vpop.f32.mrf.mxu0 }
 0x2ed   : > { %v13949_v11 = vpop.f32.mrf.mxu1 }
 0x2ee   : > { %v11047_v20 = vpop.f32.mrf.mxu0  ;;  %11334 = vmatmul.mubr.bf16.gmra.mxu0 %v5302_v33 }
 0x2ef   : > { %v11003_v10 = vpop.f32.mrf.mxu1  ;;  %11290 = vmatmul.mubr.bf16.gmra.mxu1 %v4998_v39  ;;  %v13951_v4 = vadd.f32 %v11047_v20, %v10999_v25  ;;  %11337 = vmatprep.mubr.bf16.mxu0 %v13858_v16  ;;  %v5304_v16 = vpack.c.bf16 %v5286_v18, %v5285_v60  ;;  %v5568_v25 = vld [vmem:[#allocation2 + $0x52] sm:$0xff]  ;;  %v5599_v39 = vpack.c.bf16 %v5570_v17, %v5569_v15  ;;  %v5575_v15 = vld [vmem:[#allocation2 + $0xaa] sm:$0xff] }
 0x2f0   : > { %11293 = vmatprep.mubr.bf16.mxu1 %v13761_v55  ;;  %v3681_v63 = vpop.f32.mrf.mxu0  ;;  %v5598_v33 = vpack.c.bf16 %v5568_v25, %v5567_v58  ;;  %v5576_v17 = vld [vmem:[#allocation2 + $0xb2] sm:$0xff] }
 0x2f1   : > { %v3488_v28 = vpop.f32.mrf.mxu1  ;;  %v13955_v37 = vadd.f32 %v3681_v63, %v3472_v51 }
 0x2f2   : > { %v11048_v26 = vpop.f32.mrf.mxu0 }
 0x2f3   : > { %v11004_v21 = vpop.f32.mrf.mxu1  ;;  %v13959_v36 = vadd.f32 %v11048_v26, %v11000_v61 }
 0x2f4   : > { %v13961_v3 = vpop.f32.mrf.mxu0 }
 0x2f5   : > { %v13963_v55 = vpop.f32.mrf.mxu1 }
 0x2f6   : > { %v11051_v50 = vpop.f32.mrf.mxu0  ;;  %11338 = vmatmul.mubr.bf16.gmra.mxu0 %v5304_v16  ;;  %v5573_v16 = vld [vmem:[#allocation2 + $0x92] sm:$0xff] }
 0x2f7   : > { %v11007_v57 = vpop.f32.mrf.mxu1  ;;  %11294 = vmatmul.mubr.bf16.gmra.mxu1 %v13957_v5  ;;  %v13967_v35 = vadd.f32 %v11051_v50, %v11003_v10  ;;  %11341 = vmatprep.mubr.bf16.mxu0 %v5305_v19  ;;  %v5574_v19 = vld [vmem:[#allocation2 + $0x9a] sm:$0xff] }
 0x2f8   : > { %11361 = vmatprep.mubr.bf16.mxu1 %v5597_v52  ;;  %v3697_v40 = vpop.f32.mrf.mxu0 }
 0x2f9   : > { %v3504_v59 = vpop.f32.mrf.mxu1  ;;  %v13969_v2 = vadd.f32 %v3697_v40, %v3488_v28  ;;  %v5601_v40 = vpack.c.bf16 %v5574_v19, %v5573_v16 }
 0x2fa   : > { %v11052_v0 = vpop.f32.mrf.mxu0 }
 0x2fb   : > { %v11008_v51 = vpop.f32.mrf.mxu1  ;;  %v13971_v27 = vadd.f32 %v11052_v0, %v11004_v21 }
 0x2fc   : > { %v13973_v61 = vpop.f32.mrf.mxu0 }
 0x2fd   : > { %v13975_v54 = vpop.f32.mrf.mxu1 }
 0x2fe   : > { %v11055_v20 = vpop.f32.mrf.mxu0  ;;  %11342 = vmatmul.mubr.bf16.gmra.mxu0 %v5306_v13 }
 0x2ff   : > { %v11075_v10 = vpop.f32.mrf.mxu1  ;;  %11362 = vmatmul.mubr.bf16.vlgmr.msra.gmra.mxu1 %v5598_v33  ;;  %v13977_v63 = vadd.f32 %v11055_v20, %v11007_v57  ;;  %v5578_v20 = vld [vmem:[#allocation2 + $0xca] sm:$0xff] }
 0x300   : > { %v4004_v28 = vadd.f32 %v11075_v10, %v13885_v32  ;;  %11365 = vmatprep.mubr.bf16.mxu1 %v5599_v39  ;;  %v3713_v18 = vpop.f32.mrf.mxu0  ;;  %v5577_v39 = vld [vmem:[#allocation2 + $0xc2] sm:$0xff] }
 0x301   : > { %v3875_v26 = vpop.f32.mrf.mxu1  ;;  %v13980_v30 = vadd.f32 %v3713_v18, %v3504_v59 }
 0x302   : > { %v4002_v21 = vadd.f32 %v3875_v26, %v13888_v12  ;;  %v11056_v14 = vpop.f32.mrf.mxu0  ;;  %v5602_v26 = vpack.c.bf16 %v5576_v17, %v5575_v15 }
 0x303   : > { %v11076_v60 = vpop.f32.mrf.mxu1  ;;  %v13983_v52 = vadd.f32 %v11056_v14, %v11008_v51 }
 0x304   : > { %v4005_v50 = vadd.f32 %v11076_v60, %v13893_v45  ;;  %v13986_v57 = vpop.f32.mrf.mxu0 }
 0x305   : > { %v3878_v32 = vpop.f32.mrf.mxu1 }
 0x306   : > { %v13989_v47 = vadd.f32 %v3878_v32, %v13895_v46  ;;  %v11123_v59 = vpop.f32.mrf.mxu0  ;;  %v5579_v32 = vld [vmem:[#allocation2 + $0xda] sm:$0xff] }
 0x307   : > { %v11079_v12 = vpop.f32.mrf.mxu1  ;;  %11366 = vmatmul.mubr.bf16.gmra.mxu1 %v5600_v9  ;;  %v13991_v58 = vadd.f32 %v11123_v59, %v4004_v28  ;;  %v5580_v9 = vld [vmem:[#allocation2 + $0xe2] sm:$0xff]  ;;  %v5581_v59 = vld [vmem:[#allocation2 + $0xf2] sm:$0xff] }
 0x308   : > { %v4008_v25 = vadd.f32 %v11079_v12, %v13901_v42  ;;  %11369 = vmatprep.mubr.bf16.mxu1 %v5601_v40  ;;  %v4181_v0 = vpop.f32.mrf.mxu0  ;;  %v5582_v12 = vld [vmem:[#allocation2 + $0xfa] sm:$0xff]  ;;  %v5604_v15 = vpack.c.bf16 %v5580_v9, %v5579_v32 }
 0x309   : > { %v3891_v13 = vpop.f32.mrf.mxu1  ;;  %v13994_v51 = vadd.f32 %v4181_v0, %v4002_v21  ;;  %v5603_v21 = vpack.c.bf16 %v5578_v20, %v5577_v39 }
 0x30a   : > { %v4006_v45 = vadd.f32 %v3891_v13, %v13904_v41  ;;  %v11124_v33 = vpop.f32.mrf.mxu0 }
 0x30b   : > { %v11080_v46 = vpop.f32.mrf.mxu1  ;;  %v13997_v10 = vadd.f32 %v11124_v33, %v4005_v50 }
 0x30c   : > { %v4009_v28 = vadd.f32 %v11080_v46, %v13909_v6  ;;  %v14000_v18 = vpop.f32.mrf.mxu0 }
 0x30d   : > { %v3894_v42 = vpop.f32.mrf.mxu1 }
 0x30e   : > { %v14003_v22 = vadd.f32 %v3894_v42, %v13911_v62  ;;  %v11127_v38 = vpop.f32.mrf.mxu0 }
 0x30f   : > { %v11083_v41 = vpop.f32.mrf.mxu1  ;;  %11370 = vmatmul.mubr.bf16.gmra.mxu1 %v5602_v26  ;;  %v14005_v14 = vadd.f32 %v11127_v38, %v4008_v25  ;;  %v5583_v26 = vld [vmem:[#allocation2 + $0x10a] sm:$0xff] }
 0x310   : > { %v4012_v60 = vadd.f32 %v11083_v41, %v13917_v8  ;;  %11373 = vmatprep.mubr.bf16.mxu1 %v5603_v21  ;;  %v4197_v16 = vpop.f32.mrf.mxu0  ;;  %v5584_v21 = vld [vmem:[#allocation2 + $0x112] sm:$0xff]  ;;  %v5585_v41 = vld [vmem:[#allocation2 + $0x122] sm:$0xff] }
 0x311   : > { %v3907_v19 = vpop.f32.mrf.mxu1  ;;  %v14008_v50 = vadd.f32 %v4197_v16, %v4006_v45  ;;  %v5605_v45 = vpack.c.bf16 %v5582_v12, %v5581_v59  ;;  %v5586_v16 = vld [vmem:[#allocation2 + $0x12a] sm:$0xff]  ;;  %v5606_v9 = vpack.c.bf16 %v5584_v21, %v5583_v26  ;;  %v5590_v26 = vld [vmem:[#allocation2 + $0x15a] sm:$0xff] }
 0x312   : > { %v4010_v6 = vadd.f32 %v3907_v19, %v13920_v1  ;;  %v11128_v40 = vpop.f32.mrf.mxu0 }
 0x313   : > { %v11084_v62 = vpop.f32.mrf.mxu1  ;;  %v14011_v0 = vadd.f32 %v11128_v40, %v4009_v28 }
 0x314   : > { %v4013_v25 = vadd.f32 %v11084_v62, %v13922_v48  ;;  %v14014_v13 = vpop.f32.mrf.mxu0 }
 0x315   : > { %v3910_v8 = vpop.f32.mrf.mxu1 }
 0x316   : > { %v14017_v17 = vadd.f32 %v3910_v8, %v13924_v44  ;;  %v11131_v33 = vpop.f32.mrf.mxu0 }
 0x317   : > { %v11087_v1 = vpop.f32.mrf.mxu1  ;;  %11374 = vmatmul.mubr.bf16.gmra.mxu1 %v5604_v15  ;;  %v14019_v46 = vadd.f32 %v11131_v33, %v4012_v60  ;;  %v5588_v33 = vld [vmem:[#allocation2 + $0x142] sm:$0xff] }
 0x318   : > { %v4016_v39 = vadd.f32 %v11087_v1, %v13927_v49  ;;  %11377 = vmatprep.mubr.bf16.mxu1 %v5605_v45  ;;  %v4213_v20 = vpop.f32.mrf.mxu0  ;;  %v5587_v45 = vld [vmem:[#allocation2 + $0x13a] sm:$0xff] }
 0x319   : > { %v3923_v28 = vpop.f32.mrf.mxu1  ;;  %v14022_v42 = vadd.f32 %v4213_v20, %v4010_v6  ;;  %v5607_v6 = vpack.c.bf16 %v5586_v16, %v5585_v41 }
 0x31a   : > { %v4014_v48 = vadd.f32 %v3923_v28, %v13930_v7  ;;  %v11132_v38 = vpop.f32.mrf.mxu0  ;;  %v12016_v7 = vld [vmem:[%s15614_s5 + $0x78] sm:$0xff]  }
 0x31b   : > { %v11088_v44 = vpop.f32.mrf.mxu1  ;;  %v14025_v19 = vadd.f32 %v11132_v38, %v4013_v25  ;;  %11393 = vmatprep.subr.bf16.mxu0 %v12016_v7  ;;  %v5589_v28 = vld [vmem:[#allocation2 + $0x152] sm:$0xff] }
 0x31c   : > { %v4017_v60 = vadd.f32 %v11088_v44, %v13932_v56  ;;  %v14028_v32 = vpop.f32.mrf.mxu0  ;;  %11394 = vmatpush3.bf16.msra.mxu0 %v12016_v7  ;;  %v5608_v44 = vpack.c.bf16 %v5588_v33, %v5587_v45  ;;  %v5609_v41 = vpack.c.bf16 %v5590_v26, %v5589_v28 }
 0x31d   : > { %v3926_v49 = vpop.f32.mrf.mxu1 }
 0x31e   : > { %v14031_v40 = vadd.f32 %v3926_v49, %v13937_v24  ;;  %v11135_v62 = vpop.f32.mrf.mxu0 }
 0x31f   : > { %v11091_v59 = vpop.f32.mrf.mxu1  ;;  %11378 = vmatmul.mubr.bf16.gmra.mxu1 %v5606_v9  ;;  %v14036_v12 = vadd.f32 %v11135_v62, %v4016_v39  ;;  %v5591_v62 = vld [vmem:[#allocation2 + $0x16a] sm:$0xff] }
 0x320   : > { %v4020_v25 = vadd.f32 %v11091_v59, %v13939_v34  ;;  %11381 = vmatprep.mubr.bf16.mxu1 %v5607_v6  ;;  %v4229_v56 = vpop.f32.mrf.mxu0  ;;  %v5592_v59 = vld [vmem:[#allocation2 + $0x172] sm:$0xff] }
 0x321   : > { %v3939_v8 = vpop.f32.mrf.mxu1  ;;  %v14039_v15 = vadd.f32 %v4229_v56, %v4014_v48 }
 0x322   : > { %v4018_v24 = vadd.f32 %v3939_v8, %v13942_v31  ;;  %v11136_v1 = vpop.f32.mrf.mxu0  ;;  %v12017_v31 = vld [vmem:[%s15614_s5 + $0x70] sm:$0xff]  }
 0x323   : > { %v11092_v20 = vpop.f32.mrf.mxu1  ;;  %v14042_v21 = vadd.f32 %v11136_v1, %v4017_v60  ;;  %11395 = vmatprep.subr.bf16.mxu0 %v12017_v31  ;;  %v5610_v1 = vpack.c.bf16 %v5592_v59, %v5591_v62  ;;  %v12019_v59 = vld [vmem:[%s15614_s5 + $0x60] sm:$0xff]  }
 0x324   : > { %v4021_v39 = vadd.f32 %v11092_v20, %v13944_v29  ;;  %v14045_v34 = vpop.f32.mrf.mxu0  ;;  %11396 = vmatpush3.bf16.msra.mxu0 %v12017_v31 }
 0x325   : > { %v14047_v38 = vpop.f32.mrf.mxu1 }
 0x326   : > { %v11139_v48 = vpop.f32.mrf.mxu0 }
 0x327   : > { %v11095_v16 = vpop.f32.mrf.mxu1  ;;  %11382 = vmatmul.mubr.bf16.gmra.mxu1 %v5608_v44  ;;  %v14052_v49 = vadd.f32 %v11139_v48, %v4020_v25 }
 0x328   : > { %v4024_v60 = vadd.f32 %v11095_v16, %v13951_v4  ;;  %11385 = vmatprep.mubr.bf16.mxu1 %v5609_v41  ;;  %v4245_v29 = vpop.f32.mrf.mxu0 }
 0x329   : > { %v3955_v9 = vpop.f32.mrf.mxu1  ;;  %v14055_v6 = vadd.f32 %v4245_v29, %v4018_v24  ;;  %v12018_v24 = vld [vmem:[%s15614_s5 + $0x68] sm:$0xff]  }
 0x32a   : > { %v4022_v7 = vadd.f32 %v3955_v9, %v13955_v37  ;;  %v11140_v56 = vpop.f32.mrf.mxu0  ;;  %11397 = vmatprep.subr.bf16.mxu0 %v12018_v24 }
 0x32b   : > { %v11096_v8 = vpop.f32.mrf.mxu1  ;;  %v14058_v45 = vadd.f32 %v11140_v56, %v4021_v39  ;;  %v5595_v39 = vld [vmem:[#allocation2 + $0x19a] sm:$0xff]  ;;  %11398 = vmatpush3.bf16.msra.mxu0 %v12018_v24 }
 0x32c   : > { %v4025_v25 = vadd.f32 %v11096_v8, %v13959_v36  ;;  %v14061_v33 = vpop.f32.mrf.mxu0  ;;  %v5596_v36 = vld [vmem:[#allocation2 + $0x1a2] sm:$0xff]  ;;  %11399 = vmatprep.subr.bf16.mxu0 %v12019_v59 }
 0x32d   : > { %v14063_v4 = vpop.f32.mrf.mxu1  ;;  %v5612_v9 = vpack.c.bf16 %v5596_v36, %v5595_v39 }
 0x32e   : > { %v11143_v20 = vpop.f32.mrf.mxu0 }
 0x32f   : > { %v11099_v28 = vpop.f32.mrf.mxu1  ;;  %11386 = vmatmul.mubr.bf16.gmra.mxu1 %v5610_v1  ;;  %v14068_v37 = vadd.f32 %v11143_v20, %v4024_v60  ;;  %11400 = vmatpush3.bf16.msra.mxu0 %v12019_v59  ;;  %v12021_v20 = vld [vmem:[%s15614_s5 + $0x38] sm:$0xff]  }
 0x330   : > { %v4028_v26 = vadd.f32 %v11099_v28, %v13967_v35  ;;  %11389 = vmatprep.mubr.bf16.mxu1 %v13871_v43  ;;  %v4261_v44 = vpop.f32.mrf.mxu0  ;;  %11441 = vmatprep.subr.bf16.mxu1 %v12021_v20 }
 0x331   : > { %v3971_v41 = vpop.f32.mrf.mxu1  ;;  %v14072_v31 = vadd.f32 %v4261_v44, %v4022_v7  ;;  %11442 = vmatpush3.bf16.msra.mxu1 %v12021_v20  ;;  %v12023_v20 = vld [vmem:[%s15614_s5 + $0x50] sm:$0xff]  }
 0x332   : > { %v4026_v48 = vadd.f32 %v3971_v41, %v13969_v2  ;;  %v11144_v16 = vpop.f32.mrf.mxu0  ;;  %v12022_v41 = vld [vmem:[%s15614_s5 + $0x30] sm:$0xff]  }
 0x333   : > { %v11100_v29 = vpop.f32.mrf.mxu1  ;;  %v14075_v62 = vadd.f32 %v11144_v16, %v4025_v25  ;;  %11443 = vmatprep.subr.bf16.mxu1 %v12022_v41 }
 0x334   : > { %v4029_v60 = vadd.f32 %v11100_v29, %v13971_v27  ;;  %v14078_v35 = vpop.f32.mrf.mxu0 }
 0x335   : > { %15753 = vst [vmem:[#allocation6_spill] sm:$0xff] %v14078_v35  ;;  %v14080_v43 = vpop.f32.mrf.mxu1  ;;  %11444 = vmatpush3.bf16.msra.mxu1 %v12022_v41 }
 0x336   : > { %15754 = vst [vmem:[#allocation33_spill] sm:$0xff] %v14080_v43  ;;  %v11147_v56 = vpop.f32.mrf.mxu0 }
 0x337   : > { %v11103_v7 = vpop.f32.mrf.mxu1  ;;  %11390 = vmatmul.mubr.bf16.gmra.mxu1 %v5612_v9  ;;  %v14085_v8 = vadd.f32 %v11147_v56, %v4028_v26 }
 0x338   : > { %v4032_v2 = vadd.f32 %v11103_v7, %v13977_v63  ;;  %v4277_v25 = vpop.f32.mrf.mxu0  ;;  %v12024_v7 = vld [vmem:[%s15614_s5 + $0x28] sm:$0xff]   ;;  %11457 = vmatprep.mubr.bf16.mxu1 %v13957_v5 }
 0x339   : > { %v3987_v1 = vpop.f32.mrf.mxu1  ;;  %v14088_v27 = vadd.f32 %v4277_v25, %v4026_v48  ;;  %11445 = vmatprep.subr.bf16.mxu1 %v12024_v7 }
 0x33a   : > { %v4030_v24 = vadd.f32 %v3987_v1, %v13980_v30  ;;  %v11148_v28 = vpop.f32.mrf.mxu0  ;;  %v12020_v30 = vld [vmem:[%s15614_s5 + $0x58] sm:$0xff]   ;;  %11446 = vmatpush3.bf16.msra.mxu1 %v12024_v7 }
 0x33b   : > { %v11104_v39 = vpop.f32.mrf.mxu1  ;;  %v14094_v36 = vadd.f32 %v11148_v28, %v4029_v60  ;;  %11401 = vmatprep.subr.bf16.mxu0 %v12020_v30  ;;  %v12025_v28 = vld [vmem:[%s15614_s5 + $0x20] sm:$0xff]  }
 0x33c   : > { %v4033_v26 = vadd.f32 %v11104_v39, %v13983_v52  ;;  %v14097_v63 = vpop.f32.mrf.mxu0  ;;  %11402 = vmatpush3.bf16.msra.mxu0 %v12020_v30  ;;  %11447 = vmatprep.subr.bf16.mxu1 %v12025_v28 }
 0x33d   : > { %15755 = vst [vmem:[#allocation7_spill] sm:$0xff] %v14097_v63  ;;  %v14099_v44 = vpop.f32.mrf.mxu1  ;;  %11403 = vmatprep.subr.bf16.mxu0 %v12023_v20  ;;  %v12030_v63 = vld [vmem:[%s15614_s5 + $0x8] sm:$0xff]  }
 0x33e   : > { %15756 = vst [vmem:[#allocation35_spill] sm:$0xff] %v14099_v44  ;;  %v11151_v48 = vpop.f32.mrf.mxu0  ;;  %11448 = vmatpush3.bf16.msra.mxu1 %v12025_v28 }
 0x33f   : > { %v11171_v16 = vpop.f32.mrf.mxu1  ;;  %v14107_v29 = vadd.f32 %v11151_v48, %v4032_v2 }
 0x340   : > { %v14110_v52 = vadd.f32 %v11171_v16, %v13991_v58  ;;  %v4293_v9 = vpop.f32.mrf.mxu0  ;;  %11404 = vmatpush3.bf16.msra.mxu0 %v12023_v20  ;;  %v12026_v16 = vld [vmem:[%s15614_s5 + $0x48] sm:$0xff]   ;;  %v12029_v20 = vld [vmem:[%s15614_s5 + $0x40] sm:$0xff]  }
 0x341   : > { %v4487_v60 = vpop.f32.mrf.mxu1  ;;  %v14112_v59 = vadd.f32 %v4293_v9, %v4030_v24  ;;  %v12027_v9 = vld [vmem:[%s15614_s5 + $0x18] sm:$0xff]   ;;  %11405 = vmatprep.subr.bf16.mxu0 %v12026_v16 }
 0x342   : > { %v14115_v56 = vadd.f32 %v4487_v60, %v13994_v51  ;;  %v11152_v2 = vpop.f32.mrf.mxu0  ;;  %11449 = vmatprep.subr.bf16.mxu1 %v12027_v9 }
 0x343   : > { %v11172_v25 = vpop.f32.mrf.mxu1  ;;  %v14120_v1 = vadd.f32 %v11152_v2, %v4033_v26  ;;  %11450 = vmatpush3.bf16.msra.mxu1 %v12027_v9 }
 0x344   : > { %v14123_v58 = vadd.f32 %v11172_v25, %v13997_v10  ;;  %v14128_v24 = vpop.f32.mrf.mxu0  ;;  %11406 = vmatpush3.bf16.msra.mxu0 %v12026_v16  ;;  %v12028_v25 = vld [vmem:[%s15614_s5 + $0x10] sm:$0xff]  }
 0x345   : > { %15757 = vst [vmem:[#allocation4_spill] sm:$0xff] %v14128_v24  ;;  %v14130_v51 = vpop.f32.mrf.mxu1  ;;  %11451 = vmatprep.subr.bf16.mxu1 %v12028_v25  ;;  %11407 = vmatprep.subr.bf16.mxu0 %v12029_v20 }
 0x346   : > { %v14135_v39 = vpop.f32.mrf.mxu0 }
 0x347   : > { %v11175_v26 = vpop.f32.mrf.mxu1  ;;  %11452 = vmatpush3.bf16.msra.mxu1 %v12028_v25 }
 0x348   : > { %v14138_v10 = vadd.f32 %v11175_v26, %v14005_v14  ;;  %v14140_v30 = vpop.f32.mrf.mxu0  ;;  %11408 = vmatpush3.bf16.msra.mxu0 %v12029_v20  ;;  %11453 = vmatprep.subr.bf16.mxu1 %v12030_v63 }
 0x349   : > { %v4503_v41 = vpop.f32.mrf.mxu1 }
 0x34a   : > { %v14143_v48 = vadd.f32 %v4503_v41, %v14008_v50  ;;  %v14151_v60 = vpop.f32.mrf.mxu0  ;;  %v6125_v41 = vld [vmem:[#allocation3 + $0x1] sm:$0xff] }
 0x34b   : > { %v11176_v14 = vpop.f32.mrf.mxu1  ;;  %11454 = vmatpush3.bf16.msra.mxu1 %v12030_v63 }
 0x34c   : > { %v14154_v7 = vadd.f32 %v11176_v14, %v14011_v0  ;;  %v14156_v2 = vpop.f32.mrf.mxu0  ;;  %v6126_v14 = vld [vmem:[#allocation3 + $0x9] sm:$0xff] }
 0x34d   : > { %v14158_v50 = vpop.f32.mrf.mxu1  ;;  %v6157_v24 = vpack.c.bf16 %v6126_v14, %v6125_v41 }
 0x34e   : > { %v14166_v28 = vpop.f32.mrf.mxu0 }
 0x34f   : > { %v11179_v0 = vpop.f32.mrf.mxu1  ;;  %11409 = vmatprep.mubr.bf16.mxu0 %v6157_v24 }
 0x350   : > { %v14169_v26 = vadd.f32 %v11179_v0, %v14019_v46  ;;  %v14171_v16 = vpop.f32.mrf.mxu0 }
 0x351   : > { %v4519_v9 = vpop.f32.mrf.mxu1 }
 0x352   : > { %v14174_v44 = vadd.f32 %v4519_v9, %v14022_v42  ;;  %v14179_v43 = vpop.f32.mrf.mxu0  ;;  %v12031_v42 = vld [vmem:[%s15614_s5] sm:$0xff]  }
 0x353   : > { %v11180_v46 = vpop.f32.mrf.mxu1  ;;  %11455 = vmatprep.subr.bf16.mxu1 %v12031_v42 }
 0x354   : > { %v14182_v0 = vadd.f32 %v11180_v46, %v14025_v19  ;;  %v14184_v35 = vpop.f32.mrf.mxu0  ;;  %11456 = vmatpush3.bf16.msra.mxu1 %v12031_v42 }
 0x355   : > { %v14186_v25 = vpop.f32.mrf.mxu1 }
 0x356   : > { %15758 = vst [vmem:[#allocation5_spill] sm:$0xff] %v14182_v0  ;;  %15759 = vst [vmem:[#allocation8_spill] sm:$0xff] %v14186_v25  ;;  %v14191_v20 = vpop.f32.mrf.mxu0 }
 0x357   : > { %v11183_v41 = vpop.f32.mrf.mxu1 }
 0x358   : > { %v14194_v14 = vadd.f32 %v11183_v41, %v14036_v12  ;;  %v14196_v24 = vpop.f32.mrf.mxu0  ;;  %v14210_v12 = vld [vmem:[%s15614_s5 + $0xb8] sm:$0xff]  }
 0x359   : > { %15761 = vst [vmem:[#allocation10_spill] sm:$0xff] %v14196_v24  ;;  %v4535_v19 = vpop.f32.mrf.mxu1  ;;  %15765 = vst [vmem:[#allocation36_spill] sm:$0xff] %v14210_v12  ;;  %11489 = vmatprep.subr.bf16.mxu0 %v14210_v12 }
 0x35a   : > { %15760 = vst [vmem:[#allocation31_spill] sm:$0xff] %v14194_v14  ;;  %v14199_v9 = vadd.f32 %v4535_v19, %v14039_v15  ;;  %v14201_v46 = vpop.f32.mrf.mxu0 }
 0x35b   : > { %15763 = vst [vmem:[#allocation32_spill] sm:$0xff] %v14201_v46  ;;  %v11184_v63 = vpop.f32.mrf.mxu1 }
 0x35c   : > { %15762 = vst [vmem:[#allocation13_spill] sm:$0xff] %v14199_v9  ;;  %v14205_v25 = vadd.f32 %v11184_v63, %v14042_v21  ;;  %v14212_v41 = vpop.f32.mrf.mxu0 }
 0x35d   : > { %15766 = vst [vmem:[#allocation9_spill] sm:$0xff] %v14212_v41  ;;  %v14214_v14 = vpop.f32.mrf.mxu1 }
 0x35e   : > { %15764 = vst [vmem:[#allocation34_spill] sm:$0xff] %v14205_v25  ;;  %15767 = vst [vmem:[#allocation37_spill] sm:$0xff] %v14214_v14  ;;  %v14217_v15 = vpop.f32.mrf.mxu0 }
 0x35f   : > { %15768 = vst [vmem:[#allocation39_spill] sm:$0xff] %v14217_v15  ;;  %v11187_v42 = vpop.f32.mrf.mxu1 }
 0x360   : > { %v14220_v19 = vadd.f32 %v11187_v42, %v14052_v49  ;;  %v14222_v5 = vpop.f32.mrf.mxu0 }
 0x361   : > { %15770 = vst [vmem:[#allocation41_spill] sm:$0xff] %v14222_v5  ;;  %v4551_v21 = vpop.f32.mrf.mxu1 }
 0x362   : > { %15769 = vst [vmem:[#allocation11_spill] sm:$0xff] %v14220_v19  ;;  %v14225_v63 = vadd.f32 %v4551_v21, %v14055_v6  ;;  %v14227_v25 = vpop.f32.mrf.mxu0 }
 0x363   : > { %15772 = vst [vmem:[#allocation43_spill] sm:$0xff] %v14227_v25  ;;  %v11188_v9 = vpop.f32.mrf.mxu1 }
 0x364   : > { %15771 = vst [vmem:[#allocation12_spill] sm:$0xff] %v14225_v63  ;;  %v14230_v41 = vadd.f32 %v11188_v9, %v14058_v45  ;;  %v14232_v14 = vpop.f32.mrf.mxu0 }
 0x365   : > { %15774 = vst [vmem:[#allocation38_spill] sm:$0xff] %v14232_v14  ;;  %v14234_v12 = vpop.f32.mrf.mxu1 }
 0x366   : > { %15773 = vst [vmem:[#allocation17_spill] sm:$0xff] %v14230_v41  ;;  %15775 = vst [vmem:[#allocation40_spill] sm:$0xff] %v14234_v12  ;;  %v14236_v15 = vpop.f32.mrf.mxu0 }
 0x367   : > { %15776 = vst [vmem:[#allocation42_spill] sm:$0xff] %v14236_v15  ;;  %v11191_v49 = vpop.f32.mrf.mxu1 }
 0x368   : > { %v14239_v42 = vadd.f32 %v11191_v49, %v14068_v37  ;;  %v14241_v19 = vpop.f32.mrf.mxu0 }
 0x369   : > { %15778 = vst [vmem:[#allocation14_spill] sm:$0xff] %v14241_v19  ;;  %v4567_v6 = vpop.f32.mrf.mxu1 }
 0x36a   : > { %15777 = vst [vmem:[#allocation44_spill] sm:$0xff] %v14239_v42  ;;  %v14244_v21 = vadd.f32 %v4567_v6, %v14072_v31  ;;  %v14246_v63 = vpop.f32.mrf.mxu0 }
 0x36b   : > { %15780 = vst [vmem:[#allocation25_spill] sm:$0xff] %v14246_v63  ;;  %v11192_v45 = vpop.f32.mrf.mxu1 }
 0x36c   : > { %15779 = vst [vmem:[#allocation45_spill] sm:$0xff] %v14244_v21  ;;  %v14249_v9 = vadd.f32 %v11192_v45, %v14075_v62  ;;  %v14251_v41 = vpop.f32.mrf.mxu0 }
 0x36d   : > { %15782 = vst [vmem:[#allocation15_spill] sm:$0xff] %v14251_v41  ;;  %v14253_v12 = vpop.f32.mrf.mxu1 }
 0x36e   : > { %15781 = vst [vmem:[#allocation47_spill] sm:$0xff] %v14249_v9  ;;  %15783 = vst [vmem:[#allocation49_spill] sm:$0xff] %v14253_v12  ;;  %v14255_v15 = vpop.f32.mrf.mxu0 }
 0x36f   : > { %15784 = vst [vmem:[#allocation16_spill] sm:$0xff] %v14255_v15  ;;  %v11195_v37 = vpop.f32.mrf.mxu1 }
 0x370   : > { %v14258_v49 = vadd.f32 %v11195_v37, %v14085_v8  ;;  %v14260_v42 = vpop.f32.mrf.mxu0 }
 0x371   : > { %15786 = vst [vmem:[#allocation18_spill] sm:$0xff] %v14260_v42  ;;  %v4583_v31 = vpop.f32.mrf.mxu1 }
 0x372   : > { %15785 = vst [vmem:[#allocation51_spill] sm:$0xff] %v14258_v49  ;;  %v14263_v6 = vadd.f32 %v4583_v31, %v14088_v27  ;;  %v14265_v21 = vpop.f32.mrf.mxu0 }
 0x373   : > { %15788 = vst [vmem:[#allocation46_spill] sm:$0xff] %v14265_v21  ;;  %v11196_v62 = vpop.f32.mrf.mxu1 }
 0x374   : > { %15787 = vst [vmem:[#allocation22_spill] sm:$0xff] %v14263_v6  ;;  %v14268_v45 = vadd.f32 %v11196_v62, %v14094_v36  ;;  %v14270_v9 = vpop.f32.mrf.mxu0  ;;  %v14287_v36 = vld [vmem:[%s15614_s5 + $0xf8] sm:$0xff]  }
 0x375   : > { %15790 = vst [vmem:[#allocation50_spill] sm:$0xff] %v14270_v9  ;;  %v14272_v12 = vpop.f32.mrf.mxu1  ;;  %15796 = vst [vmem:[#allocation57_spill] sm:$0xff] %v14287_v36  ;;  %11537 = vmatprep.subr.bf16.mxu1 %v14287_v36 }
 0x376   : > { %15789 = vst [vmem:[#allocation48_spill] sm:$0xff] %v14268_v45  ;;  %15791 = vst [vmem:[#allocation52_spill] sm:$0xff] %v14272_v12  ;;  %v14274_v15 = vpop.f32.mrf.mxu0 }
 0x377   : > { %15792 = vst [vmem:[#allocation19_spill] sm:$0xff] %v14274_v15  ;;  %v11199_v8 = vpop.f32.mrf.mxu1 }
 0x378   : > { %v14277_v37 = vadd.f32 %v11199_v8, %v14107_v29  ;;  %v14279_v49 = vpop.f32.mrf.mxu0 }
 0x379   : > { %15794 = vst [vmem:[#allocation55_spill] sm:$0xff] %v14279_v49  ;;  %v4599_v27 = vpop.f32.mrf.mxu1 }
 0x37a   : > { %15793 = vst [vmem:[#allocation53_spill] sm:$0xff] %v14277_v37  ;;  %v14282_v31 = vadd.f32 %v4599_v27, %v14112_v59  ;;  %v14289_v62 = vpop.f32.mrf.mxu0 }
 0x37b   : > { %15797 = vst [vmem:[#allocation23_spill] sm:$0xff] %v14289_v62  ;;  %v11200_v45 = vpop.f32.mrf.mxu1 }
 0x37c   : > { %15795 = vst [vmem:[#allocation20_spill] sm:$0xff] %v14282_v31  ;;  %v14292_v6 = vadd.f32 %v11200_v45, %v14120_v1  ;;  %v14295_v29 = vpop.f32.mrf.mxu0 }
 0x37d   : > { %15799 = vst [vmem:[#allocation21_spill] sm:$0xff] %v14295_v29  ;;  %v14297_v8 = vpop.f32.mrf.mxu1 }
 0x37e   : > { %15798 = vst [vmem:[#allocation54_spill] sm:$0xff] %v14292_v6  ;;  %15800 = vst [vmem:[#allocation28_spill] sm:$0xff] %v14297_v8  ;;  %v14299_v37 = vpop.f32.mrf.mxu0 }
 0x37f   : > { %15801 = vst [vmem:[#allocation56_spill] sm:$0xff] %v14299_v37  ;;  %v11267_v59 = vpop.f32.mrf.mxu1 }
 0x380   : > { %v14301_v27 = vpop.f32.mrf.mxu0 }
 0x381   : > { %15802 = vst [vmem:[#allocation58_spill] sm:$0xff] %v14301_v27  ;;  %v5100_v31 = vpop.f32.mrf.mxu1 }
 0x382   : > { %v14303_v49 = vpop.f32.mrf.mxu0 }
 0x383   : > { %15803 = vst [vmem:[#allocation59_spill] sm:$0xff] %v14303_v49  ;;  %v11268_v15 = vpop.f32.mrf.mxu1 }
 0x384   : > { %v14305_v62 = vpop.f32.mrf.mxu0 }
 0x385   : > { %15804 = vst [vmem:[#allocation24_spill] sm:$0xff] %v14305_v62  ;;  %v14307_v12 = vpop.f32.mrf.mxu1 }
 0x386   : > { %v11315_v1 = vpop.f32.mrf.mxu0 }
 0x387   : > { %v14309_v45 = vpop.f32.mrf.mxu1 }
 0x388   : > { %v5406_v6 = vpop.f32.mrf.mxu0 }
 0x389   : > { %v14311_v29 = vpop.f32.mrf.mxu1 }
 0x38a   : > { %v11316_v8 = vpop.f32.mrf.mxu0 }
 0x38b   : > { %v14313_v9 = vpop.f32.mrf.mxu1 }
 0x38c   : > { %v14315_v37 = vpop.f32.mrf.mxu0 }
 0x38d   : > { %v14317_v27 = vpop.f32.mrf.mxu1 }
 0x38e   : > { %v14319_v21 = vpop.f32.mrf.mxu0 }
 0x38f   : > { %v14321_v49 = vpop.f32.mrf.mxu1 }
 0x390   : > { %15805 = vst [vmem:[#allocation60_spill] sm:$0xff] %v14321_v49  ;;  %v14323_v62 = vpop.f32.mrf.mxu0 }
 0x391   : > { %v14325_v42 = vpop.f32.mrf.mxu1 }
 0x392   : > { %15806 = vst [vmem:[#allocation62_spill] sm:$0xff] %v14325_v42  ;;  %v14329_v63 = vpop.f32.mrf.mxu0 }
 0x393   : > { %v14327_v41 = vpop.f32.mrf.mxu1 }
 0x394   : > { %15807 = vst [vmem:[#allocation61_spill] sm:$0xff] %v14327_v41  ;;  %v14335_v14 = vpop.f32.mrf.mxu0 }
 0x395   : > { %v14331_v36 = vpop.f32.mrf.mxu1  ;;  %15810 = vst [vmem:[#allocation27_spill] sm:$0xff] %v14335_v14 }
 0x396   : > { %15808 = vst [vmem:[#allocation26_spill] sm:$0xff] %v14331_v36  ;;  %v14341_v46 = vpop.f32.mrf.mxu0 }
 0x397   : > { %v14333_v19 = vpop.f32.mrf.mxu1  ;;  %15813 = vst [vmem:[#allocation63_spill] sm:$0xff] %v14341_v46 }
 0x398   : > { %15809 = vst [vmem:[#allocation64_spill] sm:$0xff] %v14333_v19  ;;  %v14347_v42 = vpop.f32.mrf.mxu0 }
 0x399   : > { %v14337_v25 = vpop.f32.mrf.mxu1  ;;  %15816 = vst [vmem:[#allocation30_spill] sm:$0xff] %v14347_v42 }
 0x39a   : > { %15811 = vst [vmem:[#allocation66_spill] sm:$0xff] %v14337_v25  ;;  %v14353_v36 = vpop.f32.mrf.mxu0 }
 0x39b   : > { %v14339_v5 = vpop.f32.mrf.mxu1  ;;  %15819 = vst [vmem:[#allocation70_spill] sm:$0xff] %v14353_v36 }
 0x39c   : > { %15812 = vst [vmem:[#allocation29_spill] sm:$0xff] %v14339_v5  ;;  %v14359_v25 = vpop.f32.mrf.mxu0 }
 0x39d   : > { %v14343_v0 = vpop.f32.mrf.mxu1  ;;  %15822 = vst [vmem:[#allocation73_spill] sm:$0xff] %v14359_v25 }
 0x39e   : > { %15814 = vst [vmem:[#allocation65_spill] sm:$0xff] %v14343_v0  ;;  %v14365_v0 = vpop.f32.mrf.mxu0 }
 0x39f   : > { %v14345_v49 = vpop.f32.mrf.mxu1 }
 0x3a0   : > { %15815 = vst [vmem:[#allocation67_spill] sm:$0xff] %v14345_v49 }
 0x3a1   : > { %v14349_v41 = vpop.f32.mrf.mxu1 }
 0x3a2   : > { %15817 = vst [vmem:[#allocation68_spill] sm:$0xff] %v14349_v41  ;;  %v14371_v41 = vpop.f32.mrf.mxu0 }
 0x3a3   : > { %v14351_v24 = vpop.f32.mrf.mxu1  ;;  %15827 = vst [vmem:[#allocation78_spill] sm:$0xff] %v14371_v41 }
 0x3a4   : > { %15818 = vst [vmem:[#allocation69_spill] sm:$0xff] %v14351_v24 }
 0x3a5   : > { %v14355_v19 = vpop.f32.mrf.mxu1 }
 0x3a6   : > { %15820 = vst [vmem:[#allocation71_spill] sm:$0xff] %v14355_v19  ;;  %v14377_v19 = vpop.f32.mrf.mxu0 }
 0x3a7   : > { %v14357_v14 = vpop.f32.mrf.mxu1  ;;  %15830 = vst [vmem:[#allocation81_spill] sm:$0xff] %v14377_v19 }
 0x3a8   : > { %15821 = vst [vmem:[#allocation72_spill] sm:$0xff] %v14357_v14 }
 0x3a9   : > { %v14361_v5 = vpop.f32.mrf.mxu1 }
 0x3aa   : > { %15823 = vst [vmem:[#allocation74_spill] sm:$0xff] %v14361_v5  ;;  %v14383_v5 = vpop.f32.mrf.mxu0 }
 0x3ab   : > { %v14363_v46 = vpop.f32.mrf.mxu1  ;;  %15833 = vst [vmem:[#allocation84_spill] sm:$0xff] %v14383_v5 }
 0x3ac   : > { %15824 = vst [vmem:[#allocation75_spill] sm:$0xff] %v14363_v46  ;;  %v14395_v41 = vpop.f32.mrf.mxu0 }
 0x3ad   : > { %v14367_v49 = vpop.f32.mrf.mxu1 }
 0x3ae   : > { %15825 = vst [vmem:[#allocation76_spill] sm:$0xff] %v14367_v49  ;;  %v4922_v49 = vadd.f32 %v14135_v39, %v14110_v52  ;;  %v3669_v39 = vadd.f32 %v13946_v23, %v13935_v53  ;;  %v14418_v53 = vadd.f32 %v13986_v57, %v13975_v54  ;;  %v4926_v23 = vadd.f32 %v14166_v28, %v14138_v10 }
 0x3af   : > { %v14369_v42 = vpop.f32.mrf.mxu1 }
 0x3b0   : > { %15826 = vst [vmem:[#allocation77_spill] sm:$0xff] %v14369_v42  ;;  %v5229_v19 = vadd.f32 %v11267_v59, %v4922_v49  ;;  %v14410_v49 = vpop.f32.mrf.mxu0 }
 0x3b1   : > { %v14373_v24 = vpop.f32.mrf.mxu1 }
 0x3b2   : > { %15828 = vst [vmem:[#allocation79_spill] sm:$0xff] %v14373_v24  ;;  %v4309_v24 = vadd.f32 %v14000_v18, %v13989_v47  ;;  %v5535_v5 = vadd.f32 %v11315_v1, %v5229_v19  ;;  %v14407_v47 = vld [vmem:[%s15613_s4] ss:$0 sm:$0xff]  ;;  %v14432_v10 = vpop.f32.mrf.mxu0 }
 0x3b3   : > { %v14375_v36 = vpop.f32.mrf.mxu1 }
 0x3b4   : > { %15829 = vst [vmem:[#allocation80_spill] sm:$0xff] %v14375_v36  ;;  %v4920_v36 = vadd.f32 %v14140_v30, %v14115_v56 }
 0x3b5   : > { %v14379_v14 = vpop.f32.mrf.mxu1 }
 0x3b6   : > { %15831 = vst [vmem:[#allocation82_spill] sm:$0xff] %v14379_v14  ;;  %v5227_v52 = vadd.f32 %v5100_v31, %v4920_v36  ;;  %v14450_v36 = vpop.f32.mrf.mxu0 }
 0x3b7   : > { %v14381_v25 = vpop.f32.mrf.mxu1 }
 0x3b8   : > { %15832 = vst [vmem:[#allocation83_spill] sm:$0xff] %v14381_v25  ;;  %v4923_v25 = vadd.f32 %v14151_v60, %v14123_v58  ;;  %v5533_v56 = vadd.f32 %v5406_v6, %v5227_v52  ;;  %v3701_v60 = vadd.f32 %v13973_v61, %v13963_v55  ;;  %v4924_v55 = vadd.f32 %v14171_v16, %v14143_v48  ;;  %v15836_v52 = vld [vmem:[#allocation6_spill] sm:$0xff] }
 0x3b9   : > { %v14385_v46 = vpop.f32.mrf.mxu1  ;;  %v5233_v61 = vadd.f32 %v14309_v45, %v4926_v23 }
 0x3ba   : > { %15834 = vst [vmem:[#allocation85_spill] sm:$0xff] %v14385_v46  ;;  %v4615_v46 = vadd.f32 %v14130_v51, %v4309_v24  ;;  %v5230_v30 = vadd.f32 %v11268_v15, %v4923_v25  ;;  %v3685_v51 = vadd.f32 %v13961_v3, %v13949_v11  ;;  %v4313_v11 = vadd.f32 %v14014_v13, %v14003_v22 }
 0x3bb   : > { %v14389_v42 = vpop.f32.mrf.mxu1  ;;  %v4317_v3 = vadd.f32 %v14028_v32, %v14017_v17  ;;  %v4927_v22 = vadd.f32 %v14179_v43, %v14154_v7  ;;  %v5231_v17 = vadd.f32 %v14311_v29, %v4924_v55  ;;  %v5539_v48 = vadd.f32 %v14319_v21, %v5233_v61  ;;  %v15843_v55 = vld [vmem:[#allocation8_spill] sm:$0xff] }
 0x3bc   : > { %15835 = vst [vmem:[#allocation86_spill] sm:$0xff] %v14389_v42  ;;  %v4921_v18 = vadd.f32 %v14156_v2, %v4615_v46  ;;  %v5536_v2 = vadd.f32 %v11316_v8, %v5230_v30  ;;  %v4619_v13 = vadd.f32 %v14158_v50, %v4313_v11  ;;  %v4023_v59 = vadd.f32 %v14063_v4, %v3685_v51 }
 0x3bd   : > { %v14397_v14 = vpop.f32.mrf.mxu1  ;;  %v5234_v7 = vadd.f32 %v14313_v9, %v4927_v22  ;;  %v5537_v31 = vadd.f32 %v14323_v62, %v5231_v17  ;;  %v4623_v61 = vadd.f32 %v15843_v55, %v4317_v3  ;;  %v15846_v17 = vld [vmem:[#allocation7_spill] sm:$0xff]  ;;  %v15849_v3 = vld [vmem:[#allocation36_spill] sm:$0xff] }
 0x3be   : > { %v5228_v25 = vadd.f32 %v14307_v12, %v4921_v18  ;;  %v4925_v43 = vadd.f32 %v14184_v35, %v4619_v13  ;;  %v15837_v18 = vld [vmem:[#allocation10_spill] sm:$0xff] }
 0x3bf   : > { %v11363_v42 = vpop.f32.mrf.mxu1  ;;  %v4928_v4 = vadd.f32 %v15837_v18, %v14174_v44  ;;  %v15841_v44 = vld [vmem:[#allocation5_spill] sm:$0xff]  ;;  %v15856_v18 = vld [vmem:[#allocation70_spill] sm:$0xff] }
 0x3c0   : > { %v5841_v58 = vadd.f32 %v11363_v42, %v5535_v5  ;;  %v5534_v57 = vadd.f32 %v14315_v37, %v5228_v25  ;;  %v4019_v5 = vadd.f32 %v14047_v38, %v3669_v39  ;;  %v4321_v37 = vadd.f32 %v14045_v34, %v14031_v40  ;;  %v15840_v25 = vld [vmem:[#allocation33_spill] sm:$0xff] }
 0x3c1   : > { %v5712_v24 = vpop.f32.mrf.mxu1  ;;  %v4930_v40 = vadd.f32 %v14191_v20, %v14169_v26  ;;  %v5540_v34 = vadd.f32 %v14329_v63, %v5234_v7  ;;  %v14460_v39 = vadd.f32 %v15836_v52, %v4023_v59  ;;  %v15839_v26 = vld [vmem:[#allocation60_spill] sm:$0xff]  ;;  %v15851_v59 = vld [vmem:[#allocation35_spill] sm:$0xff] }
 0x3c2   : > { %v5880_v46 = vadd.f32 %v14407_v47, %v5841_v58  ;;  %v5839_v15 = vadd.f32 %v5712_v24, %v5533_v56  ;;  %v14445_v38 = vadd.f32 %v14061_v33, %v4019_v5  ;;  %v5232_v33 = vadd.f32 %v14317_v27, %v4925_v43  ;;  %v15838_v56 = vld [vmem:[#allocation27_spill] sm:$0xff]  ;;  %v14466_v58 = vpop.f32.mrf.mxu0  ;;  %v15850_v43 = vld [vmem:[#allocation30_spill] sm:$0xff] }
 0x3c3   : > { %v11364_v54 = vpop.f32.mrf.mxu1  ;;  %v5237_v20 = vadd.f32 %v15839_v26, %v4930_v40  ;;  %v14494_v40 = vadd.f32 %v15851_v59, %v14418_v53  ;;  %v15858_v53 = vld [vmem:[#allocation41_spill] sm:$0xff] }
 0x3c4   : > { %v5912_v28 = vmax.f32 %v5880_v46, 0.0  ;;  %v5878_v12 = vadd.f32 %v14407_v47, %v5839_v15  ;;  %v5842_v19 = vadd.f32 %v11364_v54, %v5536_v2  ;;  %v5538_v30 = vadd.f32 %v15838_v56, %v5232_v33  ;;  %v12033_v2 = vld [vmem:[%s15614_s5 + $0xb0] sm:$0xff]   ;;  %v15842_v15 = vld [vmem:[#allocation32_spill] sm:$0xff]  ;;  %v15853_v33 = vld [vmem:[#allocation39_spill] sm:$0xff] }
 0x3c5   : > { %v5715_v32 = vpop.f32.mrf.mxu1  ;;  %v4027_v46 = vadd.f32 %v15840_v25, %v3701_v60  ;;  %v4931_v11 = vadd.f32 %v15842_v15, %v15841_v44  ;;  %v15844_v54 = vld [vmem:[#allocation62_spill] sm:$0xff]  ;;  %v15847_v60 = vld [vmem:[#allocation9_spill] sm:$0xff]  ;;  %v15860_v25 = vld [vmem:[#allocation64_spill] sm:$0xff] }
 0x3c6   : > { %5999 = vst [vmem:[#allocation3 + $0x31] sm:$0xff] %v5912_v28  ;;  %v5910_v16 = vmax.f32 %v5878_v12, 0.0  ;;  %v5881_v42 = vadd.f32 %v14407_v47, %v5842_v19  ;;  %v5840_v6 = vadd.f32 %v5715_v32, %v5534_v57  ;;  %v5235_v57 = vadd.f32 %v15844_v54, %v4928_v4  ;;  %v15845_v12 = vld [vmem:[#allocation63_spill] sm:$0xff]  ;;  %v15866_v59 = vld [vmem:[#allocation29_spill] sm:$0xff] }
 0x3c7   : > { %v11367_v50 = vpop.f32.mrf.mxu1  ;;  %v5543_v19 = vadd.f32 %v15845_v12, %v5237_v20  ;;  %v14480_v32 = vadd.f32 %v15846_v17, %v4027_v46  ;;  %v15863_v17 = vld [vmem:[#allocation66_spill] sm:$0xff] }
 0x3c8   : > { %5997 = vst [vmem:[#allocation3 + $0x19] sm:$0xff] %v5910_v16  ;;  %v5913_v21 = vmax.f32 %v5881_v42, 0.0  ;;  %v5879_v29 = vadd.f32 %v14407_v47, %v5840_v6  ;;  %v5845_v8 = vadd.f32 %v11367_v50, %v5539_v48  ;;  %v4929_v48 = vadd.f32 %v15847_v60, %v4623_v61  ;;  %v14486_v50 = vpop.f32.mrf.mxu0 }
 0x3c9   : > { %v5728_v35 = vpop.f32.mrf.mxu1  ;;  %v5541_v7 = vadd.f32 %v15850_v43, %v5235_v57 }
 0x3ca   : > { %6000 = vst [vmem:[#allocation3 + $0x39] sm:$0xff] %v5913_v21  ;;  %v5911_v9 = vmax.f32 %v5879_v29, 0.0  ;;  %v5884_v62 = vadd.f32 %v14407_v47, %v5845_v8  ;;  %v5843_v1 = vadd.f32 %v5728_v35, %v5537_v31  ;;  %v6159_v45 = vpack.c.bf16 %v5913_v21, %v5912_v28  ;;  %v12034_v8 = vld [vmem:[%s15614_s5 + $0xa8] sm:$0xff]   ;;  %v14508_v55 = vpop.f32.mrf.mxu0 }
 0x3cb   : > { %v11368_v63 = vpop.f32.mrf.mxu1 }
 0x3cc   : > { %5998 = vst [vmem:[#allocation3 + $0x21] sm:$0xff] %v5911_v9  ;;  %v5916_v27 = vmax.f32 %v5884_v62, 0.0  ;;  %v5882_v51 = vadd.f32 %v14407_v47, %v5843_v1  ;;  %v5846_v23 = vadd.f32 %v11368_v63, %v5540_v34  ;;  %v6158_v24 = vpack.c.bf16 %v5911_v9, %v5910_v16  ;;  %v15848_v16 = vld [vmem:[#allocation61_spill] sm:$0xff]  ;;  %v15852_v34 = vld [vmem:[#allocation31_spill] sm:$0xff]  ;;  %v15855_v1 = vld [vmem:[#allocation26_spill] sm:$0xff] }
 0x3cd   : > { %v5731_v28 = vpop.f32.mrf.mxu1  ;;  %v5238_v42 = vadd.f32 %v15848_v16, %v4931_v11  ;;  %v4934_v35 = vadd.f32 %v15853_v33, %v15852_v34  ;;  %v15854_v9 = vld [vmem:[#allocation37_spill] sm:$0xff]  ;;  %v6065_v12 = vld [vmem:[#allocation3 + $0x30] sm:$0xff]  ;;  %v15867_v33 = vld [vmem:[#allocation78_spill] sm:$0xff] }
 0x3ce   : > { %6003 = vst [vmem:[#allocation3 + $0x61] sm:$0xff] %v5916_v27  ;;  %v5914_v5 = vmax.f32 %v5882_v51, 0.0  ;;  %v5885_v22 = vadd.f32 %v14407_v47, %v5846_v23  ;;  %v5844_v13 = vadd.f32 %v5731_v28, %v5538_v30  ;;  %11410 = vmatmul.mubr.bf16.vlgmr.msra.gmra.mxu0 %v6158_v24  ;;  %v4627_v62 = vadd.f32 %v15854_v9, %v4321_v37  ;;  %v15857_v63 = vld [vmem:[#allocation13_spill] sm:$0xff]  ;;  %v12035_v16 = vld [vmem:[%s15614_s5 + $0xa0] sm:$0xff]   ;;  %v14537_v9 = vpop.f32.mrf.mxu0 }
 0x3cf   : > { %v11371_v6 = vpop.f32.mrf.mxu1  ;;  %11413 = vmatprep.mubr.bf16.mxu0 %v6159_v45  ;;  %11490 = vmatpush3.bf16.msra.mxu0 %v15849_v3  ;;  %v5236_v45 = vadd.f32 %v15855_v1, %v4929_v48  ;;  %v5544_v4 = vadd.f32 %v15856_v18, %v5238_v42  ;;  %v4932_v51 = vadd.f32 %v15858_v53, %v15857_v63  ;;  %v15859_v23 = vld [vmem:[#allocation73_spill] sm:$0xff]  ;;  %v15869_v18 = vld [vmem:[#allocation42_spill] sm:$0xff]  ;;  %v12036_v53 = vld [vmem:[%s15614_s5 + $0x98] sm:$0xff]  }
 0x3d0   : > { %6001 = vst [vmem:[#allocation3 + $0x49] sm:$0xff] %v5914_v5  ;;  %v5917_v31 = vmax.f32 %v5885_v22, 0.0  ;;  %v5883_v21 = vadd.f32 %v14407_v47, %v5844_v13  ;;  %v5849_v29 = vadd.f32 %v11371_v6, %v5543_v19  ;;  %11491 = vmatprep.subr.bf16.mxu0 %v12033_v2  ;;  %v5241_v46 = vadd.f32 %v15860_v25, %v4934_v35  ;;  %v6063_v44 = vld [vmem:[#allocation3 + $0x18] sm:$0xff]  ;;  %v15861_v19 = vld [vmem:[#allocation34_spill] sm:$0xff]  ;;  %v15862_v22 = vld [vmem:[#allocation43_spill] sm:$0xff] }
 0x3d1   : > { %v5744_v52 = vpop.f32.mrf.mxu1  ;;  %v6066_v20 = vld [vmem:[#allocation3 + $0x38] sm:$0xff]  ;;  %v5542_v24 = vadd.f32 %v15859_v23, %v5236_v45  ;;  %v4935_v13 = vadd.f32 %v15862_v22, %v15861_v19  ;;  %v5239_v60 = vadd.f32 %v15863_v17, %v4932_v51  ;;  %v15878_v19 = vld [vmem:[#allocation67_spill] sm:$0xff] }
 0x3d2   : > { %6004 = vst [vmem:[#allocation3 + $0x69] sm:$0xff] %v5917_v31  ;;  %v5915_v56 = vmax.f32 %v5883_v21, 0.0  ;;  %v14502_v30 = vadd.f32 %v14407_v47, %v5849_v29  ;;  %v5847_v26 = vadd.f32 %v5744_v52, %v5541_v7  ;;  %v6161_v11 = vpack.c.bf16 %v5917_v31, %v5916_v27  ;;  %v12038_v7 = vld [vmem:[%s15614_s5 + $0xf0] sm:$0xff]   ;;  %v15865_v21 = vld [vmem:[#allocation40_spill] sm:$0xff]  ;;  %v15873_v51 = vld [vmem:[#allocation57_spill] sm:$0xff] }
 0x3d3   : > { %v11372_v37 = vpop.f32.mrf.mxu1  ;;  %v6064_v15 = vld [vmem:[#allocation3 + $0x20] sm:$0xff]  ;;  %11492 = vmatpush3.bf16.msra.mxu0 %v12033_v2  ;;  %v14519_v2 = vpack.c.bf16 %v6066_v20, %v6065_v12  ;;  %v5547_v42 = vadd.f32 %v14365_v0, %v5241_v46  ;;  %v4631_v29 = vadd.f32 %v15865_v21, %v14445_v38  ;;  %v5242_v34 = vadd.f32 %v15866_v59, %v4935_v13  ;;  %v15874_v23 = vld [vmem:[#allocation81_spill] sm:$0xff]  ;;  %v15879_v21 = vld [vmem:[#allocation68_spill] sm:$0xff] }
 0x3d4   : > { %6002 = vst [vmem:[#allocation3 + $0x51] sm:$0xff] %v5915_v56  ;;  %v5920_v61 = vmax.f32 %v14502_v30, 0.0  ;;  %v14512_v54 = vadd.f32 %v14407_v47, %v5847_v26  ;;  %v5850_v57 = vadd.f32 %v11372_v37, %v5544_v4  ;;  %v14514_v28 = vpack.c.bf16 %v6064_v15, %v6063_v44  ;;  %11493 = vmatprep.subr.bf16.mxu0 %v12034_v8  ;;  %v15864_v31 = vld [vmem:[#allocation38_spill] sm:$0xff]  ;;  %v15870_v4 = vld [vmem:[#allocation12_spill] sm:$0xff]  ;;  %v15872_v26 = vld [vmem:[#allocation65_spill] sm:$0xff] }
 0x3d5   : > { %v5747_v27 = vpop.f32.mrf.mxu1  ;;  %v6160_v48 = vpack.c.bf16 %v5915_v56, %v5914_v5  ;;  %v4933_v5 = vadd.f32 %v15864_v31, %v4627_v62  ;;  %v5545_v35 = vadd.f32 %v15867_v33, %v5239_v60  ;;  %v15868_v62 = vld [vmem:[#allocation11_spill] sm:$0xff]  ;;  %v15871_v56 = vld [vmem:[#allocation14_spill] sm:$0xff]  ;;  %v12040_v44 = vld [vmem:[%s15614_s5 + $0xe8] sm:$0xff]  }
 0x3d6   : > { %6007 = vst [vmem:[#allocation3 + $0x91] sm:$0xff] %v5920_v61  ;;  %v5918_v6 = vmax.f32 %v14512_v54, 0.0  ;;  %v5889_v3 = vadd.f32 %v14407_v47, %v5850_v57  ;;  %v5848_v43 = vadd.f32 %v5747_v27, %v5542_v24  ;;  %11458 = vmatmul.mubr.bf16.vlgmr.msra.gmra.mxu1 %v14514_v28  ;;  %v4938_v38 = vadd.f32 %v15869_v18, %v15868_v62  ;;  %v15875_v15 = vld [vmem:[#allocation17_spill] sm:$0xff]  ;;  %v15877_v57 = vld [vmem:[#allocation84_spill] sm:$0xff] }
 0x3d7   : > { %v11375_v0 = vpop.f32.mrf.mxu1  ;;  %11461 = vmatprep.mubr.bf16.mxu1 %v14519_v2  ;;  %11414 = vmatmul.mubr.bf16.gmra.mxu0 %v6160_v48  ;;  %v4936_v30 = vadd.f32 %v15871_v56, %v15870_v4  ;;  %v5240_v20 = vadd.f32 %v15872_v26, %v4933_v5  ;;  %v5548_v24 = vadd.f32 %v15874_v23, %v5242_v34  ;;  %v6067_v17 = vld [vmem:[#allocation3 + $0x48] sm:$0xff]  ;;  %v14560_v48 = vpop.f32.mrf.mxu0  ;;  %v6069_v5 = vld [vmem:[#allocation3 + $0x60] sm:$0xff]  ;;  %v15881_v62 = vld [vmem:[#allocation49_spill] sm:$0xff] }
 0x3d8   : > { %6005 = vst [vmem:[#allocation3 + $0x79] sm:$0xff] %v5918_v6  ;;  %v5921_v1 = vmax.f32 %v5889_v3, 0.0  ;;  %v5887_v45 = vadd.f32 %v14407_v47, %v5848_v43  ;;  %v5853_v52 = vadd.f32 %v11375_v0, %v5547_v42  ;;  %11417 = vmatprep.mubr.bf16.mxu0 %v6161_v11  ;;  %11494 = vmatpush3.bf16.msra.mxu0 %v12034_v8  ;;  %v15876_v11 = vld [vmem:[#allocation25_spill] sm:$0xff] }
 0x3d9   : > { %v5760_v63 = vpop.f32.mrf.mxu1  ;;  %11495 = vmatprep.subr.bf16.mxu0 %v12035_v16  ;;  %11538 = vmatpush3.bf16.msra.mxu1 %v15873_v51  ;;  %v6070_v37 = vld [vmem:[#allocation3 + $0x68] sm:$0xff]  ;;  %v4939_v54 = vadd.f32 %v15876_v11, %v15875_v15  ;;  %v5546_v12 = vadd.f32 %v15877_v57, %v5240_v20  ;;  %v5245_v22 = vadd.f32 %v15878_v19, %v4938_v38  ;;  %v15882_v38 = vld [vmem:[#allocation69_spill] sm:$0xff]  ;;  %v15884_v51 = vld [vmem:[#allocation16_spill] sm:$0xff] }
 0x3da   : > { %6008 = vst [vmem:[#allocation3 + $0x99] sm:$0xff] %v5921_v1  ;;  %v5919_v8 = vmax.f32 %v5887_v45, 0.0  ;;  %v14551_v25 = vadd.f32 %v14407_v47, %v5853_v52  ;;  %v5851_v46 = vadd.f32 %v5760_v63, %v5545_v35  ;;  %11539 = vmatprep.subr.bf16.mxu1 %v12038_v7  ;;  %v6163_v27 = vpack.c.bf16 %v5921_v1, %v5920_v61  ;;  %v12039_v61 = vld [vmem:[%s15614_s5 + $0x90] sm:$0xff]   ;;  %v15885_v23 = vld [vmem:[#allocation45_spill] sm:$0xff]  ;;  %v15888_v19 = vld [vmem:[#allocation47_spill] sm:$0xff] }
 0x3db   : > { %v11376_v13 = vpop.f32.mrf.mxu1  ;;  %v6068_v60 = vld [vmem:[#allocation3 + $0x50] sm:$0xff]  ;;  %v5243_v59 = vadd.f32 %v15879_v21, %v4936_v30  ;;  %v14569_v0 = vpack.c.bf16 %v6070_v37, %v6069_v5  ;;  %v5551_v35 = vadd.f32 %v14395_v41, %v5245_v22  ;;  %v4635_v18 = vadd.f32 %v15881_v62, %v14460_v39  ;;  %v14587_v30 = vpop.f32.mrf.mxu0 }
 0x3dc   : > { %6006 = vst [vmem:[#allocation3 + $0x81] sm:$0xff] %v5919_v8  ;;  %v5924_v42 = vmax.f32 %v14551_v25, 0.0  ;;  %v14564_v3 = vadd.f32 %v14407_v47, %v5851_v46  ;;  %v5854_v43 = vadd.f32 %v11376_v13, %v5548_v24  ;;  %v14566_v31 = vpack.c.bf16 %v6068_v60, %v6067_v17  ;;  %11496 = vmatpush3.bf16.msra.mxu0 %v12035_v16  ;;  %v15886_v24 = vld [vmem:[#allocation18_spill] sm:$0xff]  ;;  %v15887_v25 = vld [vmem:[#allocation71_spill] sm:$0xff]  ;;  %v15890_v17 = vld [vmem:[#allocation72_spill] sm:$0xff] }
 0x3dd   : > { %v5763_v34 = vpop.f32.mrf.mxu1  ;;  %v6162_v33 = vpack.c.bf16 %v5919_v8, %v5918_v6  ;;  %11497 = vmatprep.subr.bf16.mxu0 %v12036_v53  ;;  %11540 = vmatpush3.bf16.msra.mxu1 %v12038_v7  ;;  %v12041_v6 = vld [vmem:[%s15614_s5 + $0xe0] sm:$0xff]   ;;  %v15880_v7 = vld [vmem:[#allocation15_spill] sm:$0xff]  ;;  %v5246_v41 = vadd.f32 %v15882_v38, %v4939_v54  ;;  %v5549_v56 = vadd.f32 %v14410_v49, %v5243_v59  ;;  %v12042_v49 = vld [vmem:[%s15614_s5 + $0x88] sm:$0xff]   ;;  %v14609_v5 = vpop.f32.mrf.mxu0 }
 0x3de   : > { %6011 = vst [vmem:[#allocation3 + $0xc1] sm:$0xff] %v5924_v42  ;;  %v5922_v1 = vmax.f32 %v14564_v3, 0.0  ;;  %v5893_v45 = vadd.f32 %v14407_v47, %v5854_v43  ;;  %v5852_v16 = vadd.f32 %v5763_v34, %v5546_v12  ;;  %11462 = vmatmul.mubr.bf16.gmra.mxu1 %v14566_v31  ;;  %11541 = vmatprep.subr.bf16.mxu1 %v12040_v44  ;;  %v12043_v12 = vld [vmem:[%s15614_s5 + $0xd8] sm:$0xff]  }
 0x3df   : > { %v4937_v52 = vadd.f32 %v15880_v7, %v4631_v29  ;;  %v11379_v4 = vpop.f32.mrf.mxu1  ;;  %11465 = vmatprep.mubr.bf16.mxu1 %v14569_v0  ;;  %11418 = vmatmul.mubr.bf16.gmra.mxu0 %v6162_v33  ;;  %v15883_v29 = vld [vmem:[#allocation44_spill] sm:$0xff]  ;;  %v4940_v8 = vadd.f32 %v15886_v24, %v15885_v23  ;;  %v5552_v15 = vadd.f32 %v14432_v10, %v5246_v41 }
 0x3e0   : > { %6009 = vst [vmem:[#allocation3 + $0xa9] sm:$0xff] %v5922_v1  ;;  %v5925_v26 = vmax.f32 %v5893_v45, 0.0  ;;  %v5891_v20 = vadd.f32 %v14407_v47, %v5852_v16  ;;  %v5857_v63 = vadd.f32 %v11379_v4, %v5551_v35  ;;  %11421 = vmatprep.mubr.bf16.mxu0 %v6163_v27  ;;  %11498 = vmatpush3.bf16.msra.mxu0 %v12036_v53  ;;  %v6071_v27 = vld [vmem:[#allocation3 + $0x78] sm:$0xff]  ;;  %v6073_v35 = vld [vmem:[#allocation3 + $0x90] sm:$0xff] }
 0x3e1   : > { %v4942_v39 = vadd.f32 %v15884_v51, %v15883_v29  ;;  %v5244_v46 = vadd.f32 %v15887_v25, %v4937_v52  ;;  %v5776_v37 = vpop.f32.mrf.mxu1  ;;  %11499 = vmatprep.subr.bf16.mxu0 %v12039_v61  ;;  %11542 = vmatpush3.bf16.msra.mxu1 %v12040_v44  ;;  %v6074_v57 = vld [vmem:[#allocation3 + $0x98] sm:$0xff]  ;;  %v15889_v44 = vld [vmem:[#allocation46_spill] sm:$0xff]  ;;  %v14636_v51 = vpop.f32.mrf.mxu0 }
 0x3e2   : > { %6012 = vst [vmem:[#allocation3 + $0xc9] sm:$0xff] %v5925_v26  ;;  %v5923_v11 = vmax.f32 %v5891_v20, 0.0  ;;  %v14600_v53 = vadd.f32 %v14407_v47, %v5857_v63  ;;  %v5855_v54 = vadd.f32 %v5776_v37, %v5549_v56  ;;  %11543 = vmatprep.subr.bf16.mxu1 %v12041_v6  ;;  %v4943_v22 = vadd.f32 %v15889_v44, %v15888_v19  ;;  %v15893_v56 = vld [vmem:[#allocation52_spill] sm:$0xff]  ;;  %v15894_v20 = vld [vmem:[#allocation75_spill] sm:$0xff]  ;;  %v15897_v25 = vld [vmem:[#allocation22_spill] sm:$0xff] }
 0x3e3   : > { %v5550_v13 = vadd.f32 %v14450_v36, %v5244_v46  ;;  %v5249_v60 = vadd.f32 %v15890_v17, %v4942_v39  ;;  %v11380_v10 = vpop.f32.mrf.mxu1  ;;  %v6072_v3 = vld [vmem:[#allocation3 + $0x80] sm:$0xff]  ;;  %v6165_v43 = vpack.c.bf16 %v5925_v26, %v5924_v42  ;;  %v14618_v7 = vpack.c.bf16 %v6074_v57, %v6073_v35  ;;  %v12045_v42 = vld [vmem:[%s15614_s5 + $0x80] sm:$0xff]   ;;  %v15898_v46 = vld [vmem:[#allocation55_spill] sm:$0xff] }
 0x3e4   : > { %6010 = vst [vmem:[#allocation3 + $0xb1] sm:$0xff] %v5923_v11  ;;  %v5928_v21 = vmax.f32 %v14600_v53, 0.0  ;;  %v14613_v59 = vadd.f32 %v14407_v47, %v5855_v54  ;;  %v5858_v34 = vadd.f32 %v11380_v10, %v5552_v15  ;;  %v14615_v33 = vpack.c.bf16 %v6072_v3, %v6071_v27  ;;  %11500 = vmatpush3.bf16.msra.mxu0 %v12039_v61  ;;  %v15891_v36 = vld [vmem:[#allocation74_spill] sm:$0xff]  ;;  %v15899_v15 = vld [vmem:[#allocation76_spill] sm:$0xff]  ;;  %v15902_v10 = vld [vmem:[#allocation77_spill] sm:$0xff] }
 0x3e5   : > { %v5247_v45 = vadd.f32 %v15891_v36, %v4940_v8  ;;  %v5779_v16 = vpop.f32.mrf.mxu1  ;;  %v6164_v52 = vpack.c.bf16 %v5923_v11, %v5922_v1  ;;  %11544 = vmatpush3.bf16.msra.mxu1 %v12041_v6  ;;  %11501 = vmatprep.subr.bf16.mxu0 %v12042_v49  ;;  %v5555_v62 = vadd.f32 %v14466_v58, %v5249_v60  ;;  %v12044_v1 = vld [vmem:[%s15614_s5 + $0xd0] sm:$0xff]   ;;  %v15896_v8 = vld [vmem:[#allocation19_spill] sm:$0xff] }
 0x3e6   : > { %6015 = vst [vmem:[#allocation3 + $0xf1] sm:$0xff] %v5928_v21  ;;  %v5926_v38 = vmax.f32 %v14613_v59, 0.0  ;;  %v5897_v41 = vadd.f32 %v14407_v47, %v5858_v34  ;;  %v5856_v61 = vadd.f32 %v5779_v16, %v5550_v13  ;;  %11466 = vmatmul.mubr.bf16.gmra.mxu1 %v14615_v33  ;;  %11545 = vmatprep.subr.bf16.mxu1 %v12043_v12  ;;  %v15892_v6 = vld [vmem:[#allocation50_spill] sm:$0xff]  ;;  %v15901_v13 = vld [vmem:[#allocation23_spill] sm:$0xff]  ;;  %v14662_v34 = vpop.f32.mrf.mxu0 }
 0x3e7   : > { %v4941_v4 = vadd.f32 %v15892_v6, %v4635_v18  ;;  %v4639_v26 = vadd.f32 %v15893_v56, %v14480_v32  ;;  %v5250_v58 = vadd.f32 %v15894_v20, %v4943_v22  ;;  %v11383_v63 = vpop.f32.mrf.mxu1  ;;  %11469 = vmatprep.mubr.bf16.mxu1 %v14618_v7  ;;  %11422 = vmatmul.mubr.bf16.gmra.mxu0 %v6164_v52  ;;  %v15895_v18 = vld [vmem:[#allocation51_spill] sm:$0xff]  ;;  %v15900_v22 = vld [vmem:[#allocation48_spill] sm:$0xff]  ;;  %v6077_v52 = vld [vmem:[#allocation3 + $0xc0] sm:$0xff] }
 0x3e8   : > { %v5553_v29 = vadd.f32 %v14486_v50, %v5247_v45  ;;  %6013 = vst [vmem:[#allocation3 + $0xd9] sm:$0xff] %v5926_v38  ;;  %v5929_v39 = vmax.f32 %v5897_v41, 0.0  ;;  %v5895_v23 = vadd.f32 %v14407_v47, %v5856_v61  ;;  %v5861_v24 = vadd.f32 %v11383_v63, %v5555_v62  ;;  %11425 = vmatprep.mubr.bf16.mxu0 %v6165_v43  ;;  %v14647_v50 = vld [vmem:[%s15614_s5 + $0x138] sm:$0xff]  }
 0x3e9   : > { %11502 = vmatpush3.bf16.msra.mxu0 %v12042_v49  ;;  %v4946_v32 = vadd.f32 %v15896_v8, %v15895_v18  ;;  %v4944_v37 = vadd.f32 %v15898_v46, %v15897_v25  ;;  %v5248_v11 = vadd.f32 %v15899_v15, %v4941_v4  ;;  %v5792_v53 = vpop.f32.mrf.mxu1  ;;  %11546 = vmatpush3.bf16.msra.mxu1 %v12043_v12  ;;  %v6078_v44 = vld [vmem:[#allocation3 + $0xc8] sm:$0xff]  ;;  %v12046_v12 = vld [vmem:[%s15614_s5 + $0xc8] sm:$0xff]   ;;  %v15908_v46 = vld [vmem:[#allocation56_spill] sm:$0xff] }
 0x3ea   : > { %11503 = vmatprep.subr.bf16.mxu0 %v12045_v42  ;;  %v5556_v54 = vadd.f32 %v14508_v55, %v5250_v58  ;;  %6016 = vst [vmem:[#allocation3 + $0xf9] sm:$0xff] %v5929_v39  ;;  %v14650_v49 = vmax.f32 %v5895_v23, 0.0  ;;  %v14653_v57 = vadd.f32 %v14407_v47, %v5861_v24  ;;  %v5859_v19 = vadd.f32 %v5792_v53, %v5553_v29  ;;  %v6075_v3 = vld [vmem:[#allocation3 + $0xa8] sm:$0xff]  ;;  %v15905_v58 = vld [vmem:[#allocation21_spill] sm:$0xff]  ;;  %v15906_v29 = vld [vmem:[#allocation80_spill] sm:$0xff]  ;;  %v5518_v24 = vpop.f32.mrf.mxu0 }
 0x3eb   : > { %11547 = vmatprep.subr.bf16.mxu1 %v12044_v1  ;;  %v4947_v17 = vadd.f32 %v15901_v13, %v15900_v22  ;;  %v5554_v60 = vadd.f32 %v14537_v9, %v5248_v11  ;;  %v5253_v55 = vadd.f32 %v15902_v10, %v4946_v32  ;;  %v11384_v27 = vpop.f32.mrf.mxu1  ;;  %v6076_v43 = vld [vmem:[#allocation3 + $0xb0] sm:$0xff]  ;;  %v6167_v59 = vpack.c.bf16 %v5929_v39, %v5928_v21  ;;  %v15903_v9 = vld [vmem:[#allocation79_spill] sm:$0xff]  ;;  %v15907_v25 = vld [vmem:[#allocation53_spill] sm:$0xff] }
 0x3ec   : > { %6014 = vst [vmem:[#allocation3 + $0xe1] sm:$0xff] %v14650_v49  ;;  %v5932_v35 = vmax.f32 %v14653_v57, 0.0  ;;  %v14667_v36 = vadd.f32 %v14407_v47, %v5859_v19  ;;  %v5862_v45 = vadd.f32 %v11384_v27, %v5556_v54  ;;  %v14669_v16 = vpack.c.bf16 %v6076_v43, %v6075_v3  ;;  %v15910_v15 = vld [vmem:[#allocation82_spill] sm:$0xff]  ;;  %v14699_v22 = vld [vmem:[%s15614_s5 + $0x178] sm:$0xff]   ;;  %v15911_v13 = vld [vmem:[#allocation20_spill] sm:$0xff] }
 0x3ed   : > { %11504 = vmatpush3.bf16.msra.mxu0 %v12045_v42  ;;  %v5251_v62 = vadd.f32 %v15903_v9, %v4944_v37  ;;  %v5795_v41 = vpop.f32.mrf.mxu1  ;;  %v14672_v61 = vpack.c.bf16 %v6078_v44, %v6077_v52  ;;  %v6166_v21 = vpack.c.bf16 %v14650_v49, %v5926_v38  ;;  %11548 = vmatpush3.bf16.msra.mxu1 %v12044_v1  ;;  %v12047_v42 = vld [vmem:[%s15614_s5 + $0xc0] sm:$0xff]  }
 0x3ee   : > { %11585 = vmatprep.subr.bf16.mxu0 %v14647_v50  ;;  %v5559_v6 = vadd.f32 %v14560_v48, %v5253_v55  ;;  %6019 = vst [vmem:[#allocation3 + $0x121] sm:$0xff] %v5932_v35  ;;  %v5930_v4 = vmax.f32 %v14667_v36, 0.0  ;;  %v5901_v56 = vadd.f32 %v14407_v47, %v5862_v45  ;;  %v5860_v20 = vadd.f32 %v5795_v41, %v5554_v60  ;;  %v15904_v38 = vld [vmem:[#allocation4_spill] sm:$0xff]  ;;  %v15914_v41 = vld [vmem:[#allocation54_spill] sm:$0xff] }
 0x3ef   : > { %11470 = vmatmul.mubr.bf16.gmra.mxu1 %v14669_v16  ;;  %11549 = vmatprep.subr.bf16.mxu1 %v12046_v12  ;;  %v4337_v1 = vadd.f32 %v15904_v38, %v14494_v40  ;;  %v4945_v63 = vadd.f32 %v15905_v58, %v4639_v26  ;;  %v5254_v48 = vadd.f32 %v15906_v29, %v4947_v17  ;;  %v11387_v39 = vpop.f32.mrf.mxu1  ;;  %v15909_v37 = vld [vmem:[#allocation28_spill] sm:$0xff]  ;;  %v15912_v17 = vld [vmem:[#allocation58_spill] sm:$0xff]  ;;  %v6079_v27 = vld [vmem:[#allocation3 + $0xd8] sm:$0xff] }
 0x3f0   : > { %11473 = vmatprep.mubr.bf16.mxu1 %v14672_v61  ;;  %11426 = vmatmul.mubr.bf16.gmra.mxu0 %v6166_v21  ;;  %v5557_v23 = vadd.f32 %v14587_v30, %v5251_v62  ;;  %6017 = vst [vmem:[#allocation3 + $0x109] sm:$0xff] %v5930_v4  ;;  %v5933_v18 = vmax.f32 %v5901_v56, 0.0  ;;  %v5899_v8 = vadd.f32 %v14407_v47, %v5860_v20  ;;  %v6081_v62 = vld [vmem:[#allocation3 + $0xf0] sm:$0xff]  ;;  %v15915_v21 = vld [vmem:[#allocation59_spill] sm:$0xff]  ;;  %v15916_v56 = vld [vmem:[#allocation85_spill] sm:$0xff] }
 0x3f1   : > { %v5865_v32 = vadd.f32 %v11387_v39, %v5559_v6  ;;  %11429 = vmatprep.mubr.bf16.mxu0 %v6167_v59  ;;  %v4950_v40 = vadd.f32 %v15908_v46, %v15907_v25  ;;  %v4643_v26 = vadd.f32 %v15909_v37, %v4337_v1  ;;  %v5252_v11 = vadd.f32 %v15910_v15, %v4945_v63  ;;  %v5808_v53 = vpop.f32.mrf.mxu1  ;;  %v6082_v44 = vld [vmem:[#allocation3 + $0xf8] sm:$0xff]  ;;  %v11344_v59 = vpop.f32.mrf.mxu0 }
 0x3f2   : > { %11550 = vmatpush3.bf16.msra.mxu1 %v12046_v12  ;;  %v5560_v54 = vadd.f32 %v14609_v5, %v5254_v48  ;;  %6020 = vst [vmem:[#allocation3 + $0x129] sm:$0xff] %v5933_v18  ;;  %v5931_v30 = vmax.f32 %v5899_v8, 0.0  ;;  %v5863_v19 = vadd.f32 %v5808_v53, %v5557_v23  ;;  %v4948_v60 = vadd.f32 %v15912_v17, %v15911_v13  ;;  %v15913_v12 = vld [vmem:[#allocation83_spill] sm:$0xff]  ;;  %v15917_v48 = vld [vmem:[#allocation24_spill] sm:$0xff]  ;;  %v15918_v23 = vld [vmem:[#allocation86_spill] sm:$0xff] }
 0x3f3   : > { %v5904_v57 = vadd.f32 %v14407_v47, %v5865_v32  ;;  %11551 = vmatprep.subr.bf16.mxu1 %v12047_v42  ;;  %v5558_v10 = vadd.f32 %v14636_v51, %v5252_v11  ;;  %v5257_v55 = vadd.f32 %v15913_v12, %v4950_v40  ;;  %v11388_v5 = vpop.f32.mrf.mxu1  ;;  %v6080_v3 = vld [vmem:[#allocation3 + $0xe0] sm:$0xff]  ;;  %v6169_v43 = vpack.c.bf16 %v5933_v18, %v5932_v35 }
 0x3f4   : > { %6018 = vst [vmem:[#allocation3 + $0x111] sm:$0xff] %v5931_v30  ;;  %v5902_v45 = vadd.f32 %v14407_v47, %v5863_v19  ;;  %v5866_v52 = vadd.f32 %v11388_v5, %v5560_v54  ;;  %v14706_v9 = vpack.c.bf16 %v6080_v3, %v6079_v27  ;;  %v4951_v6 = vadd.f32 %v15915_v21, %v15914_v41 }
 0x3f5   : > { %v5936_v36 = vmax.f32 %v5904_v57, 0.0  ;;  %v5255_v51 = vadd.f32 %v15916_v56, %v4948_v60  ;;  %v5811_v20 = vpop.f32.mrf.mxu1  ;;  %v14711_v38 = vpack.c.bf16 %v6082_v44, %v6081_v62  ;;  %v14713_v1 = vpack.c.bf16 %v5931_v30, %v5930_v4  ;;  %v6085_v60 = vld [vmem:[#allocation3 + $0x120] sm:$0xff] }
 0x3f6   : > { %11552 = vmatpush3.bf16.msra.mxu1 %v12047_v42  ;;  %v5563_v35 = vadd.f32 %v14662_v34, %v5257_v55  ;;  %v5934_v58 = vmax.f32 %v5902_v45, 0.0  ;;  %v5905_v63 = vadd.f32 %v14407_v47, %v5866_v52  ;;  %v5864_v29 = vadd.f32 %v5811_v20, %v5558_v10  ;;  %v5521_v34 = vpop.f32.mrf.mxu0  ;;  %v6609_v45 = vld [vmem:[#allocation3 + $0xa] sm:$0xff] }
 0x3f7   : > { %6023 = vst [vmem:[#allocation3 + $0x151] sm:$0xff] %v5936_v36  ;;  %11474 = vmatmul.mubr.bf16.gmra.mxu1 %v14706_v9  ;;  %11633 = vmatprep.subr.bf16.mxu1 %v14699_v22  ;;  %v4949_v39 = vadd.f32 %v15917_v48, %v4643_v26  ;;  %v5258_v18 = vadd.f32 %v15918_v23, %v4951_v6  ;;  %v11391_v8 = vpop.f32.mrf.mxu1  ;;  %v6083_v30 = vld [vmem:[#allocation3 + $0x108] sm:$0xff]  ;;  %v6613_v23 = vld [vmem:[#allocation3 + $0x3a] sm:$0xff] }
 0x3f8   : > { %11477 = vmatprep.mubr.bf16.mxu1 %v14711_v38  ;;  %11430 = vmatmul.mubr.bf16.gmra.mxu0 %v14713_v1  ;;  %v5561_v4 = vadd.f32 %v5518_v24, %v5255_v51  ;;  %6021 = vst [vmem:[#allocation3 + $0x139] sm:$0xff] %v5934_v58  ;;  %v14723_v42 = vmax.f32 %v5905_v63, 0.0  ;;  %v5903_v32 = vadd.f32 %v14407_v47, %v5864_v29  ;;  %v6611_v63 = vld [vmem:[#allocation3 + $0x22] sm:$0xff]  ;;  %v6612_v29 = vld [vmem:[#allocation3 + $0x32] sm:$0xff] }
 0x3f9   : > { %v5869_v25 = vadd.f32 %v11391_v8, %v5563_v35  ;;  %11433 = vmatprep.mubr.bf16.mxu0 %v6169_v43  ;;  %v5256_v46 = vadd.f32 %v14397_v14, %v4949_v39  ;;  %v5824_v40 = vpop.f32.mrf.mxu1  ;;  %v5564_v37 = vadd.f32 %v11344_v59, %v5258_v18  ;;  %v6086_v53 = vld [vmem:[#allocation3 + $0x128] sm:$0xff] }
 0x3fa   : > { %6024 = vst [vmem:[#allocation3 + $0x159] sm:$0xff] %v14723_v42  ;;  %v5935_v26 = vmax.f32 %v5903_v32, 0.0  ;;  %v5867_v11 = vadd.f32 %v5824_v40, %v5561_v4  ;;  %v6171_v19 = vpack.c.bf16 %v14723_v42, %v5936_v36  ;;  %v14733_v12 = vpack.c.bf16 %v6086_v53, %v6085_v60  ;;  %v6608_v36 = vld [vmem:[#allocation3 + $0x2] sm:$0xff]  ;;  %v12050_v32 = vld [vmem:[%s15614_s5 + $0x128] sm:$0xff]  }
 0x3fb   : > { %v5908_v15 = vadd.f32 %v14407_v47, %v5869_v25  ;;  %v5562_v24 = vadd.f32 %v5521_v34, %v5256_v46  ;;  %v11392_v54 = vpop.f32.mrf.mxu1  ;;  %v6084_v57 = vld [vmem:[#allocation3 + $0x110] sm:$0xff]  ;;  %v6640_v35 = vpack.c.bf16 %v6609_v45, %v6608_v36  ;;  %v12049_v4 = vld [vmem:[%s15614_s5 + $0x130] sm:$0xff]   ;;  %v14761_v34 = vpack.c.bf16 %v6613_v23, %v6612_v29  ;;  %v12062_v36 = vld [vmem:[%s15614_s5 + $0x148] sm:$0xff]  }
 0x3fc   : > { %6022 = vst [vmem:[#allocation3 + $0x141] sm:$0xff] %v5935_v26  ;;  %v5906_v13 = vadd.f32 %v14407_v47, %v5867_v11  ;;  %v5870_v14 = vadd.f32 %v11392_v54, %v5564_v37  ;;  %v14731_v17 = vpack.c.bf16 %v6084_v57, %v6083_v30  ;;  %v14735_v55 = vpack.c.bf16 %v5935_v26, %v5934_v58  ;;  %v6614_v25 = vld [vmem:[#allocation3 + $0x4a] sm:$0xff]  ;;  %v6615_v46 = vld [vmem:[#allocation3 + $0x52] sm:$0xff]  ;;  %v6616_v40 = vld [vmem:[#allocation3 + $0x62] sm:$0xff] }
 0x3fd   : > { %v5940_v44 = vmax.f32 %v5908_v15, 0.0  ;;  %v5827_v10 = vpop.f32.mrf.mxu1  ;;  %v6617_v37 = vld [vmem:[#allocation3 + $0x6a] sm:$0xff]  ;;  %v14770_v26 = vpack.c.bf16 %v6615_v46, %v6614_v25  ;;  %v12054_v15 = vld [vmem:[%s15614_s5 + $0x170] sm:$0xff]  }
 0x3fe   : > { %v5938_v5 = vmax.f32 %v5906_v13, 0.0  ;;  %v5909_v27 = vadd.f32 %v14407_v47, %v5870_v14  ;;  %v5868_v3 = vadd.f32 %v5827_v10, %v5562_v24  ;;  %v6089_v51 = vld [vmem:[#allocation3 + $0x150] sm:$0xff]  ;;  %v12052_v11 = vld [vmem:[%s15614_s5 + $0x118] sm:$0xff]   ;;  %v12056_v24 = vld [vmem:[%s15614_s5 + $0x168] sm:$0xff]  }
 0x3ff   : > { %6027 = vst [vmem:[#allocation3 + $0x181] sm:$0xff] %v5940_v44  ;;  %11478 = vmatmul.mubr.bf16.gmra.mxu1 %v14731_v17  ;;  %v6087_v21 = vld [vmem:[#allocation3 + $0x138] sm:$0xff]  ;;  %v6619_v53 = vld [vmem:[#allocation3 + $0x82] sm:$0xff] }
 0x400   : > { %11481 = vmatprep.mubr.bf16.mxu1 %v14733_v12  ;;  %11434 = vmatmul.mubr.bf16.gmra.mxu0 %v14735_v55  ;;  %6025 = vst [vmem:[#allocation3 + $0x169] sm:$0xff] %v5938_v5  ;;  %v5941_v43 = vmax.f32 %v5909_v27, 0.0  ;;  %v5907_v59 = vadd.f32 %v14407_v47, %v5868_v3  ;;  %v6610_v47 = vld [vmem:[#allocation3 + $0x1a] sm:$0xff]  ;;  %v6623_v13 = vld [vmem:[#allocation3 + $0xb2] sm:$0xff]  ;;  %v12059_v14 = vld [vmem:[%s15614_s5 + $0x158] sm:$0xff]  }
 0x401   : > { %11437 = vmatprep.mubr.bf16.mxu0 %v6171_v19  ;;  %v6090_v62 = vld [vmem:[#allocation3 + $0x158] sm:$0xff]  ;;  %v14755_v8 = vpack.c.bf16 %v6611_v63, %v6610_v47  ;;  %v12055_v57 = vld [vmem:[%s15614_s5 + $0x110] sm:$0xff]   ;;  %v12057_v19 = vld [vmem:[%s15614_s5 + $0x160] sm:$0xff]  }
 0x402   : > { %6028 = vst [vmem:[#allocation3 + $0x189] sm:$0xff] %v5941_v43  ;;  %v5939_v52 = vmax.f32 %v5907_v59, 0.0  ;;  %v14742_v41 = vpack.c.bf16 %v5941_v43, %v5940_v44  ;;  %v14748_v58 = vpack.c.bf16 %v6090_v62, %v6089_v51  ;;  %v6621_v54 = vld [vmem:[#allocation3 + $0x9a] sm:$0xff]  ;;  %v6622_v44 = vld [vmem:[#allocation3 + $0xaa] sm:$0xff]  ;;  %v6624_v60 = vld [vmem:[#allocation3 + $0xc2] sm:$0xff] }
 0x403   : > { %v6088_v6 = vld [vmem:[#allocation3 + $0x140] sm:$0xff]  ;;  %v14811_v10 = vpack.c.bf16 %v6623_v13, %v6622_v44  ;;  %v6631_v51 = vld [vmem:[#allocation3 + $0x112] sm:$0xff]  ;;  %v6633_v47 = vld [vmem:[#allocation3 + $0x12a] sm:$0xff] }
 0x404   : > { %6026 = vst [vmem:[#allocation3 + $0x171] sm:$0xff] %v5939_v52  ;;  %v14744_v56 = vpack.c.bf16 %v6088_v6, %v6087_v21  ;;  %v14746_v20 = vpack.c.bf16 %v5939_v52, %v5938_v5  ;;  %v12061_v5 = vld [vmem:[%s15614_s5 + $0x100] sm:$0xff]   ;;  %v12060_v3 = vld [vmem:[%s15614_s5 + $0x150] sm:$0xff]  }
 0x405   : > { %v6626_v43 = vld [vmem:[#allocation3 + $0xda] sm:$0xff]  ;;  %v6627_v59 = vld [vmem:[#allocation3 + $0xe2] sm:$0xff]  ;;  %v12063_v21 = vld [vmem:[%s15614_s5 + $0x140] sm:$0xff]  }
 0x406   : > { %v6629_v45 = vld [vmem:[#allocation3 + $0xfa] sm:$0xff]  ;;  %v14833_v52 = vpack.c.bf16 %v6627_v59, %v6626_v43  ;;  %v6630_v6 = vld [vmem:[#allocation3 + $0x10a] sm:$0xff] }
 0x407   : > { %11482 = vmatmul.mubr.bf16.gmra.mxu1 %v14744_v56  ;;  %v6091_v48 = vld [vmem:[#allocation3 + $0x168] sm:$0xff]  ;;  %v14850_v63 = vpack.c.bf16 %v6631_v51, %v6630_v6  ;;  %v6634_v29 = vld [vmem:[#allocation3 + $0x13a] sm:$0xff]  ;;  %v12077_v51 = vld [vmem:[%s15614_s5 + $0x180] sm:$0xff]  }
 0x408   : > { %11485 = vmatprep.mubr.bf16.mxu1 %v14748_v58  ;;  %11438 = vmatmul.mubr.bf16.gmra.mxu0 %v14746_v20  ;;  %v6637_v23 = vld [vmem:[#allocation3 + $0x15a] sm:$0xff] }
 0x409   : > { %11505 = vmatprep.mubr.bf16.mxu0 %v6640_v35  ;;  %v6632_v35 = vld [vmem:[#allocation3 + $0x122] sm:$0xff]  ;;  %v7228_v44 = vld [vmem:[#allocation3 + $0x79] sm:$0xff] }
 0x40a   : > { %v7221_v25 = vld [vmem:[#allocation3 + $0x21] sm:$0xff] }
 0x40b   : > { %v6092_v39 = vld [vmem:[#allocation3 + $0x170] sm:$0xff]  ;;  %v12071_v43 = vld [vmem:[%s15614_s5 + $0x190] sm:$0xff]  }
 0x40c   : > { %v14753_v18 = vpack.c.bf16 %v6092_v39, %v6091_v48  ;;  %v6635_v48 = vld [vmem:[#allocation3 + $0x142] sm:$0xff]  ;;  %v6636_v39 = vld [vmem:[#allocation3 + $0x152] sm:$0xff] }
 0x40f   : > { %11486 = vmatmul.mubr.bf16.gmra.mxu1 %v14753_v18 }
 0x410   : > { %11553 = vmatprep.mubr.bf16.mxu1 %v14514_v28  ;;  %11506 = vmatmul.mubr.bf16.vlgmr.msra.gmra.mxu0 %v14755_v8  ;;  %v12051_v28 = vld [vmem:[%s15614_s5 + $0x120] sm:$0xff]  }
 0x411   : > { %11509 = vmatprep.mubr.bf16.mxu0 %v14761_v34  ;;  %11586 = vmatpush3.bf16.msra.mxu0 %v14647_v50  ;;  %v14776_v50 = vpack.c.bf16 %v6617_v37, %v6616_v40  ;;  %v7220_v40 = vld [vmem:[#allocation3 + $0x19] sm:$0xff] }
 0x412   : > { %11587 = vmatprep.subr.bf16.mxu0 %v12049_v4  ;;  %v7252_v37 = vpack.c.bf16 %v7221_v25, %v7220_v40  ;;  %v7557_v25 = vld [vmem:[#allocation3 + $0x18a] sm:$0xff] }
 0x413   : > { %v7838_v40 = vld [vmem:[#allocation3 + $0x68] sm:$0xff] }
 0x415   : > { %11588 = vmatpush3.bf16.msra.mxu0 %v12049_v4  ;;  %v14859_v4 = vpack.c.bf16 %v6635_v48, %v6634_v29  ;;  %v7238_v29 = vld [vmem:[#allocation3 + $0xf1] sm:$0xff] }
 0x416   : > { %11589 = vmatprep.subr.bf16.mxu0 %v12050_v32 }
 0x417   : > { %11554 = vmatmul.mubr.bf16.vlgmr.msra.gmra.mxu1 %v14519_v2  ;;  %v6618_v2 = vld [vmem:[#allocation3 + $0x7a] sm:$0xff] }
 0x418   : > { %11557 = vmatprep.mubr.bf16.mxu1 %v14566_v31  ;;  %11510 = vmatmul.mubr.bf16.gmra.mxu0 %v14770_v26  ;;  %v6620_v31 = vld [vmem:[#allocation3 + $0x92] sm:$0xff]  ;;  %v14791_v30 = vpack.c.bf16 %v6619_v53, %v6618_v2 }
 0x419   : > { %11513 = vmatprep.mubr.bf16.mxu0 %v14776_v50  ;;  %11590 = vmatpush3.bf16.msra.mxu0 %v12050_v32  ;;  %v14862_v32 = vpack.c.bf16 %v6637_v23, %v6636_v39  ;;  %v7222_v2 = vld [vmem:[#allocation3 + $0x31] sm:$0xff]  ;;  %v7243_v39 = vld [vmem:[#allocation3 + $0x129] sm:$0xff]  ;;  %v7242_v23 = vld [vmem:[#allocation3 + $0x121] sm:$0xff] }
 0x41a   : > { %11591 = vmatprep.subr.bf16.mxu0 %v12051_v28  ;;  %11634 = vmatpush3.bf16.msra.mxu1 %v14699_v22  ;;  %v14797_v22 = vpack.c.bf16 %v6621_v54, %v6620_v31  ;;  %v12066_v31 = vld [vmem:[%s15614_s5 + $0x1a8] sm:$0xff]   ;;  %v7227_v54 = vld [vmem:[#allocation3 + $0x69] sm:$0xff] }
 0x41b   : > { %11635 = vmatprep.subr.bf16.mxu1 %v12054_v15 }
 0x41d   : > { %11592 = vmatpush3.bf16.msra.mxu0 %v12051_v28  ;;  %v6944_v28 = vld [vmem:[#allocation3 + $0x180] sm:$0xff] }
 0x41e   : > { %11593 = vmatprep.subr.bf16.mxu0 %v12052_v11  ;;  %11636 = vmatpush3.bf16.msra.mxu1 %v12054_v15  ;;  %v7225_v15 = vld [vmem:[#allocation3 + $0x51] sm:$0xff] }
 0x41f   : > { %11558 = vmatmul.mubr.bf16.gmra.mxu1 %v14569_v0  ;;  %11637 = vmatprep.subr.bf16.mxu1 %v12056_v24  ;;  %v12058_v0 = vld [vmem:[%s15614_s5 + $0x108] sm:$0xff]  }
 0x420   : > { %11561 = vmatprep.mubr.bf16.mxu1 %v14615_v33  ;;  %11514 = vmatmul.mubr.bf16.gmra.mxu0 %v14791_v30  ;;  %v6625_v33 = vld [vmem:[#allocation3 + $0xca] sm:$0xff] }
 0x421   : > { %11517 = vmatprep.mubr.bf16.mxu0 %v14797_v22  ;;  %11594 = vmatpush3.bf16.msra.mxu0 %v12052_v11  ;;  %v14817_v27 = vpack.c.bf16 %v6625_v33, %v6624_v60  ;;  %v12068_v60 = vld [vmem:[%s15614_s5 + $0x198] sm:$0xff]   ;;  %v12072_v33 = vld [vmem:[%s15614_s5 + $0x1e8] sm:$0xff]  }
 0x422   : > { %11595 = vmatprep.subr.bf16.mxu0 %v12055_v57  ;;  %11638 = vmatpush3.bf16.msra.mxu1 %v12056_v24  ;;  %v7224_v24 = vld [vmem:[#allocation3 + $0x49] sm:$0xff] }
 0x423   : > { %11639 = vmatprep.subr.bf16.mxu1 %v12057_v19 }
 0x425   : > { %11596 = vmatpush3.bf16.msra.mxu0 %v12055_v57  ;;  %v7229_v57 = vld [vmem:[#allocation3 + $0x81] sm:$0xff] }
 0x426   : > { %11640 = vmatpush3.bf16.msra.mxu1 %v12057_v19  ;;  %11597 = vmatprep.subr.bf16.mxu0 %v12058_v0  ;;  %v7226_v19 = vld [vmem:[#allocation3 + $0x61] sm:$0xff]  ;;  %v14895_v13 = vpack.c.bf16 %v7229_v57, %v7228_v44 }
 0x427   : > { %11562 = vmatmul.mubr.bf16.gmra.mxu1 %v14618_v7  ;;  %11641 = vmatprep.subr.bf16.mxu1 %v12059_v14  ;;  %v14828_v7 = vld [vmem:[%s15614_s5 + $0x1b8] sm:$0xff]  }
 0x428   : > { %11565 = vmatprep.mubr.bf16.mxu1 %v14669_v16  ;;  %11518 = vmatmul.mubr.bf16.gmra.mxu0 %v14811_v10  ;;  %v6628_v16 = vld [vmem:[#allocation3 + $0xf2] sm:$0xff] }
 0x429   : > { %11521 = vmatprep.mubr.bf16.mxu0 %v14817_v27  ;;  %11598 = vmatpush3.bf16.msra.mxu0 %v12058_v0  ;;  %v14837_v62 = vpack.c.bf16 %v6629_v45, %v6628_v16  ;;  %v14889_v0 = vpack.c.bf16 %v7227_v54, %v7226_v19  ;;  %v7235_v16 = vld [vmem:[#allocation3 + $0xc9] sm:$0xff] }
 0x42a   : > { %11642 = vmatpush3.bf16.msra.mxu1 %v12059_v14  ;;  %11599 = vmatprep.subr.bf16.mxu0 %v12061_v5  ;;  %v12070_v14 = vld [vmem:[%s15614_s5 + $0x1f0] sm:$0xff]   ;;  %v12075_v45 = vld [vmem:[%s15614_s5 + $0x1d8] sm:$0xff]   ;;  %v7841_v54 = vld [vmem:[#allocation3 + $0x90] sm:$0xff] }
 0x42b   : > { %11643 = vmatprep.subr.bf16.mxu1 %v12060_v3 }
 0x42d   : > { %11600 = vmatpush3.bf16.msra.mxu0 %v12061_v5  ;;  %v7233_v5 = vld [vmem:[#allocation3 + $0xb1] sm:$0xff] }
 0x42e   : > { %11644 = vmatpush3.bf16.msra.mxu1 %v12060_v3  ;;  %11681 = vmatprep.subr.bf16.mxu0 %v14828_v7 }
 0x42f   : > { %11566 = vmatmul.mubr.bf16.gmra.mxu1 %v14672_v61  ;;  %11645 = vmatprep.subr.bf16.mxu1 %v12062_v36  ;;  %v14848_v61 = vld [vmem:[%s15614_s5 + $0x1f8] sm:$0xff]  }
 0x430   : > { %11569 = vmatprep.mubr.bf16.mxu1 %v14706_v9  ;;  %11522 = vmatmul.mubr.bf16.gmra.mxu0 %v14833_v52  ;;  %v14853_v9 = vpack.c.bf16 %v6633_v47, %v6632_v35  ;;  %v12076_v35 = vld [vmem:[%s15614_s5 + $0x1d0] sm:$0xff]  }
 0x431   : > { %11525 = vmatprep.mubr.bf16.mxu0 %v14837_v62  ;;  %v7239_v47 = vld [vmem:[#allocation3 + $0xf9] sm:$0xff] }
 0x432   : > { %11646 = vmatpush3.bf16.msra.mxu1 %v12062_v36  ;;  %v12073_v36 = vld [vmem:[%s15614_s5 + $0x1e0] sm:$0xff]   ;;  %v14951_v48 = vpack.c.bf16 %v7239_v47, %v7238_v29 }
 0x433   : > { %11647 = vmatprep.subr.bf16.mxu1 %v12063_v21 }
 0x436   : > { %11648 = vmatpush3.bf16.msra.mxu1 %v12063_v21  ;;  %v14930_v21 = vld [vmem:[#allocation3 + $0xd9] sm:$0xff] }
 0x437   : > { %11570 = vmatmul.mubr.bf16.gmra.mxu1 %v14711_v38  ;;  %11729 = vmatprep.subr.bf16.mxu1 %v14848_v61  ;;  %v6638_v38 = vld [vmem:[#allocation3 + $0x16a] sm:$0xff] }
 0x438   : > { %11573 = vmatprep.mubr.bf16.mxu1 %v14731_v17  ;;  %11526 = vmatmul.mubr.bf16.gmra.mxu0 %v14850_v63  ;;  %v6639_v17 = vld [vmem:[#allocation3 + $0x172] sm:$0xff] }
 0x439   : > { %11529 = vmatprep.mubr.bf16.mxu0 %v14853_v9  ;;  %v14867_v46 = vpack.c.bf16 %v6639_v17, %v6638_v38  ;;  %v14960_v38 = vpack.c.bf16 %v7243_v39, %v7242_v23  ;;  %v7833_v17 = vld [vmem:[#allocation3 + $0x30] sm:$0xff]  ;;  %v12086_v39 = vld [vmem:[%s15614_s5 + $0x208] sm:$0xff]  }
 0x43f   : > { %11574 = vmatmul.mubr.bf16.gmra.mxu1 %v14733_v12  ;;  %v6945_v12 = vld [vmem:[#allocation3 + $0x188] sm:$0xff] }
 0x440   : > { %11577 = vmatprep.mubr.bf16.mxu1 %v14744_v56  ;;  %11530 = vmatmul.mubr.bf16.gmra.mxu0 %v14859_v4  ;;  %v7223_v56 = vld [vmem:[#allocation3 + $0x39] sm:$0xff]  ;;  %v14872_v11 = vpack.c.bf16 %v6945_v12, %v6944_v28 }
 0x441   : > { %11533 = vmatprep.mubr.bf16.mxu0 %v14862_v32  ;;  %v14874_v53 = vpack.c.bf16 %v7223_v56, %v7222_v2  ;;  %v7837_v12 = vld [vmem:[#allocation3 + $0x60] sm:$0xff]  ;;  %v12082_v56 = vld [vmem:[%s15614_s5 + $0x228] sm:$0xff]  }
 0x442   : > { %v7842_v2 = vld [vmem:[#allocation3 + $0x98] sm:$0xff] }
 0x443   : > { %v7869_v19 = vpack.c.bf16 %v7842_v2, %v7841_v54  ;;  %v7852_v2 = vld [vmem:[#allocation3 + $0x110] sm:$0xff] }
 0x447   : > { %11578 = vmatmul.mubr.bf16.gmra.mxu1 %v14748_v58  ;;  %v12065_v58 = vld [vmem:[%s15614_s5 + $0x1b0] sm:$0xff]  }
 0x448   : > { %11581 = vmatprep.mubr.bf16.mxu1 %v14753_v18  ;;  %11534 = vmatmul.mubr.bf16.gmra.mxu0 %v14867_v46  ;;  %v14880_v18 = vpack.c.bf16 %v7225_v15, %v7224_v24  ;;  %v7840_v15 = vld [vmem:[#allocation3 + $0x80] sm:$0xff] }
 0x449   : > { %11601 = vmatprep.mubr.bf16.mxu0 %v7252_v37 }
 0x44f   : > { %11582 = vmatmul.mubr.bf16.gmra.mxu1 %v14872_v11 }
 0x450   : > { %11649 = vmatprep.mubr.bf16.mxu1 %v14755_v8  ;;  %11602 = vmatmul.mubr.bf16.vlgmr.msra.gmra.mxu0 %v14874_v53  ;;  %v12067_v8 = vld [vmem:[%s15614_s5 + $0x1a0] sm:$0xff]  }
 0x451   : > { %11605 = vmatprep.mubr.bf16.mxu0 %v14880_v18  ;;  %11682 = vmatpush3.bf16.msra.mxu0 %v14828_v7  ;;  %v7232_v7 = vld [vmem:[#allocation3 + $0xa9] sm:$0xff] }
 0x452   : > { %11683 = vmatprep.subr.bf16.mxu0 %v12065_v58  ;;  %v14916_v59 = vpack.c.bf16 %v7233_v5, %v7232_v7 }
 0x455   : > { %11684 = vmatpush3.bf16.msra.mxu0 %v12065_v58  ;;  %v7839_v58 = vld [vmem:[#allocation3 + $0x78] sm:$0xff] }
 0x456   : > { %11685 = vmatprep.subr.bf16.mxu0 %v12066_v31 }
 0x457   : > { %11650 = vmatmul.mubr.bf16.vlgmr.msra.gmra.mxu1 %v14761_v34  ;;  %v7231_v34 = vld [vmem:[#allocation3 + $0x99] sm:$0xff] }
 0x458   : > { %11653 = vmatprep.mubr.bf16.mxu1 %v14770_v26  ;;  %11606 = vmatmul.mubr.bf16.gmra.mxu0 %v14889_v0  ;;  %v7230_v26 = vld [vmem:[#allocation3 + $0x91] sm:$0xff] }
 0x459   : > { %11609 = vmatprep.mubr.bf16.mxu0 %v14895_v13  ;;  %11686 = vmatpush3.bf16.msra.mxu0 %v12066_v31  ;;  %v14910_v3 = vpack.c.bf16 %v7231_v34, %v7230_v26  ;;  %v7868_v31 = vpack.c.bf16 %v7840_v15, %v7839_v58  ;;  %v7854_v58 = vld [vmem:[#allocation3 + $0x128] sm:$0xff] }
 0x45a   : > { %11687 = vmatprep.subr.bf16.mxu0 %v12067_v8  ;;  %11730 = vmatpush3.bf16.msra.mxu1 %v14848_v61  ;;  %v7260_v61 = vpack.c.bf16 %v14650_v49, %v14930_v21  ;;  %v12078_v49 = vld [vmem:[%s15614_s5 + $0x1c8] sm:$0xff]  }
 0x45b   : > { %11731 = vmatprep.subr.bf16.mxu1 %v12070_v14 }
 0x45d   : > { %11688 = vmatpush3.bf16.msra.mxu0 %v12067_v8 }
 0x45e   : > { %11689 = vmatprep.subr.bf16.mxu0 %v12068_v60  ;;  %11732 = vmatpush3.bf16.msra.mxu1 %v12070_v14 }
 0x45f   : > { %11654 = vmatmul.mubr.bf16.gmra.mxu1 %v14776_v50  ;;  %11733 = vmatprep.subr.bf16.mxu1 %v12072_v33  ;;  %v12074_v50 = vld [vmem:[%s15614_s5 + $0x188] sm:$0xff]  }
 0x460   : > { %11657 = vmatprep.mubr.bf16.mxu1 %v14791_v30  ;;  %11610 = vmatmul.mubr.bf16.gmra.mxu0 %v14910_v3  ;;  %v7234_v30 = vld [vmem:[#allocation3 + $0xc1] sm:$0xff] }
 0x461   : > { %11613 = vmatprep.mubr.bf16.mxu0 %v14916_v59  ;;  %11690 = vmatpush3.bf16.msra.mxu0 %v12068_v60  ;;  %v14932_v6 = vpack.c.bf16 %v7235_v16, %v7234_v30  ;;  %v7845_v30 = vld [vmem:[#allocation3 + $0xc0] sm:$0xff] }
 0x462   : > { %11691 = vmatprep.subr.bf16.mxu0 %v12071_v43  ;;  %11734 = vmatpush3.bf16.msra.mxu1 %v12072_v33  ;;  %v12084_v33 = vld [vmem:[%s15614_s5 + $0x218] sm:$0xff]  }
 0x463   : > { %11735 = vmatprep.subr.bf16.mxu1 %v12073_v36 }
 0x465   : > { %11692 = vmatpush3.bf16.msra.mxu0 %v12071_v43  ;;  %v7846_v43 = vld [vmem:[#allocation3 + $0xc8] sm:$0xff] }
 0x466   : > { %11736 = vmatpush3.bf16.msra.mxu1 %v12073_v36  ;;  %11693 = vmatprep.subr.bf16.mxu0 %v12074_v50  ;;  %v7843_v36 = vld [vmem:[#allocation3 + $0xa8] sm:$0xff] }
 0x467   : > { %11658 = vmatmul.mubr.bf16.gmra.mxu1 %v14797_v22  ;;  %11737 = vmatprep.subr.bf16.mxu1 %v12075_v45  ;;  %v12080_v22 = vld [vmem:[%s15614_s5 + $0x238] sm:$0xff]  }
 0x468   : > { %11661 = vmatprep.mubr.bf16.mxu1 %v14811_v10  ;;  %11614 = vmatmul.mubr.bf16.gmra.mxu0 %v14932_v6  ;;  %v12079_v10 = vld [vmem:[%s15614_s5 + $0x1c0] sm:$0xff]  }
 0x469   : > { %11617 = vmatprep.mubr.bf16.mxu0 %v7260_v61  ;;  %11694 = vmatpush3.bf16.msra.mxu0 %v12074_v50 }
 0x46a   : > { %11738 = vmatpush3.bf16.msra.mxu1 %v12075_v45  ;;  %11695 = vmatprep.subr.bf16.mxu0 %v12077_v51 }
 0x46b   : > { %11739 = vmatprep.subr.bf16.mxu1 %v12076_v35 }
 0x46d   : > { %11696 = vmatpush3.bf16.msra.mxu0 %v12077_v51  ;;  %v12085_v51 = vld [vmem:[%s15614_s5 + $0x210] sm:$0xff]  }
 0x46e   : > { %11740 = vmatpush3.bf16.msra.mxu1 %v12076_v35  ;;  %11777 = vmatprep.subr.bf16.mxu0 %v12080_v22  ;;  %v7871_v35 = vpack.c.bf16 %v7846_v43, %v7845_v30 }
 0x46f   : > { %11662 = vmatmul.mubr.bf16.gmra.mxu1 %v14817_v27  ;;  %11741 = vmatprep.subr.bf16.mxu1 %v12078_v49  ;;  %v14963_v27 = vld [vmem:[#allocation2] sm:$0xff] }
 0x470   : > { %11665 = vmatprep.mubr.bf16.mxu1 %v14833_v52  ;;  %11618 = vmatmul.mubr.bf16.gmra.mxu0 %v14951_v48 }
 0x471   : > { %11621 = vmatprep.mubr.bf16.mxu0 %v14713_v1  ;;  %v14969_v1 = vld [vmem:[#allocation3 + $0x151] sm:$0xff] }
 0x472   : > { %11742 = vmatpush3.bf16.msra.mxu1 %v12078_v49  ;;  %v7265_v52 = vpack.c.bf16 %v14723_v42, %v14969_v1  ;;  %v7836_v42 = vld [vmem:[#allocation3 + $0x50] sm:$0xff] }
 0x473   : > { %11743 = vmatprep.subr.bf16.mxu1 %v12079_v10 }
 0x476   : > { %11744 = vmatpush3.bf16.msra.mxu1 %v12079_v10 }
 0x477   : > { %11666 = vmatmul.mubr.bf16.gmra.mxu1 %v14837_v62  ;;  %11825 = vmatprep.subr.bf16.mxu1 %v14963_v27  ;;  %v7834_v62 = vld [vmem:[#allocation3 + $0x38] sm:$0xff] }
 0x478   : > { %11669 = vmatprep.mubr.bf16.mxu1 %v14850_v63  ;;  %11622 = vmatmul.mubr.bf16.gmra.mxu0 %v14960_v38  ;;  %v7865_v63 = vpack.c.bf16 %v7834_v62, %v7833_v17  ;;  %v7850_v17 = vld [vmem:[#allocation3 + $0xf8] sm:$0xff] }
 0x479   : > { %11625 = vmatprep.mubr.bf16.mxu0 %v14735_v55  ;;  %v7556_v55 = vld [vmem:[#allocation3 + $0x182] sm:$0xff] }
 0x47f   : > { %11670 = vmatmul.mubr.bf16.gmra.mxu1 %v14853_v9  ;;  %v14979_v9 = vpack.c.bf16 %v7557_v25, %v7556_v55 }
 0x480   : > { %11673 = vmatprep.mubr.bf16.mxu1 %v14859_v4  ;;  %11626 = vmatmul.mubr.bf16.gmra.mxu0 %v7265_v52  ;;  %v7835_v4 = vld [vmem:[#allocation3 + $0x48] sm:$0xff] }
 0x481   : > { %11629 = vmatprep.mubr.bf16.mxu0 %v14746_v20  ;;  %v7866_v37 = vpack.c.bf16 %v7836_v42, %v7835_v4  ;;  %v12081_v20 = vld [vmem:[%s15614_s5 + $0x230] sm:$0xff]   ;;  %v12087_v4 = vld [vmem:[%s15614_s5 + $0x200] sm:$0xff]  }
 0x487   : > { %11674 = vmatmul.mubr.bf16.gmra.mxu1 %v14862_v32 }
 0x488   : > { %11677 = vmatprep.mubr.bf16.mxu1 %v14867_v46  ;;  %11630 = vmatmul.mubr.bf16.gmra.mxu0 %v14742_v41  ;;  %v7867_v46 = vpack.c.bf16 %v7838_v40, %v7837_v12  ;;  %v7849_v40 = vld [vmem:[#allocation3 + $0xf0] sm:$0xff] }
 0x489   : > { %11697 = vmatprep.mubr.bf16.mxu0 %v7865_v63  ;;  %v7847_v63 = vld [vmem:[#allocation3 + $0xd8] sm:$0xff]  ;;  %v7873_v12 = vpack.c.bf16 %v7850_v17, %v7849_v40 }
 0x48e   : > { %v11411_v32 = vpop.f32.mrf.mxu0 }
 0x48f   : > { %11678 = vmatmul.mubr.bf16.gmra.mxu1 %v14979_v9 }
 0x490   : > { %11745 = vmatprep.mubr.bf16.mxu1 %v14874_v53  ;;  %11698 = vmatmul.mubr.bf16.vlgmr.msra.gmra.mxu0 %v7866_v37  ;;  %v6272_v41 = vpop.f32.mrf.mxu0  ;;  %v12083_v53 = vld [vmem:[%s15614_s5 + $0x220] sm:$0xff]  }
 0x491   : > { %11701 = vmatprep.mubr.bf16.mxu0 %v7867_v46  ;;  %11778 = vmatpush3.bf16.msra.mxu0 %v12080_v22 }
 0x492   : > { %11779 = vmatprep.subr.bf16.mxu0 %v12081_v20  ;;  %v11412_v28 = vpop.f32.mrf.mxu0 }
 0x494   : > { %v6275_v24 = vpop.f32.mrf.mxu0 }
 0x495   : > { %11780 = vmatpush3.bf16.msra.mxu0 %v12081_v20 }
 0x496   : > { %11781 = vmatprep.subr.bf16.mxu0 %v12082_v56  ;;  %v11459_v57 = vpop.f32.mrf.mxu1 }
 0x497   : > { %11746 = vmatmul.mubr.bf16.vlgmr.msra.gmra.mxu1 %v14880_v18  ;;  %v14993_v44 = vadd.f32 %v11459_v57, %v11411_v32  ;;  %v11415_v8 = vpop.f32.mrf.mxu0  ;;  %v7844_v18 = vld [vmem:[#allocation3 + $0xb0] sm:$0xff] }
 0x498   : > { %11749 = vmatprep.mubr.bf16.mxu1 %v14889_v0  ;;  %11702 = vmatmul.mubr.bf16.gmra.mxu0 %v7868_v31  ;;  %v6481_v14 = vpop.f32.mrf.mxu1  ;;  %v7870_v45 = vpack.c.bf16 %v7844_v18, %v7843_v36  ;;  %v7856_v36 = vld [vmem:[#allocation3 + $0x140] sm:$0xff] }
 0x499   : > { %11705 = vmatprep.mubr.bf16.mxu0 %v7869_v19  ;;  %11782 = vmatpush3.bf16.msra.mxu0 %v12082_v56  ;;  %v14996_v60 = vadd.f32 %v6481_v14, %v6272_v41  ;;  %v6288_v34 = vpop.f32.mrf.mxu0  ;;  %v8154_v56 = vld [vmem:[#allocation3 + $0xe1] sm:$0xff] }
 0x49a   : > { %11783 = vmatprep.subr.bf16.mxu0 %v12083_v53  ;;  %v11460_v5 = vpop.f32.mrf.mxu1  ;;  %v8178_v54 = vpack.c.bf16 %v8154_v56, %v14930_v21  ;;  %v8158_v21 = vld [vmem:[#allocation3 + $0x111] sm:$0xff] }
 0x49b   : > { %v15001_v26 = vadd.f32 %v11460_v5, %v11412_v28  ;;  %v11416_v7 = vpop.f32.mrf.mxu0 }
 0x49c   : > { %v6484_v0 = vpop.f32.mrf.mxu1 }
 0x49d   : > { %11784 = vmatpush3.bf16.msra.mxu0 %v12083_v53  ;;  %v15003_v50 = vadd.f32 %v6484_v0, %v6275_v24  ;;  %v6291_v16 = vpop.f32.mrf.mxu0 }
 0x49e   : > { %11785 = vmatprep.subr.bf16.mxu0 %v12084_v33  ;;  %v11463_v61 = vpop.f32.mrf.mxu1 }
 0x49f   : > { %11750 = vmatmul.mubr.bf16.gmra.mxu1 %v14895_v13  ;;  %v15009_v22 = vadd.f32 %v11463_v61, %v11415_v8  ;;  %v11419_v47 = vpop.f32.mrf.mxu0  ;;  %v7848_v13 = vld [vmem:[#allocation3 + $0xe0] sm:$0xff] }
 0x4a0   : > { %11753 = vmatprep.mubr.bf16.mxu1 %v14910_v3  ;;  %11706 = vmatmul.mubr.bf16.gmra.mxu0 %v7870_v45  ;;  %v6497_v49 = vpop.f32.mrf.mxu1  ;;  %v7872_v42 = vpack.c.bf16 %v7848_v13, %v7847_v63  ;;  %v7853_v8 = vld [vmem:[#allocation3 + $0x120] sm:$0xff]  ;;  %v8157_v45 = vld [vmem:[#allocation3 + $0x109] sm:$0xff] }
 0x4a1   : > { %11709 = vmatprep.mubr.bf16.mxu0 %v7871_v35  ;;  %11786 = vmatpush3.bf16.msra.mxu0 %v12084_v33  ;;  %v15012_v29 = vadd.f32 %v6497_v49, %v6288_v34  ;;  %v6304_v10 = vpop.f32.mrf.mxu0  ;;  %v7875_v34 = vpack.c.bf16 %v7854_v58, %v7853_v8  ;;  %v8180_v35 = vpack.c.bf16 %v8158_v21, %v8157_v45 }
 0x4a2   : > { %11787 = vmatprep.subr.bf16.mxu0 %v12085_v51  ;;  %v11464_v23 = vpop.f32.mrf.mxu1  ;;  %v7880_v21 = vpack.c.bf16 %v14963_v27, %v14963_v27 }
 0x4a3   : > { %v15017_v52 = vadd.f32 %v11464_v23, %v11416_v7  ;;  %v11420_v62 = vpop.f32.mrf.mxu0 }
 0x4a4   : > { %v6500_v3 = vpop.f32.mrf.mxu1 }
 0x4a5   : > { %11788 = vmatpush3.bf16.msra.mxu0 %v12085_v51  ;;  %v15019_v55 = vadd.f32 %v6500_v3, %v6291_v16  ;;  %v6307_v25 = vpop.f32.mrf.mxu0  ;;  %v7858_v51 = vld [vmem:[#allocation3 + $0x158] sm:$0xff] }
 0x4a6   : > { %11789 = vmatprep.subr.bf16.mxu0 %v12086_v39  ;;  %v11467_v37 = vpop.f32.mrf.mxu1 }
 0x4a7   : > { %11754 = vmatmul.mubr.bf16.gmra.mxu1 %v14916_v59  ;;  %v15025_v20 = vadd.f32 %v11467_v37, %v11419_v47  ;;  %v11423_v32 = vpop.f32.mrf.mxu0  ;;  %v7855_v47 = vld [vmem:[#allocation3 + $0x138] sm:$0xff]  ;;  %v7860_v37 = vld [vmem:[#allocation3 + $0x170] sm:$0xff] }
 0x4a8   : > { %11757 = vmatprep.mubr.bf16.mxu1 %v14932_v6  ;;  %11710 = vmatmul.mubr.bf16.gmra.mxu0 %v7872_v42  ;;  %v6513_v46 = vpop.f32.mrf.mxu1  ;;  %v7851_v6 = vld [vmem:[#allocation3 + $0x108] sm:$0xff] }
 0x4a9   : > { %11713 = vmatprep.mubr.bf16.mxu0 %v7873_v12  ;;  %11790 = vmatpush3.bf16.msra.mxu0 %v12086_v39  ;;  %v15028_v41 = vadd.f32 %v6513_v46, %v6304_v10  ;;  %v6320_v28 = vpop.f32.mrf.mxu0  ;;  %v7874_v19 = vpack.c.bf16 %v7852_v2, %v7851_v6  ;;  %v7876_v10 = vpack.c.bf16 %v7856_v36, %v7855_v47  ;;  %v7857_v39 = vld [vmem:[#allocation3 + $0x150] sm:$0xff] }
 0x4aa   : > { %11791 = vmatprep.subr.bf16.mxu0 %v12087_v4  ;;  %v11468_v15 = vpop.f32.mrf.mxu1  ;;  %v7877_v13 = vpack.c.bf16 %v7858_v51, %v7857_v39 }
 0x4ab   : > { %v15030_v24 = vadd.f32 %v11468_v15, %v11420_v62  ;;  %v11424_v59 = vpop.f32.mrf.mxu0  ;;  %v7859_v15 = vld [vmem:[#allocation3 + $0x168] sm:$0xff] }
 0x4ac   : > { %v6516_v31 = vpop.f32.mrf.mxu1 }
 0x4ad   : > { %11792 = vmatpush3.bf16.msra.mxu0 %v12087_v4  ;;  %v15033_v53 = vadd.f32 %v6516_v31, %v6307_v25  ;;  %v6323_v57 = vpop.f32.mrf.mxu0  ;;  %v8162_v25 = vld [vmem:[#allocation3 + $0x141] sm:$0xff]  ;;  %v8164_v4 = vld [vmem:[#allocation3 + $0x159] sm:$0xff] }
 0x4af   : > { %v11471_v14 = vpop.f32.mrf.mxu1  ;;  %11758 = vmatmul.mubr.bf16.gmra.mxu1 %v8178_v54 }
 0x4b0   : > { %v15035_v33 = vadd.f32 %v11471_v14, %v11423_v32  ;;  %11761 = vmatprep.mubr.bf16.mxu1 %v14951_v48  ;;  %v11427_v5 = vpop.f32.mrf.mxu0  ;;  %11714 = vmatmul.mubr.bf16.gmra.mxu0 %v7874_v19  ;;  %v8161_v32 = vld [vmem:[#allocation3 + $0x139] sm:$0xff]  ;;  %v8166_v19 = vld [vmem:[#allocation3 + $0x171] sm:$0xff] }
 0x4b1   : > { %v6529_v18 = vpop.f32.mrf.mxu1  ;;  %11717 = vmatprep.mubr.bf16.mxu0 %v7875_v34  ;;  %v8168_v34 = vld [vmem:[#allocation3 + $0x189] sm:$0xff] }
 0x4b2   : > { %v15038_v7 = vadd.f32 %v6529_v18, %v6320_v28  ;;  %v6336_v43 = vpop.f32.mrf.mxu0  ;;  %v8182_v28 = vpack.c.bf16 %v8162_v25, %v8161_v32 }
 0x4b3   : > { %v11472_v0 = vpop.f32.mrf.mxu1 }
 0x4b4   : > { %v15040_v16 = vadd.f32 %v11472_v0, %v11424_v59  ;;  %v11428_v30 = vpop.f32.mrf.mxu0  ;;  %v7878_v59 = vpack.c.bf16 %v7860_v37, %v7859_v15  ;;  %v8446_v0 = vld [vmem:[#allocation3 + $0x3a] sm:$0xff]  ;;  %v8448_v37 = vld [vmem:[#allocation3 + $0x52] sm:$0xff]  ;;  %v8450_v15 = vld [vmem:[#allocation3 + $0x6a] sm:$0xff] }
 0x4b5   : > { %v6532_v61 = vpop.f32.mrf.mxu1 }
 0x4b6   : > { %v15042_v49 = vadd.f32 %v6532_v61, %v6323_v57  ;;  %v15044_v48 = vpop.f32.mrf.mxu0 }
 0x4b7   : > { %v11475_v23 = vpop.f32.mrf.mxu1  ;;  %11762 = vmatmul.mubr.bf16.gmra.mxu1 %v8180_v35 }
 0x4b8   : > { %v15046_v62 = vadd.f32 %v11475_v23, %v11427_v5  ;;  %11765 = vmatprep.mubr.bf16.mxu1 %v14960_v38  ;;  %v11431_v17 = vpop.f32.mrf.mxu0  ;;  %11718 = vmatmul.mubr.bf16.gmra.mxu0 %v7876_v10  ;;  %v8183_v38 = vpack.c.bf16 %v8164_v4, %v14969_v1  ;;  %v8165_v1 = vld [vmem:[#allocation3 + $0x169] sm:$0xff]  ;;  %v8169_v23 = vld [vmem:[#allocation3 + $0x199] sm:$0xff] }
 0x4b9   : > { %v6545_v3 = vpop.f32.mrf.mxu1  ;;  %11721 = vmatprep.mubr.bf16.mxu0 %v7877_v13  ;;  %v8184_v45 = vpack.c.bf16 %v8166_v19, %v8165_v1  ;;  %v8170_v13 = vld [vmem:[#allocation3 + $0x1a1] sm:$0xff]  ;;  %v8447_v4 = vld [vmem:[#allocation3 + $0x4a] sm:$0xff] }
 0x4ba   : > { %v15049_v63 = vadd.f32 %v6545_v3, %v6336_v43  ;;  %v6352_v42 = vpop.f32.mrf.mxu0  ;;  %v8445_v43 = vld [vmem:[#allocation3 + $0x32] sm:$0xff] }
 0x4bb   : > { %v11476_v40 = vpop.f32.mrf.mxu1  ;;  %v8477_v47 = vpack.c.bf16 %v8446_v0, %v8445_v43  ;;  %v8451_v0 = vld [vmem:[#allocation3 + $0x7a] sm:$0xff] }
 0x4bc   : > { %v15051_v12 = vadd.f32 %v11476_v40, %v11428_v30  ;;  %v11432_v46 = vpop.f32.mrf.mxu0  ;;  %v8167_v30 = vld [vmem:[#allocation3 + $0x181] sm:$0xff]  ;;  %v8186_v40 = vpack.c.bf16 %v8170_v13, %v8169_v23 }
 0x4bd   : > { %v15053_v56 = vpop.f32.mrf.mxu1 }
 0x4be   : > { %v6355_v2 = vpop.f32.mrf.mxu0 }
 0x4bf   : > { %v11479_v58 = vpop.f32.mrf.mxu1  ;;  %11766 = vmatmul.mubr.bf16.gmra.mxu1 %v8182_v28  ;;  %v8449_v28 = vld [vmem:[#allocation3 + $0x62] sm:$0xff] }
 0x4c0   : > { %v15056_v31 = vadd.f32 %v11479_v58, %v11431_v17  ;;  %11769 = vmatprep.mubr.bf16.mxu1 %v8183_v38  ;;  %v11435_v54 = vpop.f32.mrf.mxu0  ;;  %11722 = vmatmul.mubr.bf16.gmra.mxu0 %v7878_v59  ;;  %v8478_v58 = vpack.c.bf16 %v8448_v37, %v8447_v4 }
 0x4c1   : > { %v6561_v6 = vpop.f32.mrf.mxu1  ;;  %11725 = vmatprep.mubr.bf16.mxu0 %v14872_v11  ;;  %v8185_v11 = vpack.c.bf16 %v8168_v34, %v8167_v30 }
 0x4c2   : > { %v15059_v57 = vadd.f32 %v6561_v6, %v6352_v42  ;;  %v6368_v8 = vpop.f32.mrf.mxu0  ;;  %v8479_v6 = vpack.c.bf16 %v8450_v15, %v8449_v28  ;;  %v8455_v15 = vld [vmem:[#allocation3 + $0xaa] sm:$0xff] }
 0x4c3   : > { %v11480_v14 = vpop.f32.mrf.mxu1 }
 0x4c4   : > { %v15061_v5 = vadd.f32 %v11480_v14, %v11432_v46  ;;  %v11436_v18 = vpop.f32.mrf.mxu0 }
 0x4c5   : > { %v6564_v36 = vpop.f32.mrf.mxu1 }
 0x4c6   : > { %v15065_v51 = vadd.f32 %v6564_v36, %v6355_v2  ;;  %v6371_v61 = vpop.f32.mrf.mxu0  ;;  %v8452_v36 = vld [vmem:[#allocation3 + $0x82] sm:$0xff] }
 0x4c7   : > { %v11483_v35 = vpop.f32.mrf.mxu1  ;;  %11770 = vmatmul.mubr.bf16.gmra.mxu1 %v8184_v45  ;;  %v8480_v23 = vpack.c.bf16 %v8452_v36, %v8451_v0 }
 0x4c8   : > { %v15067_v10 = vadd.f32 %v11483_v35, %v11435_v54  ;;  %11773 = vmatprep.mubr.bf16.mxu1 %v8185_v11  ;;  %v11439_v39 = vpop.f32.mrf.mxu0  ;;  %11726 = vmatmul.mubr.bf16.gmra.mxu0 %v7880_v21  ;;  %v8453_v11 = vld [vmem:[#allocation3 + $0x92] sm:$0xff] }
 0x4c9   : > { %v6577_v17 = vpop.f32.mrf.mxu1  ;;  %11793 = vmatprep.mubr.bf16.mxu0 %v8477_v47 }
 0x4ca   : > { %v15069_v3 = vadd.f32 %v6577_v17, %v6368_v8  ;;  %v6384_v25 = vpop.f32.mrf.mxu0 }
 0x4cb   : > { %v11484_v42 = vpop.f32.mrf.mxu1 }
 0x4cc   : > { %v15071_v32 = vadd.f32 %v11484_v42, %v11436_v18  ;;  %v11440_v46 = vpop.f32.mrf.mxu0 }
 0x4cd   : > { %v6580_v38 = vpop.f32.mrf.mxu1 }
 0x4ce   : > { %v15073_v2 = vadd.f32 %v6580_v38, %v6371_v61  ;;  %v6387_v59 = vpop.f32.mrf.mxu0  ;;  %v8454_v61 = vld [vmem:[#allocation3 + $0x9a] sm:$0xff]  ;;  %v8456_v38 = vld [vmem:[#allocation3 + $0xb2] sm:$0xff] }
 0x4cf   : > { %v11487_v54 = vpop.f32.mrf.mxu1  ;;  %11774 = vmatmul.mubr.bf16.gmra.mxu1 %v8186_v40 }
 0x4d0   : > { %v15075_v19 = vadd.f32 %v11487_v54, %v11439_v39  ;;  %v11507_v8 = vpop.f32.mrf.mxu0  ;;  %11794 = vmatmul.mubr.bf16.vlgmr.msra.gmra.mxu0 %v8478_v58  ;;  %v8457_v58 = vld [vmem:[#allocation3 + $0xc2] sm:$0xff]  ;;  %v8458_v54 = vld [vmem:[#allocation3 + $0xca] sm:$0xff] }
 0x4d1   : > { %v6593_v14 = vpop.f32.mrf.mxu1  ;;  %v6884_v34 = vadd.f32 %v11507_v8, %v14993_v44  ;;  %11797 = vmatprep.mubr.bf16.mxu0 %v8479_v6 }
 0x4d2   : > { %v15078_v1 = vadd.f32 %v6593_v14, %v6384_v25  ;;  %v6755_v18 = vpop.f32.mrf.mxu0  ;;  %v8481_v25 = vpack.c.bf16 %v8454_v61, %v8453_v11 }
 0x4d3   : > { %v11488_v21 = vpop.f32.mrf.mxu1  ;;  %v6882_v43 = vadd.f32 %v6755_v18, %v14996_v60 }
 0x4d4   : > { %v15081_v45 = vadd.f32 %v11488_v21, %v11440_v46  ;;  %v11508_v30 = vpop.f32.mrf.mxu0 }
 0x4d5   : > { %v6596_v35 = vpop.f32.mrf.mxu1  ;;  %v6885_v47 = vadd.f32 %v11508_v30, %v15001_v26 }
 0x4d6   : > { %v15084_v39 = vadd.f32 %v6596_v35, %v6387_v59  ;;  %v6758_v44 = vpop.f32.mrf.mxu0 }
 0x4d7   : > { %v11555_v13 = vpop.f32.mrf.mxu1  ;;  %v6883_v17 = vadd.f32 %v6758_v44, %v15003_v50  ;;  %v8460_v44 = vld [vmem:[#allocation3 + $0xe2] sm:$0xff] }
 0x4d8   : > { %v15087_v42 = vadd.f32 %v11555_v13, %v6884_v34  ;;  %v11511_v60 = vpop.f32.mrf.mxu0  ;;  %11798 = vmatmul.mubr.bf16.gmra.mxu0 %v8480_v23  ;;  %v8482_v34 = vpack.c.bf16 %v8456_v38, %v8455_v15  ;;  %v8461_v13 = vld [vmem:[#allocation3 + $0xf2] sm:$0xff] }
 0x4d9   : > { %v7061_v40 = vpop.f32.mrf.mxu1  ;;  %v6888_v4 = vadd.f32 %v11511_v60, %v15009_v22  ;;  %11801 = vmatprep.mubr.bf16.mxu0 %v8481_v25 }
 0x4da   : > { %v15090_v37 = vadd.f32 %v7061_v40, %v6882_v43  ;;  %v6771_v46 = vpop.f32.mrf.mxu0  ;;  %v8483_v43 = vpack.c.bf16 %v8458_v54, %v8457_v58 }
 0x4db   : > { %v11556_v26 = vpop.f32.mrf.mxu1  ;;  %v6886_v28 = vadd.f32 %v6771_v46, %v15012_v29 }
 0x4dc   : > { %v15093_v59 = vadd.f32 %v11556_v26, %v6885_v47  ;;  %v11512_v50 = vpop.f32.mrf.mxu0  ;;  %v8459_v47 = vld [vmem:[#allocation3 + $0xda] sm:$0xff] }
 0x4dd   : > { %v7064_v6 = vpop.f32.mrf.mxu1  ;;  %v6889_v8 = vadd.f32 %v11512_v50, %v15017_v52 }
 0x4de   : > { %v15096_v14 = vadd.f32 %v7064_v6, %v6883_v17  ;;  %v6774_v22 = vpop.f32.mrf.mxu0  ;;  %v8462_v17 = vld [vmem:[#allocation3 + $0xfa] sm:$0xff] }
 0x4df   : > { %v11559_v18 = vpop.f32.mrf.mxu1  ;;  %v6887_v21 = vadd.f32 %v6774_v22, %v15019_v55  ;;  %v8464_v22 = vld [vmem:[#allocation3 + $0x112] sm:$0xff] }
 0x4e0   : > { %v15099_v0 = vadd.f32 %v11559_v18, %v6888_v4  ;;  %v11515_v29 = vpop.f32.mrf.mxu0  ;;  %11802 = vmatmul.mubr.bf16.gmra.mxu0 %v8482_v34  ;;  %v8484_v4 = vpack.c.bf16 %v8460_v44, %v8459_v47  ;;  %v8465_v18 = vld [vmem:[#allocation3 + $0x122] sm:$0xff] }
 0x4e1   : > { %v7077_v36 = vpop.f32.mrf.mxu1  ;;  %v6892_v30 = vadd.f32 %v11515_v29, %v15025_v20  ;;  %11805 = vmatprep.mubr.bf16.mxu0 %v8483_v43 }
 0x4e2   : > { %v15102_v11 = vadd.f32 %v7077_v36, %v6886_v28  ;;  %v6787_v61 = vpop.f32.mrf.mxu0  ;;  %v8485_v28 = vpack.c.bf16 %v8462_v17, %v8461_v13 }
 0x4e3   : > { %v11560_v52 = vpop.f32.mrf.mxu1  ;;  %v6890_v35 = vadd.f32 %v6787_v61, %v15028_v41 }
 0x4e4   : > { %v15105_v23 = vadd.f32 %v11560_v52, %v6889_v8  ;;  %v11516_v55 = vpop.f32.mrf.mxu0  ;;  %v8463_v8 = vld [vmem:[#allocation3 + $0x10a] sm:$0xff] }
 0x4e5   : > { %v7080_v25 = vpop.f32.mrf.mxu1  ;;  %v6893_v60 = vadd.f32 %v11516_v55, %v15030_v24 }
 0x4e6   : > { %v15108_v40 = vadd.f32 %v7080_v25, %v6887_v21  ;;  %v6790_v20 = vpop.f32.mrf.mxu0  ;;  %v8466_v21 = vld [vmem:[#allocation3 + $0x12a] sm:$0xff] }
 0x4e7   : > { %v11563_v46 = vpop.f32.mrf.mxu1  ;;  %v6891_v26 = vadd.f32 %v6790_v20, %v15033_v53  ;;  %v8468_v20 = vld [vmem:[#allocation3 + $0x142] sm:$0xff] }
 0x4e8   : > { %v15111_v15 = vadd.f32 %v11563_v46, %v6892_v30  ;;  %v11519_v41 = vpop.f32.mrf.mxu0  ;;  %11806 = vmatmul.mubr.bf16.gmra.mxu0 %v8484_v4  ;;  %v8486_v30 = vpack.c.bf16 %v8464_v22, %v8463_v8  ;;  %v8469_v46 = vld [vmem:[#allocation3 + $0x152] sm:$0xff] }
 0x4e9   : > { %v7093_v38 = vpop.f32.mrf.mxu1  ;;  %v6896_v50 = vadd.f32 %v11519_v41, %v15035_v33  ;;  %11809 = vmatprep.mubr.bf16.mxu0 %v8485_v28  ;;  %v6549_v28 = vadd.f32 %v15053_v56, %v15044_v48 }
 0x4ea   : > { %v15114_v58 = vadd.f32 %v7093_v38, %v6890_v35  ;;  %v6803_v54 = vpop.f32.mrf.mxu0  ;;  %v8487_v35 = vpack.c.bf16 %v8466_v21, %v8465_v18 }
 0x4eb   : > { %v11564_v24 = vpop.f32.mrf.mxu1  ;;  %v6894_v6 = vadd.f32 %v6803_v54, %v15038_v7 }
 0x4ec   : > { %v15117_v34 = vadd.f32 %v11564_v24, %v6893_v60  ;;  %v11520_v53 = vpop.f32.mrf.mxu0  ;;  %v8467_v60 = vld [vmem:[#allocation3 + $0x13a] sm:$0xff] }
 0x4ed   : > { %v7096_v43 = vpop.f32.mrf.mxu1  ;;  %v6897_v29 = vadd.f32 %v11520_v53, %v15040_v16  ;;  %v8488_v54 = vpack.c.bf16 %v8468_v20, %v8467_v60  ;;  %v8475_v60 = vld [vmem:[#allocation3 + $0x19a] sm:$0xff]  ;;  %v8476_v20 = vld [vmem:[#allocation3 + $0x1a2] sm:$0xff] }
 0x4ee   : > { %v15120_v36 = vadd.f32 %v7096_v43, %v6891_v26  ;;  %v6806_v33 = vpop.f32.mrf.mxu0  ;;  %v8470_v26 = vld [vmem:[#allocation3 + $0x15a] sm:$0xff]  ;;  %v8471_v43 = vld [vmem:[#allocation3 + $0x16a] sm:$0xff] }
 0x4ef   : > { %v11567_v61 = vpop.f32.mrf.mxu1  ;;  %v6895_v52 = vadd.f32 %v6806_v33, %v15042_v49 }
 0x4f0   : > { %v15123_v47 = vadd.f32 %v11567_v61, %v6896_v50  ;;  %v11523_v7 = vpop.f32.mrf.mxu0  ;;  %11810 = vmatmul.mubr.bf16.gmra.mxu0 %v8486_v30 }
 0x4f1   : > { %v7109_v44 = vpop.f32.mrf.mxu1  ;;  %v6900_v55 = vadd.f32 %v11523_v7, %v15046_v62  ;;  %11813 = vmatprep.mubr.bf16.mxu0 %v8487_v35 }
 0x4f2   : > { %v15126_v13 = vadd.f32 %v7109_v44, %v6894_v6  ;;  %v6819_v17 = vpop.f32.mrf.mxu0 }
 0x4f3   : > { %v11568_v16 = vpop.f32.mrf.mxu1  ;;  %v6898_v25 = vadd.f32 %v6819_v17, %v15049_v63  ;;  %v8489_v63 = vpack.c.bf16 %v8470_v26, %v8469_v46 }
 0x4f4   : > { %v15129_v4 = vadd.f32 %v11568_v16, %v6897_v29  ;;  %v11524_v49 = vpop.f32.mrf.mxu0  ;;  %v8472_v29 = vld [vmem:[#allocation3 + $0x172] sm:$0xff] }
 0x4f5   : > { %v7112_v41 = vpop.f32.mrf.mxu1  ;;  %v6901_v62 = vadd.f32 %v11524_v49, %v15051_v12  ;;  %v8490_v44 = vpack.c.bf16 %v8472_v29, %v8471_v43 }
 0x4f6   : > { %v15134_v38 = vadd.f32 %v7112_v41, %v6895_v52  ;;  %v6822_v50 = vpop.f32.mrf.mxu0  ;;  %v8492_v41 = vpack.c.bf16 %v8476_v20, %v8475_v60 }
 0x4f7   : > { %v11571_v24 = vpop.f32.mrf.mxu1  ;;  %v6899_v6 = vadd.f32 %v6822_v50, %v6549_v28 }
 0x4f8   : > { %v15136_v8 = vadd.f32 %v11571_v24, %v6900_v55  ;;  %v11527_v22 = vpop.f32.mrf.mxu0  ;;  %11814 = vmatmul.mubr.bf16.gmra.mxu0 %v8488_v54 }
 0x4f9   : > { %v7125_v53 = vpop.f32.mrf.mxu1  ;;  %v6904_v18 = vadd.f32 %v11527_v22, %v15056_v31  ;;  %11817 = vmatprep.mubr.bf16.mxu0 %v8489_v63 }
 0x4fa   : > { %v15139_v21 = vadd.f32 %v7125_v53, %v6898_v25  ;;  %v6835_v48 = vpop.f32.mrf.mxu0 }
 0x4fb   : > { %v11572_v56 = vpop.f32.mrf.mxu1  ;;  %v6902_v12 = vadd.f32 %v6835_v48, %v15059_v57 }
 0x4fc   : > { %v15142_v33 = vadd.f32 %v11572_v56, %v6901_v62  ;;  %v11528_v30 = vpop.f32.mrf.mxu0 }
 0x4fd   : > { %v7128_v61 = vpop.f32.mrf.mxu1  ;;  %v6905_v52 = vadd.f32 %v11528_v30, %v15061_v5 }
 0x4fe   : > { %v15145_v35 = vadd.f32 %v7128_v61, %v6899_v6  ;;  %v6838_v7 = vpop.f32.mrf.mxu0 }
 0x4ff   : > { %v11575_v31 = vpop.f32.mrf.mxu1  ;;  %v6903_v55 = vadd.f32 %v6838_v7, %v15065_v51 }
 0x500   : > { %v15148_v17 = vadd.f32 %v11575_v31, %v6904_v18  ;;  %v11531_v16 = vpop.f32.mrf.mxu0  ;;  %11818 = vmatmul.mubr.bf16.gmra.mxu0 %v8490_v44 }
 0x501   : > { %v7141_v57 = vpop.f32.mrf.mxu1  ;;  %v6908_v25 = vadd.f32 %v11531_v16, %v15067_v10  ;;  %11821 = vmatprep.mubr.bf16.mxu0 %v14979_v9 }
 0x502   : > { %v15152_v49 = vadd.f32 %v7141_v57, %v6902_v12  ;;  %v6851_v5 = vpop.f32.mrf.mxu0 }
 0x503   : > { %v11576_v46 = vpop.f32.mrf.mxu1  ;;  %v6906_v26 = vadd.f32 %v6851_v5, %v15069_v3 }
 0x504   : > { %v15155_v28 = vadd.f32 %v11576_v46, %v6905_v52  ;;  %v11532_v51 = vpop.f32.mrf.mxu0 }
 0x505   : > { %v7144_v62 = vpop.f32.mrf.mxu1  ;;  %v6909_v50 = vadd.f32 %v11532_v51, %v15071_v32 }
 0x506   : > { %v15158_v54 = vadd.f32 %v7144_v62, %v6903_v55  ;;  %v6854_v10 = vpop.f32.mrf.mxu0 }
 0x507   : > { %v11579_v24 = vpop.f32.mrf.mxu1  ;;  %v6907_v9 = vadd.f32 %v6854_v10, %v15073_v2 }
 0x508   : > { %v15161_v6 = vadd.f32 %v11579_v24, %v6908_v25  ;;  %v11535_v63 = vpop.f32.mrf.mxu0  ;;  %11822 = vmatmul.mubr.bf16.gmra.mxu0 %v8492_v41 }
 0x509   : > { %v7157_v22 = vpop.f32.mrf.mxu1  ;;  %v6912_v3 = vadd.f32 %v11535_v63, %v15075_v19 }
 0x50a   : > { %v15164_v53 = vadd.f32 %v7157_v22, %v6906_v26  ;;  %v6867_v18 = vpop.f32.mrf.mxu0 }
 0x50b   : > { %v11580_v48 = vpop.f32.mrf.mxu1  ;;  %v6910_v56 = vadd.f32 %v6867_v18, %v15078_v1 }
 0x50c   : > { %v15167_v32 = vadd.f32 %v11580_v48, %v6909_v50  ;;  %v11536_v12 = vpop.f32.mrf.mxu0 }
 0x50d   : > { %v7160_v43 = vpop.f32.mrf.mxu1  ;;  %v6913_v29 = vadd.f32 %v11536_v12, %v15081_v45 }
 0x50e   : > { %v15170_v2 = vadd.f32 %v7160_v43, %v6907_v9  ;;  %v6870_v30 = vpop.f32.mrf.mxu0 }
 0x50f   : > { %v11583_v61 = vpop.f32.mrf.mxu1  ;;  %v6911_v52 = vadd.f32 %v6870_v30, %v15084_v39 }
 0x510   : > { %v15173_v7 = vadd.f32 %v11583_v61, %v6912_v3  ;;  %v11603_v19 = vpop.f32.mrf.mxu0 }
 0x511   : > { %v7173_v44 = vpop.f32.mrf.mxu1  ;;  %v7496_v31 = vadd.f32 %v11603_v19, %v15087_v42 }
 0x512   : > { %v15176_v55 = vadd.f32 %v7173_v44, %v6910_v56  ;;  %v7367_v1 = vpop.f32.mrf.mxu0 }
 0x513   : > { %v11584_v16 = vpop.f32.mrf.mxu1  ;;  %v7494_v57 = vadd.f32 %v7367_v1, %v15090_v37 }
 0x514   : > { %v15179_v25 = vadd.f32 %v11584_v16, %v6913_v29  ;;  %v11604_v45 = vpop.f32.mrf.mxu0 }
 0x515   : > { %v7176_v60 = vpop.f32.mrf.mxu1  ;;  %v7497_v20 = vadd.f32 %v11604_v45, %v15093_v59 }
 0x516   : > { %v15182_v5 = vadd.f32 %v7176_v60, %v6911_v52  ;;  %v7370_v39 = vpop.f32.mrf.mxu0 }
 0x517   : > { %v11651_v46 = vpop.f32.mrf.mxu1  ;;  %v15185_v26 = vadd.f32 %v7370_v39, %v15096_v14 }
 0x518   : > { %v15187_v42 = vadd.f32 %v11651_v46, %v7496_v31  ;;  %v11607_v51 = vpop.f32.mrf.mxu0 }
 0x519   : > { %v7673_v41 = vpop.f32.mrf.mxu1  ;;  %v7500_v62 = vadd.f32 %v11607_v51, %v15099_v0 }
 0x51a   : > { %v15190_v37 = vadd.f32 %v7673_v41, %v7494_v57  ;;  %v7383_v50 = vpop.f32.mrf.mxu0 }
 0x51b   : > { %v11652_v10 = vpop.f32.mrf.mxu1  ;;  %v15193_v24 = vadd.f32 %v7383_v50, %v15102_v11 }
 0x51c   : > { %v15195_v59 = vadd.f32 %v11652_v10, %v7497_v20  ;;  %v11608_v9 = vpop.f32.mrf.mxu0 }
 0x51d   : > { %v15197_v63 = vpop.f32.mrf.mxu1  ;;  %v7501_v14 = vadd.f32 %v11608_v9, %v15105_v23 }
 0x51e   : > { %v7386_v22 = vpop.f32.mrf.mxu0 }
 0x51f   : > { %v11655_v3 = vpop.f32.mrf.mxu1  ;;  %v15201_v18 = vadd.f32 %v7386_v22, %v15108_v40 }
 0x520   : > { %v15203_v0 = vadd.f32 %v11655_v3, %v7500_v62  ;;  %v11611_v48 = vpop.f32.mrf.mxu0 }
 0x521   : > { %v15205_v56 = vpop.f32.mrf.mxu1  ;;  %v7504_v11 = vadd.f32 %v11611_v48, %v15111_v15 }
 0x522   : > { %v7399_v12 = vpop.f32.mrf.mxu0 }
 0x523   : > { %v11656_v43 = vpop.f32.mrf.mxu1  ;;  %v15209_v29 = vadd.f32 %v7399_v12, %v15114_v58 }
 0x524   : > { %v15211_v30 = vadd.f32 %v11656_v43, %v7501_v14  ;;  %v11612_v23 = vpop.f32.mrf.mxu0 }
 0x525   : > { %v15213_v61 = vpop.f32.mrf.mxu1  ;;  %v7505_v40 = vadd.f32 %v11612_v23, %v15117_v34 }
 0x526   : > { %v7402_v52 = vpop.f32.mrf.mxu0 }
 0x527   : > { %v11659_v19 = vpop.f32.mrf.mxu1  ;;  %v15217_v44 = vadd.f32 %v7402_v52, %v15120_v36 }
 0x528   : > { %v15219_v31 = vadd.f32 %v11659_v19, %v7504_v11  ;;  %v11615_v15 = vpop.f32.mrf.mxu0 }
 0x529   : > { %v15221_v1 = vpop.f32.mrf.mxu1  ;;  %v7508_v58 = vadd.f32 %v11615_v15, %v15123_v47 }
 0x52a   : > { %v7415_v16 = vpop.f32.mrf.mxu0 }
 0x52b   : > { %v11660_v57 = vpop.f32.mrf.mxu1  ;;  %v15225_v45 = vadd.f32 %v7415_v16, %v15126_v13 }
 0x52c   : > { %v15227_v60 = vadd.f32 %v11660_v57, %v7505_v40  ;;  %v11616_v34 = vpop.f32.mrf.mxu0  ;;  %v12088_v40 = vld [vmem:[%s15616_s7 + $0x38] sm:$0xff]  }
 0x52d   : > { %v15229_v20 = vpop.f32.mrf.mxu1  ;;  %v7509_v36 = vadd.f32 %v11616_v34, %v15129_v4  ;;  %11826 = vmatpush3.bf16.msra.mxu1 %v12088_v40 }
 0x52e   : > { %v7418_v39 = vpop.f32.mrf.mxu0  ;;  %11827 = vmatprep.subr.bf16.mxu1 %v14963_v27 }
 0x52f   : > { %v11663_v46 = vpop.f32.mrf.mxu1  ;;  %v15233_v51 = vadd.f32 %v7418_v39, %v15134_v38 }
 0x530   : > { %v15235_v41 = vadd.f32 %v11663_v46, %v7508_v58  ;;  %v11619_v47 = vpop.f32.mrf.mxu0 }
 0x531   : > { %v15237_v62 = vpop.f32.mrf.mxu1  ;;  %v7512_v13 = vadd.f32 %v11619_v47, %v15136_v8  ;;  %v12089_v47 = vld [vmem:[%s15616_s7 + $0x30] sm:$0xff]  }
 0x532   : > { %v7431_v50 = vpop.f32.mrf.mxu0  ;;  %11828 = vmatpush3.bf16.msra.mxu1 %v12089_v47 }
 0x533   : > { %v11664_v10 = vpop.f32.mrf.mxu1  ;;  %v15241_v9 = vadd.f32 %v7431_v50, %v15139_v21 }
 0x534   : > { %v15243_v14 = vadd.f32 %v11664_v10, %v7509_v36  ;;  %v11620_v4 = vpop.f32.mrf.mxu0 }
 0x535   : > { %v15245_v22 = vpop.f32.mrf.mxu1  ;;  %v7513_v38 = vadd.f32 %v11620_v4, %v15142_v33  ;;  %v15287_v4 = vld [vmem:[#allocation2] sm:$0xff] }
 0x536   : > { %v7434_v3 = vpop.f32.mrf.mxu0  ;;  %11829 = vmatprep.subr.bf16.mxu1 %v15287_v4  ;;  %11841 = vmatprep.mubr.msk.bf16.mxu1 %vm12109_vm0, %v15287_v4 }
 0x537   : > { %v11667_v48 = vpop.f32.mrf.mxu1  ;;  %v15249_v11 = vadd.f32 %v7434_v3, %v15145_v35 }
 0x538   : > { %v15251_v12 = vadd.f32 %v11667_v48, %v7512_v13  ;;  %v11623_v8 = vpop.f32.mrf.mxu0 }
 0x539   : > { %v15253_v43 = vpop.f32.mrf.mxu1  ;;  %v7516_v21 = vadd.f32 %v11623_v8, %v15148_v17 }
 0x53a   : > { %v7447_v23 = vpop.f32.mrf.mxu0 }
 0x53b   : > { %v11668_v52 = vpop.f32.mrf.mxu1  ;;  %v15260_v33 = vadd.f32 %v7447_v23, %v15152_v49 }
 0x53c   : > { %v15262_v19 = vadd.f32 %v11668_v52, %v7513_v38  ;;  %v11624_v35 = vpop.f32.mrf.mxu0 }
 0x53d   : > { %15919 = vst [vmem:[#allocation6_spill] sm:$0xff] %v15260_v33  ;;  %v15264_v15 = vpop.f32.mrf.mxu1  ;;  %v7517_v58 = vadd.f32 %v11624_v35, %v15155_v28 }
 0x53e   : > { %v7450_v17 = vpop.f32.mrf.mxu0 }
 0x53f   : > { %v11671_v16 = vpop.f32.mrf.mxu1  ;;  %v15269_v57 = vadd.f32 %v7450_v17, %v15158_v54 }
 0x540   : > { %v15271_v34 = vadd.f32 %v11671_v16, %v7516_v21  ;;  %v11627_v36 = vpop.f32.mrf.mxu0 }
 0x541   : > { %15920 = vst [vmem:[#allocation10_spill] sm:$0xff] %v15269_v57  ;;  %v15273_v49 = vpop.f32.mrf.mxu1  ;;  %v7520_v39 = vadd.f32 %v11627_v36, %v15161_v6 }
 0x542   : > { %15921 = vst [vmem:[#allocation27_spill] sm:$0xff] %v15273_v49  ;;  %v7463_v46 = vpop.f32.mrf.mxu0 }
 0x543   : > { %v11672_v28 = vpop.f32.mrf.mxu1  ;;  %v15280_v27 = vadd.f32 %v7463_v46, %v15164_v53 }
 0x544   : > { %v15282_v13 = vadd.f32 %v11672_v28, %v7517_v58  ;;  %v11628_v54 = vpop.f32.mrf.mxu0 }
 0x545   : > { %15922 = vst [vmem:[#allocation60_spill] sm:$0xff] %v15280_v27  ;;  %v15284_v50 = vpop.f32.mrf.mxu1  ;;  %v7521_v10 = vadd.f32 %v11628_v54, %v15167_v32  ;;  %v12090_v32 = vld [vmem:[%s15616_s7 + $0x28] sm:$0xff]   ;;  %v12095_v27 = vld [vmem:[%s15616_s7] sm:$0xff]  }
 0x546   : > { %15923 = vst [vmem:[#allocation33_spill] sm:$0xff] %v15284_v50  ;;  %v7466_v6 = vpop.f32.mrf.mxu0  ;;  %11830 = vmatpush3.bf16.msra.mxu1 %v12090_v32 }
 0x547   : > { %v11675_v38 = vpop.f32.mrf.mxu1  ;;  %v15291_v3 = vadd.f32 %v7466_v6, %v15170_v2  ;;  %11831 = vmatprep.subr.bf16.mxu1 %v15287_v4 }
 0x548   : > { %v15293_v48 = vadd.f32 %v11675_v38, %v7520_v39  ;;  %v11631_v53 = vpop.f32.mrf.mxu0 }
 0x549   : > { %15924 = vst [vmem:[#allocation5_spill] sm:$0xff] %v15291_v3  ;;  %v15295_v8 = vpop.f32.mrf.mxu1  ;;  %v7524_v21 = vadd.f32 %v11631_v53, %v15173_v7  ;;  %v12094_v3 = vld [vmem:[%s15616_s7 + $0x8] sm:$0xff]  }
 0x54a   : > { %15925 = vst [vmem:[#allocation32_spill] sm:$0xff] %v15295_v8  ;;  %v7479_v23 = vpop.f32.mrf.mxu0 }
 0x54b   : > { %v11676_v40 = vpop.f32.mrf.mxu1  ;;  %v15302_v52 = vadd.f32 %v7479_v23, %v15176_v55 }
 0x54c   : > { %v15304_v35 = vadd.f32 %v11676_v40, %v7521_v10  ;;  %v11632_v2 = vpop.f32.mrf.mxu0 }
 0x54d   : > { %15926 = vst [vmem:[#allocation8_spill] sm:$0xff] %v15302_v52  ;;  %v15306_v58 = vpop.f32.mrf.mxu1  ;;  %v7525_v17 = vadd.f32 %v11632_v2, %v15179_v25  ;;  %v12091_v25 = vld [vmem:[%s15616_s7 + $0x20] sm:$0xff]  }
 0x54e   : > { %15927 = vst [vmem:[#allocation62_spill] sm:$0xff] %v15306_v58  ;;  %v7482_v7 = vpop.f32.mrf.mxu0  ;;  %11832 = vmatpush3.bf16.msra.mxu1 %v12091_v25 }
 0x54f   : > { %v11679_v16 = vpop.f32.mrf.mxu1  ;;  %v15311_v36 = vadd.f32 %v7482_v7, %v15182_v5  ;;  %11833 = vmatprep.subr.bf16.mxu1 %v15287_v4 }
 0x550   : > { %v15313_v39 = vadd.f32 %v11679_v16, %v7524_v21  ;;  %v11699_v46 = vpop.f32.mrf.mxu0 }
 0x551   : > { %15928 = vst [vmem:[#allocation63_spill] sm:$0xff] %v15311_v36  ;;  %v15315_v55 = vpop.f32.mrf.mxu1  ;;  %v15318_v47 = vadd.f32 %v11699_v46, %v15187_v42 }
 0x552   : > { %15929 = vst [vmem:[#allocation7_spill] sm:$0xff] %v15315_v55  ;;  %v7980_v28 = vpop.f32.mrf.mxu0 }
 0x553   : > { %v11680_v54 = vpop.f32.mrf.mxu1  ;;  %v15324_v10 = vadd.f32 %v7980_v28, %v15190_v37 }
 0x554   : > { %v15326_v6 = vadd.f32 %v11680_v54, %v7525_v17  ;;  %v11700_v5 = vpop.f32.mrf.mxu0 }
 0x555   : > { %v15328_v38 = vpop.f32.mrf.mxu1  ;;  %v15331_v53 = vadd.f32 %v11700_v5, %v15195_v59 }
 0x556   : > { %15930 = vst [vmem:[#allocation9_spill] sm:$0xff] %v15328_v38  ;;  %v15334_v42 = vpop.f32.mrf.mxu0 }
 0x557   : > { %v15336_v21 = vpop.f32.mrf.mxu1 }
 0x558   : > { %v11703_v23 = vpop.f32.mrf.mxu0 }
 0x559   : > { %v15338_v32 = vpop.f32.mrf.mxu1  ;;  %v15341_v37 = vadd.f32 %v11703_v23, %v15203_v0 }
 0x55a   : > { %v15343_v40 = vpop.f32.mrf.mxu0 }
 0x55b   : > { %v15345_v2 = vpop.f32.mrf.mxu1 }
 0x55c   : > { %v11704_v17 = vpop.f32.mrf.mxu0 }
 0x55d   : > { %v15347_v7 = vpop.f32.mrf.mxu1  ;;  %v15350_v59 = vadd.f32 %v11704_v17, %v15211_v30 }
 0x55e   : > { %v15352_v16 = vpop.f32.mrf.mxu0 }
 0x55f   : > { %v15354_v46 = vpop.f32.mrf.mxu1 }
 0x560   : > { %v11707_v28 = vpop.f32.mrf.mxu0 }
 0x561   : > { %v15357_v25 = vadd.f32 %v11707_v28, %v15219_v31  ;;  %v15359_v0 = vpop.f32.mrf.mxu1  ;;  %v12092_v28 = vld [vmem:[%s15616_s7 + $0x18] sm:$0xff]  }
 0x562   : > { %v15361_v54 = vpop.f32.mrf.mxu0  ;;  %11834 = vmatpush3.bf16.msra.mxu1 %v12092_v28 }
 0x563   : > { %v15366_v38 = vpop.f32.mrf.mxu1  ;;  %11835 = vmatprep.subr.bf16.mxu1 %v15287_v4 }
 0x564   : > { %v11708_v5 = vpop.f32.mrf.mxu0 }
 0x565   : > { %v15364_v23 = vadd.f32 %v11708_v5, %v15227_v60  ;;  %v15373_v55 = vpop.f32.mrf.mxu1  ;;  %v12093_v5 = vld [vmem:[%s15616_s7 + $0x10] sm:$0xff]  }
 0x566   : > { %v15368_v30 = vpop.f32.mrf.mxu0  ;;  %11836 = vmatpush3.bf16.msra.mxu1 %v12093_v5 }
 0x567   : > { %11837 = vmatprep.subr.bf16.mxu1 %v15287_v4 }
 0x568   : > { %v11711_v17 = vpop.f32.mrf.mxu0 }
 0x569   : > { %v15371_v36 = vadd.f32 %v11711_v17, %v15235_v41  ;;  %v15388_v17 = vpop.f32.mrf.mxu1 }
 0x56a   : > { %v15375_v31 = vpop.f32.mrf.mxu0  ;;  %11838 = vmatpush3.bf16.msra.mxu1 %v12094_v3 }
 0x56b   : > { %v15399_v8 = vpop.f32.mrf.mxu1  ;;  %11839 = vmatprep.subr.bf16.mxu1 %v15287_v4 }
 0x56c   : > { %v11712_v60 = vpop.f32.mrf.mxu0 }
 0x56d   : > { %v15385_v41 = vadd.f32 %v11712_v60, %v15243_v14  ;;  %v15410_v50 = vpop.f32.mrf.mxu1 }
 0x56e   : > { %v15390_v52 = vpop.f32.mrf.mxu0  ;;  %11840 = vmatpush3.bf16.msra.mxu1 %v12095_v27 }
 0x56f   : > { %v15417_v49 = vpop.f32.mrf.mxu1 }
 0x570   : > { %v11715_v58 = vpop.f32.mrf.mxu0 }
 0x571   : > { %v15396_v28 = vadd.f32 %v11715_v58, %v15251_v12 }
 0x572   : > { %v15401_v14 = vpop.f32.mrf.mxu0 }
 0x573   : > { %15931 = vst [vmem:[#allocation61_spill] sm:$0xff] %v15396_v28 }
 0x574   : > { %v11716_v60 = vpop.f32.mrf.mxu0 }
 0x575   : > { %v15407_v5 = vadd.f32 %v11716_v60, %v15262_v19  ;;  %v15424_v19 = vpop.f32.mrf.mxu1 }
 0x576   : > { %v15412_v12 = vpop.f32.mrf.mxu0 }
 0x577   : > { %15932 = vst [vmem:[#allocation36_spill] sm:$0xff] %v15412_v12  ;;  %v15431_v27 = vpop.f32.mrf.mxu1 }
 0x578   : > { %v11719_v58 = vpop.f32.mrf.mxu0 }
 0x579   : > { %v15415_v57 = vadd.f32 %v11719_v58, %v15271_v34 }
 0x57a   : > { %v15419_v3 = vpop.f32.mrf.mxu0 }
 0x57b   : > { %15933 = vst [vmem:[#allocation30_spill] sm:$0xff] %v15415_v57  ;;  %15934 = vst [vmem:[#allocation35_spill] sm:$0xff] %v15419_v3  ;;  %v15438_v3 = vpop.f32.mrf.mxu1 }
 0x57c   : > { %v11720_v33 = vpop.f32.mrf.mxu0 }
 0x57d   : > { %v15422_v28 = vadd.f32 %v11720_v33, %v15282_v13 }
 0x57e   : > { %v15426_v4 = vpop.f32.mrf.mxu0 }
 0x57f   : > { %15935 = vst [vmem:[#allocation31_spill] sm:$0xff] %v15422_v28  ;;  %15936 = vst [vmem:[#allocation39_spill] sm:$0xff] %v15426_v4  ;;  %v15445_v4 = vpop.f32.mrf.mxu1 }
 0x580   : > { %v11723_v60 = vpop.f32.mrf.mxu0 }
 0x581   : > { %v15429_v12 = vadd.f32 %v11723_v60, %v15293_v48 }
 0x582   : > { %v15433_v34 = vpop.f32.mrf.mxu0 }
 0x583   : > { %15937 = vst [vmem:[#allocation37_spill] sm:$0xff] %v15429_v12  ;;  %15938 = vst [vmem:[#allocation26_spill] sm:$0xff] %v15433_v34  ;;  %v15452_v34 = vpop.f32.mrf.mxu1 }
 0x584   : > { %v11724_v58 = vpop.f32.mrf.mxu0 }
 0x585   : > { %v15436_v57 = vadd.f32 %v11724_v58, %v15304_v35 }
 0x586   : > { %v15440_v33 = vpop.f32.mrf.mxu0 }
 0x587   : > { %15939 = vst [vmem:[#allocation70_spill] sm:$0xff] %v15436_v57  ;;  %15940 = vst [vmem:[#allocation13_spill] sm:$0xff] %v15440_v33  ;;  %v7801_v33 = vadd.f32 %v15197_v63, %v15185_v26  ;;  %v15470_v26 = vld [vmem:[%s15615_s6] ss:$0 sm:$0xff] }
 0x588   : > { %v11727_v13 = vpop.f32.mrf.mxu0 }
 0x589   : > { %v15443_v28 = vadd.f32 %v11727_v13, %v15313_v39  ;;  %v8415_v39 = vadd.f32 %v15336_v21, %v15318_v47  ;;  %v8413_v13 = vadd.f32 %v15338_v32, %v15324_v10  ;;  %v7804_v47 = vadd.f32 %v15205_v56, %v15193_v24 }
 0x58a   : > { %v15447_v48 = vpop.f32.mrf.mxu0 }
 0x58b   : > { %15941 = vst [vmem:[#allocation41_spill] sm:$0xff] %v15443_v28  ;;  %15942 = vst [vmem:[#allocation73_spill] sm:$0xff] %v15447_v48  ;;  %v15462_v28 = vpop.f32.mrf.mxu1 }
 0x58c   : > { %v11728_v60 = vpop.f32.mrf.mxu0 }
 0x58d   : > { %v15450_v12 = vadd.f32 %v11728_v60, %v15326_v6  ;;  %v8416_v6 = vadd.f32 %v15345_v2, %v15331_v53  ;;  %v8108_v60 = vadd.f32 %v15334_v42, %v7801_v33  ;;  %v15476_v57 = vpop.f32.mrf.mxu1  ;;  %v8111_v42 = vadd.f32 %v15343_v40, %v7804_v47  ;;  %v6031_v40 = vld [vmem:[#allocation2 + $0x31] sm:$0xff] }
 0x58e   : > { %v15454_v35 = vpop.f32.mrf.mxu0 }
 0x58f   : > { %15943 = vst [vmem:[#allocation64_spill] sm:$0xff] %v15450_v12  ;;  %15944 = vst [vmem:[#allocation34_spill] sm:$0xff] %v15454_v35  ;;  %v8414_v10 = vadd.f32 %v15347_v7, %v8108_v60  ;;  %v7805_v7 = vadd.f32 %v15213_v61, %v15201_v18  ;;  %v6032_v18 = vld [vmem:[#allocation2 + $0x39] sm:$0xff] }
 0x590   : > { %v11795_v58 = vpop.f32.mrf.mxu0 }
 0x591   : > { %v8721_v12 = vadd.f32 %v11795_v58, %v8415_v39  ;;  %v8417_v39 = vadd.f32 %v15359_v0, %v8111_v42  ;;  %v7808_v0 = vadd.f32 %v15221_v1, %v15209_v29 }
 0x592   : > { %v8592_v48 = vpop.f32.mrf.mxu0 }
 0x593   : > { %v8719_v35 = vadd.f32 %v8592_v48, %v8413_v13  ;;  %v8760_v2 = vadd.f32 %v15470_v26, %v8721_v12  ;;  %v6029_v48 = vld [vmem:[#allocation2 + $0x19] sm:$0xff]  ;;  %v6030_v12 = vld [vmem:[#allocation2 + $0x21] sm:$0xff]  ;;  %v8115_v1 = vadd.f32 %v15361_v54, %v7808_v0 }
 0x594   : > { %v11796_v63 = vpop.f32.mrf.mxu0  ;;  %v6035_v0 = vld [vmem:[#allocation2 + $0x61] sm:$0xff] }
 0x595   : > { %v8758_v21 = vadd.f32 %v15470_v26, %v8719_v35  ;;  %v8722_v32 = vadd.f32 %v11796_v63, %v8416_v6  ;;  %v8419_v35 = vadd.f32 %v15354_v46, %v15341_v37  ;;  %v15487_v6 = vpop.f32.mrf.mxu1  ;;  %v8792_v63 = vadd.f32 %v8760_v2, %v6031_v40 }
 0x596   : > { %v8595_v53 = vpop.f32.mrf.mxu0 }
 0x597   : > { %v8720_v33 = vadd.f32 %v8595_v53, %v8414_v10  ;;  %v8790_v13 = vadd.f32 %v8758_v21, %v6029_v48  ;;  %v8761_v24 = vadd.f32 %v15470_v26, %v8722_v32  ;;  %v8420_v21 = vadd.f32 %v15366_v38, %v15350_v59  ;;  %v15496_v48 = vpop.f32.mrf.mxu1 }
 0x598   : > { %v11799_v58 = vpop.f32.mrf.mxu0  ;;  %v8112_v32 = vadd.f32 %v15352_v16, %v7805_v7  ;;  %v8824_v38 = vmax.f32 %v8792_v63, 0.0 }
 0x599   : > { %v8759_v56 = vadd.f32 %v15470_v26, %v8720_v33  ;;  %v8725_v61 = vadd.f32 %v11799_v58, %v8419_v35  ;;  %v8822_v37 = vmax.f32 %v8790_v13, 0.0  ;;  %v8793_v46 = vadd.f32 %v8761_v24, %v6032_v18 }
 0x59a   : > { %v8608_v60 = vpop.f32.mrf.mxu0  ;;  %v8418_v2 = vadd.f32 %v15373_v55, %v8112_v32  ;;  %v7809_v24 = vadd.f32 %v15229_v20, %v15217_v44  ;;  %v8421_v35 = vadd.f32 %v15399_v8, %v8115_v1  ;;  %v6034_v44 = vld [vmem:[#allocation2 + $0x51] sm:$0xff]  ;;  %v8424_v8 = vadd.f32 %v15410_v50, %v15364_v23  ;;  %v6037_v23 = vld [vmem:[#allocation2 + $0x79] sm:$0xff] }
 0x59b   : > { %v8791_v47 = vadd.f32 %v8759_v56, %v6030_v12  ;;  %v8723_v10 = vadd.f32 %v8608_v60, %v8417_v39  ;;  %v6033_v39 = vld [vmem:[#allocation2 + $0x49] sm:$0xff]  ;;  %v8764_v58 = vadd.f32 %v15470_v26, %v8725_v61  ;;  %v8825_v55 = vmax.f32 %v8793_v46, 0.0  ;;  %v15505_v60 = vpop.f32.mrf.mxu1 }
 0x59c   : > { %v11800_v53 = vpop.f32.mrf.mxu0  ;;  %v8423_v12 = vadd.f32 %v15388_v17, %v15357_v25 }
 0x59d   : > { %v8823_v42 = vmax.f32 %v8791_v47, 0.0  ;;  %v8762_v33 = vadd.f32 %v15470_v26, %v8723_v10  ;;  %v8726_v56 = vadd.f32 %v11800_v53, %v8420_v21  ;;  %v8116_v10 = vadd.f32 %v15368_v30, %v7809_v24 }
 0x59e   : > { %v8611_v29 = vpop.f32.mrf.mxu0  ;;  %v8796_v18 = vadd.f32 %v8764_v58, %v6035_v0  ;;  %v7812_v53 = vadd.f32 %v15237_v62, %v15225_v45 }
 0x59f   : > { %v8854_v59 = vadd.f32 %v8823_v42, %v8822_v37  ;;  %v8794_v16 = vadd.f32 %v8762_v33, %v6033_v39  ;;  %v8724_v7 = vadd.f32 %v8611_v29, %v8418_v2  ;;  %v8765_v54 = vadd.f32 %v15470_v26, %v8726_v56  ;;  %v6036_v42 = vld [vmem:[#allocation2 + $0x69] sm:$0xff]  ;;  %v15516_v33 = vpop.f32.mrf.mxu1 }
 0x5a0   : > { %v11803_v13 = vpop.f32.mrf.mxu0  ;;  %v8422_v37 = vadd.f32 %v15417_v49, %v8116_v10  ;;  %v8119_v50 = vadd.f32 %v15375_v31, %v7812_v53 }
 0x5a1   : > { %v8855_v40 = vadd.f32 %v8854_v59, %v8824_v38  ;;  %v8763_v63 = vadd.f32 %v15470_v26, %v8724_v7  ;;  %v8826_v21 = vmax.f32 %v8794_v16, 0.0  ;;  %v8729_v25 = vadd.f32 %v11803_v13, %v8423_v12  ;;  %v15526_v24 = vpop.f32.mrf.mxu1 }
 0x5a2   : > { %v8624_v47 = vpop.f32.mrf.mxu0  ;;  %v8797_v2 = vadd.f32 %v8765_v54, %v6036_v42  ;;  %v8828_v38 = vmax.f32 %v8796_v18, 0.0  ;;  %v7813_v16 = vadd.f32 %v15245_v22, %v15233_v51  ;;  %v8425_v58 = vadd.f32 %v15431_v27, %v8119_v50  ;;  %v6039_v22 = vld [vmem:[#allocation2 + $0x91] sm:$0xff] }
 0x5a3   : > { %v8856_v32 = vadd.f32 %v8855_v40, %v8825_v55  ;;  %v8727_v20 = vadd.f32 %v8624_v47, %v8421_v35  ;;  %v8795_v61 = vadd.f32 %v8763_v63, %v6034_v44  ;;  %v8768_v45 = vadd.f32 %v15470_v26, %v8729_v25  ;;  %v6038_v40 = vld [vmem:[#allocation2 + $0x81] sm:$0xff]  ;;  %v6040_v44 = vld [vmem:[#allocation2 + $0x99] sm:$0xff] }
 0x5a4   : > { %v11804_v17 = vpop.f32.mrf.mxu0  ;;  %v8427_v13 = vadd.f32 %v15424_v19, %v15371_v36  ;;  %v8829_v31 = vmax.f32 %v8797_v2, 0.0  ;;  %v8428_v54 = vadd.f32 %v15438_v3, %v15385_v41  ;;  %v8120_v51 = vadd.f32 %v15390_v52, %v7813_v16  ;;  %v15536_v41 = vpop.f32.mrf.mxu1 }
 0x5a5   : > { %v8857_v46 = vadd.f32 %v8856_v32, %v8826_v21  ;;  %v8766_v30 = vadd.f32 %v15470_v26, %v8727_v20  ;;  %v8827_v39 = vmax.f32 %v8795_v61, 0.0  ;;  %v8730_v56 = vadd.f32 %v11804_v17, %v8424_v8  ;;  %v6041_v17 = vld [vmem:[#allocation2 + $0xa9] sm:$0xff] }
 0x5a6   : > { %v8627_v29 = vpop.f32.mrf.mxu0  ;;  %v8800_v47 = vadd.f32 %v8768_v45, %v6039_v22  ;;  %v7816_v21 = vadd.f32 %v15253_v43, %v15241_v9  ;;  %v8426_v32 = vadd.f32 %v15445_v4, %v8120_v51  ;;  %v7817_v42 = vadd.f32 %v15264_v15, %v15249_v11  ;;  %v15946_v45 = vld [vmem:[#allocation36_spill] sm:$0xff] }
 0x5a7   : > { %v8728_v1 = vadd.f32 %v8627_v29, %v8422_v37  ;;  %v8858_v59 = vadd.f32 %v8857_v46, %v8827_v39  ;;  %v8798_v62 = vadd.f32 %v8766_v30, %v6037_v23  ;;  %v8769_v55 = vadd.f32 %v15470_v26, %v8730_v56  ;;  %v15945_v39 = vld [vmem:[#allocation61_spill] sm:$0xff]  ;;  %v15546_v29 = vpop.f32.mrf.mxu1 }
 0x5a8   : > { %v11807_v49 = vpop.f32.mrf.mxu0  ;;  %v8123_v25 = vadd.f32 %v15401_v14, %v7816_v21  ;;  %v8832_v37 = vmax.f32 %v8800_v47, 0.0  ;;  %v8431_v56 = vadd.f32 %v15452_v34, %v15945_v39  ;;  %v8124_v11 = vadd.f32 %v15946_v45, %v7817_v42  ;;  %v6043_v15 = vld [vmem:[#allocation2 + $0xc1] sm:$0xff]  ;;  %v15954_v42 = vld [vmem:[#allocation39_spill] sm:$0xff] }
 0x5a9   : > { %v8767_v7 = vadd.f32 %v15470_v26, %v8728_v1  ;;  %v8859_v35 = vadd.f32 %v8858_v59, %v8828_v38  ;;  %v8830_v10 = vmax.f32 %v8798_v62, 0.0  ;;  %v8733_v36 = vadd.f32 %v11807_v49, %v8427_v13  ;;  %v6042_v1 = vld [vmem:[#allocation2 + $0xb1] sm:$0xff] }
 0x5aa   : > { %v8640_v12 = vpop.f32.mrf.mxu0  ;;  %v8801_v3 = vadd.f32 %v8769_v55, %v6040_v44  ;;  %v8429_v30 = vadd.f32 %v15462_v28, %v8123_v25  ;;  %v8432_v59 = vadd.f32 %v15476_v57, %v15407_v5  ;;  %v15947_v13 = vld [vmem:[#allocation6_spill] sm:$0xff]  ;;  %v8430_v55 = vadd.f32 %v15487_v6, %v8124_v11  ;;  %v11772_v57 = vpop.f32.mrf.mxu1  ;;  %v6048_v11 = vld [vmem:[#allocation2 + $0xf9] sm:$0xff] }
 0x5ab   : > { %v8799_v27 = vadd.f32 %v8767_v7, %v6038_v40  ;;  %v8731_v63 = vadd.f32 %v8640_v12, %v8425_v58  ;;  %v8860_v0 = vadd.f32 %v8859_v35, %v8829_v31  ;;  %v8772_v9 = vadd.f32 %v15470_v26, %v8733_v36  ;;  %v15948_v31 = vld [vmem:[#allocation27_spill] sm:$0xff]  ;;  %v6044_v40 = vld [vmem:[#allocation2 + $0xc9] sm:$0xff] }
 0x5ac   : > { %v11808_v19 = vpop.f32.mrf.mxu0  ;;  %v8833_v14 = vmax.f32 %v8801_v3, 0.0  ;;  %v7820_v35 = vadd.f32 %v15948_v31, %v15947_v13  ;;  %v15950_v6 = vld [vmem:[#allocation10_spill] sm:$0xff]  ;;  %v8385_v25 = vpop.f32.mrf.mxu1 }
 0x5ad   : > { %v8831_v20 = vmax.f32 %v8799_v27, 0.0  ;;  %v8770_v8 = vadd.f32 %v15470_v26, %v8731_v63  ;;  %v8861_v52 = vadd.f32 %v8860_v0, %v8830_v10  ;;  %v8734_v18 = vadd.f32 %v11808_v19, %v8428_v54  ;;  %v15949_v63 = vld [vmem:[#allocation35_spill] sm:$0xff]  ;;  %v6049_v13 = vld [vmem:[#allocation2 + $0x109] sm:$0xff] }
 0x5ae   : > { %v8643_v61 = vpop.f32.mrf.mxu0  ;;  %v8804_v49 = vadd.f32 %v8772_v9, %v6043_v15  ;;  %v8127_v47 = vadd.f32 %v15949_v63, %v7820_v35  ;;  %v6045_v10 = vld [vmem:[#allocation2 + $0xd9] sm:$0xff]  ;;  %v15960_v63 = vld [vmem:[#allocation37_spill] sm:$0xff] }
 0x5af   : > { %v8732_v53 = vadd.f32 %v8643_v61, %v8426_v32  ;;  %v8862_v46 = vadd.f32 %v8861_v52, %v8831_v20  ;;  %v8802_v43 = vadd.f32 %v8770_v8, %v6041_v17  ;;  %v8773_v23 = vadd.f32 %v15470_v26, %v8734_v18  ;;  %v15951_v20 = vld [vmem:[#allocation33_spill] sm:$0xff]  ;;  %v15952_v18 = vld [vmem:[#allocation30_spill] sm:$0xff] }
 0x5b0   : > { %v11811_v4 = vpop.f32.mrf.mxu0  ;;  %v8836_v36 = vmax.f32 %v8804_v49, 0.0  ;;  %v7821_v8 = vadd.f32 %v15951_v20, %v15950_v6  ;;  %v8433_v52 = vadd.f32 %v15505_v60, %v8127_v47  ;;  %v8435_v61 = vadd.f32 %v15496_v48, %v15952_v18  ;;  %v15962_v20 = vld [vmem:[#allocation13_spill] sm:$0xff] }
 0x5b1   : > { %v8771_v2 = vadd.f32 %v15470_v26, %v8732_v53  ;;  %v8863_v50 = vadd.f32 %v8862_v46, %v8832_v37  ;;  %v8834_v16 = vmax.f32 %v8802_v43, 0.0  ;;  %v8737_v34 = vadd.f32 %v11811_v4, %v8431_v56  ;;  %v6046_v46 = vld [vmem:[#allocation2 + $0xe1] sm:$0xff]  ;;  %v15953_v43 = vld [vmem:[#allocation31_spill] sm:$0xff] }
 0x5b2   : > { %v8656_v38 = vpop.f32.mrf.mxu0  ;;  %v8805_v51 = vadd.f32 %v8773_v23, %v6044_v40  ;;  %v8436_v4 = vadd.f32 %v15516_v33, %v15953_v43  ;;  %v11775_v33 = vpop.f32.mrf.mxu1  ;;  %v8439_v47 = vadd.f32 %v15536_v41, %v15960_v63  ;;  %v15963_v41 = vld [vmem:[#allocation8_spill] sm:$0xff] }
 0x5b3   : > { %v8803_v28 = vadd.f32 %v8771_v2, %v6042_v1  ;;  %v8735_v62 = vadd.f32 %v8656_v38, %v8429_v30  ;;  %v8864_v58 = vadd.f32 %v8863_v50, %v8833_v14  ;;  %v8776_v21 = vadd.f32 %v15470_v26, %v8737_v34  ;;  %v6047_v2 = vld [vmem:[#allocation2 + $0xf1] sm:$0xff]  ;;  %v15955_v1 = vld [vmem:[#allocation60_spill] sm:$0xff] }
 0x5b4   : > { %v11812_v7 = vpop.f32.mrf.mxu0  ;;  %v8837_v17 = vmax.f32 %v8805_v51, 0.0  ;;  %v8128_v30 = vadd.f32 %v15954_v42, %v7821_v8  ;;  %v15956_v38 = vld [vmem:[#allocation32_spill] sm:$0xff]  ;;  %v15957_v34 = vld [vmem:[#allocation26_spill] sm:$0xff] }
 0x5b5   : > { %v8835_v12 = vmax.f32 %v8803_v28, 0.0  ;;  %v8774_v54 = vadd.f32 %v15470_v26, %v8735_v62  ;;  %v8865_v5 = vadd.f32 %v8864_v58, %v8834_v16  ;;  %v8738_v22 = vadd.f32 %v11812_v7, %v8432_v59 }
 0x5b6   : > { %v8659_v27 = vpop.f32.mrf.mxu0  ;;  %v8808_v56 = vadd.f32 %v8776_v21, %v6047_v2  ;;  %v7824_v59 = vadd.f32 %v15956_v38, %v15955_v1  ;;  %v8434_v45 = vadd.f32 %v15526_v24, %v8128_v30  ;;  %v15958_v24 = vld [vmem:[#allocation5_spill] sm:$0xff]  ;;  %v6050_v21 = vld [vmem:[#allocation2 + $0x111] sm:$0xff] }
 0x5b7   : > { %v8736_v0 = vadd.f32 %v8659_v27, %v8430_v55  ;;  %v8866_v19 = vadd.f32 %v8865_v5, %v8835_v12  ;;  %v8806_v32 = vadd.f32 %v8774_v54, %v6045_v10  ;;  %v8777_v37 = vadd.f32 %v15470_v26, %v8738_v22  ;;  %v15959_v5 = vld [vmem:[#allocation62_spill] sm:$0xff]  ;;  %v8398_v10 = vpop.f32.mrf.mxu1 }
 0x5b8   : > { %v11815_v44 = vpop.f32.mrf.mxu0  ;;  %v8131_v7 = vadd.f32 %v15957_v34, %v7824_v59  ;;  %v8840_v35 = vmax.f32 %v8808_v56, 0.0  ;;  %v7825_v51 = vadd.f32 %v15959_v5, %v15958_v24  ;;  %v6055_v5 = vld [vmem:[#allocation2 + $0x151] sm:$0xff] }
 0x5b9   : > { %v8775_v3 = vadd.f32 %v15470_v26, %v8736_v0  ;;  %v8867_v53 = vadd.f32 %v8866_v19, %v8836_v36  ;;  %v8838_v14 = vmax.f32 %v8806_v32, 0.0  ;;  %v8741_v23 = vadd.f32 %v11815_v44, %v8435_v61  ;;  %v15961_v44 = vld [vmem:[#allocation70_spill] sm:$0xff]  ;;  %v11776_v2 = vpop.f32.mrf.mxu1 }
 0x5ba   : > { %v8672_v9 = vpop.f32.mrf.mxu0  ;;  %v8809_v49 = vadd.f32 %v8777_v37, %v6048_v11  ;;  %v8437_v22 = vadd.f32 %v15546_v29, %v8131_v7  ;;  %v8440_v6 = vadd.f32 %v11772_v57, %v15961_v44  ;;  %v8132_v8 = vadd.f32 %v15962_v20, %v7825_v51 }
 0x5bb   : > { %v8807_v39 = vadd.f32 %v8775_v3, %v6046_v46  ;;  %v8739_v60 = vadd.f32 %v8672_v9, %v8433_v52  ;;  %v8868_v50 = vadd.f32 %v8867_v53, %v8837_v17  ;;  %v8780_v40 = vadd.f32 %v15470_v26, %v8741_v23  ;;  %v6051_v52 = vld [vmem:[#allocation2 + $0x121] sm:$0xff]  ;;  %v15964_v46 = vld [vmem:[#allocation7_spill] sm:$0xff]  ;;  %v8401_v34 = vpop.f32.mrf.mxu1 }
 0x5bc   : > { %v11816_v48 = vpop.f32.mrf.mxu0  ;;  %v8841_v0 = vmax.f32 %v8809_v49, 0.0  ;;  %v7828_v9 = vadd.f32 %v15964_v46, %v15963_v41  ;;  %v8438_v43 = vadd.f32 %v8385_v25, %v8132_v8  ;;  %v6053_v23 = vld [vmem:[#allocation2 + $0x139] sm:$0xff]  ;;  %v6057_v8 = vld [vmem:[#allocation2 + $0x169] sm:$0xff]  ;;  %v6058_v46 = vld [vmem:[#allocation2 + $0x171] sm:$0xff] }
 0x5bd   : > { %v8839_v15 = vmax.f32 %v8807_v39, 0.0  ;;  %v8778_v28 = vadd.f32 %v15470_v26, %v8739_v60  ;;  %v8869_v62 = vadd.f32 %v8868_v50, %v8838_v14  ;;  %v8742_v16 = vadd.f32 %v11816_v48, %v8436_v4  ;;  %v6052_v4 = vld [vmem:[#allocation2 + $0x129] sm:$0xff]  ;;  %v15966_v25 = vld [vmem:[#allocation63_spill] sm:$0xff] }
 0x5be   : > { %v8675_v58 = vpop.f32.mrf.mxu0  ;;  %v8812_v29 = vadd.f32 %v8780_v40, %v6051_v52  ;;  %v15965_v14 = vld [vmem:[#allocation73_spill] sm:$0xff]  ;;  %v15969_v40 = vld [vmem:[#allocation34_spill] sm:$0xff] }
 0x5bf   : > { %v8740_v31 = vadd.f32 %v8675_v58, %v8434_v45  ;;  %v8870_v55 = vadd.f32 %v8869_v62, %v8839_v15  ;;  %v8810_v12 = vadd.f32 %v8778_v28, %v6049_v13  ;;  %v8781_v19 = vadd.f32 %v15470_v26, %v8742_v16  ;;  %v15967_v15 = vld [vmem:[#allocation9_spill] sm:$0xff] }
 0x5c0   : > { %v11819_v54 = vpop.f32.mrf.mxu0  ;;  %v8135_v50 = vadd.f32 %v15965_v14, %v7828_v9  ;;  %v8844_v1 = vmax.f32 %v8812_v29, 0.0  ;;  %v7829_v28 = vadd.f32 %v15967_v15, %v15966_v25  ;;  %v15968_v16 = vld [vmem:[#allocation41_spill] sm:$0xff] }
 0x5c1   : > { %v8779_v27 = vadd.f32 %v15470_v26, %v8740_v31  ;;  %v8871_v36 = vadd.f32 %v8870_v55, %v8840_v35  ;;  %v8842_v61 = vmax.f32 %v8810_v12, 0.0  ;;  %v8745_v53 = vadd.f32 %v11819_v54, %v8439_v47  ;;  %v6054_v35 = vld [vmem:[#allocation2 + $0x141] sm:$0xff] }
 0x5c2   : > { %v8688_v32 = vpop.f32.mrf.mxu0  ;;  %v8813_v39 = vadd.f32 %v8781_v19, %v6052_v4  ;;  %v8441_v62 = vadd.f32 %v8398_v10, %v8135_v50  ;;  %v8443_v58 = vadd.f32 %v11775_v33, %v15968_v16  ;;  %v8136_v12 = vadd.f32 %v15969_v40, %v7829_v28  ;;  %v15970_v54 = vld [vmem:[#allocation64_spill] sm:$0xff] }
 0x5c3   : > { %v8811_v3 = vadd.f32 %v8779_v27, %v6050_v21  ;;  %v8743_v18 = vadd.f32 %v8688_v32, %v8437_v22  ;;  %v8872_v17 = vadd.f32 %v8871_v36, %v8841_v0  ;;  %v8784_v59 = vadd.f32 %v15470_v26, %v8745_v53  ;;  %v6056_v36 = vld [vmem:[#allocation2 + $0x159] sm:$0xff]  ;;  %v6059_v9 = vld [vmem:[#allocation2 + $0x181] sm:$0xff] }
 0x5c4   : > { %v11820_v37 = vpop.f32.mrf.mxu0  ;;  %v8845_v7 = vmax.f32 %v8813_v39, 0.0  ;;  %v8444_v24 = vadd.f32 %v11776_v2, %v15970_v54  ;;  %v8442_v33 = vadd.f32 %v8401_v34, %v8136_v12  ;;  %v6060_v2 = vld [vmem:[#allocation2 + $0x189] sm:$0xff]  ;;  %v9861_v28 = vld [vmem:[%s15617_s8] ss:$0 sm:$0xff] }
 0x5c5   : > { %v8843_v42 = vmax.f32 %v8811_v3, 0.0  ;;  %v8782_v30 = vadd.f32 %v15470_v26, %v8743_v18  ;;  %v8873_v57 = vadd.f32 %v8872_v17, %v8842_v61  ;;  %v8746_v60 = vadd.f32 %v11820_v37, %v8440_v6 }
 0x5c6   : > { %v8691_v56 = vpop.f32.mrf.mxu0  ;;  %v8816_v27 = vadd.f32 %v8784_v59, %v6055_v5 }
 0x5c7   : > { %v8744_v48 = vadd.f32 %v8691_v56, %v8438_v43  ;;  %v8874_v38 = vadd.f32 %v8873_v57, %v8843_v42  ;;  %v8814_v45 = vadd.f32 %v8782_v30, %v6053_v23  ;;  %v8785_v31 = vadd.f32 %v15470_v26, %v8746_v60 }
 0x5c8   : > { %v11823_v11 = vpop.f32.mrf.mxu0  ;;  %v8848_v3 = vmax.f32 %v8816_v27, 0.0 }
 0x5c9   : > { %v8783_v49 = vadd.f32 %v15470_v26, %v8744_v48  ;;  %v8875_v13 = vadd.f32 %v8874_v38, %v8844_v1  ;;  %v8846_v63 = vmax.f32 %v8814_v45, 0.0  ;;  %v8749_v10 = vadd.f32 %v11823_v11, %v8443_v58 }
 0x5ca   : > { %v8704_v55 = vpop.f32.mrf.mxu0  ;;  %v8817_v44 = vadd.f32 %v8785_v31, %v6056_v36 }
 0x5cb   : > { %v8815_v51 = vadd.f32 %v8783_v49, %v6054_v35  ;;  %v8747_v22 = vadd.f32 %v8704_v55, %v8441_v62  ;;  %v8876_v47 = vadd.f32 %v8875_v13, %v8845_v7  ;;  %v8788_v29 = vadd.f32 %v15470_v26, %v8749_v10 }
 0x5cc   : > { %v11824_v0 = vpop.f32.mrf.mxu0  ;;  %v8849_v53 = vmax.f32 %v8817_v44, 0.0 }
 0x5cd   : > { %v8847_v19 = vmax.f32 %v8815_v51, 0.0  ;;  %v8786_v21 = vadd.f32 %v15470_v26, %v8747_v22  ;;  %v8877_v32 = vadd.f32 %v8876_v47, %v8846_v63  ;;  %v8750_v6 = vadd.f32 %v11824_v0, %v8444_v24 }
 0x5ce   : > { %v8707_v20 = vpop.f32.mrf.mxu0  ;;  %v8820_v4 = vadd.f32 %v8788_v29, %v6059_v9 }
 0x5cf   : > { %v8748_v52 = vadd.f32 %v8707_v20, %v8442_v33  ;;  %v8878_v18 = vadd.f32 %v8877_v32, %v8847_v19  ;;  %v8818_v61 = vadd.f32 %v8786_v21, %v6057_v8  ;;  %v8789_v41 = vadd.f32 %v15470_v26, %v8750_v6 }
 0x5d0   : > { %v8852_v56 = vmax.f32 %v8820_v4, 0.0 }
 0x5d1   : > { %v8787_v17 = vadd.f32 %v15470_v26, %v8748_v52  ;;  %v8879_v37 = vadd.f32 %v8878_v18, %v8848_v3  ;;  %v8850_v42 = vmax.f32 %v8818_v61, 0.0  ;;  %v8821_v60 = vadd.f32 %v8789_v41, %v6060_v2 }
 0x5d3   : > { %v8819_v43 = vadd.f32 %v8787_v17, %v6058_v46  ;;  %v8880_v30 = vadd.f32 %v8879_v37, %v8849_v53  ;;  %v8853_v50 = vmax.f32 %v8821_v60, 0.0 }
 0x5d5   : > { %v8851_v57 = vmax.f32 %v8819_v43, 0.0  ;;  %v8881_v39 = vadd.f32 %v8880_v30, %v8850_v42 }
 0x5d7   : > { %v8882_v14 = vadd.f32 %v8881_v39, %v8851_v57 }
 0x5d9   : > { %v8883_v23 = vadd.f32 %v8882_v14, %v8852_v56 }
 0x5db   : > { %v8884_v48 = vadd.f32 %v8883_v23, %v8853_v50 }
 0x5dd   : > { %v8885_v1 = vrot.slane %v8884_v48, 4 }
 0x5df   : > { %v8886_v38 = vadd.f32 %v8885_v1, %v8884_v48 }
 0x5e1   : > { %v8887_v59 = vrot.slane %v8886_v38, 2 }
 0x5e3   : > { %v8888_v26 = vadd.f32 %v8887_v59, %v8886_v38 }
 0x5e5   : > { %v8889_v45 = vrot.slane %v8888_v26, 1 }
 0x5e7   : > { %v8890_v11 = vadd.f32 %v8889_v45, %v8888_v26 }
 0x5e9   : > { %v8892_v25 = vmul.f32 0.00390625, %v8890_v11 }
 0x5eb   : > { %v8893_v15 = vpack.c.bf16 %v8892_v25, %v8892_v25 }
 0x5ed   : > { %11842 = vmatmul.mubr.bf16.vlgmr.msra.gmra.mxu1 %v8893_v15 }
 0x6ad   : > { %v8999_v62 = vpop.f32.mrf.mxu1 }
 0x6ae   : > { %v9000_v49 = vadd.f32 %v9861_v28, %v8999_v62 }
 0x6af   : > { %v11843_v16 = vpop.f32.mrf.mxu1 }
 0x6b0   : > { %9005 = vst [vmem:[%s330_s25] sm:$0xff] %v9000_v49 }
 0x6b1   : > { %v9002_v58 = vpop.f32.mrf.mxu1 }
 0x6b3   : > { %v11844_v34 = vpop.f32.mrf.mxu1 }
 0x6b4 PF: > { %s19_s30 = sadd.s32 1, %s12105_s30  }
 0x6b5   : > { %p16_p4 = scmp.ge.s32.totalorder %s19_s30, 4  }
 0x6b7   :  { %18 = sbr.rel (!%p16_p4) target bundleno = 1 (0x1), region = 116 }

</bundles_post_ra>
